<compile_context>
chip_gen: v7x
topology: tpu7x:2x2x1
jax: 0.10.0
libtpu: 0.0.40
codegen_flags: <defaults>
</compile_context>

<pallas_src>
import math

import jax
import jax.numpy as jnp
import numpy as np
from jax.experimental import pallas as pl
from jax.experimental.pallas import tpu as pltpu


# ----------------------------- Pallas kernel ------------------------------ #

def pointnet_mlp_kernel(x_ref, valid_ref,
                        w1_ref, b1_ref, w2_ref, b2_ref, w3_ref, b3_ref,
                        o_ref):
    """One (batch, point-tile) step of the fused 3-layer 1x1-conv MLP.

    x_ref:     (1, Cin, TN)  f32 point tile (channels in sublanes, points in lanes)
    valid_ref: (1, 1,  TN)   f32 lane-dense per-point validity mask
    w1_ref:    (C1, Cin) f32 BN-folded conv1 weight (layer 1 kept in f32)
    w2_ref:    (C2, C1)  cdt BN-folded conv2 weight (cdt = f32 or bf16)
    w3_ref:    (C3, C2)  cdt BN-folded conv3 weight
    b*_ref:    (C*, 1)   f32 BN-folded biases (added after the f32-acc dot)
    o_ref:     (1, C3, TN)   output tile
    """
    cdt = w2_ref.dtype
    x = x_ref[0]                                               # (Cin, TN) f32
    h = jnp.dot(w1_ref[...], x, preferred_element_type=jnp.float32) + b1_ref[...]
    h = jnp.maximum(h, 0.0)
    h = jnp.dot(w2_ref[...], h.astype(cdt),
                preferred_element_type=jnp.float32) + b2_ref[...]
    h = jnp.maximum(h, 0.0)
    h = jnp.dot(w3_ref[...], h.astype(cdt),
                preferred_element_type=jnp.float32) + b3_ref[...]
    h = jnp.maximum(h, 0.0)
    # valid broadcasts over the channel (sublane) axis.
    o_ref[0] = (h * valid_ref[0]).astype(o_ref.dtype)


# ------------------------------ host wrapper ------------------------------- #

def _round_up(x, m):
    return ((x + m - 1) // m) * m


def _cdiv(a, b):
    return (a + b - 1) // b


def _pad_rows(c, itemsize):
    """Sublane-padded row count (8 rows for 32-bit, 16 for bf16, 32 for 8-bit)."""
    if c <= 0:
        return 0
    mult = 8 * max(1, 4 // int(itemsize))
    return _round_up(int(c), mult)


def _vmem_estimate_bytes(tile, cin, c1, c2, c3, out_isz, comp_isz):
    """Rough VMEM bytes for one pipeline stage at point-tile `tile` (lanes)."""
    p = _pad_rows
    dbl_io = 2 * tile * (p(cin, 4) * 4            # x tile (f32), double-buffered
                         + p(1, 4) * 4            # valid row, double-buffered
                         + p(c3, out_isz) * out_isz)   # output tile, double-buffered
    inter = tile * ((p(c1, 4) + p(c2, 4) + p(c3, 4)) * 4          # f32 relu outputs
                    + (p(c1, comp_isz) + p(c2, comp_isz)) * comp_isz)  # casts fed to MXU
    return dbl_io + inter + (2 << 20)             # params + Mosaic internal scratch slack


def _detect_num_tensorcores():
    """Best-effort: v7x has 2 TensorCores per chip; v5e/v6e have 1."""
    try:
        kind = (jax.devices()[0].device_kind or "").lower()
        if "v7" in kind or "7x" in kind:
            return 2
    except Exception:
        pass
    return 1


def _choose_tile(n, cin, c1, c2, c3, out_isz, comp_isz, num_cores, budget):
    """Point tile (lanes): multiple of 128 (or the full extent), no host padding."""
    n_blocks = _cdiv(n, 128)
    fixed = _vmem_estimate_bytes(0, cin, c1, c2, c3, out_isz, comp_isz)
    per_block = max(1, _vmem_estimate_bytes(128, cin, c1, c2, c3, out_isz, comp_isz) - fixed)
    max_blocks = max(1, (budget - fixed) // per_block)
    steps = _cdiv(n_blocks, max_blocks)
    if num_cores > 1 and n_blocks > 1:
        # Even split across v7x's two TensorCores; no benefit on 1-TC chips.
        steps = _round_up(max(steps, num_cores), num_cores)
    tile = _cdiv(n_blocks, steps) * 128
    if tile >= n:
        tile = n            # full-extent block: always a legal block shape
    return tile


def pointnet_module_forward(grouped_pc, valid, params, *,
                            compute_dtype=jnp.float32, out_dtype=None,
                            num_tensorcores=None, vmem_budget_bytes=24 << 20):
    """grouped_pc: (B, Cin, npoint, k) NCHW; valid: (B, 1, npoint, 1).

    Returns (B, C3, npoint, k): conv1 -> conv2 -> conv3 (1x1 conv + folded
    eval-BN + ReLU) followed by the `* valid` mask, as in the PyTorch module.
    """
    w1, b1, w2, b2, w3, b3 = params
    B, Cin, npoint, k = grouped_pc.shape
    C1, C2, C3 = w1.shape[0], w2.shape[0], w3.shape[0]
    N = npoint * k                                     # points per batch element
    out_dtype = out_dtype if out_dtype is not None else grouped_pc.dtype
    out_isz = jnp.dtype(out_dtype).itemsize
    comp_isz = jnp.dtype(compute_dtype).itemsize

    # ---- layout: NCHW -> (B, C, N).  Pure reshapes (no HBM transpose) for any B.
    # x / layer-1 operands stay f32 even on the bf16 path (input is tiny: Cin x N).
    x = grouped_pc.reshape(B, Cin, N).astype(jnp.float32)
    valid_row = jnp.broadcast_to(valid.astype(jnp.float32),
                                 (B, 1, npoint, k)).reshape(B, 1, N)

    # ---- tile / grid selection: no host padding, no post-kernel slice.
    ncores = _detect_num_tensorcores() if num_tensorcores is None else int(num_tensorcores)
    tile = _choose_tile(N, Cin, C1, C2, C3, out_isz, comp_isz, ncores, vmem_budget_bytes)
    lane_steps = _cdiv(N, tile)

    est = _vmem_estimate_bytes(_round_up(tile, 128), Cin, C1, C2, C3, out_isz, comp_isz)
    vmem_limit = int(est + (4 << 20))       # tight limit + headroom (v7x has 64 MiB total)

    # Weights: layer-1 stays f32; layers 2/3 in compute dtype; biases f32
    # (added after the f32-accumulating dot).
    w1c = w1.astype(jnp.float32)
    w2c, w3c = w2.astype(compute_dtype), w3.astype(compute_dtype)
    b1c = b1.reshape(C1, 1).astype(jnp.float32)
    b2c = b2.reshape(C2, 1).astype(jnp.float32)
    b3c = b3.reshape(C3, 1).astype(jnp.float32)

    def param_spec(r, c):
        return pl.BlockSpec((r, c), lambda b, i: (0, 0))   # tiny, constant across grid

    flops = 2 * B * N * (Cin * C1 + C1 * C2 + C2 * C3)
    bytes_accessed = (B * N * (Cin * 4 + 4 + C3 * out_isz)
                      + 4 * (C1 * Cin + C1 + C2 + C3)
                      + comp_isz * (C2 * C1 + C3 * C2))
    cost = pl.CostEstimate(flops=int(flops), transcendentals=0,
                           bytes_accessed=int(bytes_accessed))

    out = pl.pallas_call(
        pointnet_mlp_kernel,
        out_shape=jax.ShapeDtypeStruct((B, C3, N), out_dtype),
        grid_spec=pltpu.PrefetchScalarGridSpec(
            num_scalar_prefetch=0,
            grid=(B, lane_steps),
            in_specs=[
                pl.BlockSpec((1, Cin, tile), lambda b, i: (b, 0, i)),   # x
                pl.BlockSpec((1, 1, tile), lambda b, i: (b, 0, i)),     # valid row
                param_spec(C1, Cin), param_spec(C1, 1),
                param_spec(C2, C1), param_spec(C2, 1),
                param_spec(C3, C2), param_spec(C3, 1),
            ],
            out_specs=pl.BlockSpec((1, C3, tile), lambda b, i: (b, 0, i)),
        ),
        compiler_params=pltpu.CompilerParams(
            dimension_semantics=("parallel", "parallel"),
            vmem_limit_bytes=vmem_limit),
        cost_estimate=cost,
    )(x, valid_row, w1c, b1c, w2c, b2c, w3c, b3c)

    # (B, C3, N) -> NCHW is a pure reshape for any B (no moveaxis).
    return out.reshape(B, C3, npoint, k)


# ------------------------ parameter construction -------------------------- #

def make_params(key, cin, mlp, eps=1e-5):
    """Kaiming-normal 1x1 conv weights (bias 0) + identity eval BN, folded.

    Weights are stored PyTorch-style (Cout, Cin); biases as (Cout,).
    For non-identity BN stats the fold would be:
        w' = w * gamma / sqrt(var + eps);  b' = (b - mean) * gamma / sqrt(var + eps) + beta
    """
    ks = jax.random.split(key, 3)
    dims = [cin] + list(mlp)
    bn_scale = 1.0 / math.sqrt(1.0 + eps)   # mean=0, var=1, gamma=1, beta=0
    params = []
    for li in range(3):
        fan_in = dims[li]                    # 1x1 kernel
        std = math.sqrt(2.0 / fan_in)
        w = std * jax.random.normal(ks[li], (dims[li + 1], dims[li]),
                                    dtype=jnp.float32)
        b = jnp.zeros((dims[li + 1],), dtype=jnp.float32)
        params.extend([w * bn_scale, b * bn_scale])
    return tuple(params)


def reference_forward(grouped_pc, valid, params):
    """Pure-JAX f32 reference (same math, NCHW in/out)."""
    w1, b1, w2, b2, w3, b3 = params
    B, Cin, P, K = grouped_pc.shape
    x = grouped_pc.reshape(B, Cin, P * K)
    h = jnp.maximum(jnp.einsum('oc,bcn->bon', w1, x) + b1[None, :, None], 0.0)
    h = jnp.maximum(jnp.einsum('oc,bcn->bon', w2, h) + b2[None, :, None], 0.0)
    h = jnp.maximum(jnp.einsum('oc,bcn->bon', w3, h) + b3[None, :, None], 0.0)
    h = h.reshape(B, -1, P, K)
    return h * valid


# --------------------------------- main ------------------------------------ #

if __name__ == "__main__":
    # Module-consistent shapes: batch=1 (hard-coded in the torch forward),
    # Infea=0 (=> use_feature=False), use_xyz=True => conv1 in-channels = 3,
    # npoint=280 (module default), nsample=32, mlp=(16, 32, 64).
    B, CIN, NPOINT, NSAMPLE = 1, 3, 280, 32
    MLP = (16, 32, 64)

    key = jax.random.PRNGKey(0)
    k_pc, k_valid, k_par, k_pc2, k_valid2 = jax.random.split(key, 5)

    grouped_pc = jax.random.normal(k_pc, (B, CIN, NPOINT, NSAMPLE),
                                   dtype=jnp.float32)
    valid = (jax.random.uniform(k_valid, (B, 1, NPOINT, 1)) > 0.3)
    valid = valid.astype(jnp.float32)
    params = make_params(k_par, CIN, MLP)

    ref = jax.block_until_ready(reference_forward(grouped_pc, valid, params))

    # f32 path (bit-faithful to the PyTorch module semantics).
    out_f32 = jax.block_until_ready(
        pointnet_module_forward(grouped_pc, valid, params))
    np.testing.assert_allclose(np.asarray(out_f32), np.asarray(ref),
                               rtol=1e-5, atol=1e-5)

    # bf16 layer-2/3 weights + intermediates + output (x / layer-1 stays f32);
    # halves the dominant 64xN output HBM stream on all generations.
    out_bf16 = jax.block_until_ready(
        pointnet_module_forward(grouped_pc, valid, params,
                                compute_dtype=jnp.bfloat16,
                                out_dtype=jnp.bfloat16))
    np.testing.assert_allclose(np.asarray(out_bf16.astype(jnp.float32)),
                               np.asarray(ref), rtol=5e-2, atol=5e-2)

    # Small B > 1 smoke test: exercises the (batch, point-tile) grid path that
    # replaces the v2 host-side moveaxis transpose.
    pc2 = jax.random.normal(k_pc2, (2, CIN, 24, 8), dtype=jnp.float32)
    valid2 = (jax.random.uniform(k_valid2, (2, 1, 24, 1)) > 0.3).astype(jnp.float32)
    ref2 = reference_forward(pc2, valid2, params)
    out2 = jax.block_until_ready(pointnet_module_forward(pc2, valid2, params))
    np.testing.assert_allclose(np.asarray(out2), np.asarray(ref2),
                               rtol=1e-5, atol=1e-5)

    # TODO(synk): QueryDepthPoint / the torch.gather branch (use_feature=True)
    # reference an undefined `indices` in the original forward and are dead
    # code for Infea=0; they are intentionally not reproduced.
    print("KERNEL_OK")
</pallas_src>

<mosaic_0001>
module attributes {stable_mosaic.version = 11 : i64} {
  func.func @pointnet_mlp_kernel(%arg0: i32, %arg1: i32, %arg2: memref<1x3x8960xf32, #tpu.memory_space<vmem>>, %arg3: memref<1x1x8960xf32, #tpu.memory_space<vmem>>, %arg4: memref<16x3xf32, #tpu.memory_space<vmem>>, %arg5: memref<16x1xf32, #tpu.memory_space<vmem>>, %arg6: memref<32x16xf32, #tpu.memory_space<vmem>>, %arg7: memref<32x1xf32, #tpu.memory_space<vmem>>, %arg8: memref<64x32xf32, #tpu.memory_space<vmem>>, %arg9: memref<64x1xf32, #tpu.memory_space<vmem>>, %arg10: memref<1x64x8960xf32, #tpu.memory_space<vmem>>) attributes {dimension_semantics = [#tpu.dimension_semantics<parallel>, #tpu.dimension_semantics<parallel>], iteration_bounds = array<i64: 1, 1>, scalar_prefetch = 0 : i64, scratch_operands = 0 : i64, tpu.core_type = #tpu.core_type<tc>, window_params = [{transform_indices = @transform_0, window_bounds = array<i64: 1, 3, 8960>}, {transform_indices = @transform_1, window_bounds = array<i64: 1, 1, 8960>}, {pipeline_mode = #tpu.pipeline_mode<synchronous>, transform_indices = @transform_2, window_bounds = array<i64: 16, 3>}, {pipeline_mode = #tpu.pipeline_mode<synchronous>, transform_indices = @transform_3, window_bounds = array<i64: 16, 1>}, {pipeline_mode = #tpu.pipeline_mode<synchronous>, transform_indices = @transform_4, window_bounds = array<i64: 32, 16>}, {pipeline_mode = #tpu.pipeline_mode<synchronous>, transform_indices = @transform_5, window_bounds = array<i64: 32, 1>}, {pipeline_mode = #tpu.pipeline_mode<synchronous>, transform_indices = @transform_6, window_bounds = array<i64: 64, 32>}, {pipeline_mode = #tpu.pipeline_mode<synchronous>, transform_indices = @transform_7, window_bounds = array<i64: 64, 1>}, {transform_indices = @transform_8, window_bounds = array<i64: 1, 64, 8960>}]} {
    %c0 = arith.constant 0 : index
    %c0_0 = arith.constant 0 : index
    %c0_1 = arith.constant 0 : index
    %0 = vector.load %arg2[%c0, %c0_0, %c0_1] : memref<1x3x8960xf32, #tpu.memory_space<vmem>>, vector<1x3x8960xf32>
    %1 = vector.shape_cast %0 : vector<1x3x8960xf32> to vector<3x8960xf32>
    %c0_2 = arith.constant 0 : index
    %c0_3 = arith.constant 0 : index
    %2 = vector.load %arg4[%c0_2, %c0_3] : memref<16x3xf32, #tpu.memory_space<vmem>>, vector<16x3xf32>
    %cst = arith.constant dense<0.000000e+00> : vector<16x8960xf32>
    %3 = tpu.matmul %2, %1, %cst {dimension_numbers = #tpu.dot_dimension_numbers<[1], [0], [0], [1], [0, 0, 1, 1], [], []>} : vector<16x3xf32>, vector<3x8960xf32>, vector<16x8960xf32> -> vector<16x8960xf32>
    %c0_4 = arith.constant 0 : index
    %c0_5 = arith.constant 0 : index
    %4 = vector.load %arg5[%c0_4, %c0_5] : memref<16x1xf32, #tpu.memory_space<vmem>>, vector<16x1xf32>
    %5 = vector.broadcast %4 : vector<16x1xf32> to vector<16x8960xf32>
    %6 = arith.addf %3, %5 : vector<16x8960xf32>
    %cst_6 = arith.constant 0.000000e+00 : f32
    %7 = vector.broadcast %cst_6 : f32 to vector<16x8960xf32>
    %8 = arith.maximumf %6, %7 : vector<16x8960xf32>
    %c0_7 = arith.constant 0 : index
    %c0_8 = arith.constant 0 : index
    %9 = vector.load %arg6[%c0_7, %c0_8] : memref<32x16xf32, #tpu.memory_space<vmem>>, vector<32x16xf32>
    %cst_9 = arith.constant dense<0.000000e+00> : vector<32x8960xf32>
    %10 = tpu.matmul %9, %8, %cst_9 {dimension_numbers = #tpu.dot_dimension_numbers<[1], [0], [0], [1], [0, 0, 1, 1], [], []>} : vector<32x16xf32>, vector<16x8960xf32>, vector<32x8960xf32> -> vector<32x8960xf32>
    %c0_10 = arith.constant 0 : index
    %c0_11 = arith.constant 0 : index
    %11 = vector.load %arg7[%c0_10, %c0_11] : memref<32x1xf32, #tpu.memory_space<vmem>>, vector<32x1xf32>
    %12 = vector.broadcast %11 : vector<32x1xf32> to vector<32x8960xf32>
    %13 = arith.addf %10, %12 : vector<32x8960xf32>
    %cst_12 = arith.constant 0.000000e+00 : f32
    %14 = vector.broadcast %cst_12 : f32 to vector<32x8960xf32>
    %15 = arith.maximumf %13, %14 : vector<32x8960xf32>
    %c0_13 = arith.constant 0 : index
    %c0_14 = arith.constant 0 : index
    %16 = vector.load %arg8[%c0_13, %c0_14] : memref<64x32xf32, #tpu.memory_space<vmem>>, vector<64x32xf32>
    %cst_15 = arith.constant dense<0.000000e+00> : vector<64x8960xf32>
    %17 = tpu.matmul %16, %15, %cst_15 {dimension_numbers = #tpu.dot_dimension_numbers<[1], [0], [0], [1], [0, 0, 1, 1], [], []>} : vector<64x32xf32>, vector<32x8960xf32>, vector<64x8960xf32> -> vector<64x8960xf32>
    %c0_16 = arith.constant 0 : index
    %c0_17 = arith.constant 0 : index
    %18 = vector.load %arg9[%c0_16, %c0_17] : memref<64x1xf32, #tpu.memory_space<vmem>>, vector<64x1xf32>
    %19 = vector.broadcast %18 : vector<64x1xf32> to vector<64x8960xf32>
    %20 = arith.addf %17, %19 : vector<64x8960xf32>
    %cst_18 = arith.constant 0.000000e+00 : f32
    %21 = vector.broadcast %cst_18 : f32 to vector<64x8960xf32>
    %22 = arith.maximumf %20, %21 : vector<64x8960xf32>
    %c0_19 = arith.constant 0 : index
    %c0_20 = arith.constant 0 : index
    %c0_21 = arith.constant 0 : index
    %23 = vector.load %arg3[%c0_19, %c0_20, %c0_21] : memref<1x1x8960xf32, #tpu.memory_space<vmem>>, vector<1x1x8960xf32>
    %24 = vector.shape_cast %23 : vector<1x1x8960xf32> to vector<1x8960xf32>
    %25 = vector.broadcast %24 : vector<1x8960xf32> to vector<64x8960xf32>
    %26 = arith.mulf %22, %25 : vector<64x8960xf32>
    %c0_22 = arith.constant 0 : index
    %c0_23 = arith.constant 0 : index
    %c0_24 = arith.constant 0 : index
    %27 = vector.load %arg10[%c0_22, %c0_23, %c0_24] : memref<1x64x8960xf32, #tpu.memory_space<vmem>>, vector<1x64x8960xf32>
    %28 = vector.shape_cast %27 : vector<1x64x8960xf32> to vector<64x8960xf32>
    %29 = vector.shape_cast %26 : vector<64x8960xf32> to vector<1x64x8960xf32>
    tpu.vector_store %arg10[%c0_22, %c0_23, %c0_24], %29 {strides = array<i32>} : memref<1x64x8960xf32, #tpu.memory_space<vmem>>, vector<1x64x8960xf32>,
    return
  }
  func.func @transform_0(%arg0: i32, %arg1: i32) -> (i32, i32, i32) {
    %c0_i32 = arith.constant 0 : i32
    %c0_i32_0 = arith.constant 0 : i32
    return %arg0, %c0_i32, %arg1 : i32, i32, i32
  }
  func.func @transform_1(%arg0: i32, %arg1: i32) -> (i32, i32, i32) {
    %c0_i32 = arith.constant 0 : i32
    %c0_i32_0 = arith.constant 0 : i32
    return %arg0, %c0_i32, %arg1 : i32, i32, i32
  }
  func.func @transform_2(%arg0: i32, %arg1: i32) -> (i32, i32) {
    %c0_i32 = arith.constant 0 : i32
    %c0_i32_0 = arith.constant 0 : i32
    %c0_i32_1 = arith.constant 0 : i32
    return %c0_i32, %c0_i32_0 : i32, i32
  }
  func.func @transform_3(%arg0: i32, %arg1: i32) -> (i32, i32) {
    %c0_i32 = arith.constant 0 : i32
    %c0_i32_0 = arith.constant 0 : i32
    %c0_i32_1 = arith.constant 0 : i32
    return %c0_i32, %c0_i32_0 : i32, i32
  }
  func.func @transform_4(%arg0: i32, %arg1: i32) -> (i32, i32) {
    %c0_i32 = arith.constant 0 : i32
    %c0_i32_0 = arith.constant 0 : i32
    %c0_i32_1 = arith.constant 0 : i32
    return %c0_i32, %c0_i32_0 : i32, i32
  }
  func.func @transform_5(%arg0: i32, %arg1: i32) -> (i32, i32) {
    %c0_i32 = arith.constant 0 : i32
    %c0_i32_0 = arith.constant 0 : i32
    %c0_i32_1 = arith.constant 0 : i32
    return %c0_i32, %c0_i32_0 : i32, i32
  }
  func.func @transform_6(%arg0: i32, %arg1: i32) -> (i32, i32) {
    %c0_i32 = arith.constant 0 : i32
    %c0_i32_0 = arith.constant 0 : i32
    %c0_i32_1 = arith.constant 0 : i32
    return %c0_i32, %c0_i32_0 : i32, i32
  }
  func.func @transform_7(%arg0: i32, %arg1: i32) -> (i32, i32) {
    %c0_i32 = arith.constant 0 : i32
    %c0_i32_0 = arith.constant 0 : i32
    %c0_i32_1 = arith.constant 0 : i32
    return %c0_i32, %c0_i32_0 : i32, i32
  }
  func.func @transform_8(%arg0: i32, %arg1: i32) -> (i32, i32, i32) {
    %c0_i32 = arith.constant 0 : i32
    %c0_i32_0 = arith.constant 0 : i32
    return %arg0, %c0_i32, %arg1 : i32, i32, i32
  }
}

</mosaic_0001>

<bundles_post_ra>
// kernel: tpu_custom_call.1
= control target key start
LH: loop header
LB: loop body
LE: loop exit
PB: predicated region body
PF: predicated region fallthrough
CT: control target
= control target key end

     0   :  { %13 = vsyncpa [#allocation3], 0  ;;  %s18310_s0 = inlined_call_operand.vmem [shape: f32[1,3,8960], index: 0, kind: input, shape index: {}]   ;;  %s18311_s1 = inlined_call_operand.hbm [shape: f32[1,1,8960], index: 1, kind: input, shape index: {}]   ;;  %s18312_s2 = inlined_call_operand.vmem [shape: f32[16,3], index: 2, kind: input, shape index: {}]   ;;  %s18313_s3 = inlined_call_operand.vmem [shape: f32[16,1], index: 3, kind: input, shape index: {}]   ;;  %s18314_s4 = inlined_call_operand.vmem [shape: f32[32,16], index: 4, kind: input, shape index: {}]   ;;  %s18315_s5 = inlined_call_operand.vmem [shape: f32[32,1], index: 5, kind: input, shape index: {}]   ;;  %s18316_s6 = inlined_call_operand.vmem [shape: f32[64,32], index: 6, kind: input, shape index: {}]   ;;  %s18317_s7 = inlined_call_operand.vmem [shape: f32[64,1], index: 7, kind: input, shape index: {}]   ;;  %s18318_s8 = inlined_call_operand.hbm [shape: f32[1,64,8960], index: 8, kind: output, shape index: {}]  }
   0x1   :  { %14 = vsyncpa [#allocation4], 0  ;;  %s13802_s27 = smov [#allocation2]   ;;  %s13754_s9 = scalar_lea.hbm %s18311_s1, 1120 }
   0x2   :  { %s23_s28 = sshll.u32 %s13802_s27, 4  ;;  %p13755_p0 = scmp.ne.s32.totalorder %s18311_s1, %s13754_s9  ;;  %s24_s28 = int_to_ptr.vmem [resolvable:$true] %s23_s28 }
   0x3   :  { %p13758_p1 = scmp.lt.u32.totalorder %s13754_s9, %s18311_s1 }
   0x5   :  { %p13760_p2 = pnand %p13758_p1, %p13755_p0 }
   0x7   :  { %13763 = shalt.err (!%p13760_p2)
}
   0x8   :  { %s13764_s14 = scalar_lea.vmem %s24_s28, 1120  ;;  %p13769_p4 = scmp.lt.s32.totalorder %s24_s28, %s24_s28 }
   0x9   :  { %p13765_p3 = scmp.ne.s32.totalorder %s24_s28, %s13764_s14  ;;  %p13770_p5 = scmp.lt.s32.totalorder %s13764_s14, %s13764_s14 }
   0xb   :  { %p13771_p6 = por %p13770_p5, %p13769_p4 }
   0xd   :  { %p13772_p7 = pnand %p13771_p6, %p13765_p3 }
   0xf   :  { %13775 = shalt.err (!%p13772_p7)
}
  0x10   :  { %26 = dma.hbm_to_vmem [thread:$0]  %s18311_s1, 1120, %s24_s28, [#allocation3]  }
  0x11   :  { %13798 = dma.done.wait [#allocation3], 1120  }
  0x12   :  { %13799 = vsyncadd [#allocation3], 4294966176  ;;  %v18319_v0 = vmov 0.0   ;;  %v13804_v1 = vmov 0   ;;  %v42_v2 = vld [vmem:[%s18310_s0] sm:$0x77] }
  0x13   :  { %373 = vmatprep.mubr.f32.mxu0 %v18319_v0  ;;  %450 = vmatprep.mubr.f32.mxu1 %v18319_v0  ;;  %vm168_vm0 = vcmask 1042432   ;;  %v43_v3 = vld [vmem:[%s18310_s0 + $0x8] sm:$0x77]  ;;  %v126_v4 = vcombine.high %v42_v2, %v42_v2  ;;  %v44_v6 = vld [vmem:[%s18310_s0 + $0x10] sm:$0x77]  ;;  %v13882_v8 = vld [vmem:[%s18312_s2] sm:$0xff] }
  0x14   :  { %13669 = vset.pattern.permute.xlu0 %v13804_v1  ;;  %13670 = vset.pattern.permute.xlu1 %v13804_v1  ;;  %v127_v5 = vcombine.high %v43_v3, %v43_v3  ;;  %v45_v7 = vld [vmem:[%s18310_s0 + $0x18] sm:$0x77]  ;;  %vm161_vm1 = vcmask 23552   ;;  %v128_v9 = vcombine.high %v44_v6, %v44_v6  ;;  %v46_v11 = vld [vmem:[%s18310_s0 + $0x20] sm:$0x77]  ;;  %v13903_v13 = vld [vmem:[%s18312_s2 + $0x8] sm:$0xff] }
  0x15   :  { %12681 = vmatprep.subr.msk.mxu0 %vm168_vm0, %v126_v4  ;;  %v129_v10 = vcombine.high %v45_v7, %v45_v7  ;;  %v47_v12 = vld [vmem:[%s18310_s0 + $0x28] sm:$0x77]  ;;  %v130_v14 = vcombine.high %v46_v11, %v46_v11  ;;  %v48_v16 = vld [vmem:[%s18310_s0 + $0x30] sm:$0x77]  ;;  %v49_v17 = vld [vmem:[%s18310_s0 + $0x38] sm:$0x77] }
  0x16   :  { %12685 = vmatprep.subr.msk.mxu1 %vm168_vm0, %v127_v5  ;;  %12682 = vmatpush1.msk.msra.mxu0 %vm168_vm0, %v42_v2  ;;  %v131_v15 = vcombine.high %v47_v12, %v47_v12  ;;  %v79_v18 = vld [vmem:[%s18313_s3] sm:$0xff]  ;;  %v132_v19 = vcombine.high %v48_v16, %v48_v16  ;;  %v133_v20 = vcombine.high %v49_v17, %v49_v17  ;;  %v80_v21 = vld [vmem:[%s18313_s3 + $0x8] sm:$0xff]  ;;  %v3150_v26 = vld [vmem:[%s18315_s5 + $0x10] sm:$0xff]  ;;  %vm3172_vm2 = vcmask 130048  }
  0x17   :  { %12686 = vmatpush1.msk.msra.mxu1 %vm168_vm0, %v43_v3  ;;  %12683 = vmatmul.mubr.msk.f32.vlgmr.msra.gmra.mrb[0].mxu0 %vm161_vm1, %v13882_v8  ;;  %v50_v22 = vld [vmem:[%s18310_s0 + $0x40] sm:$0x77]  ;;  %v51_v23 = vld [vmem:[%s18310_s0 + $0x48] sm:$0x77]  ;;  %v52_v27 = vld [vmem:[%s18310_s0 + $0x50] sm:$0x77] }
  0x18   :  { %12687 = vmatmul.mubr.msk.f32.vlgmr.msra.gmra.mrb[0].mxu1 %vm161_vm1, %v13882_v8  ;;  %379 = vmatprep.mubr.f32.mxu0 %v18319_v0  ;;  %v134_v24 = vcombine.high %v50_v22, %v50_v22  ;;  %v135_v25 = vcombine.high %v51_v23, %v51_v23  ;;  %v53_v28 = vld [vmem:[%s18310_s0 + $0x58] sm:$0x77]  ;;  %v136_v29 = vcombine.high %v52_v27, %v52_v27  ;;  %v6588_v31 = vld [vmem:[%s18317_s7] sm:$0xff]  ;;  %v55_v33 = vld [vmem:[%s18310_s0 + $0x68] sm:$0x77]  ;;  %vm6636_vm3 = vcmask 261120  }
  0x19   :  { %456 = vmatprep.mubr.f32.mxu1 %v18319_v0  ;;  %12689 = vmatprep.subr.msk.mxu0 %vm168_vm0, %v128_v9  ;;  %v137_v30 = vcombine.high %v53_v28, %v53_v28  ;;  %v54_v32 = vld [vmem:[%s18310_s0 + $0x60] sm:$0x77]  ;;  %v139_v35 = vcombine.high %v55_v33, %v55_v33  ;;  %v6590_v36 = vld [vmem:[%s18317_s7 + $0x10] sm:$0xff]  ;;  %v57_v38 = vld [vmem:[%s18310_s0 + $0x78] sm:$0x77] }
  0x1a   :  { %12693 = vmatprep.subr.msk.mxu1 %vm168_vm0, %v129_v10  ;;  %12690 = vmatpush1.msk.msra.mxu0 %vm168_vm0, %v44_v6  ;;  %v138_v34 = vcombine.high %v54_v32, %v54_v32  ;;  %v56_v37 = vld [vmem:[%s18310_s0 + $0x70] sm:$0x77]  ;;  %v141_v40 = vcombine.high %v57_v38, %v57_v38  ;;  %v6592_v41 = vld [vmem:[%s18317_s7 + $0x20] sm:$0xff]  ;;  %v59_v43 = vld [vmem:[%s18310_s0 + $0x88] sm:$0x77] }
  0x1b   :  { %12694 = vmatpush1.msk.msra.mxu1 %vm168_vm0, %v45_v7  ;;  %12684 = vmatmul.mubr.msk.f32.gmra.mrb[2].mxu0 %vm161_vm1, %v13903_v13  ;;  %v140_v39 = vcombine.high %v56_v37, %v56_v37  ;;  %v58_v42 = vld [vmem:[%s18310_s0 + $0x80] sm:$0x77]  ;;  %v143_v45 = vcombine.high %v59_v43, %v59_v43  ;;  %v6594_v46 = vld [vmem:[%s18317_s7 + $0x30] sm:$0xff]  ;;  %v61_v48 = vld [vmem:[%s18310_s0 + $0x98] sm:$0x77] }
  0x1c   :  { %12688 = vmatmul.mubr.msk.f32.gmra.mrb[2].mxu1 %vm161_vm1, %v13903_v13  ;;  %527 = vmatprep.mubr.f32.mxu0 %v18319_v0  ;;  %v142_v44 = vcombine.high %v58_v42, %v58_v42  ;;  %v60_v47 = vld [vmem:[%s18310_s0 + $0x90] sm:$0x77]  ;;  %v145_v50 = vcombine.high %v61_v48, %v61_v48  ;;  %v62_v51 = vld [vmem:[%s18310_s0 + $0xa0] sm:$0x77]  ;;  %v63_v52 = vld [vmem:[%s18310_s0 + $0xa8] sm:$0x77] }
  0x1d   :  { %604 = vmatprep.mubr.f32.mxu1 %v18319_v0  ;;  %12697 = vmatprep.subr.msk.mxu0 %vm168_vm0, %v130_v14  ;;  %v144_v49 = vcombine.high %v60_v47, %v60_v47  ;;  %v146_v53 = vcombine.high %v62_v51, %v62_v51  ;;  %v147_v54 = vcombine.high %v63_v52, %v63_v52  ;;  %v64_v55 = vld [vmem:[%s18310_s0 + $0xb0] sm:$0x77]  ;;  %v65_v56 = vld [vmem:[%s18310_s0 + $0xb8] sm:$0x77]  ;;  %v66_v59 = vld [vmem:[%s18310_s0 + $0xc0] sm:$0x77] }
  0x1e   :  { %12701 = vmatprep.subr.msk.mxu1 %vm168_vm0, %v131_v15  ;;  %83 = vperm.xlu0 %13669, %v79_v18   ;;  %v148_v57 = vcombine.high %v64_v55, %v64_v55  ;;  %v149_v58 = vcombine.high %v65_v56, %v65_v56  ;;  %v67_v60 = vld [vmem:[%s18310_s0 + $0xc8] sm:$0x77]  ;;  %v150_v61 = vcombine.high %v66_v59, %v66_v59  ;;  %v68_v63 = vld [vmem:[%s18310_s0 + $0xd0] sm:$0x77]  ;;  %v69_v1 = vld [vmem:[%s18310_s0 + $0xd8] sm:$0x77] }
  0x1f   :  { %12691 = vmatmul.mubr.msk.f32.vlgmr.msra.gmra.mrb[4].mxu0 %vm161_vm1, %v13882_v8  ;;  %v151_v62 = vcombine.high %v67_v60, %v67_v60  ;;  %v152_v2 = vcombine.high %v68_v63, %v68_v63  ;;  %v153_v3 = vcombine.high %v69_v1, %v69_v1  ;;  %v70_v4 = vld [vmem:[%s18310_s0 + $0xe0] sm:$0x77]  ;;  %v71_v5 = vld [vmem:[%s18310_s0 + $0xe8] sm:$0x77]  ;;  %v72_v9 = vld [vmem:[%s18310_s0 + $0xf0] sm:$0x77] }
  0x20   :  { %12695 = vmatmul.mubr.msk.f32.vlgmr.msra.gmra.mrb[4].mxu1 %vm161_vm1, %v13882_v8  ;;  %533 = vmatprep.mubr.f32.mxu0 %v18319_v0  ;;  %v154_v6 = vcombine.high %v70_v4, %v70_v4  ;;  %v155_v7 = vcombine.high %v71_v5, %v71_v5  ;;  %v73_v10 = vld [vmem:[%s18310_s0 + $0xf8] sm:$0x77]  ;;  %v74_v14 = vld [vmem:[%s18310_s0 + $0x100] sm:$0x77]  ;;  %v75_v15 = vld [vmem:[%s18310_s0 + $0x108] sm:$0x77] }
  0x21   :  { %610 = vmatprep.mubr.f32.mxu1 %v18319_v0  ;;  %12698 = vmatpush1.msk.msra.mxu0 %vm168_vm0, %v46_v11  ;;  %v156_v11 = vcombine.high %v72_v9, %v72_v9  ;;  %v76_v18 = vld [vmem:[%s18310_s0 + $0x110] sm:$0x77] }
  0x22   :  { %12702 = vmatpush1.msk.msra.mxu1 %vm168_vm0, %v47_v12  ;;  %12705 = vmatprep.subr.msk.mxu0 %vm168_vm0, %v132_v19  ;;  %v157_v12 = vcombine.high %v73_v10, %v73_v10  ;;  %v160_v19 = vcombine.high %v76_v18, %v76_v18 }
  0x23   :  { %12709 = vmatprep.subr.msk.mxu1 %vm168_vm0, %v133_v20  ;;  %12692 = vmatmul.mubr.msk.f32.gmra.mrb[6].mxu0 %vm161_vm1, %v13903_v13  ;;  %v3148_v20 = vld [vmem:[%s18315_s5] sm:$0xff] }
  0x24   :  { %12696 = vmatmul.mubr.msk.f32.gmra.mrb[6].mxu1 %vm161_vm1, %v13903_v13  ;;  %681 = vmatprep.mubr.f32.mxu0 %v18319_v0 }
  0x25   :  { %758 = vmatprep.mubr.f32.mxu1 %v18319_v0  ;;  %88 = vperm.xlu0 %13669, %v80_v21   ;;  %v3149_v21 = vld [vmem:[%s18315_s5 + $0x8] sm:$0xff] }
  0x26   :  { %3154 = vperm.xlu1 %13670, %v3148_v20  }
  0x27   :  { %12699 = vmatmul.mubr.msk.f32.vlgmr.msra.gmra.mrb[8].mxu0 %vm161_vm1, %v13882_v8 }
  0x28   :  { %12703 = vmatmul.mubr.msk.f32.vlgmr.msra.gmra.mrb[8].mxu1 %vm161_vm1, %v13882_v8  ;;  %687 = vmatprep.mubr.f32.mxu0 %v18319_v0 }
  0x29   :  { %764 = vmatprep.mubr.f32.mxu1 %v18319_v0  ;;  %12706 = vmatpush1.msk.msra.mxu0 %vm168_vm0, %v48_v16  ;;  %v158_v16 = vcombine.high %v74_v14, %v74_v14 }
  0x2a   :  { %12710 = vmatpush1.msk.msra.mxu1 %vm168_vm0, %v49_v17  ;;  %12713 = vmatprep.subr.msk.mxu0 %vm168_vm0, %v134_v24  ;;  %v159_v17 = vcombine.high %v75_v15, %v75_v15 }
  0x2b   :  { %12717 = vmatprep.subr.msk.mxu1 %vm168_vm0, %v135_v25  ;;  %12700 = vmatmul.mubr.msk.f32.gmra.mrb[10].mxu0 %vm161_vm1, %v13903_v13 }
  0x2c   :  { %12704 = vmatmul.mubr.msk.f32.gmra.mrb[10].mxu1 %vm161_vm1, %v13903_v13  ;;  %835 = vmatprep.mubr.f32.mxu0 %v18319_v0 }
  0x2d   :  { %912 = vmatprep.mubr.f32.mxu1 %v18319_v0  ;;  %3164 = vperm.xlu0 %13669, %v3150_v26  }
  0x2e   :  { %3159 = vperm.xlu1 %13670, %v3149_v21  }
  0x2f   :  { %12707 = vmatmul.mubr.msk.f32.vlgmr.msra.gmra.mrb[12].mxu0 %vm161_vm1, %v13882_v8 }
  0x30   :  { %12711 = vmatmul.mubr.msk.f32.vlgmr.msra.gmra.mrb[12].mxu1 %vm161_vm1, %v13882_v8  ;;  %841 = vmatprep.mubr.f32.mxu0 %v18319_v0 }
  0x31   :  { %918 = vmatprep.mubr.f32.mxu1 %v18319_v0  ;;  %12714 = vmatpush1.msk.msra.mxu0 %vm168_vm0, %v50_v22 }
  0x32   :  { %12718 = vmatpush1.msk.msra.mxu1 %vm168_vm0, %v51_v23  ;;  %12721 = vmatprep.subr.msk.mxu0 %vm168_vm0, %v136_v29 }
  0x33   :  { %12725 = vmatprep.subr.msk.mxu1 %vm168_vm0, %v137_v30  ;;  %12708 = vmatmul.mubr.msk.f32.gmra.mrb[14].mxu0 %vm161_vm1, %v13903_v13 }
  0x34   :  { %12712 = vmatmul.mubr.msk.f32.gmra.mrb[14].mxu1 %vm161_vm1, %v13903_v13  ;;  %989 = vmatprep.mubr.f32.mxu0 %v18319_v0 }
  0x35   :  { %1066 = vmatprep.mubr.f32.mxu1 %v18319_v0  ;;  %6598 = vperm.xlu0 %13669, %v6588_v31  }
  0x37   :  { %12715 = vmatmul.mubr.msk.f32.vlgmr.msra.gmra.mrb[16].mxu0 %vm161_vm1, %v13882_v8 }
  0x38   :  { %12719 = vmatmul.mubr.msk.f32.vlgmr.msra.gmra.mrb[16].mxu1 %vm161_vm1, %v13882_v8  ;;  %995 = vmatprep.mubr.f32.mxu0 %v18319_v0 }
  0x39   :  { %1072 = vmatprep.mubr.f32.mxu1 %v18319_v0  ;;  %12722 = vmatpush1.msk.msra.mxu0 %vm168_vm0, %v52_v27  ;;  %v6591_v27 = vld [vmem:[%s18317_s7 + $0x18] sm:$0xff] }
  0x3a   :  { %12726 = vmatpush1.msk.msra.mxu1 %vm168_vm0, %v53_v28  ;;  %12729 = vmatprep.subr.msk.mxu0 %vm168_vm0, %v138_v34 }
  0x3b   :  { %12733 = vmatprep.subr.msk.mxu1 %vm168_vm0, %v139_v35  ;;  %12716 = vmatmul.mubr.msk.f32.gmra.mrb[18].mxu0 %vm161_vm1, %v13903_v13  ;;  %v6593_v35 = vld [vmem:[%s18317_s7 + $0x28] sm:$0xff] }
  0x3c   :  { %12720 = vmatmul.mubr.msk.f32.gmra.mrb[18].mxu1 %vm161_vm1, %v13903_v13  ;;  %1143 = vmatprep.mubr.f32.mxu0 %v18319_v0 }
  0x3d   :  { %1220 = vmatprep.mubr.f32.mxu1 %v18319_v0  ;;  %6608 = vperm.xlu0 %13669, %v6590_v36  }
  0x3f   :  { %12723 = vmatmul.mubr.msk.f32.vlgmr.msra.gmra.mrb[20].mxu0 %vm161_vm1, %v13882_v8 }
  0x40   :  { %12727 = vmatmul.mubr.msk.f32.vlgmr.msra.gmra.mrb[20].mxu1 %vm161_vm1, %v13882_v8  ;;  %1149 = vmatprep.mubr.f32.mxu0 %v18319_v0 }
  0x41   :  { %1226 = vmatprep.mubr.f32.mxu1 %v18319_v0  ;;  %12730 = vmatpush1.msk.msra.mxu0 %vm168_vm0, %v54_v32 }
  0x42   :  { %12734 = vmatpush1.msk.msra.mxu1 %vm168_vm0, %v55_v33  ;;  %12737 = vmatprep.subr.msk.mxu0 %vm168_vm0, %v140_v39 }
  0x43   :  { %12741 = vmatprep.subr.msk.mxu1 %vm168_vm0, %v141_v40  ;;  %12724 = vmatmul.mubr.msk.f32.gmra.mrb[22].mxu0 %vm161_vm1, %v13903_v13 }
  0x44   :  { %12728 = vmatmul.mubr.msk.f32.gmra.mrb[22].mxu1 %vm161_vm1, %v13903_v13  ;;  %1297 = vmatprep.mubr.f32.mxu0 %v18319_v0 }
  0x45   :  { %1374 = vmatprep.mubr.f32.mxu1 %v18319_v0  ;;  %6618 = vperm.xlu0 %13669, %v6592_v41  }
  0x47   :  { %12731 = vmatmul.mubr.msk.f32.vlgmr.msra.gmra.mrb[24].mxu0 %vm161_vm1, %v13882_v8 }
  0x48   :  { %12735 = vmatmul.mubr.msk.f32.vlgmr.msra.gmra.mrb[24].mxu1 %vm161_vm1, %v13882_v8  ;;  %1303 = vmatprep.mubr.f32.mxu0 %v18319_v0 }
  0x49   :  { %1380 = vmatprep.mubr.f32.mxu1 %v18319_v0  ;;  %12738 = vmatpush1.msk.msra.mxu0 %vm168_vm0, %v56_v37 }
  0x4a   :  { %12742 = vmatpush1.msk.msra.mxu1 %vm168_vm0, %v57_v38  ;;  %12745 = vmatprep.subr.msk.mxu0 %vm168_vm0, %v142_v44 }
  0x4b   :  { %12749 = vmatprep.subr.msk.mxu1 %vm168_vm0, %v143_v45  ;;  %12732 = vmatmul.mubr.msk.f32.gmra.mrb[26].mxu0 %vm161_vm1, %v13903_v13 }
  0x4c   :  { %12736 = vmatmul.mubr.msk.f32.gmra.mrb[26].mxu1 %vm161_vm1, %v13903_v13  ;;  %1451 = vmatprep.mubr.f32.mxu0 %v18319_v0 }
  0x4d   :  { %1528 = vmatprep.mubr.f32.mxu1 %v18319_v0  ;;  %6628 = vperm.xlu0 %13669, %v6594_v46  }
  0x4f   :  { %12739 = vmatmul.mubr.msk.f32.vlgmr.msra.gmra.mrb[28].mxu0 %vm161_vm1, %v13882_v8 }
  0x50   :  { %12743 = vmatmul.mubr.msk.f32.vlgmr.msra.gmra.mrb[28].mxu1 %vm161_vm1, %v13882_v8  ;;  %1457 = vmatprep.mubr.f32.mxu0 %v18319_v0 }
  0x51   :  { %1534 = vmatprep.mubr.f32.mxu1 %v18319_v0  ;;  %12746 = vmatpush1.msk.msra.mxu0 %vm168_vm0, %v58_v42 }
  0x52   :  { %12750 = vmatpush1.msk.msra.mxu1 %vm168_vm0, %v59_v43  ;;  %12753 = vmatprep.subr.msk.mxu0 %vm168_vm0, %v144_v49 }
  0x53   :  { %12757 = vmatprep.subr.msk.mxu1 %vm168_vm0, %v145_v50  ;;  %12740 = vmatmul.mubr.msk.f32.gmra.mrb[30].mxu0 %vm161_vm1, %v13903_v13 }
  0x54   :  { %12744 = vmatmul.mubr.msk.f32.gmra.mrb[30].mxu1 %vm161_vm1, %v13903_v13  ;;  %1605 = vmatprep.mubr.f32.mxu0 %v18319_v0 }
  0x55   :  { %1682 = vmatprep.mubr.f32.mxu1 %v18319_v0 }
  0x57   :  { %12747 = vmatmul.mubr.msk.f32.vlgmr.msra.gmra.mrb[32].mxu0 %vm161_vm1, %v13882_v8 }
  0x58   :  { %12751 = vmatmul.mubr.msk.f32.vlgmr.msra.gmra.mrb[32].mxu1 %vm161_vm1, %v13882_v8  ;;  %1611 = vmatprep.mubr.f32.mxu0 %v18319_v0 }
  0x59   :  { %1688 = vmatprep.mubr.f32.mxu1 %v18319_v0  ;;  %12754 = vmatpush1.msk.msra.mxu0 %vm168_vm0, %v60_v47 }
  0x5a   :  { %12758 = vmatpush1.msk.msra.mxu1 %vm168_vm0, %v61_v48  ;;  %12761 = vmatprep.subr.msk.mxu0 %vm168_vm0, %v146_v53 }
  0x5b   :  { %12765 = vmatprep.subr.msk.mxu1 %vm168_vm0, %v147_v54  ;;  %12748 = vmatmul.mubr.msk.f32.gmra.mrb[34].mxu0 %vm161_vm1, %v13903_v13 }
  0x5c   :  { %12752 = vmatmul.mubr.msk.f32.gmra.mrb[34].mxu1 %vm161_vm1, %v13903_v13  ;;  %1759 = vmatprep.mubr.f32.mxu0 %v18319_v0 }
  0x5d   :  { %1836 = vmatprep.mubr.f32.mxu1 %v18319_v0 }
  0x5f   :  { %12755 = vmatmul.mubr.msk.f32.vlgmr.msra.gmra.mrb[36].mxu0 %vm161_vm1, %v13882_v8 }
  0x60   :  { %12759 = vmatmul.mubr.msk.f32.vlgmr.msra.gmra.mrb[36].mxu1 %vm161_vm1, %v13882_v8  ;;  %1765 = vmatprep.mubr.f32.mxu0 %v18319_v0 }
  0x61   :  { %1842 = vmatprep.mubr.f32.mxu1 %v18319_v0  ;;  %12762 = vmatpush1.msk.msra.mxu0 %vm168_vm0, %v62_v51 }
  0x62   :  { %12766 = vmatpush1.msk.msra.mxu1 %vm168_vm0, %v63_v52  ;;  %12769 = vmatprep.subr.msk.mxu0 %vm168_vm0, %v148_v57 }
  0x63   :  { %12773 = vmatprep.subr.msk.mxu1 %vm168_vm0, %v149_v58  ;;  %12756 = vmatmul.mubr.msk.f32.gmra.mrb[38].mxu0 %vm161_vm1, %v13903_v13 }
  0x64   :  { %12760 = vmatmul.mubr.msk.f32.gmra.mrb[38].mxu1 %vm161_vm1, %v13903_v13  ;;  %1913 = vmatprep.mubr.f32.mxu0 %v18319_v0 }
  0x65   :  { %1990 = vmatprep.mubr.f32.mxu1 %v18319_v0 }
  0x67   :  { %12763 = vmatmul.mubr.msk.f32.vlgmr.msra.gmra.mrb[40].mxu0 %vm161_vm1, %v13882_v8 }
  0x68   :  { %12767 = vmatmul.mubr.msk.f32.vlgmr.msra.gmra.mrb[40].mxu1 %vm161_vm1, %v13882_v8  ;;  %1919 = vmatprep.mubr.f32.mxu0 %v18319_v0 }
  0x69   :  { %1996 = vmatprep.mubr.f32.mxu1 %v18319_v0  ;;  %12770 = vmatpush1.msk.msra.mxu0 %vm168_vm0, %v64_v55 }
  0x6a   :  { %12774 = vmatpush1.msk.msra.mxu1 %vm168_vm0, %v65_v56  ;;  %12777 = vmatprep.subr.msk.mxu0 %vm168_vm0, %v150_v61  ;;  %v6595_v56 = vld [vmem:[%s18317_s7 + $0x38] sm:$0xff] }
  0x6b   :  { %12781 = vmatprep.subr.msk.mxu1 %vm168_vm0, %v151_v62  ;;  %12764 = vmatmul.mubr.msk.f32.gmra.mrb[42].mxu0 %vm161_vm1, %v13903_v13 }
  0x6c   :  { %12768 = vmatmul.mubr.msk.f32.gmra.mrb[42].mxu1 %vm161_vm1, %v13903_v13  ;;  %2067 = vmatprep.mubr.f32.mxu0 %v18319_v0 }
  0x6d   :  { %2144 = vmatprep.mubr.f32.mxu1 %v18319_v0 }
  0x6f   :  { %12771 = vmatmul.mubr.msk.f32.vlgmr.msra.gmra.mrb[44].mxu0 %vm161_vm1, %v13882_v8 }
  0x70   :  { %12775 = vmatmul.mubr.msk.f32.vlgmr.msra.gmra.mrb[44].mxu1 %vm161_vm1, %v13882_v8  ;;  %2073 = vmatprep.mubr.f32.mxu0 %v18319_v0 }
  0x71   :  { %2150 = vmatprep.mubr.f32.mxu1 %v18319_v0  ;;  %12778 = vmatpush1.msk.msra.mxu0 %vm168_vm0, %v66_v59 }
  0x72   :  { %12782 = vmatpush1.msk.msra.mxu1 %vm168_vm0, %v67_v60  ;;  %12785 = vmatprep.subr.msk.mxu0 %vm168_vm0, %v152_v2 }
  0x73   :  { %12789 = vmatprep.subr.msk.mxu1 %vm168_vm0, %v153_v3  ;;  %12772 = vmatmul.mubr.msk.f32.gmra.mrb[46].mxu0 %vm161_vm1, %v13903_v13 }
  0x74   :  { %12776 = vmatmul.mubr.msk.f32.gmra.mrb[46].mxu1 %vm161_vm1, %v13903_v13  ;;  %2221 = vmatprep.mubr.f32.mxu0 %v18319_v0 }
  0x75   :  { %2298 = vmatprep.mubr.f32.mxu1 %v18319_v0 }
  0x77   :  { %12779 = vmatmul.mubr.msk.f32.vlgmr.msra.gmra.mrb[48].mxu0 %vm161_vm1, %v13882_v8 }
  0x78   :  { %12783 = vmatmul.mubr.msk.f32.vlgmr.msra.gmra.mrb[48].mxu1 %vm161_vm1, %v13882_v8  ;;  %2227 = vmatprep.mubr.f32.mxu0 %v18319_v0 }
  0x79   :  { %2304 = vmatprep.mubr.f32.mxu1 %v18319_v0  ;;  %12786 = vmatpush1.msk.msra.mxu0 %vm168_vm0, %v68_v63 }
  0x7a   :  { %12790 = vmatpush1.msk.msra.mxu1 %vm168_vm0, %v69_v1  ;;  %12793 = vmatprep.subr.msk.mxu0 %vm168_vm0, %v154_v6  ;;  %v14325_v6 = vld [vmem:[%s18314_s4] sm:$0xff] }
  0x7b   :  { %12797 = vmatprep.subr.msk.mxu1 %vm168_vm0, %v155_v7  ;;  %12780 = vmatmul.mubr.msk.f32.gmra.mrb[50].mxu0 %vm161_vm1, %v13903_v13 }
  0x7c   :  { %12784 = vmatmul.mubr.msk.f32.gmra.mrb[50].mxu1 %vm161_vm1, %v13903_v13  ;;  %2375 = vmatprep.mubr.f32.mxu0 %v18319_v0 }
  0x7d   :  { %2452 = vmatprep.mubr.f32.mxu1 %v18319_v0 }
  0x7f   :  { %12787 = vmatmul.mubr.msk.f32.vlgmr.msra.gmra.mrb[52].mxu0 %vm161_vm1, %v13882_v8 }
  0x80   :  { %12791 = vmatmul.mubr.msk.f32.vlgmr.msra.gmra.mrb[52].mxu1 %vm161_vm1, %v13882_v8  ;;  %2381 = vmatprep.mubr.f32.mxu0 %v18319_v0 }
  0x81   :  { %2458 = vmatprep.mubr.f32.mxu1 %v18319_v0  ;;  %12794 = vmatpush1.msk.msra.mxu0 %vm168_vm0, %v70_v4 }
  0x82   :  { %12798 = vmatpush1.msk.msra.mxu1 %vm168_vm0, %v71_v5  ;;  %12801 = vmatprep.subr.msk.mxu0 %vm168_vm0, %v156_v11 }
  0x83   :  { %12805 = vmatprep.subr.msk.mxu1 %vm168_vm0, %v157_v12  ;;  %12788 = vmatmul.mubr.msk.f32.gmra.mrb[54].mxu0 %vm161_vm1, %v13903_v13 }
  0x84   :  { %12792 = vmatmul.mubr.msk.f32.gmra.mrb[54].mxu1 %vm161_vm1, %v13903_v13  ;;  %2529 = vmatprep.mubr.f32.mxu0 %v18319_v0 }
  0x85   :  { %2606 = vmatprep.mubr.f32.mxu1 %v18319_v0 }
  0x87   :  { %12795 = vmatmul.mubr.msk.f32.vlgmr.msra.gmra.mrb[56].mxu0 %vm161_vm1, %v13882_v8 }
  0x88   :  { %12799 = vmatmul.mubr.msk.f32.vlgmr.msra.gmra.mrb[56].mxu1 %vm161_vm1, %v13882_v8  ;;  %2535 = vmatprep.mubr.f32.mxu0 %v18319_v0 }
  0x89   :  { %2612 = vmatprep.mubr.f32.mxu1 %v18319_v0  ;;  %12802 = vmatpush1.msk.msra.mxu0 %vm168_vm0, %v72_v9 }
  0x8a   :  { %12806 = vmatpush1.msk.msra.mxu1 %vm168_vm0, %v73_v10  ;;  %12809 = vmatprep.subr.msk.mxu0 %vm168_vm0, %v158_v16 }
  0x8b   :  { %12813 = vmatprep.subr.msk.mxu1 %vm168_vm0, %v159_v17  ;;  %12796 = vmatmul.mubr.msk.f32.gmra.mrb[58].mxu0 %vm161_vm1, %v13903_v13 }
  0x8c   :  { %12800 = vmatmul.mubr.msk.f32.gmra.mrb[58].mxu1 %vm161_vm1, %v13903_v13  ;;  %2683 = vmatprep.mubr.f32.mxu0 %v18319_v0 }
  0x8d   :  { %2760 = vmatprep.mubr.f32.mxu1 %v18319_v0 }
  0x8f   :  { %12803 = vmatmul.mubr.msk.f32.vlgmr.msra.gmra.mrb[60].mxu0 %vm161_vm1, %v13882_v8 }
  0x90   :  { %12807 = vmatmul.mubr.msk.f32.vlgmr.msra.gmra.mrb[60].mxu1 %vm161_vm1, %v13882_v8  ;;  %2689 = vmatprep.mubr.f32.mxu0 %v18319_v0 }
  0x91   :  { %2766 = vmatprep.mubr.f32.mxu1 %v18319_v0  ;;  %12810 = vmatpush1.msk.msra.mxu0 %vm168_vm0, %v74_v14 }
  0x92   :  { %12814 = vmatpush1.msk.msra.mxu1 %vm168_vm0, %v75_v15  ;;  %12817 = vmatprep.subr.msk.mxu0 %vm168_vm0, %v160_v19 }
  0x93   :  { %12804 = vmatmul.mubr.msk.f32.gmra.mrb[62].mxu0 %vm161_vm1, %v13903_v13 }
  0x94   :  { %12808 = vmatmul.mubr.msk.f32.gmra.mrb[62].mxu1 %vm161_vm1, %v13903_v13  ;;  %2837 = vmatprep.mubr.f32.mxu0 %v18319_v0 }
  0x95   :  { %2914 = vmatprep.mubr.f32.mxu1 %v18319_v0 }
  0x97   :  { %12811 = vmatmul.mubr.msk.f32.vlgmr.msra.gmra.mrb[64].mxu0 %vm161_vm1, %v13882_v8 }
  0x98   :  { %12815 = vmatmul.mubr.msk.f32.vlgmr.msra.gmra.mrb[64].mxu1 %vm161_vm1, %v13882_v8  ;;  %2843 = vmatprep.mubr.f32.mxu0 %v18319_v0 }
  0x99   :  { %2920 = vmatprep.mubr.f32.mxu1 %v18319_v0  ;;  %12818 = vmatpush1.msk.msra.mxu0 %vm168_vm0, %v76_v18 }
  0x9b   :  { %12812 = vmatmul.mubr.msk.f32.gmra.mrb[66].mxu0 %vm161_vm1, %v13903_v13 }
  0x9c   :  { %12816 = vmatmul.mubr.msk.f32.gmra.mrb[66].mxu1 %vm161_vm1, %v13903_v13  ;;  %2991 = vmatprep.mubr.f32.mxu0 %v18319_v0 }
  0x9d   :  { %3249 = vmatprep.mubr.f32.mxu1 %v18319_v0  ;;  %v14295_v22 = vpop.permute.xlu0 %83 }
  0x9f   :  { %12819 = vmatmul.mubr.msk.f32.vlgmr.msra.gmra.mrb[68].mxu0 %vm161_vm1, %v13882_v8  ;;  %v3151_v8 = vld [vmem:[%s18315_s5 + $0x18] sm:$0xff] }
  0xa0   :  { %2997 = vmatprep.mubr.f32.mxu0 %v18319_v0  ;;  %3169 = vperm.xlu1 %13670, %v3151_v8  }
  0xa3   :  { %12820 = vmatmul.mubr.msk.f32.gmra.mrb[70].mxu0 %vm161_vm1, %v13903_v13  ;;  %v6589_v13 = vld [vmem:[%s18317_s7 + $0x8] sm:$0xff] }
  0xa4   :  { %3338 = vmatprep.mubr.f32.mxu0 %v18319_v0  ;;  %6603 = vperm.xlu1 %13670, %v6589_v13   ;;  %v14300_v28 = vpop.permute.xlu0 %88 }
  0xa8   :  { %6613 = vperm.xlu1 %13670, %v6591_v27  }
  0xac   :  { %6623 = vperm.xlu1 %13670, %v6593_v35  }
  0xb0   :  { %6633 = vperm.xlu1 %13670, %v6595_v56  }
  0xea   :  { %v375_v23 = vpop.f32.mrb[0].mxu0 }
  0xeb   :  { %v452_v24 = vpop.f32.mrb[0].mxu1  ;;  %v377_v25 = vpop.f32.mrb[1].mxu0  ;;  %v376_v29 = vadd.f32 %v375_v23, %v14295_v22 }
  0xec   :  { %v454_v26 = vpop.f32.mrb[1].mxu1  ;;  %v453_v30 = vadd.f32 %v452_v24, %v14295_v22  ;;  %v378_v31 = vadd.f32 %v377_v25, %v14295_v22  ;;  %v14338_v24 = vld [vmem:[%s18314_s4 + $0x8] sm:$0xff] }
  0xed   :  { %v455_v32 = vadd.f32 %v454_v26, %v14295_v22  ;;  %v3004_v42 = vmax.f32 %v376_v29, 0.0 }
  0xee   :  { %v381_v33 = vpop.f32.mrb[2].mxu0  ;;  %v3006_v43 = vmax.f32 %v453_v30, 0.0  ;;  %v3005_v46 = vmax.f32 %v378_v31, 0.0 }
  0xef   :  { %v458_v34 = vpop.f32.mrb[2].mxu1  ;;  %v382_v36 = vadd.f32 %v381_v33, %v14300_v28  ;;  %v383_v38 = vpop.f32.mrb[3].mxu0  ;;  %v3007_v47 = vmax.f32 %v455_v32, 0.0 }
  0xf0   :  { %v459_v37 = vadd.f32 %v458_v34, %v14300_v28  ;;  %v460_v39 = vpop.f32.mrb[3].mxu1  ;;  %v384_v40 = vadd.f32 %v383_v38, %v14300_v28  ;;  %v14354_v38 = vld [vmem:[%s18314_s4 + $0x10] sm:$0xff] }
  0xf1   :  { %v461_v41 = vadd.f32 %v460_v39, %v14300_v28  ;;  %v3074_v44 = vmax.f32 %v382_v36, 0.0 }
  0xf2   :  { %v3076_v45 = vmax.f32 %v459_v37, 0.0  ;;  %v3075_v48 = vmax.f32 %v384_v40, 0.0  ;;  %v529_v50 = vpop.f32.mrb[4].mxu0 }
  0xf3   :  { %v3077_v49 = vmax.f32 %v461_v41, 0.0  ;;  %v606_v51 = vpop.f32.mrb[4].mxu1  ;;  %v13243_v52 = vpack.c.bf16 %v3074_v44, %v3004_v42  ;;  %v531_v54 = vpop.f32.mrb[5].mxu0  ;;  %v530_v59 = vadd.f32 %v529_v50, %v14295_v22 }
  0xf4   :  { %v13247_v53 = vpack.c.bf16 %v3076_v45, %v3006_v43  ;;  %v608_v55 = vpop.f32.mrb[5].mxu1  ;;  %v13241_v57 = vpack.c.bf16 %v3075_v48, %v3005_v46  ;;  %v607_v60 = vadd.f32 %v606_v51, %v14295_v22  ;;  %v532_v61 = vadd.f32 %v531_v54, %v14295_v22 }
  0xf5   :  { %v13245_v58 = vpack.c.bf16 %v3077_v49, %v3007_v47  ;;  %v609_v62 = vadd.f32 %v608_v55, %v14295_v22  ;;  %v3008_v10 = vmax.f32 %v530_v59, 0.0  ;;  %v14367_v55 = vld [vmem:[%s18314_s4 + $0x18] sm:$0xff] }
  0xf6   :  { %v535_v63 = vpop.f32.mrb[6].mxu0  ;;  %13242 = vmatprep.subr.bf16.mxu1 %v13241_v57  ;;  %v3010_v11 = vmax.f32 %v607_v60, 0.0  ;;  %v3009_v15 = vmax.f32 %v532_v61, 0.0 }
  0xf7   :  { %v612_v1 = vpop.f32.mrb[6].mxu1  ;;  %13246 = vmatprep.subr.bf16.mxu0 %v13245_v58  ;;  %v536_v2 = vadd.f32 %v535_v63, %v14300_v28  ;;  %v537_v4 = vpop.f32.mrb[7].mxu0  ;;  %13244 = vmatpush1.bf16.msra.mxu1 %v13243_v52  ;;  %v3011_v16 = vmax.f32 %v609_v62, 0.0 }
  0xf8   :  { %v613_v3 = vadd.f32 %v612_v1, %v14300_v28  ;;  %v614_v5 = vpop.f32.mrb[7].mxu1  ;;  %13248 = vmatpush1.bf16.msra.mxu0 %v13247_v53  ;;  %v538_v7 = vadd.f32 %v537_v4, %v14300_v28  ;;  %13661 = vmatprep.subr.bf16.mxu1 %v13245_v58 }
  0xf9   :  { %v615_v9 = vadd.f32 %v614_v5, %v14300_v28  ;;  %v3078_v12 = vmax.f32 %v536_v2, 0.0 }
  0xfa   :  { %v3080_v14 = vmax.f32 %v613_v3, 0.0  ;;  %v3079_v17 = vmax.f32 %v538_v7, 0.0  ;;  %v683_v19 = vpop.f32.mrb[8].mxu0  ;;  %12821 = vmatmul.mubr.msk.f32.vlgmr.msra.gmra.mrb[68].mxu1 %vm3172_vm2, %v14325_v6 }
  0xfb   :  { %v3081_v18 = vmax.f32 %v615_v9, 0.0  ;;  %v760_v20 = vpop.f32.mrb[8].mxu1  ;;  %12825 = vmatmul.mubr.msk.f32.vlgmr.msra.gmra.mrb[72].mxu0 %vm3172_vm2, %v14325_v6  ;;  %v14333_v21 = vpack.c.bf16 %v3078_v12, %v3008_v10  ;;  %v685_v13 = vpop.f32.mrb[9].mxu0  ;;  %13662 = vmatpush1.bf16.msra.mxu1 %v13247_v53  ;;  %v684_v27 = vadd.f32 %v683_v19, %v14295_v22 }
  0xfc   :  { %v13255_v8 = vpack.c.bf16 %v3080_v14, %v3010_v11  ;;  %v762_v23 = vpop.f32.mrb[9].mxu1  ;;  %3255 = vmatprep.mubr.f32.mxu1 %v18319_v0  ;;  %v13249_v25 = vpack.c.bf16 %v3079_v17, %v3009_v15  ;;  %v761_v29 = vadd.f32 %v760_v20, %v14295_v22  ;;  %3516 = vmatprep.mubr.f32.mxu0 %v18319_v0 }
  0xfd   :  { %v13253_v26 = vpack.c.bf16 %v3081_v18, %v3011_v16  ;;  %v763_v30 = vadd.f32 %v762_v23, %v14295_v22  ;;  %v686_v33 = vadd.f32 %v685_v13, %v14295_v22  ;;  %v3012_v41 = vmax.f32 %v684_v27, 0.0 }
  0xfe   :  { %v689_v31 = vpop.f32.mrb[10].mxu0  ;;  %12822 = vmatmul.mubr.msk.f32.gmra.mrb[70].mxu1 %vm3172_vm2, %v14338_v24  ;;  %13250 = vmatprep.subr.bf16.mxu1 %v13249_v25  ;;  %v3014_v42 = vmax.f32 %v761_v29, 0.0 }
  0xff   :  { %v766_v32 = vpop.f32.mrb[10].mxu1  ;;  %v690_v34 = vadd.f32 %v689_v31, %v14300_v28  ;;  %13254 = vmatprep.subr.bf16.mxu0 %v13253_v26  ;;  %v691_v36 = vpop.f32.mrb[11].mxu0  ;;  %3261 = vmatprep.mubr.f32.mxu1 %v18319_v0  ;;  %v3015_v45 = vmax.f32 %v763_v30, 0.0  ;;  %v3013_v50 = vmax.f32 %v686_v33, 0.0 }
 0x100   :  { %v767_v35 = vadd.f32 %v766_v32, %v14300_v28  ;;  %v768_v37 = vpop.f32.mrb[11].mxu1  ;;  %v692_v39 = vadd.f32 %v691_v36, %v14300_v28  ;;  %13256 = vmatpush1.bf16.msra.mxu0 %v13255_v8 }
 0x101   :  { %v769_v40 = vadd.f32 %v768_v37, %v14300_v28  ;;  %v3082_v43 = vmax.f32 %v690_v34, 0.0 }
 0x102   :  { %v3084_v44 = vmax.f32 %v767_v35, 0.0  ;;  %v3083_v46 = vmax.f32 %v692_v39, 0.0  ;;  %v837_v48 = vpop.f32.mrb[12].mxu0  ;;  %12823 = vmatmul.mubr.msk.f32.gmra.mrb[72].mxu1 %vm3172_vm2, %v14354_v38 }
 0x103   :  { %v3085_v47 = vmax.f32 %v769_v40, 0.0  ;;  %v914_v49 = vpop.f32.mrb[12].mxu1  ;;  %v14360_v51 = vpack.c.bf16 %v3082_v43, %v3012_v41  ;;  %12833 = vmatmul.mubr.msk.f32.vlgmr.msra.gmra.mrb[74].mxu0 %vm3172_vm2, %v14325_v6  ;;  %v839_v53 = vpop.f32.mrb[13].mxu0  ;;  %3267 = vmatprep.mubr.f32.mxu1 %v18319_v0  ;;  %v838_v57 = vadd.f32 %v837_v48, %v14295_v22 }
 0x104   :  { %v13263_v52 = vpack.c.bf16 %v3084_v44, %v3014_v42  ;;  %v916_v54 = vpop.f32.mrb[13].mxu1  ;;  %3522 = vmatprep.mubr.f32.mxu0 %v18319_v0  ;;  %v915_v58 = vadd.f32 %v914_v49, %v14295_v22  ;;  %v13257_v59 = vpack.c.bf16 %v3083_v46, %v3013_v50  ;;  %v840_v63 = vadd.f32 %v839_v53, %v14295_v22 }
 0x105   :  { %v13261_v56 = vpack.c.bf16 %v3085_v47, %v3015_v45  ;;  %v917_v60 = vadd.f32 %v916_v54, %v14295_v22  ;;  %v3016_v9 = vmax.f32 %v838_v57, 0.0 }
 0x106   :  { %v843_v61 = vpop.f32.mrb[14].mxu0  ;;  %12824 = vmatmul.mubr.msk.f32.gmra.mrb[74].mxu1 %vm3172_vm2, %v14367_v55  ;;  %v3018_v10 = vmax.f32 %v915_v58, 0.0  ;;  %v3017_v19 = vmax.f32 %v840_v63, 0.0 }
 0x107   :  { %v920_v62 = vpop.f32.mrb[14].mxu1  ;;  %13262 = vmatprep.subr.bf16.mxu0 %v13261_v56  ;;  %v844_v1 = vadd.f32 %v843_v61, %v14300_v28  ;;  %12834 = vmatmul.mubr.msk.f32.gmra.mrb[76].mxu0 %vm3172_vm2, %v14338_v24  ;;  %v845_v3 = vpop.f32.mrb[15].mxu0  ;;  %v3019_v14 = vmax.f32 %v917_v60, 0.0 }
 0x108   :  { %v921_v2 = vadd.f32 %v920_v62, %v14300_v28  ;;  %v922_v4 = vpop.f32.mrb[15].mxu1  ;;  %3344 = vmatprep.mubr.f32.mxu1 %v18319_v0  ;;  %v846_v5 = vadd.f32 %v845_v3, %v14300_v28  ;;  %13264 = vmatpush1.bf16.msra.mxu0 %v13263_v52 }
 0x109   :  { %v923_v7 = vadd.f32 %v922_v4, %v14300_v28  ;;  %3528 = vmatprep.mubr.f32.mxu0 %v18319_v0  ;;  %v3086_v11 = vmax.f32 %v844_v1, 0.0 }
 0x10a   :  { %v3088_v12 = vmax.f32 %v921_v2, 0.0  ;;  %v3087_v15 = vmax.f32 %v846_v5, 0.0  ;;  %v991_v17 = vpop.f32.mrb[16].mxu0  ;;  %12826 = vmatmul.mubr.msk.f32.vlgmr.msra.gmra.mrb[76].mxu1 %vm3172_vm2, %v14338_v24 }
 0x10b   :  { %v3089_v16 = vmax.f32 %v923_v7, 0.0  ;;  %v1068_v18 = vpop.f32.mrb[16].mxu1  ;;  %v14387_v20 = vpack.c.bf16 %v3086_v11, %v3016_v9  ;;  %13252 = vmatpush1.bf16.msra.mxu1 %v14333_v21  ;;  %v993_v13 = vpop.f32.mrb[17].mxu0  ;;  %12835 = vmatmul.mubr.msk.f32.gmra.mrb[78].mxu0 %vm3172_vm2, %v14354_v38  ;;  %v992_v26 = vadd.f32 %v991_v17, %v14295_v22 }
 0x10c   :  { %v13271_v8 = vpack.c.bf16 %v3088_v12, %v3018_v10  ;;  %v1070_v23 = vpop.f32.mrb[17].mxu1  ;;  %13258 = vmatprep.subr.bf16.mxu1 %v13257_v59  ;;  %v1069_v27 = vadd.f32 %v1068_v18, %v14295_v22  ;;  %3350 = vmatprep.mubr.f32.mxu1 %v18319_v0  ;;  %v13265_v29 = vpack.c.bf16 %v3087_v15, %v3017_v19 }
 0x10d   :  { %v13269_v25 = vpack.c.bf16 %v3089_v16, %v3019_v14  ;;  %3534 = vmatprep.mubr.f32.mxu0 %v18319_v0  ;;  %v994_v30 = vadd.f32 %v993_v13, %v14295_v22  ;;  %v1071_v21 = vadd.f32 %v1070_v23, %v14295_v22  ;;  %v3020_v40 = vmax.f32 %v992_v26, 0.0 }
 0x10e   :  { %v997_v31 = vpop.f32.mrb[18].mxu0  ;;  %12827 = vmatmul.mubr.msk.f32.gmra.mrb[78].mxu1 %vm3172_vm2, %v14354_v38  ;;  %v3022_v41 = vmax.f32 %v1069_v27, 0.0 }
 0x10f   :  { %v1074_v32 = vpop.f32.mrb[18].mxu1  ;;  %13270 = vmatprep.subr.bf16.mxu0 %v13269_v25  ;;  %v998_v33 = vadd.f32 %v997_v31, %v14300_v28  ;;  %v999_v35 = vpop.f32.mrb[19].mxu0  ;;  %3356 = vmatprep.mubr.f32.mxu1 %v18319_v0  ;;  %v3021_v44 = vmax.f32 %v994_v30, 0.0  ;;  %v3023_v45 = vmax.f32 %v1071_v21, 0.0 }
 0x110   :  { %v1075_v34 = vadd.f32 %v1074_v32, %v14300_v28  ;;  %v1076_v36 = vpop.f32.mrb[19].mxu1  ;;  %12836 = vmatmul.mubr.msk.f32.gmra.mrb[80].mxu0 %vm3172_vm2, %v14367_v55  ;;  %v1000_v37 = vadd.f32 %v999_v35, %v14300_v28 }
 0x111   :  { %v1077_v39 = vadd.f32 %v1076_v36, %v14300_v28  ;;  %v3090_v42 = vmax.f32 %v998_v33, 0.0  ;;  %3694 = vmatprep.mubr.f32.mxu0 %v18319_v0 }
 0x112   :  { %v3092_v43 = vmax.f32 %v1075_v34, 0.0  ;;  %v3091_v46 = vmax.f32 %v1000_v37, 0.0  ;;  %v1145_v48 = vpop.f32.mrb[20].mxu0  ;;  %12828 = vmatmul.mubr.msk.f32.gmra.mrb[80].mxu1 %vm3172_vm2, %v14367_v55 }
 0x113   :  { %v3093_v47 = vmax.f32 %v1077_v39, 0.0  ;;  %v1222_v49 = vpop.f32.mrb[20].mxu1  ;;  %v14410_v50 = vpack.c.bf16 %v3090_v42, %v3020_v40  ;;  %v1147_v53 = vpop.f32.mrb[21].mxu0  ;;  %3427 = vmatprep.mubr.f32.mxu1 %v18319_v0  ;;  %v1146_v58 = vadd.f32 %v1145_v48, %v14295_v22 }
 0x114   :  { %v14412_v52 = vpack.c.bf16 %v3092_v43, %v3022_v41  ;;  %v1224_v54 = vpop.f32.mrb[21].mxu1  ;;  %12841 = vmatmul.mubr.msk.f32.vlgmr.msra.gmra.mrb[82].mxu0 %vm3172_vm2, %v14325_v6  ;;  %v14417_v57 = vpack.c.bf16 %v3091_v46, %v3021_v44  ;;  %v1223_v59 = vadd.f32 %v1222_v49, %v14295_v22  ;;  %v1148_v60 = vadd.f32 %v1147_v53, %v14295_v22 }
 0x115   :  { %v13277_v56 = vpack.c.bf16 %v3093_v47, %v3023_v45  ;;  %13272 = vmatpush1.bf16.msra.mxu0 %v13271_v8  ;;  %3700 = vmatprep.mubr.f32.mxu0 %v18319_v0  ;;  %v1225_v61 = vadd.f32 %v1224_v54, %v14295_v22  ;;  %v3024_v9 = vmax.f32 %v1146_v58, 0.0 }
 0x116   :  { %v1151_v62 = vpop.f32.mrb[22].mxu0  ;;  %12829 = vmatmul.mubr.msk.f32.vlgmr.msra.gmra.mrb[82].mxu1 %vm3172_vm2, %v14325_v6  ;;  %v3026_v10 = vmax.f32 %v1223_v59, 0.0  ;;  %v3025_v14 = vmax.f32 %v1148_v60, 0.0 }
 0x117   :  { %v1228_v63 = vpop.f32.mrb[22].mxu1  ;;  %13278 = vmatprep.subr.bf16.mxu0 %v13277_v56  ;;  %v1152_v1 = vadd.f32 %v1151_v62, %v14300_v28  ;;  %13260 = vmatpush1.bf16.msra.mxu1 %v14360_v51  ;;  %v1153_v3 = vpop.f32.mrb[23].mxu0  ;;  %v3027_v51 = vmax.f32 %v1225_v61, 0.0 }
 0x118   :  { %v1229_v2 = vadd.f32 %v1228_v63, %v14300_v28  ;;  %v1230_v4 = vpop.f32.mrb[23].mxu1  ;;  %3433 = vmatprep.mubr.f32.mxu1 %v18319_v0  ;;  %12842 = vmatmul.mubr.msk.f32.gmra.mrb[84].mxu0 %vm3172_vm2, %v14338_v24  ;;  %v1154_v5 = vadd.f32 %v1153_v3, %v14300_v28 }
 0x119   :  { %v1231_v7 = vadd.f32 %v1230_v4, %v14300_v28  ;;  %13266 = vmatprep.subr.bf16.mxu1 %v13265_v29  ;;  %v3094_v11 = vmax.f32 %v1152_v1, 0.0  ;;  %3706 = vmatprep.mubr.f32.mxu0 %v18319_v0 }
 0x11a   :  { %v3096_v12 = vmax.f32 %v1229_v2, 0.0  ;;  %v3095_v15 = vmax.f32 %v1154_v5, 0.0  ;;  %v1299_v17 = vpop.f32.mrb[24].mxu0  ;;  %12830 = vmatmul.mubr.msk.f32.gmra.mrb[84].mxu1 %vm3172_vm2, %v14338_v24 }
 0x11b   :  { %v3097_v16 = vmax.f32 %v1231_v7, 0.0  ;;  %v1376_v18 = vpop.f32.mrb[24].mxu1  ;;  %v14437_v19 = vpack.c.bf16 %v3094_v11, %v3024_v9  ;;  %v1301_v13 = vpop.f32.mrb[25].mxu0  ;;  %3439 = vmatprep.mubr.f32.mxu1 %v18319_v0  ;;  %v1300_v27 = vadd.f32 %v1299_v17, %v14295_v22 }
 0x11c   :  { %v14439_v8 = vpack.c.bf16 %v3096_v12, %v3026_v10  ;;  %v1378_v23 = vpop.f32.mrb[25].mxu1  ;;  %12843 = vmatmul.mubr.msk.f32.gmra.mrb[86].mxu0 %vm3172_vm2, %v14354_v38  ;;  %v14444_v26 = vpack.c.bf16 %v3095_v15, %v3025_v14  ;;  %v1377_v29 = vadd.f32 %v1376_v18, %v14295_v22  ;;  %v1302_v30 = vadd.f32 %v1301_v13, %v14295_v22 }
 0x11d   :  { %v13285_v25 = vpack.c.bf16 %v3097_v16, %v3027_v51  ;;  %3712 = vmatprep.mubr.f32.mxu0 %v18319_v0  ;;  %v1379_v21 = vadd.f32 %v1378_v23, %v14295_v22  ;;  %v3028_v40 = vmax.f32 %v1300_v27, 0.0 }
 0x11e   :  { %v1305_v31 = vpop.f32.mrb[26].mxu0  ;;  %12831 = vmatmul.mubr.msk.f32.gmra.mrb[86].mxu1 %vm3172_vm2, %v14354_v38  ;;  %v3030_v41 = vmax.f32 %v1377_v29, 0.0  ;;  %v3029_v44 = vmax.f32 %v1302_v30, 0.0 }
 0x11f   :  { %v1382_v32 = vpop.f32.mrb[26].mxu1  ;;  %v1306_v33 = vadd.f32 %v1305_v31, %v14300_v28  ;;  %v1307_v35 = vpop.f32.mrb[27].mxu0  ;;  %3445 = vmatprep.mubr.f32.mxu1 %v18319_v0  ;;  %v3031_v45 = vmax.f32 %v1379_v21, 0.0 }
 0x120   :  { %v1383_v34 = vadd.f32 %v1382_v32, %v14300_v28  ;;  %v1384_v36 = vpop.f32.mrb[27].mxu1  ;;  %12844 = vmatmul.mubr.msk.f32.gmra.mrb[88].mxu0 %vm3172_vm2, %v14367_v55  ;;  %v1308_v37 = vadd.f32 %v1307_v35, %v14300_v28 }
 0x121   :  { %v1385_v39 = vadd.f32 %v1384_v36, %v14300_v28  ;;  %v3098_v42 = vmax.f32 %v1306_v33, 0.0  ;;  %3872 = vmatprep.mubr.f32.mxu0 %v18319_v0 }
 0x122   :  { %v3100_v43 = vmax.f32 %v1383_v34, 0.0  ;;  %v3099_v46 = vmax.f32 %v1308_v37, 0.0  ;;  %v1453_v48 = vpop.f32.mrb[28].mxu0  ;;  %12832 = vmatmul.mubr.msk.f32.gmra.mrb[88].mxu1 %vm3172_vm2, %v14367_v55 }
 0x123   :  { %v3101_v47 = vmax.f32 %v1385_v39, 0.0  ;;  %v1530_v49 = vpop.f32.mrb[28].mxu1  ;;  %v14463_v53 = vpack.c.bf16 %v3098_v42, %v3028_v40  ;;  %v1455_v56 = vpop.f32.mrb[29].mxu0  ;;  %3605 = vmatprep.mubr.f32.mxu1 %v18319_v0  ;;  %v1454_v61 = vadd.f32 %v1453_v48, %v14295_v22 }
 0x124   :  { %v14465_v54 = vpack.c.bf16 %v3100_v43, %v3030_v41  ;;  %v1532_v58 = vpop.f32.mrb[29].mxu1  ;;  %12849 = vmatmul.mubr.msk.f32.vlgmr.msra.gmra.mrb[90].mxu0 %vm3172_vm2, %v14325_v6  ;;  %v14472_v60 = vpack.c.bf16 %v3099_v46, %v3029_v44  ;;  %v1531_v62 = vadd.f32 %v1530_v49, %v14295_v22  ;;  %v1456_v63 = vadd.f32 %v1455_v56, %v14295_v22 }
 0x125   :  { %v14470_v59 = vpack.c.bf16 %v3101_v47, %v3031_v45  ;;  %13280 = vmatpush1.bf16.msra.mxu0 %v14412_v52  ;;  %3878 = vmatprep.mubr.f32.mxu0 %v18319_v0  ;;  %v1533_v1 = vadd.f32 %v1532_v58, %v14295_v22  ;;  %v3032_v11 = vmax.f32 %v1454_v61, 0.0 }
 0x126   :  { %13286 = vmatprep.subr.bf16.mxu0 %v13285_v25  ;;  %v1459_v2 = vpop.f32.mrb[30].mxu0  ;;  %12837 = vmatmul.mubr.msk.f32.vlgmr.msra.gmra.mrb[90].mxu1 %vm3172_vm2, %v14325_v6  ;;  %v3034_v12 = vmax.f32 %v1531_v62, 0.0 }
 0x127   :  { %v1536_v3 = vpop.f32.mrb[30].mxu1  ;;  %v1460_v4 = vadd.f32 %v1459_v2, %v14300_v28  ;;  %13268 = vmatpush1.bf16.msra.mxu1 %v14387_v20  ;;  %v1461_v7 = vpop.f32.mrb[31].mxu0  ;;  %3611 = vmatprep.mubr.f32.mxu1 %v18319_v0  ;;  %v3033_v20 = vmax.f32 %v1456_v63, 0.0  ;;  %v3035_v15 = vmax.f32 %v1533_v1, 0.0 }
 0x128   :  { %v1537_v5 = vadd.f32 %v1536_v3, %v14300_v28  ;;  %v1538_v52 = vpop.f32.mrb[31].mxu1  ;;  %12850 = vmatmul.mubr.msk.f32.gmra.mrb[92].mxu0 %vm3172_vm2, %v14338_v24  ;;  %v1462_v9 = vadd.f32 %v1461_v7, %v14300_v28  ;;  %13274 = vmatprep.subr.bf16.mxu1 %v14417_v57 }
 0x129   :  { %v1539_v10 = vadd.f32 %v1538_v52, %v14300_v28  ;;  %v3102_v14 = vmax.f32 %v1460_v4, 0.0  ;;  %3884 = vmatprep.mubr.f32.mxu0 %v18319_v0 }
 0x12a   :  { %v3104_v51 = vmax.f32 %v1537_v5, 0.0  ;;  %v3103_v16 = vmax.f32 %v1462_v9, 0.0  ;;  %v1607_v18 = vpop.f32.mrb[32].mxu0  ;;  %12838 = vmatmul.mubr.msk.f32.gmra.mrb[92].mxu1 %vm3172_vm2, %v14338_v24 }
 0x12b   :  { %v3105_v17 = vmax.f32 %v1539_v10, 0.0  ;;  %v1684_v13 = vpop.f32.mrb[32].mxu1  ;;  %v14494_v23 = vpack.c.bf16 %v3102_v14, %v3032_v11  ;;  %v1609_v57 = vpop.f32.mrb[33].mxu0  ;;  %3617 = vmatprep.mubr.f32.mxu1 %v18319_v0  ;;  %v1608_v21 = vadd.f32 %v1607_v18, %v14295_v22 }
 0x12c   :  { %v14496_v25 = vpack.c.bf16 %v3104_v51, %v3034_v12  ;;  %v1686_v27 = vpop.f32.mrb[33].mxu1  ;;  %12851 = vmatmul.mubr.msk.f32.gmra.mrb[94].mxu0 %vm3172_vm2, %v14354_v38  ;;  %v14503_v30 = vpack.c.bf16 %v3103_v16, %v3033_v20  ;;  %v1685_v31 = vadd.f32 %v1684_v13, %v14295_v22  ;;  %v1610_v32 = vadd.f32 %v1609_v57, %v14295_v22 }
 0x12d   :  { %v14501_v29 = vpack.c.bf16 %v3105_v17, %v3035_v15  ;;  %3890 = vmatprep.mubr.f32.mxu0 %v18319_v0  ;;  %v1687_v33 = vadd.f32 %v1686_v27, %v14295_v22  ;;  %v3036_v43 = vmax.f32 %v1608_v21, 0.0 }
 0x12e   :  { %v1613_v34 = vpop.f32.mrb[34].mxu0  ;;  %12839 = vmatmul.mubr.msk.f32.gmra.mrb[94].mxu1 %vm3172_vm2, %v14354_v38  ;;  %v3038_v44 = vmax.f32 %v1685_v31, 0.0  ;;  %v3037_v47 = vmax.f32 %v1610_v32, 0.0 }
 0x12f   :  { %v1690_v35 = vpop.f32.mrb[34].mxu1  ;;  %v1614_v36 = vadd.f32 %v1613_v34, %v14300_v28  ;;  %v1615_v39 = vpop.f32.mrb[35].mxu0  ;;  %3623 = vmatprep.mubr.f32.mxu1 %v18319_v0  ;;  %v3039_v48 = vmax.f32 %v1687_v33, 0.0 }
 0x130   :  { %v1691_v37 = vadd.f32 %v1690_v35, %v14300_v28  ;;  %v1692_v40 = vpop.f32.mrb[35].mxu1  ;;  %12852 = vmatmul.mubr.msk.f32.gmra.mrb[96].mxu0 %vm3172_vm2, %v14367_v55  ;;  %v1616_v41 = vadd.f32 %v1615_v39, %v14300_v28 }
 0x131   :  { %v1693_v42 = vadd.f32 %v1692_v40, %v14300_v28  ;;  %v3106_v45 = vmax.f32 %v1614_v36, 0.0  ;;  %4050 = vmatprep.mubr.f32.mxu0 %v18319_v0 }
 0x132   :  { %v3108_v46 = vmax.f32 %v1691_v37, 0.0  ;;  %v3107_v49 = vmax.f32 %v1616_v41, 0.0  ;;  %v1761_v58 = vpop.f32.mrb[36].mxu0  ;;  %12840 = vmatmul.mubr.msk.f32.gmra.mrb[96].mxu1 %vm3172_vm2, %v14367_v55 }
 0x133   :  { %v3109_v56 = vmax.f32 %v1693_v42, 0.0  ;;  %v1838_v61 = vpop.f32.mrb[36].mxu1  ;;  %v14522_v62 = vpack.c.bf16 %v3106_v45, %v3036_v43  ;;  %v1763_v1 = vpop.f32.mrb[37].mxu0  ;;  %3783 = vmatprep.mubr.f32.mxu1 %v18319_v0  ;;  %v1762_v5 = vadd.f32 %v1761_v58, %v14295_v22 }
 0x134   :  { %v14524_v63 = vpack.c.bf16 %v3108_v46, %v3038_v44  ;;  %v1840_v2 = vpop.f32.mrb[37].mxu1  ;;  %12857 = vmatmul.mubr.msk.f32.vlgmr.msra.gmra.mrb[98].mxu0 %vm3172_vm2, %v14325_v6  ;;  %v14531_v4 = vpack.c.bf16 %v3107_v49, %v3037_v47  ;;  %v1839_v7 = vadd.f32 %v1838_v61, %v14295_v22  ;;  %v1764_v52 = vadd.f32 %v1763_v1, %v14295_v22 }
 0x135   :  { %v14529_v3 = vpack.c.bf16 %v3109_v56, %v3039_v48  ;;  %13288 = vmatpush1.bf16.msra.mxu0 %v14439_v8  ;;  %4056 = vmatprep.mubr.f32.mxu0 %v18319_v0  ;;  %v1841_v9 = vadd.f32 %v1840_v2, %v14295_v22  ;;  %v3040_v15 = vmax.f32 %v1762_v5, 0.0 }
 0x136   :  { %13294 = vmatprep.subr.bf16.mxu0 %v14470_v59  ;;  %v1767_v10 = vpop.f32.mrb[38].mxu0  ;;  %12845 = vmatmul.mubr.msk.f32.vlgmr.msra.gmra.mrb[98].mxu1 %vm3172_vm2, %v14325_v6  ;;  %v3042_v16 = vmax.f32 %v1839_v7, 0.0 }
 0x137   :  { %v1844_v11 = vpop.f32.mrb[38].mxu1  ;;  %v1768_v12 = vadd.f32 %v1767_v10, %v14300_v28  ;;  %13276 = vmatpush1.bf16.msra.mxu1 %v14410_v50  ;;  %v1769_v8 = vpop.f32.mrb[39].mxu0  ;;  %3789 = vmatprep.mubr.f32.mxu1 %v18319_v0  ;;  %v3041_v50 = vmax.f32 %v1764_v52, 0.0  ;;  %v3043_v13 = vmax.f32 %v1841_v9, 0.0 }
 0x138   :  { %v1845_v14 = vadd.f32 %v1844_v11, %v14300_v28  ;;  %v1846_v51 = vpop.f32.mrb[39].mxu1  ;;  %12858 = vmatmul.mubr.msk.f32.gmra.mrb[100].mxu0 %vm3172_vm2, %v14338_v24  ;;  %v1770_v59 = vadd.f32 %v1769_v8, %v14300_v28  ;;  %13282 = vmatprep.subr.bf16.mxu1 %v14444_v26 }
 0x139   :  { %v1847_v20 = vadd.f32 %v1846_v51, %v14300_v28  ;;  %v3110_v17 = vmax.f32 %v1768_v12, 0.0  ;;  %4062 = vmatprep.mubr.f32.mxu0 %v18319_v0 }
 0x13a   :  { %v3112_v18 = vmax.f32 %v1845_v14, 0.0  ;;  %v3111_v57 = vmax.f32 %v1770_v59, 0.0  ;;  %v1915_v21 = vpop.f32.mrb[40].mxu0  ;;  %12846 = vmatmul.mubr.msk.f32.gmra.mrb[100].mxu1 %vm3172_vm2, %v14338_v24 }
 0x13b   :  { %v3113_v27 = vmax.f32 %v1847_v20, 0.0  ;;  %v1992_v31 = vpop.f32.mrb[40].mxu1  ;;  %v14554_v32 = vpack.c.bf16 %v3110_v17, %v3040_v15  ;;  %v1917_v26 = vpop.f32.mrb[41].mxu0  ;;  %3795 = vmatprep.mubr.f32.mxu1 %v18319_v0  ;;  %v1916_v37 = vadd.f32 %v1915_v21, %v14295_v22 }
 0x13c   :  { %v14556_v33 = vpack.c.bf16 %v3112_v18, %v3042_v16  ;;  %v1994_v34 = vpop.f32.mrb[41].mxu1  ;;  %12859 = vmatmul.mubr.msk.f32.gmra.mrb[102].mxu0 %vm3172_vm2, %v14354_v38  ;;  %v14563_v36 = vpack.c.bf16 %v3111_v57, %v3041_v50  ;;  %v1993_v39 = vadd.f32 %v1992_v31, %v14295_v22  ;;  %v1918_v40 = vadd.f32 %v1917_v26, %v14295_v22 }
 0x13d   :  { %v14561_v35 = vpack.c.bf16 %v3113_v27, %v3043_v13  ;;  %4068 = vmatprep.mubr.f32.mxu0 %v18319_v0  ;;  %v1995_v41 = vadd.f32 %v1994_v34, %v14295_v22  ;;  %v3044_v56 = vmax.f32 %v1916_v37, 0.0 }
 0x13e   :  { %v1921_v42 = vpop.f32.mrb[42].mxu0  ;;  %12847 = vmatmul.mubr.msk.f32.gmra.mrb[102].mxu1 %vm3172_vm2, %v14354_v38  ;;  %v3046_v58 = vmax.f32 %v1993_v39, 0.0  ;;  %v3045_v2 = vmax.f32 %v1918_v40, 0.0 }
 0x13f   :  { %v1998_v43 = vpop.f32.mrb[42].mxu1  ;;  %v1922_v44 = vadd.f32 %v1921_v42, %v14300_v28  ;;  %v1923_v46 = vpop.f32.mrb[43].mxu0  ;;  %3801 = vmatprep.mubr.f32.mxu1 %v18319_v0  ;;  %v3047_v5 = vmax.f32 %v1995_v41, 0.0 }
 0x140   :  { %v1999_v45 = vadd.f32 %v1998_v43, %v14300_v28  ;;  %v2000_v47 = vpop.f32.mrb[43].mxu1  ;;  %12860 = vmatmul.mubr.msk.f32.gmra.mrb[104].mxu0 %vm3172_vm2, %v14367_v55  ;;  %v1924_v48 = vadd.f32 %v1923_v46, %v14300_v28 }
 0x141   :  { %v2001_v49 = vadd.f32 %v2000_v47, %v14300_v28  ;;  %v3114_v61 = vmax.f32 %v1922_v44, 0.0  ;;  %4228 = vmatprep.mubr.f32.mxu0 %v18319_v0 }
 0x142   :  { %v3116_v1 = vmax.f32 %v1999_v45, 0.0  ;;  %v3115_v7 = vmax.f32 %v1924_v48, 0.0  ;;  %v2069_v9 = vpop.f32.mrb[44].mxu0  ;;  %12848 = vmatmul.mubr.msk.f32.gmra.mrb[104].mxu1 %vm3172_vm2, %v14367_v55 }
 0x143   :  { %v3117_v52 = vmax.f32 %v2001_v49, 0.0  ;;  %v2146_v10 = vpop.f32.mrb[44].mxu1  ;;  %v14582_v11 = vpack.c.bf16 %v3114_v61, %v3044_v56  ;;  %v2071_v14 = vpop.f32.mrb[45].mxu0  ;;  %3961 = vmatprep.mubr.f32.mxu1 %v18319_v0  ;;  %v2070_v20 = vadd.f32 %v2069_v9, %v14295_v22 }
 0x144   :  { %v14584_v12 = vpack.c.bf16 %v3116_v1, %v3046_v58  ;;  %v2148_v8 = vpop.f32.mrb[45].mxu1  ;;  %12865 = vmatmul.mubr.msk.f32.vlgmr.msra.gmra.mrb[106].mxu0 %vm3172_vm2, %v14325_v6  ;;  %v14591_v59 = vpack.c.bf16 %v3115_v7, %v3045_v2  ;;  %v2147_v15 = vadd.f32 %v2146_v10, %v14295_v22  ;;  %v2072_v16 = vadd.f32 %v2071_v14, %v14295_v22 }
 0x145   :  { %v14589_v51 = vpack.c.bf16 %v3117_v52, %v3047_v5  ;;  %13296 = vmatpush1.bf16.msra.mxu0 %v14465_v54  ;;  %4234 = vmatprep.mubr.f32.mxu0 %v18319_v0  ;;  %v2149_v17 = vadd.f32 %v2148_v8, %v14295_v22  ;;  %v3048_v31 = vmax.f32 %v2070_v20, 0.0 }
 0x146   :  { %13302 = vmatprep.subr.bf16.mxu0 %v14501_v29  ;;  %v2075_v18 = vpop.f32.mrb[46].mxu0  ;;  %12853 = vmatmul.mubr.msk.f32.vlgmr.msra.gmra.mrb[106].mxu1 %vm3172_vm2, %v14325_v6  ;;  %v3050_v26 = vmax.f32 %v2147_v15, 0.0 }
 0x147   :  { %v2152_v50 = vpop.f32.mrb[46].mxu1  ;;  %v2076_v13 = vadd.f32 %v2075_v18, %v14300_v28  ;;  %13284 = vmatpush1.bf16.msra.mxu1 %v14437_v19  ;;  %v2077_v54 = vpop.f32.mrb[47].mxu0  ;;  %3967 = vmatprep.mubr.f32.mxu1 %v18319_v0  ;;  %v3049_v19 = vmax.f32 %v2072_v16, 0.0  ;;  %v3051_v39 = vmax.f32 %v2149_v17, 0.0 }
 0x148   :  { %v2153_v57 = vadd.f32 %v2152_v50, %v14300_v28  ;;  %v2154_v27 = vpop.f32.mrb[47].mxu1  ;;  %12866 = vmatmul.mubr.msk.f32.gmra.mrb[108].mxu0 %vm3172_vm2, %v14338_v24  ;;  %v2078_v29 = vadd.f32 %v2077_v54, %v14300_v28  ;;  %13290 = vmatprep.subr.bf16.mxu1 %v14472_v60 }
 0x149   :  { %v2155_v21 = vadd.f32 %v2154_v27, %v14300_v28  ;;  %v3118_v34 = vmax.f32 %v2076_v13, 0.0  ;;  %4240 = vmatprep.mubr.f32.mxu0 %v18319_v0 }
 0x14a   :  { %v3120_v37 = vmax.f32 %v2153_v57, 0.0  ;;  %v3119_v40 = vmax.f32 %v2078_v29, 0.0  ;;  %v2223_v42 = vpop.f32.mrb[48].mxu0  ;;  %12854 = vmatmul.mubr.msk.f32.gmra.mrb[108].mxu1 %vm3172_vm2, %v14338_v24 }
 0x14b   :  { %v3121_v41 = vmax.f32 %v2155_v21, 0.0  ;;  %v2300_v43 = vpop.f32.mrb[48].mxu1  ;;  %v14614_v44 = vpack.c.bf16 %v3118_v34, %v3048_v31  ;;  %v2225_v60 = vpop.f32.mrb[49].mxu0  ;;  %3973 = vmatprep.mubr.f32.mxu1 %v18319_v0  ;;  %v2224_v49 = vadd.f32 %v2223_v42, %v14295_v22 }
 0x14c   :  { %v14616_v45 = vpack.c.bf16 %v3120_v37, %v3050_v26  ;;  %v2302_v46 = vpop.f32.mrb[49].mxu1  ;;  %12867 = vmatmul.mubr.msk.f32.gmra.mrb[110].mxu0 %vm3172_vm2, %v14354_v38  ;;  %v14623_v48 = vpack.c.bf16 %v3119_v40, %v3049_v19  ;;  %v2301_v56 = vadd.f32 %v2300_v43, %v14295_v22  ;;  %v2226_v58 = vadd.f32 %v2225_v60, %v14295_v22 }
 0x14d   :  { %v14621_v47 = vpack.c.bf16 %v3121_v41, %v3051_v39  ;;  %4246 = vmatprep.mubr.f32.mxu0 %v18319_v0  ;;  %v2303_v61 = vadd.f32 %v2302_v46, %v14295_v22  ;;  %v3052_v8 = vmax.f32 %v2224_v49, 0.0 }
 0x14e   :  { %v2229_v1 = vpop.f32.mrb[50].mxu0  ;;  %12855 = vmatmul.mubr.msk.f32.gmra.mrb[110].mxu1 %vm3172_vm2, %v14354_v38  ;;  %v3054_v20 = vmax.f32 %v2301_v56, 0.0  ;;  %v3053_v17 = vmax.f32 %v2226_v58, 0.0 }
 0x14f   :  { %v2306_v2 = vpop.f32.mrb[50].mxu1  ;;  %v2230_v5 = vadd.f32 %v2229_v1, %v14300_v28  ;;  %v2231_v52 = vpop.f32.mrb[51].mxu0  ;;  %3979 = vmatprep.mubr.f32.mxu1 %v18319_v0  ;;  %v3055_v18 = vmax.f32 %v2303_v61, 0.0 }
 0x150   :  { %v2307_v7 = vadd.f32 %v2306_v2, %v14300_v28  ;;  %v2308_v9 = vpop.f32.mrb[51].mxu1  ;;  %12868 = vmatmul.mubr.msk.f32.gmra.mrb[112].mxu0 %vm3172_vm2, %v14367_v55  ;;  %v2232_v10 = vadd.f32 %v2231_v52, %v14300_v28 }
 0x151   :  { %v2309_v14 = vadd.f32 %v2308_v9, %v14300_v28  ;;  %v3122_v15 = vmax.f32 %v2230_v5, 0.0  ;;  %4406 = vmatprep.mubr.f32.mxu0 %v18319_v0 }
 0x152   :  { %v3124_v16 = vmax.f32 %v2307_v7, 0.0  ;;  %v3123_v50 = vmax.f32 %v2232_v10, 0.0  ;;  %v2377_v57 = vpop.f32.mrb[52].mxu0  ;;  %12856 = vmatmul.mubr.msk.f32.gmra.mrb[112].mxu1 %vm3172_vm2, %v14367_v55 }
 0x153   :  { %v3125_v13 = vmax.f32 %v2309_v14, 0.0  ;;  %v2454_v54 = vpop.f32.mrb[52].mxu1  ;;  %v14642_v27 = vpack.c.bf16 %v3122_v15, %v3052_v8  ;;  %v2379_v21 = vpop.f32.mrb[53].mxu0  ;;  %4139 = vmatprep.mubr.f32.mxu1 %v18319_v0  ;;  %v2378_v37 = vadd.f32 %v2377_v57, %v14295_v22 }
 0x154   :  { %v14644_v29 = vpack.c.bf16 %v3124_v16, %v3054_v20  ;;  %v2456_v31 = vpop.f32.mrb[53].mxu1  ;;  %12873 = vmatmul.mubr.msk.f32.vlgmr.msra.gmra.mrb[114].mxu0 %vm3172_vm2, %v14325_v6  ;;  %v14651_v34 = vpack.c.bf16 %v3123_v50, %v3053_v17  ;;  %v2455_v19 = vadd.f32 %v2454_v54, %v14295_v22  ;;  %v2380_v39 = vadd.f32 %v2379_v21, %v14295_v22 }
 0x155   :  { %v14649_v26 = vpack.c.bf16 %v3125_v13, %v3055_v18  ;;  %13304 = vmatpush1.bf16.msra.mxu0 %v14496_v25  ;;  %4412 = vmatprep.mubr.f32.mxu0 %v18319_v0  ;;  %v2457_v40 = vadd.f32 %v2456_v31, %v14295_v22 }
 0x156   :  { %13310 = vmatprep.subr.bf16.mxu0 %v14529_v3  ;;  %v2383_v41 = vpop.f32.mrb[54].mxu0  ;;  %12861 = vmatmul.mubr.msk.f32.vlgmr.msra.gmra.mrb[114].mxu1 %vm3172_vm2, %v14325_v6  ;;  %v3056_v6 = vmax.f32 %v2378_v37, 0.0  ;;  %v3058_v56 = vmax.f32 %v2455_v19, 0.0 }
 0x157   :  { %v2460_v42 = vpop.f32.mrb[54].mxu1  ;;  %v2384_v43 = vadd.f32 %v2383_v41, %v14300_v28  ;;  %13292 = vmatpush1.bf16.msra.mxu1 %v14463_v53  ;;  %v2385_v25 = vpop.f32.mrb[55].mxu0  ;;  %4145 = vmatprep.mubr.f32.mxu1 %v18319_v0  ;;  %v3057_v53 = vmax.f32 %v2380_v39, 0.0  ;;  %v3059_v1 = vmax.f32 %v2457_v40, 0.0 }
 0x158   :  { %v2461_v60 = vadd.f32 %v2460_v42, %v14300_v28  ;;  %v2462_v46 = vpop.f32.mrb[55].mxu1  ;;  %12874 = vmatmul.mubr.msk.f32.gmra.mrb[116].mxu0 %vm3172_vm2, %v14338_v24  ;;  %v2386_v3 = vadd.f32 %v2385_v25, %v14300_v28  ;;  %13298 = vmatprep.subr.bf16.mxu1 %v14503_v30 }
 0x159   :  { %v2463_v49 = vadd.f32 %v2462_v46, %v14300_v28  ;;  %v3126_v58 = vmax.f32 %v2384_v43, 0.0  ;;  %4418 = vmatprep.mubr.f32.mxu0 %v18319_v0 }
 0x15a   :  { %v3128_v61 = vmax.f32 %v2461_v60, 0.0  ;;  %v3127_v2 = vmax.f32 %v2386_v3, 0.0  ;;  %v2531_v7 = vpop.f32.mrb[56].mxu0  ;;  %12862 = vmatmul.mubr.msk.f32.gmra.mrb[116].mxu1 %vm3172_vm2, %v14338_v24 }
 0x15b   :  { %v3129_v5 = vmax.f32 %v2463_v49, 0.0  ;;  %v2608_v52 = vpop.f32.mrb[56].mxu1  ;;  %v14674_v9 = vpack.c.bf16 %v3126_v58, %v3056_v6  ;;  %v2533_v30 = vpop.f32.mrb[57].mxu0  ;;  %4151 = vmatprep.mubr.f32.mxu1 %v18319_v0  ;;  %v2532_v15 = vadd.f32 %v2531_v7, %v14295_v22  ;;  %v14710_v58 = vld [vmem:[%s18314_s4] sm:$0xff] }
 0x15c   :  { %v14676_v10 = vpack.c.bf16 %v3128_v61, %v3058_v56  ;;  %v2610_v14 = vpop.f32.mrb[57].mxu1  ;;  %12875 = vmatmul.mubr.msk.f32.gmra.mrb[118].mxu0 %vm3172_vm2, %v14354_v38  ;;  %v14683_v20 = vpack.c.bf16 %v3127_v2, %v3057_v53  ;;  %v2609_v16 = vadd.f32 %v2608_v52, %v14295_v22  ;;  %v2534_v24 = vadd.f32 %v2533_v30, %v14295_v22 }
 0x15d   :  { %v14681_v8 = vpack.c.bf16 %v3129_v5, %v3059_v1  ;;  %4424 = vmatprep.mubr.f32.mxu0 %v18319_v0  ;;  %v2611_v17 = vadd.f32 %v2610_v14, %v14295_v22  ;;  %v3060_v19 = vmax.f32 %v2532_v15, 0.0 }
 0x15e   :  { %v2537_v18 = vpop.f32.mrb[58].mxu0  ;;  %12863 = vmatmul.mubr.msk.f32.gmra.mrb[118].mxu1 %vm3172_vm2, %v14354_v38  ;;  %v3062_v39 = vmax.f32 %v2609_v16, 0.0  ;;  %v3061_v38 = vmax.f32 %v2534_v24, 0.0  ;;  %v14734_v16 = vld [vmem:[%s18314_s4 + $0x8] sm:$0xff] }
 0x15f   :  { %v2614_v50 = vpop.f32.mrb[58].mxu1  ;;  %v2538_v13 = vadd.f32 %v2537_v18, %v14300_v28  ;;  %v2539_v54 = vpop.f32.mrb[59].mxu0  ;;  %4157 = vmatprep.mubr.f32.mxu1 %v18319_v0  ;;  %v3063_v42 = vmax.f32 %v2611_v17, 0.0 }
 0x160   :  { %v2615_v57 = vadd.f32 %v2614_v50, %v14300_v28  ;;  %v2616_v21 = vpop.f32.mrb[59].mxu1  ;;  %12876 = vmatmul.mubr.msk.f32.gmra.mrb[120].mxu0 %vm3172_vm2, %v14367_v55  ;;  %v2540_v31 = vadd.f32 %v2539_v54, %v14300_v28 }
 0x161   :  { %v2617_v37 = vadd.f32 %v2616_v21, %v14300_v28  ;;  %v3130_v40 = vmax.f32 %v2538_v13, 0.0  ;;  %4584 = vmatprep.mubr.f32.mxu0 %v18319_v0 }
 0x162   :  { %v3132_v41 = vmax.f32 %v2615_v57, 0.0  ;;  %v3131_v43 = vmax.f32 %v2540_v31, 0.0  ;;  %v2685_v25 = vpop.f32.mrb[60].mxu0  ;;  %12864 = vmatmul.mubr.msk.f32.gmra.mrb[120].mxu1 %vm3172_vm2, %v14367_v55 }
 0x163   :  { %v3133_v60 = vmax.f32 %v2617_v37, 0.0  ;;  %v2762_v46 = vpop.f32.mrb[60].mxu1  ;;  %v14702_v3 = vpack.c.bf16 %v3130_v40, %v3060_v19  ;;  %v2687_v6 = vpop.f32.mrb[61].mxu0  ;;  %4317 = vmatprep.mubr.f32.mxu1 %v18319_v0  ;;  %v2686_v55 = vadd.f32 %v2685_v25, %v14295_v22 }
 0x164   :  { %v14704_v49 = vpack.c.bf16 %v3132_v41, %v3062_v39  ;;  %v2764_v56 = vpop.f32.mrb[61].mxu1  ;;  %12881 = vmatmul.mubr.msk.f32.vlgmr.msra.gmra.mrb[122].mxu0 %vm3172_vm2, %v14710_v58  ;;  %v14716_v53 = vpack.c.bf16 %v3131_v43, %v3061_v38  ;;  %v2763_v1 = vadd.f32 %v2762_v46, %v14295_v22  ;;  %v2688_v2 = vadd.f32 %v2687_v6, %v14295_v22  ;;  %v14752_v41 = vld [vmem:[%s18314_s4 + $0x10] sm:$0xff] }
 0x165   :  { %v14714_v61 = vpack.c.bf16 %v3133_v60, %v3063_v42  ;;  %13312 = vmatpush1.bf16.msra.mxu0 %v14524_v63  ;;  %4590 = vmatprep.mubr.f32.mxu0 %v18319_v0  ;;  %v2765_v5 = vadd.f32 %v2764_v56, %v14295_v22  ;;  %v3064_v17 = vmax.f32 %v2686_v55, 0.0 }
 0x166   :  { %13318 = vmatprep.subr.bf16.mxu0 %v14561_v35  ;;  %v2691_v7 = vpop.f32.mrb[62].mxu0  ;;  %12869 = vmatmul.mubr.msk.f32.vlgmr.msra.gmra.mrb[122].mxu1 %vm3172_vm2, %v14710_v58  ;;  %v3065_v13 = vmax.f32 %v2688_v2, 0.0 }
 0x167   :  { %v2768_v52 = vpop.f32.mrb[62].mxu1  ;;  %v2692_v30 = vadd.f32 %v2691_v7, %v14300_v28  ;;  %13300 = vmatpush1.bf16.msra.mxu1 %v14494_v23  ;;  %v2693_v63 = vpop.f32.mrb[63].mxu0  ;;  %4323 = vmatprep.mubr.f32.mxu1 %v18319_v0  ;;  %v3066_v23 = vmax.f32 %v2763_v1, 0.0  ;;  %v3067_v57 = vmax.f32 %v2765_v5, 0.0  ;;  %v14773_v7 = vld [vmem:[%s18314_s4 + $0x18] sm:$0xff] }
 0x168   :  { %v2769_v14 = vadd.f32 %v2768_v52, %v14300_v28  ;;  %v2770_v15 = vpop.f32.mrb[63].mxu1  ;;  %12882 = vmatmul.mubr.msk.f32.gmra.mrb[124].mxu0 %vm3172_vm2, %v14734_v16  ;;  %v2694_v35 = vadd.f32 %v2693_v63, %v14300_v28  ;;  %13306 = vmatprep.subr.bf16.mxu1 %v14531_v4 }
 0x169   :  { %v2771_v24 = vadd.f32 %v2770_v15, %v14300_v28  ;;  %v3134_v18 = vmax.f32 %v2692_v30, 0.0  ;;  %4596 = vmatprep.mubr.f32.mxu0 %v18319_v0 }
 0x16a   :  { %v3136_v50 = vmax.f32 %v2769_v14, 0.0  ;;  %v3135_v54 = vmax.f32 %v2694_v35, 0.0  ;;  %v2839_v31 = vpop.f32.mrb[64].mxu0  ;;  %12870 = vmatmul.mubr.msk.f32.gmra.mrb[124].mxu1 %vm3172_vm2, %v14734_v16 }
 0x16b   :  { %v3137_v21 = vmax.f32 %v2771_v24, 0.0  ;;  %v2916_v37 = vpop.f32.mrb[64].mxu1  ;;  %v14744_v19 = vpack.c.bf16 %v3134_v18, %v3064_v17  ;;  %v2841_v4 = vpop.f32.mrb[65].mxu0  ;;  %4329 = vmatprep.mubr.f32.mxu1 %v18319_v0  ;;  %v2840_v43 = vadd.f32 %v2839_v31, %v14295_v22 }
 0x16c   :  { %v14746_v39 = vpack.c.bf16 %v3136_v50, %v3066_v23  ;;  %v2918_v40 = vpop.f32.mrb[65].mxu1  ;;  %12883 = vmatmul.mubr.msk.f32.gmra.mrb[126].mxu0 %vm3172_vm2, %v14752_v41  ;;  %v14758_v42 = vpack.c.bf16 %v3135_v54, %v3065_v13  ;;  %v2917_v60 = vadd.f32 %v2916_v37, %v14295_v22  ;;  %v2842_v25 = vadd.f32 %v2841_v4, %v14295_v22 }
 0x16d   :  { %v14756_v38 = vpack.c.bf16 %v3137_v21, %v3067_v57  ;;  %4602 = vmatprep.mubr.f32.mxu0 %v18319_v0  ;;  %v2919_v46 = vadd.f32 %v2918_v40, %v14295_v22  ;;  %v3068_v14 = vmax.f32 %v2840_v43, 0.0 }
 0x16e   :  { %v2845_v6 = vpop.f32.mrb[66].mxu0  ;;  %12871 = vmatmul.mubr.msk.f32.gmra.mrb[126].mxu1 %vm3172_vm2, %v14752_v41  ;;  %v3070_v63 = vmax.f32 %v2917_v60, 0.0  ;;  %v3069_v24 = vmax.f32 %v2842_v25, 0.0 }
 0x16f   :  { %v2922_v56 = vpop.f32.mrb[66].mxu1  ;;  %v2846_v55 = vadd.f32 %v2845_v6, %v14300_v28  ;;  %v2847_v2 = vpop.f32.mrb[67].mxu0  ;;  %4335 = vmatprep.mubr.f32.mxu1 %v18319_v0  ;;  %v3071_v17 = vmax.f32 %v2919_v46, 0.0 }
 0x170   :  { %v2923_v1 = vadd.f32 %v2922_v56, %v14300_v28  ;;  %v2924_v5 = vpop.f32.mrb[67].mxu1  ;;  %12884 = vmatmul.mubr.msk.f32.gmra.mrb[128].mxu0 %vm3172_vm2, %v14773_v7  ;;  %v2848_v52 = vadd.f32 %v2847_v2, %v14300_v28 }
 0x171   :  { %v2925_v30 = vadd.f32 %v2924_v5, %v14300_v28  ;;  %v3138_v15 = vmax.f32 %v2846_v55, 0.0  ;;  %4762 = vmatprep.mubr.f32.mxu0 %v18319_v0 }
 0x172   :  { %v3140_v35 = vmax.f32 %v2923_v1, 0.0  ;;  %v3139_v23 = vmax.f32 %v2848_v52, 0.0  ;;  %v2993_v50 = vpop.f32.mrb[68].mxu0  ;;  %12872 = vmatmul.mubr.msk.f32.gmra.mrb[128].mxu1 %vm3172_vm2, %v14773_v7 }
 0x173   :  { %v3141_v18 = vmax.f32 %v2925_v30, 0.0  ;;  %v14782_v13 = vpack.c.bf16 %v3138_v15, %v3068_v14  ;;  %v2995_v54 = vpop.f32.mrb[69].mxu0  ;;  %4495 = vmatprep.mubr.f32.mxu1 %v18319_v0  ;;  %v2994_v37 = vadd.f32 %v2993_v50, %v14295_v22 }
 0x174   :  { %v14784_v57 = vpack.c.bf16 %v3140_v35, %v3070_v63  ;;  %12889 = vmatmul.mubr.msk.f32.vlgmr.msra.gmra.mrb[130].mxu0 %vm3172_vm2, %v14710_v58  ;;  %v14791_v31 = vpack.c.bf16 %v3139_v23, %v3069_v24  ;;  %v2996_v4 = vadd.f32 %v2995_v54, %v14295_v22 }
 0x175   :  { %v14789_v21 = vpack.c.bf16 %v3141_v18, %v3071_v17  ;;  %13320 = vmatpush1.bf16.msra.mxu0 %v14556_v33  ;;  %4768 = vmatprep.mubr.f32.mxu0 %v18319_v0  ;;  %v3072_v22 = vmax.f32 %v2994_v37, 0.0 }
 0x176   :  { %13326 = vmatprep.subr.bf16.mxu0 %v14589_v51  ;;  %v2999_v40 = vpop.f32.mrb[70].mxu0  ;;  %12877 = vmatmul.mubr.msk.f32.vlgmr.msra.gmra.mrb[130].mxu1 %vm3172_vm2, %v14710_v58  ;;  %v3073_v25 = vmax.f32 %v2996_v4, 0.0 }
 0x177   :  { %v3000_v43 = vadd.f32 %v2999_v40, %v14300_v28  ;;  %13308 = vmatpush1.bf16.msra.mxu1 %v14522_v62  ;;  %v3001_v60 = vpop.f32.mrb[71].mxu0  ;;  %4501 = vmatprep.mubr.f32.mxu1 %v18319_v0 }
 0x178   :  { %12890 = vmatmul.mubr.msk.f32.gmra.mrb[132].mxu0 %vm3172_vm2, %v14734_v16  ;;  %v3002_v33 = vadd.f32 %v3001_v60, %v14300_v28  ;;  %13314 = vmatprep.subr.bf16.mxu1 %v14563_v36  ;;  %v14952_v28 = vpop.permute.xlu1 %3154 }
 0x179   :  { %v3142_v51 = vmax.f32 %v3000_v43, 0.0  ;;  %4774 = vmatprep.mubr.f32.mxu0 %v18319_v0 }
 0x17a   :  { %v3143_v46 = vmax.f32 %v3002_v33, 0.0  ;;  %12878 = vmatmul.mubr.msk.f32.gmra.mrb[132].mxu1 %vm3172_vm2, %v14734_v16 }
 0x17b   :  { %v14810_v62 = vpack.c.bf16 %v3142_v51, %v3072_v22  ;;  %4507 = vmatprep.mubr.f32.mxu1 %v18319_v0 }
 0x17c   :  { %12891 = vmatmul.mubr.msk.f32.gmra.mrb[134].mxu0 %vm3172_vm2, %v14752_v41  ;;  %v14815_v6 = vpack.c.bf16 %v3143_v46, %v3073_v25 }
 0x17d   :  { %4780 = vmatprep.mubr.f32.mxu0 %v18319_v0 }
 0x17e   :  { %12879 = vmatmul.mubr.msk.f32.gmra.mrb[134].mxu1 %vm3172_vm2, %v14752_v41 }
 0x17f   :  { %4513 = vmatprep.mubr.f32.mxu1 %v18319_v0 }
 0x180   :  { %12892 = vmatmul.mubr.msk.f32.gmra.mrb[136].mxu0 %vm3172_vm2, %v14773_v7 }
 0x181   :  { %4940 = vmatprep.mubr.f32.mxu0 %v18319_v0 }
 0x182   :  { %12880 = vmatmul.mubr.msk.f32.gmra.mrb[136].mxu1 %vm3172_vm2, %v14773_v7 }
 0x183   :  { %4673 = vmatprep.mubr.f32.mxu1 %v18319_v0 }
 0x184   :  { %12897 = vmatmul.mubr.msk.f32.vlgmr.msra.gmra.mrb[138].mxu0 %vm3172_vm2, %v14710_v58 }
 0x185   :  { %13328 = vmatpush1.bf16.msra.mxu0 %v14584_v12  ;;  %4946 = vmatprep.mubr.f32.mxu0 %v18319_v0 }
 0x186   :  { %13334 = vmatprep.subr.bf16.mxu0 %v14621_v47  ;;  %12885 = vmatmul.mubr.msk.f32.vlgmr.msra.gmra.mrb[138].mxu1 %vm3172_vm2, %v14710_v58 }
 0x187   :  { %13316 = vmatpush1.bf16.msra.mxu1 %v14554_v32  ;;  %4679 = vmatprep.mubr.f32.mxu1 %v18319_v0 }
 0x188   :  { %12898 = vmatmul.mubr.msk.f32.gmra.mrb[140].mxu0 %vm3172_vm2, %v14734_v16  ;;  %13322 = vmatprep.subr.bf16.mxu1 %v14591_v59  ;;  %v14963_v59 = vpop.permute.xlu1 %3159 }
 0x189   :  { %4952 = vmatprep.mubr.f32.mxu0 %v18319_v0 }
 0x18a   :  { %12886 = vmatmul.mubr.msk.f32.gmra.mrb[140].mxu1 %vm3172_vm2, %v14734_v16 }
 0x18b   :  { %4685 = vmatprep.mubr.f32.mxu1 %v18319_v0 }
 0x18c   :  { %12899 = vmatmul.mubr.msk.f32.gmra.mrb[142].mxu0 %vm3172_vm2, %v14752_v41 }
 0x18d   :  { %4958 = vmatprep.mubr.f32.mxu0 %v18319_v0 }
 0x18e   :  { %12887 = vmatmul.mubr.msk.f32.gmra.mrb[142].mxu1 %vm3172_vm2, %v14752_v41 }
 0x18f   :  { %4691 = vmatprep.mubr.f32.mxu1 %v18319_v0 }
 0x190   :  { %12900 = vmatmul.mubr.msk.f32.gmra.mrb[144].mxu0 %vm3172_vm2, %v14773_v7 }
 0x191   :  { %5118 = vmatprep.mubr.f32.mxu0 %v18319_v0 }
 0x192   :  { %12888 = vmatmul.mubr.msk.f32.gmra.mrb[144].mxu1 %vm3172_vm2, %v14773_v7 }
 0x193   :  { %4851 = vmatprep.mubr.f32.mxu1 %v18319_v0 }
 0x194   :  { %12905 = vmatmul.mubr.msk.f32.vlgmr.msra.gmra.mrb[146].mxu0 %vm3172_vm2, %v14710_v58 }
 0x195   :  { %13336 = vmatpush1.bf16.msra.mxu0 %v14616_v45  ;;  %5124 = vmatprep.mubr.f32.mxu0 %v18319_v0 }
 0x196   :  { %13342 = vmatprep.subr.bf16.mxu0 %v14649_v26  ;;  %12893 = vmatmul.mubr.msk.f32.vlgmr.msra.gmra.mrb[146].mxu1 %vm3172_vm2, %v14710_v58 }
 0x197   :  { %13324 = vmatpush1.bf16.msra.mxu1 %v14582_v11  ;;  %4857 = vmatprep.mubr.f32.mxu1 %v18319_v0 }
 0x198   :  { %12906 = vmatmul.mubr.msk.f32.gmra.mrb[148].mxu0 %vm3172_vm2, %v14734_v16  ;;  %13330 = vmatprep.subr.bf16.mxu1 %v14623_v48 }
 0x199   :  { %5130 = vmatprep.mubr.f32.mxu0 %v18319_v0 }
 0x19a   :  { %12894 = vmatmul.mubr.msk.f32.gmra.mrb[148].mxu1 %vm3172_vm2, %v14734_v16 }
 0x19b   :  { %4863 = vmatprep.mubr.f32.mxu1 %v18319_v0 }
 0x19c   :  { %12907 = vmatmul.mubr.msk.f32.gmra.mrb[150].mxu0 %vm3172_vm2, %v14752_v41 }
 0x19d   :  { %5136 = vmatprep.mubr.f32.mxu0 %v18319_v0 }
 0x19e   :  { %12895 = vmatmul.mubr.msk.f32.gmra.mrb[150].mxu1 %vm3172_vm2, %v14752_v41 }
 0x19f   :  { %4869 = vmatprep.mubr.f32.mxu1 %v18319_v0 }
 0x1a0   :  { %12908 = vmatmul.mubr.msk.f32.gmra.mrb[152].mxu0 %vm3172_vm2, %v14773_v7 }
 0x1a1   :  { %5296 = vmatprep.mubr.f32.mxu0 %v18319_v0 }
 0x1a2   :  { %12896 = vmatmul.mubr.msk.f32.gmra.mrb[152].mxu1 %vm3172_vm2, %v14773_v7 }
 0x1a3   :  { %5029 = vmatprep.mubr.f32.mxu1 %v18319_v0 }
 0x1a4   :  { %12913 = vmatmul.mubr.msk.f32.vlgmr.msra.gmra.mrb[154].mxu0 %vm3172_vm2, %v14710_v58 }
 0x1a5   :  { %13344 = vmatpush1.bf16.msra.mxu0 %v14644_v29  ;;  %5302 = vmatprep.mubr.f32.mxu0 %v18319_v0 }
 0x1a6   :  { %13350 = vmatprep.subr.bf16.mxu0 %v14681_v8  ;;  %12901 = vmatmul.mubr.msk.f32.vlgmr.msra.gmra.mrb[154].mxu1 %vm3172_vm2, %v14710_v58 }
 0x1a7   :  { %13332 = vmatpush1.bf16.msra.mxu1 %v14614_v44  ;;  %5035 = vmatprep.mubr.f32.mxu1 %v18319_v0 }
 0x1a8   :  { %12914 = vmatmul.mubr.msk.f32.gmra.mrb[156].mxu0 %vm3172_vm2, %v14734_v16  ;;  %13338 = vmatprep.subr.bf16.mxu1 %v14651_v34 }
 0x1a9   :  { %5308 = vmatprep.mubr.f32.mxu0 %v18319_v0 }
 0x1aa   :  { %12902 = vmatmul.mubr.msk.f32.gmra.mrb[156].mxu1 %vm3172_vm2, %v14734_v16 }
 0x1ab   :  { %5041 = vmatprep.mubr.f32.mxu1 %v18319_v0 }
 0x1ac   :  { %12915 = vmatmul.mubr.msk.f32.gmra.mrb[158].mxu0 %vm3172_vm2, %v14752_v41 }
 0x1ad   :  { %5314 = vmatprep.mubr.f32.mxu0 %v18319_v0 }
 0x1ae   :  { %12903 = vmatmul.mubr.msk.f32.gmra.mrb[158].mxu1 %vm3172_vm2, %v14752_v41 }
 0x1af   :  { %5047 = vmatprep.mubr.f32.mxu1 %v18319_v0 }
 0x1b0   :  { %12916 = vmatmul.mubr.msk.f32.gmra.mrb[160].mxu0 %vm3172_vm2, %v14773_v7 }
 0x1b1   :  { %5474 = vmatprep.mubr.f32.mxu0 %v18319_v0 }
 0x1b2   :  { %12904 = vmatmul.mubr.msk.f32.gmra.mrb[160].mxu1 %vm3172_vm2, %v14773_v7 }
 0x1b3   :  { %5207 = vmatprep.mubr.f32.mxu1 %v18319_v0 }
 0x1b4   :  { %12921 = vmatmul.mubr.msk.f32.vlgmr.msra.gmra.mrb[162].mxu0 %vm3172_vm2, %v14710_v58 }
 0x1b5   :  { %13352 = vmatpush1.bf16.msra.mxu0 %v14676_v10  ;;  %5480 = vmatprep.mubr.f32.mxu0 %v18319_v0 }
 0x1b6   :  { %13358 = vmatprep.subr.bf16.mxu0 %v14714_v61  ;;  %12909 = vmatmul.mubr.msk.f32.vlgmr.msra.gmra.mrb[162].mxu1 %vm3172_vm2, %v14710_v58 }
 0x1b7   :  { %13340 = vmatpush1.bf16.msra.mxu1 %v14642_v27  ;;  %5213 = vmatprep.mubr.f32.mxu1 %v18319_v0 }
 0x1b8   :  { %12922 = vmatmul.mubr.msk.f32.gmra.mrb[164].mxu0 %vm3172_vm2, %v14734_v16  ;;  %13346 = vmatprep.subr.bf16.mxu1 %v14683_v20 }
 0x1b9   :  { %5486 = vmatprep.mubr.f32.mxu0 %v18319_v0 }
 0x1ba   :  { %12910 = vmatmul.mubr.msk.f32.gmra.mrb[164].mxu1 %vm3172_vm2, %v14734_v16 }
 0x1bb   :  { %5219 = vmatprep.mubr.f32.mxu1 %v18319_v0 }
 0x1bc   :  { %12923 = vmatmul.mubr.msk.f32.gmra.mrb[166].mxu0 %vm3172_vm2, %v14752_v41 }
 0x1bd   :  { %5492 = vmatprep.mubr.f32.mxu0 %v18319_v0 }
 0x1be   :  { %12911 = vmatmul.mubr.msk.f32.gmra.mrb[166].mxu1 %vm3172_vm2, %v14752_v41 }
 0x1bf   :  { %5225 = vmatprep.mubr.f32.mxu1 %v18319_v0 }
 0x1c0   :  { %12924 = vmatmul.mubr.msk.f32.gmra.mrb[168].mxu0 %vm3172_vm2, %v14773_v7 }
 0x1c1   :  { %5652 = vmatprep.mubr.f32.mxu0 %v18319_v0 }
 0x1c2   :  { %12912 = vmatmul.mubr.msk.f32.gmra.mrb[168].mxu1 %vm3172_vm2, %v14773_v7 }
 0x1c3   :  { %5385 = vmatprep.mubr.f32.mxu1 %v18319_v0 }
 0x1c4   :  { %12929 = vmatmul.mubr.msk.f32.vlgmr.msra.gmra.mrb[170].mxu0 %vm3172_vm2, %v14710_v58 }
 0x1c5   :  { %13360 = vmatpush1.bf16.msra.mxu0 %v14704_v49  ;;  %5658 = vmatprep.mubr.f32.mxu0 %v18319_v0 }
 0x1c6   :  { %13366 = vmatprep.subr.bf16.mxu0 %v14756_v38  ;;  %12917 = vmatmul.mubr.msk.f32.vlgmr.msra.gmra.mrb[170].mxu1 %vm3172_vm2, %v14710_v58  ;;  %v14987_v38 = vpop.permute.xlu1 %3169 }
 0x1c7   :  { %13348 = vmatpush1.bf16.msra.mxu1 %v14674_v9  ;;  %5391 = vmatprep.mubr.f32.mxu1 %v18319_v0  ;;  %v14977_v9 = vpop.permute.xlu0 %3164 }
 0x1c8   :  { %12930 = vmatmul.mubr.msk.f32.gmra.mrb[172].mxu0 %vm3172_vm2, %v14734_v16  ;;  %13354 = vmatprep.subr.bf16.mxu1 %v14716_v53 }
 0x1c9   :  { %5664 = vmatprep.mubr.f32.mxu0 %v18319_v0 }
 0x1ca   :  { %12918 = vmatmul.mubr.msk.f32.gmra.mrb[172].mxu1 %vm3172_vm2, %v14734_v16 }
 0x1cb   :  { %5397 = vmatprep.mubr.f32.mxu1 %v18319_v0 }
 0x1cc   :  { %12931 = vmatmul.mubr.msk.f32.gmra.mrb[174].mxu0 %vm3172_vm2, %v14752_v41 }
 0x1cd   :  { %5670 = vmatprep.mubr.f32.mxu0 %v18319_v0  ;;  %v3251_v32 = vpop.f32.mrb[68].mxu1 }
 0x1ce   :  { %v3340_v36 = vpop.f32.mrb[72].mxu0  ;;  %12919 = vmatmul.mubr.msk.f32.gmra.mrb[174].mxu1 %vm3172_vm2, %v14752_v41  ;;  %v3253_v11 = vpop.f32.mrb[69].mxu1  ;;  %v3252_v44 = vadd.f32 %v3251_v32, %v14952_v28 }
 0x1cf   :  { %v3342_v12 = vpop.f32.mrb[73].mxu0  ;;  %5403 = vmatprep.mubr.f32.mxu1 %v18319_v0  ;;  %v3254_v45 = vadd.f32 %v3253_v11, %v14952_v28  ;;  %v3341_v63 = vadd.f32 %v3340_v36, %v14952_v28 }
 0x1d0   :  { %12932 = vmatmul.mubr.msk.f32.gmra.mrb[176].mxu0 %vm3172_vm2, %v14773_v7  ;;  %v6300_v26 = vmax.f32 %v3252_v44, 0.0 }
 0x1d1   :  { %v3257_v47 = vpop.f32.mrb[70].mxu1  ;;  %5830 = vmatprep.mubr.f32.mxu0 %v18319_v0  ;;  %v6301_v10 = vmax.f32 %v3254_v45, 0.0  ;;  %v6302_v36 = vmax.f32 %v3341_v63, 0.0 }
 0x1d2   :  { %v3259_v48 = vpop.f32.mrb[71].mxu1  ;;  %12920 = vmatmul.mubr.msk.f32.gmra.mrb[176].mxu1 %vm3172_vm2, %v14773_v7  ;;  %v3258_v27 = vadd.f32 %v3257_v47, %v14963_v59 }
 0x1d3   :  { %v3260_v29 = vadd.f32 %v3259_v48, %v14963_v59  ;;  %5563 = vmatprep.mubr.f32.mxu1 %v18319_v0 }
 0x1d4   :  { %12937 = vmatmul.mubr.msk.f32.vlgmr.msra.gmra.mrb[178].mxu0 %vm3172_vm2, %v14710_v58  ;;  %v6370_v34 = vmax.f32 %v3258_v27, 0.0 }
 0x1d5   :  { %v6371_v8 = vmax.f32 %v3260_v29, 0.0  ;;  %13368 = vmatpush1.bf16.msra.mxu0 %v14746_v39  ;;  %v3263_v20 = vpop.f32.mrb[72].mxu1  ;;  %5836 = vmatprep.mubr.f32.mxu0 %v18319_v0 }
 0x1d6   :  { %13374 = vmatprep.subr.bf16.mxu0 %v14789_v21  ;;  %v3265_v49 = vpop.f32.mrb[73].mxu1  ;;  %12925 = vmatmul.mubr.msk.f32.vlgmr.msra.gmra.mrb[178].mxu1 %vm3172_vm2, %v14710_v58  ;;  %v3518_v61 = vpop.f32.mrb[74].mxu0  ;;  %v14984_v53 = vpack.c.bf16 %v6370_v34, %v6300_v26  ;;  %v3264_v1 = vadd.f32 %v3263_v20, %v14977_v9  ;;  %v3343_v21 = vadd.f32 %v3342_v12, %v14952_v28 }
 0x1d7   :  { %13356 = vmatpush1.bf16.msra.mxu1 %v14702_v3  ;;  %v3519_v56 = vadd.f32 %v3518_v61, %v14952_v28  ;;  %5569 = vmatprep.mubr.f32.mxu1 %v18319_v0  ;;  %v3520_v39 = vpop.f32.mrb[75].mxu0  ;;  %v14991_v55 = vpack.c.bf16 %v6371_v8, %v6301_v10  ;;  %v3266_v3 = vadd.f32 %v3265_v49, %v14977_v9 }
 0x1d8   :  { %12938 = vmatmul.mubr.msk.f32.gmra.mrb[180].mxu0 %vm3172_vm2, %v14734_v16  ;;  %13362 = vmatprep.subr.bf16.mxu1 %v14758_v42  ;;  %v3521_v2 = vadd.f32 %v3520_v39, %v14952_v28  ;;  %v6440_v17 = vmax.f32 %v3264_v1, 0.0  ;;  %v6303_v45 = vmax.f32 %v3343_v21, 0.0 }
 0x1d9   :  { %v3269_v5 = vpop.f32.mrb[74].mxu1  ;;  %5842 = vmatprep.mubr.f32.mxu0 %v18319_v0  ;;  %v6306_v15 = vmax.f32 %v3519_v56, 0.0  ;;  %v6441_v54 = vmax.f32 %v3266_v3, 0.0 }
 0x1da   :  { %v3270_v52 = vadd.f32 %v3269_v5, %v14987_v38  ;;  %v3271_v30 = vpop.f32.mrb[75].mxu1  ;;  %12926 = vmatmul.mubr.msk.f32.gmra.mrb[180].mxu1 %vm3172_vm2, %v14734_v16  ;;  %v3524_v14 = vpop.f32.mrb[76].mxu0  ;;  %v6307_v18 = vmax.f32 %v3521_v2, 0.0 }
 0x1db   :  { %v3272_v35 = vadd.f32 %v3271_v30, %v14987_v38  ;;  %v3525_v42 = vadd.f32 %v3524_v14, %v14963_v59  ;;  %v3526_v24 = vpop.f32.mrb[77].mxu0  ;;  %5575 = vmatprep.mubr.f32.mxu1 %v18319_v0 }
 0x1dc   :  { %v6510_v23 = vmax.f32 %v3270_v52, 0.0  ;;  %12939 = vmatmul.mubr.msk.f32.gmra.mrb[182].mxu0 %vm3172_vm2, %v14752_v41  ;;  %v3527_v50 = vadd.f32 %v3526_v24, %v14963_v59 }
 0x1dd   :  { %v6511_v37 = vmax.f32 %v3272_v35, 0.0  ;;  %v6376_v4 = vmax.f32 %v3525_v42, 0.0  ;;  %v3346_v40 = vpop.f32.mrb[76].mxu1  ;;  %5848 = vmatprep.mubr.f32.mxu0 %v18319_v0 }
 0x1de   :  { %v15012_v43 = vpack.c.bf16 %v6510_v23, %v6440_v17  ;;  %v6377_v60 = vmax.f32 %v3527_v50, 0.0  ;;  %v3347_v33 = vadd.f32 %v3346_v40, %v14963_v59  ;;  %v3348_v22 = vpop.f32.mrb[77].mxu1  ;;  %12927 = vmatmul.mubr.msk.f32.gmra.mrb[182].mxu1 %vm3172_vm2, %v14752_v41  ;;  %v3530_v25 = vpop.f32.mrb[78].mxu0 }
 0x1df   :  { %v15017_v51 = vpack.c.bf16 %v6376_v4, %v6306_v15  ;;  %v3349_v46 = vadd.f32 %v3348_v22, %v14963_v59  ;;  %5581 = vmatprep.mubr.f32.mxu1 %v18319_v0  ;;  %v15021_v32 = vpack.c.bf16 %v6511_v37, %v6441_v54  ;;  %v3532_v12 = vpop.f32.mrb[79].mxu0  ;;  %v3531_v29 = vadd.f32 %v3530_v25, %v14977_v9 }
 0x1e0   :  { %v6372_v11 = vmax.f32 %v3347_v33, 0.0  ;;  %12940 = vmatmul.mubr.msk.f32.gmra.mrb[184].mxu0 %vm3172_vm2, %v14773_v7  ;;  %v15025_v44 = vpack.c.bf16 %v6377_v60, %v6307_v18  ;;  %v3533_v34 = vadd.f32 %v3532_v12, %v14977_v9 }
 0x1e1   :  { %v6373_v47 = vmax.f32 %v3349_v46, 0.0  ;;  %v3352_v48 = vpop.f32.mrb[78].mxu1  ;;  %6008 = vmatprep.mubr.f32.mxu0 %v18319_v0  ;;  %v6446_v2 = vmax.f32 %v3531_v29, 0.0 }
 0x1e2   :  { %v15028_v27 = vpack.c.bf16 %v6372_v11, %v6302_v36  ;;  %v3354_v26 = vpop.f32.mrb[79].mxu1  ;;  %12928 = vmatmul.mubr.msk.f32.gmra.mrb[184].mxu1 %vm3172_vm2, %v14773_v7  ;;  %v3353_v20 = vadd.f32 %v3352_v48, %v14977_v9  ;;  %v6447_v30 = vmax.f32 %v3533_v34, 0.0 }
 0x1e3   :  { %v3536_v10 = vpop.f32.mrb[80].mxu0  ;;  %5741 = vmatprep.mubr.f32.mxu1 %v18319_v0  ;;  %v15035_v8 = vpack.c.bf16 %v6373_v47, %v6303_v45  ;;  %v3355_v56 = vadd.f32 %v3354_v26, %v14977_v9 }
 0x1e4   :  { %v3537_v49 = vadd.f32 %v3536_v10, %v14987_v38  ;;  %v3538_v61 = vpop.f32.mrb[81].mxu0  ;;  %12945 = vmatmul.mubr.msk.f32.vlgmr.msra.gmra.mrb[186].mxu0 %vm3172_vm2, %v14710_v58  ;;  %v6442_v15 = vmax.f32 %v3353_v20, 0.0 }
 0x1e5   :  { %v3539_v39 = vadd.f32 %v3538_v61, %v14987_v38  ;;  %13376 = vmatpush1.bf16.msra.mxu0 %v14784_v57  ;;  %v3358_v1 = vpop.f32.mrb[80].mxu1  ;;  %6014 = vmatprep.mubr.f32.mxu0 %v18319_v0  ;;  %v6443_v17 = vmax.f32 %v3355_v56, 0.0 }
 0x1e6   :  { %v6516_v3 = vmax.f32 %v3537_v49, 0.0  ;;  %13382 = vmatprep.subr.bf16.mxu0 %v14991_v55  ;;  %v3359_v5 = vadd.f32 %v3358_v1, %v14987_v38  ;;  %v3360_v52 = vpop.f32.mrb[81].mxu1  ;;  %12933 = vmatmul.mubr.msk.f32.vlgmr.msra.gmra.mrb[186].mxu1 %vm3172_vm2, %v14710_v58 }
 0x1e7   :  { %v6517_v14 = vmax.f32 %v3539_v39, 0.0  ;;  %v3361_v63 = vadd.f32 %v3360_v52, %v14987_v38  ;;  %13364 = vmatpush1.bf16.msra.mxu1 %v14744_v19  ;;  %v3696_v57 = vpop.f32.mrb[82].mxu0  ;;  %5747 = vmatprep.mubr.f32.mxu1 %v18319_v0 }
 0x1e8   :  { %v15052_v35 = vpack.c.bf16 %v6516_v3, %v6446_v2  ;;  %v6512_v42 = vmax.f32 %v3359_v5, 0.0  ;;  %12946 = vmatmul.mubr.msk.f32.gmra.mrb[188].mxu0 %vm3172_vm2, %v14734_v16  ;;  %13370 = vmatprep.subr.bf16.mxu1 %v14791_v31  ;;  %v3697_v55 = vadd.f32 %v3696_v57, %v14952_v28  ;;  %v3698_v24 = vpop.f32.mrb[83].mxu0 }
 0x1e9   :  { %v6513_v23 = vmax.f32 %v3361_v63, 0.0  ;;  %6020 = vmatprep.mubr.f32.mxu0 %v18319_v0  ;;  %v3699_v19 = vadd.f32 %v3698_v24, %v14952_v28  ;;  %v3429_v18 = vpop.f32.mrb[82].mxu1  ;;  %v15060_v50 = vpack.c.bf16 %v6517_v14, %v6447_v30 }
 0x1ea   :  { %v15062_v54 = vpack.c.bf16 %v6512_v42, %v6442_v15  ;;  %12934 = vmatmul.mubr.msk.f32.gmra.mrb[188].mxu1 %vm3172_vm2, %v14734_v16  ;;  %v3431_v21 = vpop.f32.mrb[83].mxu1  ;;  %v6310_v4 = vmax.f32 %v3697_v55, 0.0  ;;  %v3430_v40 = vadd.f32 %v3429_v18, %v14952_v28 }
 0x1eb   :  { %v3702_v37 = vpop.f32.mrb[84].mxu0  ;;  %5753 = vmatprep.mubr.f32.mxu1 %v18319_v0  ;;  %v15067_v31 = vpack.c.bf16 %v6513_v23, %v6443_v17  ;;  %v6311_v22 = vmax.f32 %v3699_v19, 0.0  ;;  %v3432_v25 = vadd.f32 %v3431_v21, %v14952_v28 }
 0x1ec   :  { %12947 = vmatmul.mubr.msk.f32.gmra.mrb[190].mxu0 %vm3172_vm2, %v14752_v41  ;;  %v3703_v60 = vadd.f32 %v3702_v37, %v14963_v59  ;;  %v3704_v33 = vpop.f32.mrb[85].mxu0  ;;  %v6304_v26 = vmax.f32 %v3430_v40, 0.0 }
 0x1ed   :  { %v3705_v46 = vadd.f32 %v3704_v33, %v14963_v59  ;;  %v3435_v36 = vpop.f32.mrb[84].mxu1  ;;  %6026 = vmatprep.mubr.f32.mxu0 %v18319_v0  ;;  %v6305_v49 = vmax.f32 %v3432_v25, 0.0 }
 0x1ee   :  { %v6380_v11 = vmax.f32 %v3703_v60, 0.0  ;;  %v3436_v12 = vadd.f32 %v3435_v36, %v14963_v59  ;;  %v3437_v45 = vpop.f32.mrb[85].mxu1  ;;  %12935 = vmatmul.mubr.msk.f32.gmra.mrb[190].mxu1 %vm3172_vm2, %v14752_v41 }
 0x1ef   :  { %v6381_v47 = vmax.f32 %v3705_v46, 0.0  ;;  %v3708_v48 = vpop.f32.mrb[86].mxu0  ;;  %v3438_v29 = vadd.f32 %v3437_v45, %v14963_v59  ;;  %5759 = vmatprep.mubr.f32.mxu1 %v18319_v0 }
 0x1f0   :  { %v15081_v34 = vpack.c.bf16 %v6380_v11, %v6310_v4  ;;  %v6374_v10 = vmax.f32 %v3436_v12, 0.0  ;;  %v3710_v20 = vpop.f32.mrb[87].mxu0  ;;  %12948 = vmatmul.mubr.msk.f32.gmra.mrb[192].mxu0 %vm3172_vm2, %v14773_v7  ;;  %v3709_v2 = vadd.f32 %v3708_v48, %v14977_v9 }
 0x1f1   :  { %v6375_v61 = vmax.f32 %v3438_v29, 0.0  ;;  %v3441_v56 = vpop.f32.mrb[86].mxu1  ;;  %6186 = vmatprep.mubr.f32.mxu0 %v18319_v0  ;;  %v15086_v39 = vpack.c.bf16 %v6381_v47, %v6311_v22  ;;  %v3711_v5 = vadd.f32 %v3710_v20, %v14977_v9 }
 0x1f2   :  { %v15088_v1 = vpack.c.bf16 %v6374_v10, %v6304_v26  ;;  %v3443_v3 = vpop.f32.mrb[87].mxu1  ;;  %12936 = vmatmul.mubr.msk.f32.gmra.mrb[192].mxu1 %vm3172_vm2, %v14773_v7  ;;  %v3442_v14 = vadd.f32 %v3441_v56, %v14977_v9  ;;  %v6450_v24 = vmax.f32 %v3709_v2, 0.0 }
 0x1f3   :  { %v3714_v52 = vpop.f32.mrb[88].mxu0  ;;  %5919 = vmatprep.mubr.f32.mxu1 %v18319_v0  ;;  %v13397_v30 = vpack.c.bf16 %v6375_v61, %v6305_v49  ;;  %v3444_v15 = vadd.f32 %v3443_v3, %v14977_v9  ;;  %v6451_v18 = vmax.f32 %v3711_v5, 0.0 }
 0x1f4   :  { %v3715_v63 = vadd.f32 %v3714_v52, %v14987_v38  ;;  %v3716_v57 = vpop.f32.mrb[89].mxu0  ;;  %12953 = vmatmul.mubr.msk.f32.vlgmr.msra.gmra.mrb[194].mxu0 %vm3172_vm2, %v14710_v58 }
 0x1f5   :  { %v3717_v42 = vadd.f32 %v3716_v57, %v14987_v38  ;;  %13384 = vmatpush1.bf16.msra.mxu0 %v14984_v53  ;;  %v3447_v55 = vpop.f32.mrb[88].mxu1  ;;  %6192 = vmatprep.mubr.f32.mxu0 %v18319_v0  ;;  %v6444_v53 = vmax.f32 %v3442_v14, 0.0  ;;  %v6445_v33 = vmax.f32 %v3444_v15, 0.0 }
 0x1f6   :  { %v6520_v17 = vmax.f32 %v3715_v63, 0.0  ;;  %13386 = vmatprep.subr.bf16.mxu0 %v15021_v32  ;;  %v3448_v23 = vadd.f32 %v3447_v55, %v14987_v38  ;;  %v3449_v19 = vpop.f32.mrb[89].mxu1  ;;  %12941 = vmatmul.mubr.msk.f32.vlgmr.msra.gmra.mrb[194].mxu1 %vm3172_vm2, %v14710_v58 }
 0x1f7   :  { %v6521_v21 = vmax.f32 %v3717_v42, 0.0  ;;  %v3874_v37 = vpop.f32.mrb[90].mxu0  ;;  %v3450_v4 = vadd.f32 %v3449_v19, %v14987_v38  ;;  %13372 = vmatpush1.bf16.msra.mxu1 %v14782_v13  ;;  %5925 = vmatprep.mubr.f32.mxu1 %v18319_v0 }
 0x1f8   :  { %v15110_v40 = vpack.c.bf16 %v6520_v17, %v6450_v24  ;;  %v6514_v60 = vmax.f32 %v3448_v23, 0.0  ;;  %v3876_v32 = vpop.f32.mrb[91].mxu0  ;;  %12954 = vmatmul.mubr.msk.f32.gmra.mrb[196].mxu0 %vm3172_vm2, %v14734_v16  ;;  %13378 = vmatprep.subr.bf16.mxu1 %v14815_v6  ;;  %v3875_v36 = vadd.f32 %v3874_v37, %v14952_v28  ;;  %v15146_v24 = vld [vmem:[%s18316_s6] sm:$0xff] }
 0x1f9   :  { %v6515_v22 = vmax.f32 %v3450_v4, 0.0  ;;  %13388 = vmatpush1.bf16.msra.mxu0 %v15012_v43  ;;  %v3607_v25 = vpop.f32.mrb[90].mxu1  ;;  %6198 = vmatprep.mubr.f32.mxu0 %v18319_v0  ;;  %v15117_v13 = vpack.c.bf16 %v6521_v21, %v6451_v18  ;;  %v3877_v6 = vadd.f32 %v3876_v32, %v14952_v28 }
 0x1fa   :  { %v15119_v46 = vpack.c.bf16 %v6514_v60, %v6444_v53  ;;  %13398 = vmatprep.subr.bf16.mxu0 %v13397_v30  ;;  %v3609_v11 = vpop.f32.mrb[91].mxu1  ;;  %12942 = vmatmul.mubr.msk.f32.gmra.mrb[196].mxu1 %vm3172_vm2, %v14734_v16  ;;  %v3608_v45 = vadd.f32 %v3607_v25, %v14952_v28  ;;  %v6314_v20 = vmax.f32 %v3875_v36, 0.0  ;;  %v15168_v36 = vld [vmem:[%s18316_s6 + $0x8] sm:$0xff] }
 0x1fb   :  { %v3880_v12 = vpop.f32.mrb[92].mxu0  ;;  %5931 = vmatprep.mubr.f32.mxu1 %v18319_v0  ;;  %v13401_v43 = vpack.c.bf16 %v6515_v22, %v6445_v33  ;;  %v3610_v29 = vadd.f32 %v3609_v11, %v14952_v28  ;;  %v6315_v2 = vmax.f32 %v3877_v6, 0.0 }
 0x1fc   :  { %v3881_v47 = vadd.f32 %v3880_v12, %v14963_v59  ;;  %v3882_v48 = vpop.f32.mrb[93].mxu0  ;;  %12955 = vmatmul.mubr.msk.f32.gmra.mrb[198].mxu0 %vm3172_vm2, %v14752_v41  ;;  %v6308_v30 = vmax.f32 %v3608_v45, 0.0 }
 0x1fd   :  { %v3883_v26 = vadd.f32 %v3882_v48, %v14963_v59  ;;  %v3613_v10 = vpop.f32.mrb[92].mxu1  ;;  %6204 = vmatprep.mubr.f32.mxu0 %v18319_v0  ;;  %v6309_v15 = vmax.f32 %v3610_v29, 0.0 }
 0x1fe   :  { %v6384_v49 = vmax.f32 %v3881_v47, 0.0  ;;  %v3614_v61 = vadd.f32 %v3613_v10, %v14963_v59  ;;  %v3615_v56 = vpop.f32.mrb[93].mxu1  ;;  %12943 = vmatmul.mubr.msk.f32.gmra.mrb[198].mxu1 %vm3172_vm2, %v14752_v41 }
 0x1ff   :  { %v6385_v3 = vmax.f32 %v3883_v26, 0.0  ;;  %v3886_v5 = vpop.f32.mrb[94].mxu0  ;;  %v3616_v52 = vadd.f32 %v3615_v56, %v14963_v59  ;;  %5937 = vmatprep.mubr.f32.mxu1 %v18319_v0 }
 0x200   :  { %v15138_v14 = vpack.c.bf16 %v6384_v49, %v6314_v20  ;;  %v6378_v63 = vmax.f32 %v3614_v61, 0.0  ;;  %v3888_v57 = vpop.f32.mrb[95].mxu0  ;;  %12956 = vmatmul.mubr.msk.f32.gmra.mrb[200].mxu0 %vm3172_vm2, %v14773_v7  ;;  %v3887_v19 = vadd.f32 %v3886_v5, %v14977_v9 }
 0x201   :  { %v6379_v42 = vmax.f32 %v3616_v52, 0.0  ;;  %v3619_v55 = vpop.f32.mrb[94].mxu1  ;;  %6725 = vmatprep.mubr.f32.mxu0 %v18319_v0  ;;  %v15148_v17 = vpack.c.bf16 %v6385_v3, %v6315_v2  ;;  %v3889_v21 = vadd.f32 %v3888_v57, %v14977_v9 }
 0x202   :  { %v15150_v23 = vpack.c.bf16 %v6378_v63, %v6308_v30  ;;  %v3621_v18 = vpop.f32.mrb[95].mxu1  ;;  %12944 = vmatmul.mubr.msk.f32.gmra.mrb[200].mxu1 %vm3172_vm2, %v14773_v7  ;;  %v3620_v53 = vadd.f32 %v3619_v55, %v14977_v9  ;;  %v6454_v11 = vmax.f32 %v3887_v19, 0.0  ;;  %v15209_v55 = vld [vmem:[%s18316_s6 + $0x18] sm:$0xff] }
 0x203   :  { %v3892_v37 = vpop.f32.mrb[96].mxu0  ;;  %6097 = vmatprep.mubr.f32.mxu1 %v18319_v0  ;;  %v13413_v4 = vpack.c.bf16 %v6379_v42, %v6309_v15  ;;  %v3622_v33 = vadd.f32 %v3621_v18, %v14977_v9  ;;  %v6455_v47 = vmax.f32 %v3889_v21, 0.0 }
 0x204   :  { %v3893_v60 = vadd.f32 %v3892_v37, %v14987_v38  ;;  %v3894_v32 = vpop.f32.mrb[97].mxu0  ;;  %12961 = vmatmul.mubr.msk.f32.vlgmr.msra.gmra.mrb[202].mxu0 %vm6636_vm3, %v15146_v24  ;;  %v6448_v26 = vmax.f32 %v3620_v53, 0.0 }
 0x205   :  { %v3895_v22 = vadd.f32 %v3894_v32, %v14987_v38  ;;  %13400 = vmatpush1.bf16.msra.mxu0 %v15088_v1  ;;  %v3625_v25 = vpop.f32.mrb[96].mxu1  ;;  %6731 = vmatprep.mubr.f32.mxu0 %v18319_v0 }
 0x206   :  { %v6524_v6 = vmax.f32 %v3893_v60, 0.0  ;;  %13402 = vmatprep.subr.bf16.mxu0 %v13401_v43  ;;  %v3626_v12 = vadd.f32 %v3625_v25, %v14987_v38  ;;  %v3627_v45 = vpop.f32.mrb[97].mxu1  ;;  %12949 = vmatmul.mubr.msk.f32.vlgmr.msra.gmra.mrb[202].mxu1 %vm3172_vm2, %v14710_v58  ;;  %v6449_v58 = vmax.f32 %v3622_v33, 0.0 }
 0x207   :  { %v6525_v48 = vmax.f32 %v3895_v22, 0.0  ;;  %v4052_v1 = vpop.f32.mrb[98].mxu0  ;;  %v3628_v29 = vadd.f32 %v3627_v45, %v14987_v38  ;;  %13380 = vmatpush1.bf16.msra.mxu1 %v14810_v62  ;;  %6103 = vmatprep.mubr.f32.mxu1 %v18319_v0  ;;  %v15186_v62 = vld [vmem:[%s18316_s6 + $0x10] sm:$0xff] }
 0x208   :  { %v15176_v10 = vpack.c.bf16 %v6524_v6, %v6454_v11  ;;  %v6518_v20 = vmax.f32 %v3626_v12, 0.0  ;;  %v4054_v43 = vpop.f32.mrb[99].mxu0  ;;  %12962 = vmatmul.mubr.msk.f32.gmra.mrb[204].mxu0 %vm6636_vm3, %v15168_v36  ;;  %13390 = vmatprep.subr.bf16.mxu1 %v15035_v8  ;;  %v4053_v3 = vadd.f32 %v4052_v1, %v14952_v28 }
 0x209   :  { %v6519_v49 = vmax.f32 %v3628_v29, 0.0  ;;  %13404 = vmatpush1.bf16.msra.mxu0 %v15119_v46  ;;  %v3785_v61 = vpop.f32.mrb[98].mxu1  ;;  %6737 = vmatprep.mubr.f32.mxu0 %v18319_v0  ;;  %v15188_v56 = vpack.c.bf16 %v6525_v48, %v6455_v47  ;;  %v4055_v46 = vadd.f32 %v4054_v43, %v14952_v28 }
 0x20a   :  { %v15190_v2 = vpack.c.bf16 %v6518_v20, %v6448_v26  ;;  %13414 = vmatprep.subr.bf16.mxu0 %v13413_v4  ;;  %v3787_v8 = vpop.f32.mrb[99].mxu1  ;;  %12950 = vmatmul.mubr.msk.f32.gmra.mrb[204].mxu1 %vm3172_vm2, %v14734_v16  ;;  %v3786_v30 = vadd.f32 %v3785_v61, %v14952_v28  ;;  %v6318_v19 = vmax.f32 %v4053_v3, 0.0 }
 0x20b   :  { %v4058_v5 = vpop.f32.mrb[100].mxu0  ;;  %6109 = vmatprep.mubr.f32.mxu1 %v18319_v0  ;;  %v15197_v52 = vpack.c.bf16 %v6519_v49, %v6449_v58  ;;  %v3788_v15 = vadd.f32 %v3787_v8, %v14952_v28  ;;  %v6319_v4 = vmax.f32 %v4055_v46, 0.0  ;;  %v15247_v46 = vld [vmem:[%s18316_s6 + $0x28] sm:$0xff] }
 0x20c   :  { %v4059_v63 = vadd.f32 %v4058_v5, %v14963_v59  ;;  %v4060_v57 = vpop.f32.mrb[101].mxu0  ;;  %12963 = vmatmul.mubr.msk.f32.gmra.mrb[206].mxu0 %vm6636_vm3, %v15186_v62  ;;  %v6312_v33 = vmax.f32 %v3786_v30, 0.0 }
 0x20d   :  { %v4061_v42 = vadd.f32 %v4060_v57, %v14963_v59  ;;  %v3791_v16 = vpop.f32.mrb[100].mxu1  ;;  %6743 = vmatprep.mubr.f32.mxu0 %v18319_v0  ;;  %v6313_v6 = vmax.f32 %v3788_v15, 0.0  ;;  %v13710_v15 = vld [vmem:[%s18314_s4] sm:$0xff] }
 0x20e   :  { %v6388_v18 = vmax.f32 %v4059_v63, 0.0  ;;  %v3792_v21 = vadd.f32 %v3791_v16, %v14963_v59  ;;  %v3793_v37 = vpop.f32.mrb[101].mxu1  ;;  %12951 = vmatmul.mubr.msk.f32.gmra.mrb[206].mxu1 %vm3172_vm2, %v14752_v41  ;;  %v15224_v41 = vld [vmem:[%s18316_s6 + $0x20] sm:$0xff] }
 0x20f   :  { %v6389_v53 = vmax.f32 %v4061_v42, 0.0  ;;  %v4064_v60 = vpop.f32.mrb[102].mxu0  ;;  %v3794_v32 = vadd.f32 %v3793_v37, %v14963_v59  ;;  %6115 = vmatprep.mubr.f32.mxu1 %v18319_v0 }
 0x210   :  { %v15216_v22 = vpack.c.bf16 %v6388_v18, %v6318_v19  ;;  %v6382_v25 = vmax.f32 %v3792_v21, 0.0  ;;  %v4066_v11 = vpop.f32.mrb[103].mxu0  ;;  %12964 = vmatmul.mubr.msk.f32.gmra.mrb[208].mxu0 %vm6636_vm3, %v15209_v55  ;;  %v4065_v1 = vadd.f32 %v4064_v60, %v14977_v9 }
 0x211   :  { %v6383_v12 = vmax.f32 %v3794_v32, 0.0  ;;  %v3797_v45 = vpop.f32.mrb[102].mxu1  ;;  %6749 = vmatprep.mubr.f32.mxu0 %v18319_v0  ;;  %v15226_v47 = vpack.c.bf16 %v6389_v53, %v6319_v4  ;;  %v4067_v26 = vadd.f32 %v4066_v11, %v14977_v9 }
 0x212   :  { %v15228_v48 = vpack.c.bf16 %v6382_v25, %v6312_v33  ;;  %v3799_v29 = vpop.f32.mrb[103].mxu1  ;;  %12952 = vmatmul.mubr.msk.f32.gmra.mrb[208].mxu1 %vm3172_vm2, %v14773_v7  ;;  %v3798_v58 = vadd.f32 %v3797_v45, %v14977_v9  ;;  %v6458_v5 = vmax.f32 %v4065_v1, 0.0 }
 0x213   :  { %v4070_v20 = vpop.f32.mrb[104].mxu0  ;;  %6275 = vmatprep.mubr.f32.mxu1 %v18319_v0  ;;  %v15235_v43 = vpack.c.bf16 %v6383_v12, %v6313_v6  ;;  %v3800_v3 = vadd.f32 %v3799_v29, %v14977_v9  ;;  %v6459_v42 = vmax.f32 %v4067_v26, 0.0 }
 0x214   :  { %v4071_v49 = vadd.f32 %v4070_v20, %v14987_v38  ;;  %v4072_v61 = vpop.f32.mrb[105].mxu0  ;;  %12965 = vmatmul.mubr.msk.f32.gmra.mrb[210].mxu0 %vm6636_vm3, %v15224_v41  ;;  %v6452_v21 = vmax.f32 %v3798_v58, 0.0 }
 0x215   :  { %v4073_v8 = vadd.f32 %v4072_v61, %v14987_v38  ;;  %v3803_v7 = vpop.f32.mrb[104].mxu1  ;;  %6755 = vmatprep.mubr.f32.mxu0 %v18319_v0  ;;  %v6453_v60 = vmax.f32 %v3800_v3, 0.0 }
 0x216   :  { %v6528_v30 = vmax.f32 %v4071_v49, 0.0  ;;  %v3804_v63 = vadd.f32 %v3803_v7, %v14987_v38  ;;  %v3805_v57 = vpop.f32.mrb[105].mxu1  ;;  %12957 = vmatmul.mubr.msk.f32.vlgmr.msra.gmra.mrb[210].mxu1 %vm3172_vm2, %v13710_v15 }
 0x217   :  { %v6529_v16 = vmax.f32 %v4073_v8, 0.0  ;;  %v4230_v19 = vpop.f32.mrb[106].mxu0  ;;  %v3806_v18 = vadd.f32 %v3805_v57, %v14987_v38  ;;  %13392 = vmatpush1.bf16.msra.mxu1 %v15028_v27  ;;  %6281 = vmatprep.mubr.f32.mxu1 %v18319_v0  ;;  %v15266_v27 = vld [vmem:[%s18316_s6 + $0x30] sm:$0xff] }
 0x218   :  { %v15257_v37 = vpack.c.bf16 %v6528_v30, %v6458_v5  ;;  %v6522_v4 = vmax.f32 %v3804_v63, 0.0  ;;  %v4232_v53 = vpop.f32.mrb[107].mxu0  ;;  %12966 = vmatmul.mubr.msk.f32.gmra.mrb[212].mxu0 %vm6636_vm3, %v15247_v46  ;;  %13394 = vmatprep.subr.bf16.mxu1 %v15067_v31  ;;  %v4231_v6 = vadd.f32 %v4230_v19, %v14952_v28  ;;  %v13711_v31 = vld [vmem:[%s18314_s4 + $0x8] sm:$0xff] }
 0x219   :  { %v6523_v32 = vmax.f32 %v3806_v18, 0.0  ;;  %v3963_v33 = vpop.f32.mrb[106].mxu1  ;;  %6761 = vmatprep.mubr.f32.mxu0 %v18319_v0  ;;  %v15268_v25 = vpack.c.bf16 %v6529_v16, %v6459_v42  ;;  %v4233_v45 = vadd.f32 %v4232_v53, %v14952_v28 }
 0x21a   :  { %v15270_v11 = vpack.c.bf16 %v6522_v4, %v6452_v21  ;;  %v3965_v12 = vpop.f32.mrb[107].mxu1  ;;  %12958 = vmatmul.mubr.msk.f32.gmra.mrb[212].mxu1 %vm3172_vm2, %v13711_v31  ;;  %v3964_v26 = vadd.f32 %v3963_v33, %v14952_v28  ;;  %v6322_v8 = vmax.f32 %v4231_v6, 0.0  ;;  %v13713_v31 = vld [vmem:[%s18314_s4 + $0x18] sm:$0xff] }
 0x21b   :  { %v4236_v1 = vpop.f32.mrb[108].mxu0  ;;  %13396 = vmatpush1.bf16.msra.mxu1 %v15062_v54  ;;  %6287 = vmatprep.mubr.f32.mxu1 %v18319_v0  ;;  %v15280_v29 = vpack.c.bf16 %v6523_v32, %v6453_v60  ;;  %v3966_v49 = vadd.f32 %v3965_v12, %v14952_v28  ;;  %v15293_v54 = vld [vmem:[%s18316_s6 + $0x38] sm:$0xff]  ;;  %v6323_v63 = vmax.f32 %v4233_v45, 0.0 }
 0x21c   :  { %v4237_v20 = vadd.f32 %v4236_v1, %v14963_v59  ;;  %v4238_v58 = vpop.f32.mrb[109].mxu0  ;;  %12967 = vmatmul.mubr.msk.f32.gmra.mrb[214].mxu0 %vm6636_vm3, %v15266_v27  ;;  %13406 = vmatprep.subr.bf16.mxu1 %v15025_v44  ;;  %v13712_v44 = vld [vmem:[%s18314_s4 + $0x10] sm:$0xff]  ;;  %v6316_v16 = vmax.f32 %v3964_v26, 0.0 }
 0x21d   :  { %v4239_v61 = vadd.f32 %v4238_v58, %v14963_v59  ;;  %v3969_v3 = vpop.f32.mrb[108].mxu1  ;;  %6767 = vmatprep.mubr.f32.mxu0 %v18319_v0  ;;  %v6317_v4 = vmax.f32 %v3966_v49, 0.0 }
 0x21e   :  { %v6392_v7 = vmax.f32 %v4237_v20, 0.0  ;;  %v3970_v5 = vadd.f32 %v3969_v3, %v14963_v59  ;;  %v3971_v30 = vpop.f32.mrb[109].mxu1  ;;  %12959 = vmatmul.mubr.msk.f32.gmra.mrb[214].mxu1 %vm3172_vm2, %v13712_v44 }
 0x21f   :  { %v6393_v57 = vmax.f32 %v4239_v61, 0.0  ;;  %v4242_v15 = vpop.f32.mrb[110].mxu0  ;;  %v3972_v42 = vadd.f32 %v3971_v30, %v14963_v59  ;;  %6293 = vmatprep.mubr.f32.mxu1 %v18319_v0 }
 0x220   :  { %v15302_v19 = vpack.c.bf16 %v6392_v7, %v6322_v8  ;;  %v6386_v18 = vmax.f32 %v3970_v5, 0.0  ;;  %v4244_v21 = vpop.f32.mrb[111].mxu0  ;;  %12968 = vmatmul.mubr.msk.f32.gmra.mrb[216].mxu0 %vm6636_vm3, %v15293_v54  ;;  %v4243_v6 = vadd.f32 %v4242_v15, %v14977_v9 }
 0x221   :  { %v6387_v53 = vmax.f32 %v3972_v42, 0.0  ;;  %v3975_v60 = vpop.f32.mrb[110].mxu1  ;;  %6951 = vmatprep.mubr.f32.mxu0 %v18319_v0  ;;  %v15307_v32 = vpack.c.bf16 %v6393_v57, %v6323_v63  ;;  %v4245_v45 = vadd.f32 %v4244_v21, %v14977_v9 }
 0x222   :  { %v15309_v33 = vpack.c.bf16 %v6386_v18, %v6316_v16  ;;  %v3977_v12 = vpop.f32.mrb[111].mxu1  ;;  %12960 = vmatmul.mubr.msk.f32.gmra.mrb[216].mxu1 %vm3172_vm2, %v13713_v31  ;;  %v3976_v20 = vadd.f32 %v3975_v60, %v14977_v9  ;;  %v6462_v7 = vmax.f32 %v4243_v6, 0.0 }
 0x223   :  { %v4248_v1 = vpop.f32.mrb[112].mxu0  ;;  %6838 = vmatprep.mubr.f32.mxu1 %v18319_v0  ;;  %v15318_v26 = vpack.c.bf16 %v6387_v53, %v6317_v4  ;;  %v3978_v61 = vadd.f32 %v3977_v12, %v14977_v9  ;;  %v6463_v63 = vmax.f32 %v4245_v45, 0.0 }
 0x224   :  { %v4249_v58 = vadd.f32 %v4248_v1, %v14987_v38  ;;  %v4250_v49 = vpop.f32.mrb[113].mxu0  ;;  %12977 = vmatmul.mubr.msk.f32.vlgmr.msra.gmra.mrb[218].mxu0 %vm6636_vm3, %v15146_v24 }
 0x225   :  { %v4251_v3 = vadd.f32 %v4250_v49, %v14987_v38  ;;  %13416 = vmatpush1.bf16.msra.mxu0 %v15150_v23  ;;  %v3981_v8 = vpop.f32.mrb[112].mxu1  ;;  %6957 = vmatprep.mubr.f32.mxu0 %v18319_v0  ;;  %v6456_v23 = vmax.f32 %v3976_v20, 0.0  ;;  %v6457_v21 = vmax.f32 %v3978_v61, 0.0 }
 0x226   :  { %v6532_v5 = vmax.f32 %v4249_v58, 0.0  ;;  %13418 = vmatprep.subr.bf16.mxu0 %v15197_v52  ;;  %v3982_v30 = vadd.f32 %v3981_v8, %v14987_v38  ;;  %v3983_v44 = vpop.f32.mrb[113].mxu1  ;;  %12969 = vmatmul.mubr.msk.f32.vlgmr.msra.gmra.mrb[218].mxu1 %vm6636_vm3, %v15146_v24 }
 0x227   :  { %v6533_v57 = vmax.f32 %v4251_v3, 0.0  ;;  %v4408_v15 = vpop.f32.mrb[114].mxu0  ;;  %v3984_v42 = vadd.f32 %v3983_v44, %v14987_v38  ;;  %13408 = vmatpush1.bf16.msra.mxu1 %v15017_v51  ;;  %6844 = vmatprep.mubr.f32.mxu1 %v18319_v0 }
 0x228   :  { %v15335_v16 = vpack.c.bf16 %v6532_v5, %v6462_v7  ;;  %v6526_v18 = vmax.f32 %v3982_v30, 0.0  ;;  %v4410_v52 = vpop.f32.mrb[115].mxu0  ;;  %12978 = vmatmul.mubr.msk.f32.gmra.mrb[220].mxu0 %vm6636_vm3, %v15168_v36  ;;  %13410 = vmatprep.subr.bf16.mxu1 %v15060_v50  ;;  %v4409_v6 = vadd.f32 %v4408_v15, %v14952_v28 }
 0x229   :  { %v6527_v4 = vmax.f32 %v3984_v42, 0.0  ;;  %13420 = vmatpush1.bf16.msra.mxu0 %v15190_v2  ;;  %v4141_v53 = vpop.f32.mrb[114].mxu1  ;;  %6963 = vmatprep.mubr.f32.mxu0 %v18319_v0  ;;  %v15342_v51 = vpack.c.bf16 %v6533_v57, %v6463_v63  ;;  %v4411_v50 = vadd.f32 %v4410_v52, %v14952_v28 }
 0x22a   :  { %v15344_v60 = vpack.c.bf16 %v6526_v18, %v6456_v23  ;;  %13430 = vmatprep.subr.bf16.mxu0 %v15235_v43  ;;  %v4143_v12 = vpop.f32.mrb[115].mxu1  ;;  %12970 = vmatmul.mubr.msk.f32.gmra.mrb[220].mxu1 %vm6636_vm3, %v15168_v36  ;;  %v4142_v45 = vadd.f32 %v4141_v53, %v14952_v28 }
 0x22b   :  { %v4414_v31 = vpop.f32.mrb[116].mxu0  ;;  %13412 = vmatpush1.bf16.msra.mxu1 %v15052_v35  ;;  %6850 = vmatprep.mubr.f32.mxu1 %v18319_v0  ;;  %v15353_v2 = vpack.c.bf16 %v6527_v4, %v6457_v21  ;;  %v4144_v43 = vadd.f32 %v4143_v12, %v14952_v28  ;;  %v6326_v35 = vmax.f32 %v4409_v6, 0.0  ;;  %v6327_v7 = vmax.f32 %v4411_v50, 0.0 }
 0x22c   :  { %v4415_v1 = vadd.f32 %v4414_v31, %v14963_v59  ;;  %v4416_v20 = vpop.f32.mrb[117].mxu0  ;;  %12979 = vmatmul.mubr.msk.f32.gmra.mrb[222].mxu0 %vm6636_vm3, %v15186_v62  ;;  %13422 = vmatprep.subr.bf16.mxu1 %v15086_v39  ;;  %v6320_v44 = vmax.f32 %v4142_v45, 0.0 }
 0x22d   :  { %v4417_v58 = vadd.f32 %v4416_v20, %v14963_v59  ;;  %v4147_v49 = vpop.f32.mrb[116].mxu1  ;;  %6969 = vmatprep.mubr.f32.mxu0 %v18319_v0  ;;  %v6321_v42 = vmax.f32 %v4144_v43, 0.0 }
 0x22e   :  { %v6396_v61 = vmax.f32 %v4415_v1, 0.0  ;;  %v4148_v3 = vadd.f32 %v4147_v49, %v14963_v59  ;;  %v4149_v8 = vpop.f32.mrb[117].mxu1  ;;  %12971 = vmatmul.mubr.msk.f32.gmra.mrb[222].mxu1 %vm6636_vm3, %v15186_v62 }
 0x22f   :  { %v6397_v5 = vmax.f32 %v4417_v58, 0.0  ;;  %v4420_v30 = vpop.f32.mrb[118].mxu0  ;;  %v4150_v39 = vadd.f32 %v4149_v8, %v14963_v59  ;;  %6856 = vmatprep.mubr.f32.mxu1 %v18319_v0 }
 0x230   :  { %v15368_v63 = vpack.c.bf16 %v6396_v61, %v6326_v35  ;;  %v6390_v57 = vmax.f32 %v4148_v3, 0.0  ;;  %v4422_v15 = vpop.f32.mrb[119].mxu0  ;;  %12980 = vmatmul.mubr.msk.f32.gmra.mrb[224].mxu0 %vm6636_vm3, %v15209_v55  ;;  %v4421_v4 = vadd.f32 %v4420_v30, %v14977_v9 }
 0x231   :  { %v6391_v23 = vmax.f32 %v4150_v39, 0.0  ;;  %v4153_v18 = vpop.f32.mrb[118].mxu1  ;;  %6975 = vmatprep.mubr.f32.mxu0 %v18319_v0  ;;  %v15373_v52 = vpack.c.bf16 %v6397_v5, %v6327_v7  ;;  %v4423_v6 = vadd.f32 %v4422_v15, %v14977_v9 }
 0x232   :  { %v15375_v21 = vpack.c.bf16 %v6390_v57, %v6320_v44  ;;  %v4155_v53 = vpop.f32.mrb[119].mxu1  ;;  %12972 = vmatmul.mubr.msk.f32.gmra.mrb[224].mxu1 %vm6636_vm3, %v15209_v55  ;;  %v4154_v31 = vadd.f32 %v4153_v18, %v14977_v9  ;;  %v6466_v49 = vmax.f32 %v4421_v4, 0.0 }
 0x233   :  { %v4426_v12 = vpop.f32.mrb[120].mxu0  ;;  %6862 = vmatprep.mubr.f32.mxu1 %v18319_v0  ;;  %v15382_v50 = vpack.c.bf16 %v6391_v23, %v6321_v42  ;;  %v4156_v20 = vadd.f32 %v4155_v53, %v14977_v9  ;;  %v6467_v8 = vmax.f32 %v4423_v6, 0.0 }
 0x234   :  { %v4427_v45 = vadd.f32 %v4426_v12, %v14987_v38  ;;  %v4428_v1 = vpop.f32.mrb[121].mxu0  ;;  %12981 = vmatmul.mubr.msk.f32.gmra.mrb[226].mxu0 %vm6636_vm3, %v15224_v41  ;;  %v6460_v39 = vmax.f32 %v4154_v31, 0.0 }
 0x235   :  { %v4429_v43 = vadd.f32 %v4428_v1, %v14987_v38  ;;  %v4159_v58 = vpop.f32.mrb[120].mxu1  ;;  %6981 = vmatprep.mubr.f32.mxu0 %v18319_v0  ;;  %v6461_v42 = vmax.f32 %v4156_v20, 0.0 }
 0x236   :  { %v6536_v35 = vmax.f32 %v4427_v45, 0.0  ;;  %v4160_v61 = vadd.f32 %v4159_v58, %v14987_v38  ;;  %v4161_v3 = vpop.f32.mrb[121].mxu1  ;;  %12973 = vmatmul.mubr.msk.f32.gmra.mrb[226].mxu1 %vm6636_vm3, %v15224_v41 }
 0x237   :  { %v6537_v7 = vmax.f32 %v4429_v43, 0.0  ;;  %v4586_v5 = vpop.f32.mrb[122].mxu0  ;;  %v4162_v30 = vadd.f32 %v4161_v3, %v14987_v38  ;;  %6868 = vmatprep.mubr.f32.mxu1 %v18319_v0 }
 0x238   :  { %v15396_v44 = vpack.c.bf16 %v6536_v35, %v6466_v49  ;;  %v6530_v57 = vmax.f32 %v4160_v61, 0.0  ;;  %v4588_v15 = vpop.f32.mrb[123].mxu0  ;;  %12982 = vmatmul.mubr.msk.f32.gmra.mrb[228].mxu0 %vm6636_vm3, %v15247_v46  ;;  %v4587_v6 = vadd.f32 %v4586_v5, %v14952_v28 }
 0x239   :  { %v6531_v23 = vmax.f32 %v4162_v30, 0.0  ;;  %v4319_v18 = vpop.f32.mrb[122].mxu1  ;;  %6987 = vmatprep.mubr.f32.mxu0 %v18319_v0  ;;  %v15401_v4 = vpack.c.bf16 %v6537_v7, %v6467_v8  ;;  %v4589_v31 = vadd.f32 %v4588_v15, %v14952_v28 }
 0x23a   :  { %v15403_v53 = vpack.c.bf16 %v6530_v57, %v6460_v39  ;;  %v4321_v12 = vpop.f32.mrb[123].mxu1  ;;  %12974 = vmatmul.mubr.msk.f32.gmra.mrb[228].mxu1 %vm6636_vm3, %v15247_v46  ;;  %v4320_v20 = vadd.f32 %v4319_v18, %v14952_v28  ;;  %v6330_v3 = vmax.f32 %v4587_v6, 0.0 }
 0x23b   :  { %v4592_v45 = vpop.f32.mrb[124].mxu0  ;;  %6874 = vmatprep.mubr.f32.mxu1 %v18319_v0  ;;  %v15410_v1 = vpack.c.bf16 %v6531_v23, %v6461_v42  ;;  %v4322_v49 = vadd.f32 %v4321_v12, %v14952_v28  ;;  %v6331_v30 = vmax.f32 %v4589_v31, 0.0 }
 0x23c   :  { %v4593_v43 = vadd.f32 %v4592_v45, %v14963_v59  ;;  %v4594_v58 = vpop.f32.mrb[125].mxu0  ;;  %12983 = vmatmul.mubr.msk.f32.gmra.mrb[230].mxu0 %vm6636_vm3, %v15266_v27  ;;  %v6324_v42 = vmax.f32 %v4320_v20, 0.0 }
 0x23d   :  { %v4595_v35 = vadd.f32 %v4594_v58, %v14963_v59  ;;  %v4325_v61 = vpop.f32.mrb[124].mxu1  ;;  %6993 = vmatprep.mubr.f32.mxu0 %v18319_v0  ;;  %v6325_v6 = vmax.f32 %v4322_v49, 0.0 }
 0x23e   :  { %v6400_v8 = vmax.f32 %v4593_v43, 0.0  ;;  %v4326_v7 = vadd.f32 %v4325_v61, %v14963_v59  ;;  %v4327_v5 = vpop.f32.mrb[125].mxu1  ;;  %12975 = vmatmul.mubr.msk.f32.gmra.mrb[230].mxu1 %vm6636_vm3, %v15266_v27 }
 0x23f   :  { %v6401_v39 = vmax.f32 %v4595_v35, 0.0  ;;  %v4598_v57 = vpop.f32.mrb[126].mxu0  ;;  %v4328_v15 = vadd.f32 %v4327_v5, %v14963_v59  ;;  %6880 = vmatprep.mubr.f32.mxu1 %v18319_v0 }
 0x240   :  { %v15424_v23 = vpack.c.bf16 %v6400_v8, %v6330_v3  ;;  %v6394_v18 = vmax.f32 %v4326_v7, 0.0  ;;  %v4600_v12 = vpop.f32.mrb[127].mxu0  ;;  %12984 = vmatmul.mubr.msk.f32.gmra.mrb[232].mxu0 %vm6636_vm3, %v15293_v54  ;;  %v4599_v35 = vadd.f32 %v4598_v57, %v14977_v9 }
 0x241   :  { %v6395_v45 = vmax.f32 %v4328_v15, 0.0  ;;  %v4331_v43 = vpop.f32.mrb[126].mxu1  ;;  %7177 = vmatprep.mubr.f32.mxu0 %v18319_v0  ;;  %v15429_v31 = vpack.c.bf16 %v6401_v39, %v6331_v30  ;;  %v4601_v20 = vadd.f32 %v4600_v12, %v14977_v9 }
 0x242   :  { %18321 = vst [vmem:[#allocation8_spill] sm:$0xff] %v15424_v23  ;;  %v15431_v58 = vpack.c.bf16 %v6394_v18, %v6324_v42  ;;  %v4333_v61 = vpop.f32.mrb[127].mxu1  ;;  %12976 = vmatmul.mubr.msk.f32.gmra.mrb[232].mxu1 %vm6636_vm3, %v15293_v54  ;;  %v4332_v8 = vadd.f32 %v4331_v43, %v14977_v9  ;;  %v6470_v15 = vmax.f32 %v4599_v35, 0.0 }
 0x243   :  { %v4604_v3 = vpop.f32.mrb[128].mxu0  ;;  %7064 = vmatprep.mubr.f32.mxu1 %v18319_v0  ;;  %v15438_v49 = vpack.c.bf16 %v6395_v45, %v6325_v6  ;;  %v4334_v30 = vadd.f32 %v4333_v61, %v14977_v9  ;;  %v6471_v6 = vmax.f32 %v4601_v20, 0.0 }
 0x244   :  { %v4605_v7 = vadd.f32 %v4604_v3, %v14987_v38  ;;  %v4606_v5 = vpop.f32.mrb[129].mxu0  ;;  %12993 = vmatmul.mubr.msk.f32.vlgmr.msra.gmra.mrb[234].mxu0 %vm6636_vm3, %v15146_v24 }
 0x245   :  { %v4607_v39 = vadd.f32 %v4606_v5, %v14987_v38  ;;  %13432 = vmatpush1.bf16.msra.mxu0 %v15228_v48  ;;  %v4337_v57 = vpop.f32.mrb[128].mxu1  ;;  %7183 = vmatprep.mubr.f32.mxu0 %v18319_v0  ;;  %v6464_v48 = vmax.f32 %v4332_v8, 0.0 }
 0x246   :  { %v6540_v42 = vmax.f32 %v4605_v7, 0.0  ;;  %13434 = vmatprep.subr.bf16.mxu0 %v15280_v29  ;;  %v4338_v18 = vadd.f32 %v4337_v57, %v14987_v38  ;;  %v4339_v12 = vpop.f32.mrb[129].mxu1  ;;  %12985 = vmatmul.mubr.msk.f32.vlgmr.msra.gmra.mrb[234].mxu1 %vm6636_vm3, %v15146_v24  ;;  %v6465_v7 = vmax.f32 %v4334_v30, 0.0 }
 0x247   :  { %v6541_v45 = vmax.f32 %v4607_v39, 0.0  ;;  %v4764_v43 = vpop.f32.mrb[130].mxu0  ;;  %v4340_v61 = vadd.f32 %v4339_v12, %v14987_v38  ;;  %13424 = vmatpush1.bf16.msra.mxu1 %v15081_v34  ;;  %7070 = vmatprep.mubr.f32.mxu1 %v18319_v0 }
 0x248   :  { %v15455_v35 = vpack.c.bf16 %v6540_v42, %v6470_v15  ;;  %v6534_v3 = vmax.f32 %v4338_v18, 0.0  ;;  %v4766_v29 = vpop.f32.mrb[131].mxu0  ;;  %12994 = vmatmul.mubr.msk.f32.gmra.mrb[236].mxu0 %vm6636_vm3, %v15168_v36  ;;  %13426 = vmatprep.subr.bf16.mxu1 %v15117_v13  ;;  %v4765_v8 = vadd.f32 %v4764_v43, %v14952_v28 }
 0x249   :  { %v6535_v20 = vmax.f32 %v4340_v61, 0.0  ;;  %13436 = vmatpush1.bf16.msra.mxu0 %v15270_v11  ;;  %v4497_v5 = vpop.f32.mrb[130].mxu1  ;;  %7189 = vmatprep.mubr.f32.mxu0 %v18319_v0  ;;  %v15462_v34 = vpack.c.bf16 %v6541_v45, %v6471_v6  ;;  %v4767_v13 = vadd.f32 %v4766_v29, %v14952_v28 }
 0x24a   :  { %18322 = vst [vmem:[#allocation9_spill] sm:$0xff] %v15455_v35  ;;  %v15464_v39 = vpack.c.bf16 %v6534_v3, %v6464_v48  ;;  %13446 = vmatprep.subr.bf16.mxu0 %v15318_v26  ;;  %v4499_v57 = vpop.f32.mrb[131].mxu1  ;;  %12986 = vmatmul.mubr.msk.f32.gmra.mrb[236].mxu1 %vm6636_vm3, %v15168_v36  ;;  %v4498_v15 = vadd.f32 %v4497_v5, %v14952_v28 }
 0x24b   :  { %18323 = vst [vmem:[#allocation10_spill] sm:$0xff] %v15462_v34  ;;  %v4770_v30 = vpop.f32.mrb[132].mxu0  ;;  %13428 = vmatpush1.bf16.msra.mxu1 %v15110_v40  ;;  %7076 = vmatprep.mubr.f32.mxu1 %v18319_v0  ;;  %v15473_v11 = vpack.c.bf16 %v6535_v20, %v6465_v7  ;;  %v4500_v26 = vadd.f32 %v4499_v57, %v14952_v28  ;;  %v6334_v40 = vmax.f32 %v4765_v8, 0.0  ;;  %v6335_v48 = vmax.f32 %v4767_v13, 0.0 }
 0x24c   :  { %v4771_v42 = vadd.f32 %v4770_v30, %v14963_v59  ;;  %v4772_v18 = vpop.f32.mrb[133].mxu0  ;;  %12995 = vmatmul.mubr.msk.f32.gmra.mrb[238].mxu0 %vm6636_vm3, %v15186_v62  ;;  %13438 = vmatprep.subr.bf16.mxu1 %v15148_v17  ;;  %v6328_v7 = vmax.f32 %v4498_v15, 0.0 }
 0x24d   :  { %v4773_v12 = vadd.f32 %v4772_v18, %v14963_v59  ;;  %v4503_v6 = vpop.f32.mrb[132].mxu1  ;;  %7195 = vmatprep.mubr.f32.mxu0 %v18319_v0  ;;  %v6329_v8 = vmax.f32 %v4500_v26, 0.0 }
 0x24e   :  { %v6404_v45 = vmax.f32 %v4771_v42, 0.0  ;;  %v4504_v43 = vadd.f32 %v4503_v6, %v14963_v59  ;;  %v4505_v61 = vpop.f32.mrb[133].mxu1  ;;  %12987 = vmatmul.mubr.msk.f32.gmra.mrb[238].mxu1 %vm6636_vm3, %v15186_v62 }
 0x24f   :  { %v6405_v3 = vmax.f32 %v4773_v12, 0.0  ;;  %v4776_v29 = vpop.f32.mrb[134].mxu0  ;;  %v4506_v17 = vadd.f32 %v4505_v61, %v14963_v59  ;;  %7082 = vmatprep.mubr.f32.mxu1 %v18319_v0 }
 0x250   :  { %v15488_v20 = vpack.c.bf16 %v6404_v45, %v6334_v40  ;;  %v6398_v5 = vmax.f32 %v4504_v43, 0.0  ;;  %v4778_v57 = vpop.f32.mrb[135].mxu0  ;;  %12996 = vmatmul.mubr.msk.f32.gmra.mrb[240].mxu0 %vm6636_vm3, %v15209_v55  ;;  %v4777_v12 = vadd.f32 %v4776_v29, %v14977_v9 }
 0x251   :  { %v6399_v30 = vmax.f32 %v4506_v17, 0.0  ;;  %v4509_v42 = vpop.f32.mrb[134].mxu1  ;;  %7201 = vmatprep.mubr.f32.mxu0 %v18319_v0  ;;  %v15493_v13 = vpack.c.bf16 %v6405_v3, %v6335_v48  ;;  %v4779_v15 = vadd.f32 %v4778_v57, %v14977_v9 }
 0x252   :  { %18324 = vst [vmem:[#allocation11_spill] sm:$0xff] %v15488_v20  ;;  %v15495_v18 = vpack.c.bf16 %v6398_v5, %v6328_v7  ;;  %v4511_v6 = vpop.f32.mrb[135].mxu1  ;;  %12988 = vmatmul.mubr.msk.f32.gmra.mrb[240].mxu1 %vm6636_vm3, %v15209_v55  ;;  %v4510_v45 = vadd.f32 %v4509_v42, %v14977_v9  ;;  %v6474_v17 = vmax.f32 %v4777_v12, 0.0 }
 0x253   :  { %18325 = vst [vmem:[#allocation12_spill] sm:$0xff] %v15493_v13  ;;  %v4782_v40 = vpop.f32.mrb[136].mxu0  ;;  %7088 = vmatprep.mubr.f32.mxu1 %v18319_v0  ;;  %v15502_v26 = vpack.c.bf16 %v6399_v30, %v6329_v8  ;;  %v4512_v48 = vadd.f32 %v4511_v6, %v14977_v9  ;;  %v6475_v8 = vmax.f32 %v4779_v15, 0.0 }
 0x254   :  { %v4783_v43 = vadd.f32 %v4782_v40, %v14987_v38  ;;  %v4784_v61 = vpop.f32.mrb[137].mxu0  ;;  %12997 = vmatmul.mubr.msk.f32.gmra.mrb[242].mxu0 %vm6636_vm3, %v15224_v41  ;;  %v6468_v6 = vmax.f32 %v4510_v45, 0.0 }
 0x255   :  { %v4785_v3 = vadd.f32 %v4784_v61, %v14987_v38  ;;  %v4515_v29 = vpop.f32.mrb[136].mxu1  ;;  %7207 = vmatprep.mubr.f32.mxu0 %v18319_v0  ;;  %v6469_v12 = vmax.f32 %v4512_v48, 0.0 }
 0x256   :  { %v6544_v7 = vmax.f32 %v4783_v43, 0.0  ;;  %v4516_v5 = vadd.f32 %v4515_v29, %v14987_v38  ;;  %v4517_v57 = vpop.f32.mrb[137].mxu1  ;;  %12989 = vmatmul.mubr.msk.f32.gmra.mrb[242].mxu1 %vm6636_vm3, %v15224_v41 }
 0x257   :  { %v6545_v30 = vmax.f32 %v4785_v3, 0.0  ;;  %v4942_v42 = vpop.f32.mrb[138].mxu0  ;;  %v4518_v40 = vadd.f32 %v4517_v57, %v14987_v38  ;;  %7094 = vmatprep.mubr.f32.mxu1 %v18319_v0 }
 0x258   :  { %v15516_v61 = vpack.c.bf16 %v6544_v7, %v6474_v17  ;;  %v6538_v20 = vmax.f32 %v4516_v5, 0.0  ;;  %v4944_v13 = vpop.f32.mrb[139].mxu0  ;;  %12998 = vmatmul.mubr.msk.f32.gmra.mrb[244].mxu0 %vm6636_vm3, %v15247_v46  ;;  %v4943_v57 = vadd.f32 %v4942_v42, %v14952_v28 }
 0x259   :  { %v6539_v43 = vmax.f32 %v4518_v40, 0.0  ;;  %v4675_v29 = vpop.f32.mrb[138].mxu1  ;;  %7213 = vmatprep.mubr.f32.mxu0 %v18319_v0  ;;  %v15521_v15 = vpack.c.bf16 %v6545_v30, %v6475_v8  ;;  %v4945_v45 = vadd.f32 %v4944_v13, %v14952_v28 }
 0x25a   :  { %18326 = vst [vmem:[#allocation13_spill] sm:$0xff] %v15516_v61  ;;  %v15523_v3 = vpack.c.bf16 %v6538_v20, %v6468_v6  ;;  %v4677_v35 = vpop.f32.mrb[139].mxu1  ;;  %12990 = vmatmul.mubr.msk.f32.gmra.mrb[244].mxu1 %vm6636_vm3, %v15247_v46  ;;  %v4676_v7 = vadd.f32 %v4675_v29, %v14952_v28  ;;  %v6338_v13 = vmax.f32 %v4943_v57, 0.0 }
 0x25b   :  { %18327 = vst [vmem:[#allocation14_spill] sm:$0xff] %v15521_v15  ;;  %v4948_v17 = vpop.f32.mrb[140].mxu0  ;;  %7100 = vmatprep.mubr.f32.mxu1 %v18319_v0  ;;  %v15530_v48 = vpack.c.bf16 %v6539_v43, %v6469_v12  ;;  %v4678_v20 = vadd.f32 %v4677_v35, %v14952_v28  ;;  %v6339_v43 = vmax.f32 %v4945_v45, 0.0 }
 0x25c   :  { %v4949_v5 = vadd.f32 %v4948_v17, %v14963_v59  ;;  %v4950_v8 = vpop.f32.mrb[141].mxu0  ;;  %12999 = vmatmul.mubr.msk.f32.gmra.mrb[246].mxu0 %vm6636_vm3, %v15266_v27  ;;  %v6332_v35 = vmax.f32 %v4676_v7, 0.0 }
 0x25d   :  { %v4951_v30 = vadd.f32 %v4950_v8, %v14963_v59  ;;  %v4681_v42 = vpop.f32.mrb[140].mxu1  ;;  %7219 = vmatprep.mubr.f32.mxu0 %v18319_v0  ;;  %v6333_v57 = vmax.f32 %v4678_v20, 0.0 }
 0x25e   :  { %v6408_v40 = vmax.f32 %v4949_v5, 0.0  ;;  %v4682_v6 = vadd.f32 %v4681_v42, %v14963_v59  ;;  %v4683_v12 = vpop.f32.mrb[141].mxu1  ;;  %12991 = vmatmul.mubr.msk.f32.gmra.mrb[246].mxu1 %vm6636_vm3, %v15266_v27 }
 0x25f   :  { %v6409_v29 = vmax.f32 %v4951_v30, 0.0  ;;  %v4954_v17 = vpop.f32.mrb[142].mxu0  ;;  %v4684_v61 = vadd.f32 %v4683_v12, %v14963_v59  ;;  %7106 = vmatprep.mubr.f32.mxu1 %v18319_v0 }
 0x260   :  { %v15544_v8 = vpack.c.bf16 %v6408_v40, %v6338_v13  ;;  %v6402_v15 = vmax.f32 %v4682_v6, 0.0  ;;  %v4956_v34 = vpop.f32.mrb[143].mxu0  ;;  %13000 = vmatmul.mubr.msk.f32.gmra.mrb[248].mxu0 %vm6636_vm3, %v15293_v54  ;;  %v4955_v12 = vadd.f32 %v4954_v17, %v14977_v9 }
 0x261   :  { %v6403_v5 = vmax.f32 %v4684_v61, 0.0  ;;  %v4687_v42 = vpop.f32.mrb[142].mxu1  ;;  %7403 = vmatprep.mubr.f32.mxu0 %v18319_v0  ;;  %v15549_v45 = vpack.c.bf16 %v6409_v29, %v6339_v43  ;;  %v4957_v7 = vadd.f32 %v4956_v34, %v14977_v9 }
 0x262   :  { %v15551_v30 = vpack.c.bf16 %v6402_v15, %v6332_v35  ;;  %v4689_v23 = vpop.f32.mrb[143].mxu1  ;;  %12992 = vmatmul.mubr.msk.f32.gmra.mrb[248].mxu1 %vm6636_vm3, %v15293_v54  ;;  %v4688_v61 = vadd.f32 %v4687_v42, %v14977_v9  ;;  %v6478_v29 = vmax.f32 %v4955_v12, 0.0 }
 0x263   :  { %v4960_v13 = vpop.f32.mrb[144].mxu0  ;;  %7290 = vmatprep.mubr.f32.mxu1 %v18319_v0  ;;  %v15558_v20 = vpack.c.bf16 %v6403_v5, %v6333_v57  ;;  %v4690_v15 = vadd.f32 %v4689_v23, %v14977_v9  ;;  %v6479_v5 = vmax.f32 %v4957_v7, 0.0 }
 0x264   :  { %v4961_v40 = vadd.f32 %v4960_v13, %v14987_v38  ;;  %v4962_v6 = vpop.f32.mrb[145].mxu0  ;;  %13009 = vmatmul.mubr.msk.f32.vlgmr.msra.gmra.mrb[250].mxu0 %vm6636_vm3, %v15146_v24 }
 0x265   :  { %v4963_v43 = vadd.f32 %v4962_v6, %v14987_v38  ;;  %13448 = vmatpush1.bf16.msra.mxu0 %v15309_v33  ;;  %v4693_v34 = vpop.f32.mrb[144].mxu1  ;;  %7409 = vmatprep.mubr.f32.mxu0 %v18319_v0  ;;  %v6472_v33 = vmax.f32 %v4688_v61, 0.0 }
 0x266   :  { %v6548_v17 = vmax.f32 %v4961_v40, 0.0  ;;  %13450 = vmatprep.subr.bf16.mxu0 %v15353_v2  ;;  %v4694_v35 = vadd.f32 %v4693_v34, %v14987_v38  ;;  %v4695_v57 = vpop.f32.mrb[145].mxu1  ;;  %13001 = vmatmul.mubr.msk.f32.vlgmr.msra.gmra.mrb[250].mxu1 %vm6636_vm3, %v15146_v24  ;;  %v6473_v24 = vmax.f32 %v4690_v15, 0.0 }
 0x267   :  { %v6549_v42 = vmax.f32 %v4963_v43, 0.0  ;;  %v5120_v23 = vpop.f32.mrb[146].mxu0  ;;  %v4696_v13 = vadd.f32 %v4695_v57, %v14987_v38  ;;  %13440 = vmatpush1.bf16.msra.mxu1 %v15138_v14  ;;  %7296 = vmatprep.mubr.f32.mxu1 %v18319_v0 }
 0x268   :  { %v15575_v12 = vpack.c.bf16 %v6548_v17, %v6478_v29  ;;  %v6542_v40 = vmax.f32 %v4694_v35, 0.0  ;;  %v5122_v2 = vpop.f32.mrb[147].mxu0  ;;  %13010 = vmatmul.mubr.msk.f32.gmra.mrb[252].mxu0 %vm6636_vm3, %v15168_v36  ;;  %13442 = vmatprep.subr.bf16.mxu1 %v15188_v56  ;;  %v5121_v61 = vadd.f32 %v5120_v23, %v14952_v28 }
 0x269   :  { %v6543_v7 = vmax.f32 %v4696_v13, 0.0  ;;  %13452 = vmatpush1.bf16.msra.mxu0 %v15344_v60  ;;  %v4853_v6 = vpop.f32.mrb[146].mxu1  ;;  %7415 = vmatprep.mubr.f32.mxu0 %v18319_v0  ;;  %v15582_v14 = vpack.c.bf16 %v6549_v42, %v6479_v5  ;;  %v5123_v56 = vadd.f32 %v5122_v2, %v14952_v28 }
 0x26a   :  { %v15584_v43 = vpack.c.bf16 %v6542_v40, %v6472_v33  ;;  %13462 = vmatprep.subr.bf16.mxu0 %v15382_v50  ;;  %v4855_v34 = vpop.f32.mrb[147].mxu1  ;;  %13002 = vmatmul.mubr.msk.f32.gmra.mrb[252].mxu1 %vm6636_vm3, %v15168_v36  ;;  %v4854_v29 = vadd.f32 %v4853_v6, %v14952_v28 }
 0x26b   :  { %v5126_v15 = vpop.f32.mrb[148].mxu0  ;;  %13444 = vmatpush1.bf16.msra.mxu1 %v15176_v10  ;;  %7302 = vmatprep.mubr.f32.mxu1 %v18319_v0  ;;  %v15593_v60 = vpack.c.bf16 %v6543_v7, %v6473_v24  ;;  %v4856_v36 = vadd.f32 %v4855_v34, %v14952_v28  ;;  %v6342_v10 = vmax.f32 %v5121_v61, 0.0  ;;  %v6343_v13 = vmax.f32 %v5123_v56, 0.0 }
 0x26c   :  { %v5127_v17 = vadd.f32 %v5126_v15, %v14963_v59  ;;  %v5128_v35 = vpop.f32.mrb[149].mxu0  ;;  %13011 = vmatmul.mubr.msk.f32.gmra.mrb[254].mxu0 %vm6636_vm3, %v15186_v62  ;;  %13454 = vmatprep.subr.bf16.mxu1 %v15226_v47  ;;  %v6336_v2 = vmax.f32 %v4854_v29, 0.0 }
 0x26d   :  { %v5129_v50 = vadd.f32 %v5128_v35, %v14963_v59  ;;  %v4859_v57 = vpop.f32.mrb[148].mxu1  ;;  %7421 = vmatprep.mubr.f32.mxu0 %v18319_v0  ;;  %v6337_v61 = vmax.f32 %v4856_v36, 0.0 }
 0x26e   :  { %v6412_v5 = vmax.f32 %v5127_v17, 0.0  ;;  %v4860_v42 = vadd.f32 %v4859_v57, %v14963_v59  ;;  %v4861_v23 = vpop.f32.mrb[149].mxu1  ;;  %13003 = vmatmul.mubr.msk.f32.gmra.mrb[254].mxu1 %vm6636_vm3, %v15186_v62 }
 0x26f   :  { %v6413_v33 = vmax.f32 %v5129_v50, 0.0  ;;  %v5132_v40 = vpop.f32.mrb[150].mxu0  ;;  %v4862_v47 = vadd.f32 %v4861_v23, %v14963_v59  ;;  %7308 = vmatprep.mubr.f32.mxu1 %v18319_v0 }
 0x270   :  { %v15608_v24 = vpack.c.bf16 %v6412_v5, %v6342_v10  ;;  %v6406_v7 = vmax.f32 %v4860_v42, 0.0  ;;  %v5134_v6 = vpop.f32.mrb[151].mxu0  ;;  %13012 = vmatmul.mubr.msk.f32.gmra.mrb[0].mxu0 %vm6636_vm3, %v15209_v55  ;;  %v5133_v17 = vadd.f32 %v5132_v40, %v14977_v9 }
 0x271   :  { %v6407_v34 = vmax.f32 %v4862_v47, 0.0  ;;  %v4865_v15 = vpop.f32.mrb[150].mxu1  ;;  %7427 = vmatprep.mubr.f32.mxu0 %v18319_v0  ;;  %v15613_v62 = vpack.c.bf16 %v6413_v33, %v6343_v13  ;;  %v5135_v29 = vadd.f32 %v5134_v6, %v14977_v9 }
 0x272   :  { %18328 = vst [vmem:[#allocation15_spill] sm:$0xff] %v15608_v24  ;;  %v15615_v56 = vpack.c.bf16 %v6406_v7, %v6336_v2  ;;  %v4867_v35 = vpop.f32.mrb[151].mxu1  ;;  %13004 = vmatmul.mubr.msk.f32.gmra.mrb[0].mxu1 %vm6636_vm3, %v15209_v55  ;;  %v4866_v57 = vadd.f32 %v4865_v15, %v14977_v9  ;;  %v6482_v13 = vmax.f32 %v5133_v17, 0.0 }
 0x273   :  { %v5138_v50 = vpop.f32.mrb[152].mxu0  ;;  %7314 = vmatprep.mubr.f32.mxu1 %v18319_v0  ;;  %v15622_v36 = vpack.c.bf16 %v6407_v34, %v6337_v61  ;;  %v4868_v42 = vadd.f32 %v4867_v35, %v14977_v9  ;;  %v6483_v2 = vmax.f32 %v5135_v29, 0.0 }
 0x274   :  { %v5139_v10 = vadd.f32 %v5138_v50, %v14987_v38  ;;  %v5140_v5 = vpop.f32.mrb[153].mxu0  ;;  %13013 = vmatmul.mubr.msk.f32.gmra.mrb[2].mxu0 %vm6636_vm3, %v15224_v41  ;;  %v6476_v34 = vmax.f32 %v4866_v57, 0.0 }
 0x275   :  { %v5141_v23 = vadd.f32 %v5140_v5, %v14987_v38  ;;  %v4871_v55 = vpop.f32.mrb[152].mxu1  ;;  %7433 = vmatprep.mubr.f32.mxu0 %v18319_v0  ;;  %v6477_v17 = vmax.f32 %v4868_v42, 0.0 }
 0x276   :  { %v6552_v33 = vmax.f32 %v5139_v10, 0.0  ;;  %v4872_v40 = vadd.f32 %v4871_v55, %v14987_v38  ;;  %v4873_v47 = vpop.f32.mrb[153].mxu1  ;;  %13005 = vmatmul.mubr.msk.f32.gmra.mrb[2].mxu1 %vm6636_vm3, %v15224_v41 }
 0x277   :  { %v6553_v7 = vmax.f32 %v5141_v23, 0.0  ;;  %v5298_v6 = vpop.f32.mrb[154].mxu0  ;;  %v4874_v61 = vadd.f32 %v4873_v47, %v14987_v38  ;;  %7320 = vmatprep.mubr.f32.mxu1 %v18319_v0 }
 0x278   :  { %v15636_v15 = vpack.c.bf16 %v6552_v33, %v6482_v13  ;;  %v6546_v35 = vmax.f32 %v4872_v40, 0.0  ;;  %v5300_v50 = vpop.f32.mrb[155].mxu0  ;;  %13014 = vmatmul.mubr.msk.f32.gmra.mrb[4].mxu0 %vm6636_vm3, %v15247_v46  ;;  %v5299_v23 = vadd.f32 %v5298_v6, %v14952_v28 }
 0x279   :  { %v6547_v10 = vmax.f32 %v4874_v61, 0.0  ;;  %v5031_v5 = vpop.f32.mrb[154].mxu1  ;;  %7439 = vmatprep.mubr.f32.mxu0 %v18319_v0  ;;  %v15641_v41 = vpack.c.bf16 %v6553_v7, %v6483_v2  ;;  %v5301_v57 = vadd.f32 %v5300_v50, %v14952_v28 }
 0x27a   :  { %18329 = vst [vmem:[#allocation16_spill] sm:$0xff] %v15636_v15  ;;  %v15643_v29 = vpack.c.bf16 %v6546_v35, %v6476_v34  ;;  %v5033_v55 = vpop.f32.mrb[155].mxu1  ;;  %13006 = vmatmul.mubr.msk.f32.gmra.mrb[4].mxu1 %vm6636_vm3, %v15247_v46  ;;  %v5032_v33 = vadd.f32 %v5031_v5, %v14952_v28  ;;  %v6346_v6 = vmax.f32 %v5299_v23, 0.0 }
 0x27b   :  { %18330 = vst [vmem:[#allocation17_spill] sm:$0xff] %v15641_v41  ;;  %v5304_v13 = vpop.f32.mrb[156].mxu0  ;;  %7326 = vmatprep.mubr.f32.mxu1 %v18319_v0  ;;  %v15650_v42 = vpack.c.bf16 %v6547_v10, %v6477_v17  ;;  %v5034_v2 = vadd.f32 %v5033_v55, %v14952_v28  ;;  %v6347_v50 = vmax.f32 %v5301_v57, 0.0 }
 0x27c   :  { %v5305_v40 = vadd.f32 %v5304_v13, %v14963_v59  ;;  %v5306_v47 = vpop.f32.mrb[157].mxu0  ;;  %13015 = vmatmul.mubr.msk.f32.gmra.mrb[6].mxu0 %vm6636_vm3, %v15266_v27  ;;  %v6340_v55 = vmax.f32 %v5032_v33, 0.0 }
 0x27d   :  { %v5307_v7 = vadd.f32 %v5306_v47, %v14963_v59  ;;  %v5037_v46 = vpop.f32.mrb[156].mxu1  ;;  %7445 = vmatprep.mubr.f32.mxu0 %v18319_v0  ;;  %v6341_v23 = vmax.f32 %v5034_v2, 0.0 }
 0x27e   :  { %v6416_v61 = vmax.f32 %v5305_v40, 0.0  ;;  %v5038_v34 = vadd.f32 %v5037_v46, %v14963_v59  ;;  %v5039_v35 = vpop.f32.mrb[157].mxu1  ;;  %13007 = vmatmul.mubr.msk.f32.gmra.mrb[6].mxu1 %vm6636_vm3, %v15266_v27 }
 0x27f   :  { %v6417_v17 = vmax.f32 %v5307_v7, 0.0  ;;  %v5310_v10 = vpop.f32.mrb[158].mxu0  ;;  %v5040_v5 = vadd.f32 %v5039_v35, %v14963_v59  ;;  %7332 = vmatprep.mubr.f32.mxu1 %v18319_v0 }
 0x280   :  { %v15664_v13 = vpack.c.bf16 %v6416_v61, %v6346_v6  ;;  %v6410_v47 = vmax.f32 %v5038_v34, 0.0  ;;  %v5312_v15 = vpop.f32.mrb[159].mxu0  ;;  %13016 = vmatmul.mubr.msk.f32.gmra.mrb[8].mxu0 %vm6636_vm3, %v15293_v54  ;;  %v5311_v7 = vadd.f32 %v5310_v10, %v14977_v9 }
 0x281   :  { %v6411_v40 = vmax.f32 %v5040_v5, 0.0  ;;  %v5043_v46 = vpop.f32.mrb[158].mxu1  ;;  %7629 = vmatprep.mubr.f32.mxu0 %v18319_v0  ;;  %v15669_v27 = vpack.c.bf16 %v6417_v17, %v6347_v50  ;;  %v5313_v33 = vadd.f32 %v5312_v15, %v14977_v9  ;;  %v15685_v17 = vld [vmem:[%s18316_s6] sm:$0xff] }
 0x282   :  { %18331 = vst [vmem:[#allocation18_spill] sm:$0xff] %v15664_v13  ;;  %v15671_v57 = vpack.c.bf16 %v6410_v47, %v6340_v55  ;;  %v5045_v35 = vpop.f32.mrb[159].mxu1  ;;  %13008 = vmatmul.mubr.msk.f32.gmra.mrb[8].mxu1 %vm6636_vm3, %v15293_v54  ;;  %v5044_v61 = vadd.f32 %v5043_v46, %v14977_v9  ;;  %v6486_v5 = vmax.f32 %v5311_v7, 0.0 }
 0x283   :  { %18332 = vst [vmem:[#allocation19_spill] sm:$0xff] %v15669_v27  ;;  %v5316_v6 = vpop.f32.mrb[160].mxu0  ;;  %7516 = vmatprep.mubr.f32.mxu1 %v18319_v0  ;;  %v15678_v2 = vpack.c.bf16 %v6411_v40, %v6341_v23  ;;  %v5046_v54 = vadd.f32 %v5045_v35, %v14977_v9  ;;  %v6487_v40 = vmax.f32 %v5313_v33, 0.0 }
 0x284   :  { %v5317_v34 = vadd.f32 %v5316_v6, %v14987_v38  ;;  %v5318_v50 = vpop.f32.mrb[161].mxu0  ;;  %13025 = vmatmul.mubr.msk.f32.vlgmr.msra.gmra.mrb[10].mxu0 %vm6636_vm3, %v15685_v17 }
 0x285   :  { %v5319_v15 = vadd.f32 %v5318_v50, %v14987_v38  ;;  %13464 = vmatpush1.bf16.msra.mxu0 %v15375_v21  ;;  %v5049_v10 = vpop.f32.mrb[160].mxu1  ;;  %7635 = vmatprep.mubr.f32.mxu0 %v18319_v0  ;;  %v6480_v21 = vmax.f32 %v5044_v61, 0.0  ;;  %v15705_v50 = vld [vmem:[%s18316_s6 + $0x8] sm:$0xff]  ;;  %v6481_v33 = vmax.f32 %v5046_v54, 0.0 }
 0x286   :  { %v6556_v55 = vmax.f32 %v5317_v34, 0.0  ;;  %13466 = vmatprep.subr.bf16.mxu0 %v15410_v1  ;;  %v5050_v47 = vadd.f32 %v5049_v10, %v14987_v38  ;;  %v5051_v23 = vpop.f32.mrb[161].mxu1  ;;  %13017 = vmatmul.mubr.msk.f32.vlgmr.msra.gmra.mrb[10].mxu1 %vm6636_vm3, %v15685_v17 }
 0x287   :  { %v6557_v46 = vmax.f32 %v5319_v15, 0.0  ;;  %v5476_v35 = vpop.f32.mrb[162].mxu0  ;;  %v5052_v6 = vadd.f32 %v5051_v23, %v14987_v38  ;;  %13456 = vmatpush1.bf16.msra.mxu1 %v15216_v22  ;;  %7522 = vmatprep.mubr.f32.mxu1 %v18319_v0 }
 0x288   :  { %v15700_v7 = vpack.c.bf16 %v6556_v55, %v6486_v5  ;;  %v6550_v34 = vmax.f32 %v5050_v47, 0.0  ;;  %v5478_v1 = vpop.f32.mrb[163].mxu0  ;;  %13026 = vmatmul.mubr.msk.f32.gmra.mrb[12].mxu0 %vm6636_vm3, %v15705_v50  ;;  %13458 = vmatprep.subr.bf16.mxu1 %v15268_v25  ;;  %v5477_v5 = vadd.f32 %v5476_v35, %v14952_v28 }
 0x289   :  { %v6551_v15 = vmax.f32 %v5052_v6, 0.0  ;;  %13468 = vmatpush1.bf16.msra.mxu0 %v15403_v53  ;;  %v5209_v22 = vpop.f32.mrb[162].mxu1  ;;  %7641 = vmatprep.mubr.f32.mxu0 %v18319_v0  ;;  %v15712_v61 = vpack.c.bf16 %v6557_v46, %v6487_v40  ;;  %v5479_v25 = vadd.f32 %v5478_v1, %v14952_v28 }
 0x28a   :  { %18333 = vst [vmem:[#allocation20_spill] sm:$0xff] %v15700_v7  ;;  %v15714_v10 = vpack.c.bf16 %v6550_v34, %v6480_v21  ;;  %13478 = vmatprep.subr.bf16.mxu0 %v15438_v49  ;;  %v5211_v55 = vpop.f32.mrb[163].mxu1  ;;  %13018 = vmatmul.mubr.msk.f32.gmra.mrb[12].mxu1 %vm6636_vm3, %v15705_v50  ;;  %v5210_v47 = vadd.f32 %v5209_v22, %v14952_v28  ;;  %v15730_v49 = vld [vmem:[%s18316_s6 + $0x10] sm:$0xff]  ;;  %v6350_v6 = vmax.f32 %v5477_v5, 0.0  ;;  %v15748_v5 = vld [vmem:[%s18316_s6 + $0x18] sm:$0xff] }
 0x28b   :  { %18334 = vst [vmem:[#allocation21_spill] sm:$0xff] %v15712_v61  ;;  %v5482_v54 = vpop.f32.mrb[164].mxu0  ;;  %13460 = vmatpush1.bf16.msra.mxu1 %v15257_v37  ;;  %7528 = vmatprep.mubr.f32.mxu1 %v18319_v0  ;;  %v15723_v53 = vpack.c.bf16 %v6551_v15, %v6481_v33  ;;  %v5212_v37 = vadd.f32 %v5211_v55, %v14952_v28  ;;  %v6351_v33 = vmax.f32 %v5479_v25, 0.0 }
 0x28c   :  { %v5483_v23 = vadd.f32 %v5482_v54, %v14963_v59  ;;  %v5484_v40 = vpop.f32.mrb[165].mxu0  ;;  %13027 = vmatmul.mubr.msk.f32.gmra.mrb[14].mxu0 %vm6636_vm3, %v15730_v49  ;;  %13470 = vmatprep.subr.bf16.mxu1 %v15307_v32  ;;  %v6344_v55 = vmax.f32 %v5210_v47, 0.0 }
 0x28d   :  { %v5485_v46 = vadd.f32 %v5484_v40, %v14963_v59  ;;  %v5215_v35 = vpop.f32.mrb[164].mxu1  ;;  %7647 = vmatprep.mubr.f32.mxu0 %v18319_v0  ;;  %v6345_v25 = vmax.f32 %v5212_v37, 0.0 }
 0x28e   :  { %v6420_v21 = vmax.f32 %v5483_v23, 0.0  ;;  %v5216_v34 = vadd.f32 %v5215_v35, %v14963_v59  ;;  %v5217_v1 = vpop.f32.mrb[165].mxu1  ;;  %13019 = vmatmul.mubr.msk.f32.gmra.mrb[14].mxu1 %vm6636_vm3, %v15730_v49 }
 0x28f   :  { %v6421_v15 = vmax.f32 %v5485_v46, 0.0  ;;  %v5488_v22 = vpop.f32.mrb[166].mxu0  ;;  %v5218_v32 = vadd.f32 %v5217_v1, %v14963_v59  ;;  %7534 = vmatprep.mubr.f32.mxu1 %v18319_v0 }
 0x290   :  { %v15743_v54 = vpack.c.bf16 %v6420_v21, %v6350_v6  ;;  %v6414_v40 = vmax.f32 %v5216_v34, 0.0  ;;  %v5490_v7 = vpop.f32.mrb[167].mxu0  ;;  %13028 = vmatmul.mubr.msk.f32.gmra.mrb[16].mxu0 %vm6636_vm3, %v15748_v5  ;;  %v5489_v6 = vadd.f32 %v5488_v22, %v14977_v9  ;;  %v15769_v22 = vld [vmem:[%s18316_s6 + $0x20] sm:$0xff] }
 0x291   :  { %v6415_v23 = vmax.f32 %v5218_v32, 0.0  ;;  %v5221_v46 = vpop.f32.mrb[166].mxu1  ;;  %7653 = vmatprep.mubr.f32.mxu0 %v18319_v0  ;;  %v15753_v35 = vpack.c.bf16 %v6421_v15, %v6351_v33  ;;  %v5491_v34 = vadd.f32 %v5490_v7, %v14977_v9 }
 0x292   :  { %18335 = vst [vmem:[#allocation22_spill] sm:$0xff] %v15743_v54  ;;  %v15755_v47 = vpack.c.bf16 %v6414_v40, %v6344_v55  ;;  %v5223_v21 = vpop.f32.mrb[167].mxu1  ;;  %13020 = vmatmul.mubr.msk.f32.gmra.mrb[16].mxu1 %vm6636_vm3, %v15748_v5  ;;  %v5222_v32 = vadd.f32 %v5221_v46, %v14977_v9 }
 0x293   :  { %18336 = vst [vmem:[#allocation23_spill] sm:$0xff] %v15753_v35  ;;  %v5494_v1 = vpop.f32.mrb[168].mxu0  ;;  %7540 = vmatprep.mubr.f32.mxu1 %v18319_v0  ;;  %v15762_v37 = vpack.c.bf16 %v6415_v23, %v6345_v25  ;;  %v5224_v7 = vadd.f32 %v5223_v21, %v14977_v9  ;;  %v6490_v25 = vmax.f32 %v5489_v6, 0.0  ;;  %v6491_v54 = vmax.f32 %v5491_v34, 0.0  ;;  %v15786_v6 = vld [vmem:[%s18316_s6 + $0x28] sm:$0xff] }
 0x294   :  { %18337 = vst [vmem:[#allocation24_spill] sm:$0xff] %v15755_v47  ;;  %v5495_v33 = vadd.f32 %v5494_v1, %v14987_v38  ;;  %v5496_v15 = vpop.f32.mrb[169].mxu0  ;;  %13029 = vmatmul.mubr.msk.f32.gmra.mrb[18].mxu0 %vm6636_vm3, %v15769_v22  ;;  %v6484_v21 = vmax.f32 %v5222_v32, 0.0 }
 0x295   :  { %v5497_v55 = vadd.f32 %v5496_v15, %v14987_v38  ;;  %v5227_v40 = vpop.f32.mrb[168].mxu1  ;;  %7659 = vmatprep.mubr.f32.mxu0 %v18319_v0  ;;  %v6485_v34 = vmax.f32 %v5224_v7, 0.0 }
 0x296   :  { %v6560_v23 = vmax.f32 %v5495_v33, 0.0  ;;  %v5228_v46 = vadd.f32 %v5227_v40, %v14987_v38  ;;  %v5229_v1 = vpop.f32.mrb[169].mxu1  ;;  %13021 = vmatmul.mubr.msk.f32.gmra.mrb[18].mxu1 %vm6636_vm3, %v15769_v22 }
 0x297   :  { %v6561_v35 = vmax.f32 %v5497_v55, 0.0  ;;  %v5654_v61 = vpop.f32.mrb[170].mxu0  ;;  %v5230_v13 = vadd.f32 %v5229_v1, %v14987_v38  ;;  %7546 = vmatprep.mubr.f32.mxu1 %v18319_v0 }
 0x298   :  { %v15781_v15 = vpack.c.bf16 %v6560_v23, %v6490_v25  ;;  %v6554_v27 = vmax.f32 %v5228_v46, 0.0  ;;  %v5656_v41 = vpop.f32.mrb[171].mxu0  ;;  %13030 = vmatmul.mubr.msk.f32.gmra.mrb[20].mxu0 %vm6636_vm3, %v15786_v6  ;;  %v5655_v25 = vadd.f32 %v5654_v61, %v14952_v28 }
 0x299   :  { %v6555_v33 = vmax.f32 %v5230_v13, 0.0  ;;  %v5387_v55 = vpop.f32.mrb[170].mxu1  ;;  %7665 = vmatprep.mubr.f32.mxu0 %v18319_v0  ;;  %v15791_v40 = vpack.c.bf16 %v6561_v35, %v6491_v54  ;;  %v5657_v46 = vadd.f32 %v5656_v41, %v14952_v28 }
 0x29a   :  { %18338 = vst [vmem:[#allocation25_spill] sm:$0xff] %v15781_v15  ;;  %v15793_v32 = vpack.c.bf16 %v6554_v27, %v6484_v21  ;;  %v5389_v23 = vpop.f32.mrb[171].mxu1  ;;  %13022 = vmatmul.mubr.msk.f32.gmra.mrb[20].mxu1 %vm6636_vm3, %v15786_v6  ;;  %v5388_v13 = vadd.f32 %v5387_v55, %v14952_v28  ;;  %v15807_v27 = vld [vmem:[%s18316_s6 + $0x30] sm:$0xff] }
 0x29b   :  { %18339 = vst [vmem:[#allocation26_spill] sm:$0xff] %v15791_v40  ;;  %v5660_v1 = vpop.f32.mrb[172].mxu0  ;;  %7552 = vmatprep.mubr.f32.mxu1 %v18319_v0  ;;  %v15800_v7 = vpack.c.bf16 %v6555_v33, %v6485_v34  ;;  %v5390_v41 = vadd.f32 %v5389_v23, %v14952_v28  ;;  %v6354_v34 = vmax.f32 %v5655_v25, 0.0  ;;  %v6355_v15 = vmax.f32 %v5657_v46, 0.0  ;;  %v15824_v25 = vld [vmem:[%s18316_s6 + $0x38] sm:$0xff] }
 0x29c   :  { %18340 = vst [vmem:[#allocation27_spill] sm:$0xff] %v15793_v32  ;;  %v5661_v54 = vadd.f32 %v5660_v1, %v14963_v59  ;;  %v5662_v35 = vpop.f32.mrb[173].mxu0  ;;  %13031 = vmatmul.mubr.msk.f32.gmra.mrb[22].mxu0 %vm6636_vm3, %v15807_v27  ;;  %v6348_v23 = vmax.f32 %v5388_v13, 0.0 }
 0x29d   :  { %18341 = vst [vmem:[#allocation28_spill] sm:$0xff] %v15800_v7  ;;  %v5663_v61 = vadd.f32 %v5662_v35, %v14963_v59  ;;  %v5393_v21 = vpop.f32.mrb[172].mxu1  ;;  %7671 = vmatprep.mubr.f32.mxu0 %v18319_v0  ;;  %v6349_v46 = vmax.f32 %v5390_v41, 0.0 }
 0x29e   :  { %v6424_v33 = vmax.f32 %v5661_v54, 0.0  ;;  %v5394_v55 = vadd.f32 %v5393_v21, %v14963_v59  ;;  %v5395_v1 = vpop.f32.mrb[173].mxu1  ;;  %13023 = vmatmul.mubr.msk.f32.gmra.mrb[22].mxu1 %vm6636_vm3, %v15807_v27 }
 0x29f   :  { %v6425_v40 = vmax.f32 %v5663_v61, 0.0  ;;  %v5666_v32 = vpop.f32.mrb[174].mxu0  ;;  %v5396_v24 = vadd.f32 %v5395_v1, %v14963_v59  ;;  %7558 = vmatprep.mubr.f32.mxu1 %v18319_v0 }
 0x2a0   :  { %v15819_v35 = vpack.c.bf16 %v6424_v33, %v6354_v34  ;;  %v6418_v7 = vmax.f32 %v5394_v55, 0.0  ;;  %v5668_v47 = vpop.f32.mrb[175].mxu0  ;;  %13032 = vmatmul.mubr.msk.f32.gmra.mrb[24].mxu0 %vm6636_vm3, %v15824_v25  ;;  %v5667_v34 = vadd.f32 %v5666_v32, %v14977_v9 }
 0x2a1   :  { %v6419_v54 = vmax.f32 %v5396_v24, 0.0  ;;  %v5399_v61 = vpop.f32.mrb[174].mxu1  ;;  %7855 = vmatprep.mubr.f32.mxu0 %v18319_v0  ;;  %v15829_v21 = vpack.c.bf16 %v6425_v40, %v6355_v15  ;;  %v5669_v55 = vadd.f32 %v5668_v47, %v14977_v9 }
 0x2a2   :  { %18342 = vst [vmem:[#allocation29_spill] sm:$0xff] %v15819_v35  ;;  %v15831_v13 = vpack.c.bf16 %v6418_v7, %v6348_v23  ;;  %v5401_v33 = vpop.f32.mrb[175].mxu1  ;;  %13024 = vmatmul.mubr.msk.f32.gmra.mrb[24].mxu1 %vm6636_vm3, %v15824_v25  ;;  %v5400_v24 = vadd.f32 %v5399_v61, %v14977_v9  ;;  %v6494_v23 = vmax.f32 %v5667_v34, 0.0 }
 0x2a3   :  { %18343 = vst [vmem:[#allocation30_spill] sm:$0xff] %v15829_v21  ;;  %v5672_v1 = vpop.f32.mrb[176].mxu0  ;;  %7742 = vmatprep.mubr.f32.mxu1 %v18319_v0  ;;  %v15838_v41 = vpack.c.bf16 %v6419_v54, %v6349_v46  ;;  %v5402_v32 = vadd.f32 %v5401_v33, %v14977_v9 }
 0x2a4   :  { %v5673_v15 = vadd.f32 %v5672_v1, %v14987_v38  ;;  %v5674_v40 = vpop.f32.mrb[177].mxu0  ;;  %13041 = vmatmul.mubr.msk.f32.vlgmr.msra.gmra.mrb[26].mxu0 %vm6636_vm3, %v15685_v17  ;;  %v6495_v1 = vmax.f32 %v5669_v55, 0.0 }
 0x2a5   :  { %v5675_v7 = vadd.f32 %v5674_v40, %v14987_v38  ;;  %13480 = vmatpush1.bf16.msra.mxu0 %v15431_v58  ;;  %v5405_v47 = vpop.f32.mrb[176].mxu1  ;;  %7861 = vmatprep.mubr.f32.mxu0 %v18319_v0  ;;  %v6488_v58 = vmax.f32 %v5400_v24, 0.0 }
 0x2a6   :  { %v6564_v46 = vmax.f32 %v5673_v15, 0.0  ;;  %13482 = vmatprep.subr.bf16.mxu0 %v15473_v11  ;;  %v5406_v54 = vadd.f32 %v5405_v47, %v14987_v38  ;;  %v5407_v61 = vpop.f32.mrb[177].mxu1  ;;  %13033 = vmatmul.mubr.msk.f32.vlgmr.msra.gmra.mrb[26].mxu1 %vm6636_vm3, %v15685_v17  ;;  %v6489_v47 = vmax.f32 %v5402_v32, 0.0 }
 0x2a7   :  { %v6565_v35 = vmax.f32 %v5675_v7, 0.0  ;;  %v5832_v33 = vpop.f32.mrb[178].mxu0  ;;  %v5408_v40 = vadd.f32 %v5407_v61, %v14987_v38  ;;  %13472 = vmatpush1.bf16.msra.mxu1 %v15302_v19  ;;  %7748 = vmatprep.mubr.f32.mxu1 %v18319_v0 }
 0x2a8   :  { %v15855_v34 = vpack.c.bf16 %v6564_v46, %v6494_v23  ;;  %v6558_v15 = vmax.f32 %v5406_v54, 0.0  ;;  %v5834_v11 = vpop.f32.mrb[179].mxu0  ;;  %13042 = vmatmul.mubr.msk.f32.gmra.mrb[28].mxu0 %vm6636_vm3, %v15705_v50  ;;  %13474 = vmatprep.subr.bf16.mxu1 %v15342_v51  ;;  %v5833_v24 = vadd.f32 %v5832_v33, %v14952_v28 }
 0x2a9   :  { %v6559_v55 = vmax.f32 %v5408_v40, 0.0  ;;  %13484 = vmatpush1.bf16.msra.mxu0 %v15464_v39  ;;  %v5565_v7 = vpop.f32.mrb[178].mxu1  ;;  %7867 = vmatprep.mubr.f32.mxu0 %v18319_v0  ;;  %v15862_v19 = vpack.c.bf16 %v6565_v35, %v6495_v1  ;;  %v5835_v51 = vadd.f32 %v5834_v11, %v14952_v28 }
 0x2aa   :  { %18344 = vst [vmem:[#allocation31_spill] sm:$0xff] %v15855_v34  ;;  %v15864_v61 = vpack.c.bf16 %v6558_v15, %v6488_v58  ;;  %13494 = vmatprep.subr.bf16.mxu0 %v15502_v26  ;;  %v5567_v23 = vpop.f32.mrb[179].mxu1  ;;  %13034 = vmatmul.mubr.msk.f32.gmra.mrb[28].mxu1 %vm6636_vm3, %v15705_v50  ;;  %v5566_v35 = vadd.f32 %v5565_v7, %v14952_v28 }
 0x2ab   :  { %18345 = vst [vmem:[#allocation32_spill] sm:$0xff] %v15862_v19  ;;  %v5838_v32 = vpop.f32.mrb[180].mxu0  ;;  %13476 = vmatpush1.bf16.msra.mxu1 %v15335_v16  ;;  %7754 = vmatprep.mubr.f32.mxu1 %v18319_v0  ;;  %v15873_v39 = vpack.c.bf16 %v6559_v55, %v6489_v47  ;;  %v5568_v26 = vadd.f32 %v5567_v23, %v14952_v28  ;;  %v6358_v16 = vmax.f32 %v5833_v24, 0.0  ;;  %v6359_v11 = vmax.f32 %v5835_v51, 0.0 }
 0x2ac   :  { %v5839_v46 = vadd.f32 %v5838_v32, %v14963_v59  ;;  %v5840_v54 = vpop.f32.mrb[181].mxu0  ;;  %13043 = vmatmul.mubr.msk.f32.gmra.mrb[30].mxu0 %vm6636_vm3, %v15730_v49  ;;  %13486 = vmatprep.subr.bf16.mxu1 %v15373_v52  ;;  %v6352_v7 = vmax.f32 %v5566_v35, 0.0 }
 0x2ad   :  { %v5841_v1 = vadd.f32 %v5840_v54, %v14963_v59  ;;  %v5571_v33 = vpop.f32.mrb[180].mxu1  ;;  %7873 = vmatprep.mubr.f32.mxu0 %v18319_v0  ;;  %v6353_v24 = vmax.f32 %v5568_v26, 0.0 }
 0x2ae   :  { %v6428_v40 = vmax.f32 %v5839_v46, 0.0  ;;  %v5572_v58 = vadd.f32 %v5571_v33, %v14963_v59  ;;  %v5573_v15 = vpop.f32.mrb[181].mxu1  ;;  %13035 = vmatmul.mubr.msk.f32.gmra.mrb[30].mxu1 %vm6636_vm3, %v15730_v49 }
 0x2af   :  { %v6429_v47 = vmax.f32 %v5841_v1, 0.0  ;;  %v5844_v55 = vpop.f32.mrb[182].mxu0  ;;  %v5574_v52 = vadd.f32 %v5573_v15, %v14963_v59  ;;  %7760 = vmatprep.mubr.f32.mxu1 %v18319_v0 }
 0x2b0   :  { %v15888_v23 = vpack.c.bf16 %v6428_v40, %v6358_v16  ;;  %v6422_v32 = vmax.f32 %v5572_v58, 0.0  ;;  %v5846_v54 = vpop.f32.mrb[183].mxu0  ;;  %13044 = vmatmul.mubr.msk.f32.gmra.mrb[32].mxu0 %vm6636_vm3, %v15748_v5  ;;  %v5845_v15 = vadd.f32 %v5844_v55, %v14977_v9 }
 0x2b1   :  { %v6423_v46 = vmax.f32 %v5574_v52, 0.0  ;;  %v5577_v33 = vpop.f32.mrb[182].mxu1  ;;  %7879 = vmatprep.mubr.f32.mxu0 %v18319_v0  ;;  %v15893_v51 = vpack.c.bf16 %v6429_v47, %v6359_v11  ;;  %v5847_v35 = vadd.f32 %v5846_v54, %v14977_v9 }
 0x2b2   :  { %18346 = vst [vmem:[#allocation33_spill] sm:$0xff] %v15888_v23  ;;  %v15895_v1 = vpack.c.bf16 %v6422_v32, %v6352_v7  ;;  %v5579_v34 = vpop.f32.mrb[183].mxu1  ;;  %13036 = vmatmul.mubr.msk.f32.gmra.mrb[32].mxu1 %vm6636_vm3, %v15748_v5  ;;  %v5578_v40 = vadd.f32 %v5577_v33, %v14977_v9  ;;  %v6498_v7 = vmax.f32 %v5845_v15, 0.0 }
 0x2b3   :  { %18347 = vst [vmem:[#allocation34_spill] sm:$0xff] %v15893_v51  ;;  %v5850_v16 = vpop.f32.mrb[184].mxu0  ;;  %7766 = vmatprep.mubr.f32.mxu1 %v18319_v0  ;;  %v15902_v26 = vpack.c.bf16 %v6423_v46, %v6353_v24  ;;  %v5580_v47 = vadd.f32 %v5579_v34, %v14977_v9  ;;  %v6499_v46 = vmax.f32 %v5847_v35, 0.0 }
 0x2b4   :  { %v5851_v58 = vadd.f32 %v5850_v16, %v14987_v38  ;;  %v5852_v11 = vpop.f32.mrb[185].mxu0  ;;  %13045 = vmatmul.mubr.msk.f32.gmra.mrb[34].mxu0 %vm6636_vm3, %v15769_v22  ;;  %v6492_v34 = vmax.f32 %v5578_v40, 0.0 }
 0x2b5   :  { %v5853_v55 = vadd.f32 %v5852_v11, %v14987_v38  ;;  %v5583_v52 = vpop.f32.mrb[184].mxu1  ;;  %7885 = vmatprep.mubr.f32.mxu0 %v18319_v0  ;;  %v6493_v15 = vmax.f32 %v5580_v47, 0.0 }
 0x2b6   :  { %v6568_v32 = vmax.f32 %v5851_v58, 0.0  ;;  %v5584_v54 = vadd.f32 %v5583_v52, %v14987_v38  ;;  %v5585_v24 = vpop.f32.mrb[185].mxu1  ;;  %13037 = vmatmul.mubr.msk.f32.gmra.mrb[34].mxu1 %vm6636_vm3, %v15769_v22 }
 0x2b7   :  { %v6569_v33 = vmax.f32 %v5853_v55, 0.0  ;;  %v6010_v16 = vpop.f32.mrb[186].mxu0  ;;  %v5586_v23 = vadd.f32 %v5585_v24, %v14987_v38  ;;  %7772 = vmatprep.mubr.f32.mxu1 %v18319_v0 }
 0x2b8   :  { %v15916_v11 = vpack.c.bf16 %v6568_v32, %v6498_v7  ;;  %v6562_v51 = vmax.f32 %v5584_v54, 0.0  ;;  %v6012_v19 = vpop.f32.mrb[187].mxu0  ;;  %13046 = vmatmul.mubr.msk.f32.gmra.mrb[36].mxu0 %vm6636_vm3, %v15786_v6  ;;  %v6011_v24 = vadd.f32 %v6010_v16, %v14952_v28 }
 0x2b9   :  { %v6563_v58 = vmax.f32 %v5586_v23, 0.0  ;;  %v5743_v52 = vpop.f32.mrb[186].mxu1  ;;  %7891 = vmatprep.mubr.f32.mxu0 %v18319_v0  ;;  %v15921_v35 = vpack.c.bf16 %v6569_v33, %v6499_v46  ;;  %v6013_v40 = vadd.f32 %v6012_v19, %v14952_v28 }
 0x2ba   :  { %18348 = vst [vmem:[#allocation35_spill] sm:$0xff] %v15916_v11  ;;  %v15923_v55 = vpack.c.bf16 %v6562_v51, %v6492_v34  ;;  %v5745_v21 = vpop.f32.mrb[187].mxu1  ;;  %13038 = vmatmul.mubr.msk.f32.gmra.mrb[36].mxu1 %vm6636_vm3, %v15786_v6  ;;  %v5744_v23 = vadd.f32 %v5743_v52, %v14952_v28  ;;  %v6362_v19 = vmax.f32 %v6011_v24, 0.0 }
 0x2bb   :  { %18349 = vst [vmem:[#allocation36_spill] sm:$0xff] %v15921_v35  ;;  %v6016_v7 = vpop.f32.mrb[188].mxu0  ;;  %7778 = vmatprep.mubr.f32.mxu1 %v18319_v0  ;;  %v15930_v47 = vpack.c.bf16 %v6563_v58, %v6493_v15  ;;  %v5746_v51 = vadd.f32 %v5745_v21, %v14952_v28  ;;  %v6363_v58 = vmax.f32 %v6013_v40, 0.0 }
 0x2bc   :  { %18350 = vst [vmem:[#allocation37_spill] sm:$0xff] %v15923_v55  ;;  %v6017_v32 = vadd.f32 %v6016_v7, %v14963_v59  ;;  %v6018_v54 = vpop.f32.mrb[189].mxu0  ;;  %13047 = vmatmul.mubr.msk.f32.gmra.mrb[38].mxu0 %vm6636_vm3, %v15807_v27  ;;  %v6356_v21 = vmax.f32 %v5744_v23, 0.0 }
 0x2bd   :  { %18351 = vst [vmem:[#allocation38_spill] sm:$0xff] %v15930_v47  ;;  %v6019_v46 = vadd.f32 %v6018_v54, %v14963_v59  ;;  %v5749_v33 = vpop.f32.mrb[188].mxu1  ;;  %7897 = vmatprep.mubr.f32.mxu0 %v18319_v0  ;;  %v6357_v24 = vmax.f32 %v5746_v51, 0.0 }
 0x2be   :  { %v6432_v16 = vmax.f32 %v6017_v32, 0.0  ;;  %v5750_v34 = vadd.f32 %v5749_v33, %v14963_v59  ;;  %v5751_v15 = vpop.f32.mrb[189].mxu1  ;;  %13039 = vmatmul.mubr.msk.f32.gmra.mrb[38].mxu1 %vm6636_vm3, %v15807_v27 }
 0x2bf   :  { %v6433_v52 = vmax.f32 %v6019_v46, 0.0  ;;  %v6022_v7 = vpop.f32.mrb[190].mxu0  ;;  %v5752_v11 = vadd.f32 %v5751_v15, %v14963_v59  ;;  %7784 = vmatprep.mubr.f32.mxu1 %v18319_v0 }
 0x2c0   :  { %v15944_v54 = vpack.c.bf16 %v6432_v16, %v6362_v19  ;;  %v6426_v35 = vmax.f32 %v5750_v34, 0.0  ;;  %v6024_v55 = vpop.f32.mrb[191].mxu0  ;;  %13048 = vmatmul.mubr.msk.f32.gmra.mrb[40].mxu0 %vm6636_vm3, %v15824_v25  ;;  %v6023_v15 = vadd.f32 %v6022_v7, %v14977_v9 }
 0x2c1   :  { %v6427_v32 = vmax.f32 %v5752_v11, 0.0  ;;  %v5755_v33 = vpop.f32.mrb[190].mxu1  ;;  %8081 = vmatprep.mubr.f32.mxu0 %v18319_v0  ;;  %v15949_v40 = vpack.c.bf16 %v6433_v52, %v6363_v58  ;;  %v6025_v23 = vadd.f32 %v6024_v55, %v14977_v9 }
 0x2c2   :  { %18352 = vst [vmem:[#allocation39_spill] sm:$0xff] %v15944_v54  ;;  %v15951_v46 = vpack.c.bf16 %v6426_v35, %v6356_v21  ;;  %v5757_v47 = vpop.f32.mrb[191].mxu1  ;;  %13040 = vmatmul.mubr.msk.f32.gmra.mrb[40].mxu1 %vm6636_vm3, %v15824_v25  ;;  %v5756_v11 = vadd.f32 %v5755_v33, %v14977_v9  ;;  %v6502_v52 = vmax.f32 %v6023_v15, 0.0 }
 0x2c3   :  { %18353 = vst [vmem:[#allocation40_spill] sm:$0xff] %v15949_v40  ;;  %v6028_v19 = vpop.f32.mrb[192].mxu0  ;;  %7968 = vmatprep.mubr.f32.mxu1 %v18319_v0  ;;  %v15958_v51 = vpack.c.bf16 %v6427_v32, %v6357_v24  ;;  %v5758_v35 = vadd.f32 %v5757_v47, %v14977_v9  ;;  %v6503_v32 = vmax.f32 %v6025_v23, 0.0 }
 0x2c4   :  { %18354 = vst [vmem:[#allocation41_spill] sm:$0xff] %v15951_v46  ;;  %v6029_v16 = vadd.f32 %v6028_v19, %v14987_v38  ;;  %v6030_v34 = vpop.f32.mrb[193].mxu0  ;;  %13057 = vmatmul.mubr.msk.f32.vlgmr.msra.gmra.mrb[42].mxu0 %vm6636_vm3, %v15685_v17 }
 0x2c5   :  { %v6031_v58 = vadd.f32 %v6030_v34, %v14987_v38  ;;  %13496 = vmatpush1.bf16.msra.mxu0 %v15495_v18  ;;  %v5761_v55 = vpop.f32.mrb[192].mxu1  ;;  %8087 = vmatprep.mubr.f32.mxu0 %v18319_v0  ;;  %v6496_v18 = vmax.f32 %v5756_v11, 0.0  ;;  %v6497_v34 = vmax.f32 %v5758_v35, 0.0 }
 0x2c6   :  { %v6572_v7 = vmax.f32 %v6029_v16, 0.0  ;;  %13498 = vmatprep.subr.bf16.mxu0 %v15530_v48  ;;  %v5762_v21 = vadd.f32 %v5761_v55, %v14987_v38  ;;  %v5763_v24 = vpop.f32.mrb[193].mxu1  ;;  %13049 = vmatmul.mubr.msk.f32.vlgmr.msra.gmra.mrb[42].mxu1 %vm6636_vm3, %v15685_v17 }
 0x2c7   :  { %v6573_v33 = vmax.f32 %v6031_v58, 0.0  ;;  %v6188_v47 = vpop.f32.mrb[194].mxu0  ;;  %v5764_v19 = vadd.f32 %v5763_v24, %v14987_v38  ;;  %13488 = vmatpush1.bf16.msra.mxu1 %v15368_v63  ;;  %7974 = vmatprep.mubr.f32.mxu1 %v18319_v0 }
 0x2c8   :  { %v15975_v15 = vpack.c.bf16 %v6572_v7, %v6502_v52  ;;  %v6566_v16 = vmax.f32 %v5762_v21, 0.0  ;;  %v6190_v48 = vpop.f32.mrb[195].mxu0  ;;  %13058 = vmatmul.mubr.msk.f32.gmra.mrb[44].mxu0 %vm6636_vm3, %v15705_v50  ;;  %13490 = vmatprep.subr.bf16.mxu1 %v15401_v4  ;;  %v6189_v11 = vadd.f32 %v6188_v47, %v14952_v28  ;;  %v11194_v4 = vlaneseq }
 0x2c9   :  { %v6567_v23 = vmax.f32 %v5764_v19, 0.0  ;;  %13500 = vmatpush1.bf16.msra.mxu0 %v15523_v3  ;;  %v5921_v58 = vpop.f32.mrb[194].mxu1  ;;  %8093 = vmatprep.mubr.f32.mxu0 %v18319_v0  ;;  %v15982_v63 = vpack.c.bf16 %v6573_v33, %v6503_v32  ;;  %v6191_v35 = vadd.f32 %v6190_v48, %v14952_v28 }
 0x2ca   :  { %18355 = vst [vmem:[#allocation42_spill] sm:$0xff] %v15975_v15  ;;  %v15984_v55 = vpack.c.bf16 %v6566_v16, %v6496_v18  ;;  %13510 = vmatprep.subr.bf16.mxu0 %v15558_v20  ;;  %v5923_v52 = vpop.f32.mrb[195].mxu1  ;;  %13050 = vmatmul.mubr.msk.f32.gmra.mrb[44].mxu1 %vm6636_vm3, %v15705_v50  ;;  %v5922_v21 = vadd.f32 %v5921_v58, %v14952_v28  ;;  %v16006_v48 = vshrl.u32 %v11194_v4, 7 }
 0x2cb   :  { %18356 = vst [vmem:[#allocation43_spill] sm:$0xff] %v15982_v63  ;;  %v6194_v7 = vpop.f32.mrb[196].mxu0  ;;  %13492 = vmatpush1.bf16.msra.mxu1 %v15396_v44  ;;  %7980 = vmatprep.mubr.f32.mxu1 %v18319_v0  ;;  %v15993_v3 = vpack.c.bf16 %v6567_v23, %v6497_v34  ;;  %v5924_v20 = vadd.f32 %v5923_v52, %v14952_v28  ;;  %v6366_v44 = vmax.f32 %v6189_v11, 0.0  ;;  %v6367_v34 = vmax.f32 %v6191_v35, 0.0 }
 0x2cc   :  { %18357 = vst [vmem:[#allocation44_spill] sm:$0xff] %v15984_v55  ;;  %v6195_v24 = vadd.f32 %v6194_v7, %v14963_v59  ;;  %v6196_v32 = vpop.f32.mrb[197].mxu0  ;;  %13059 = vmatmul.mubr.msk.f32.gmra.mrb[46].mxu0 %vm6636_vm3, %v15730_v49  ;;  %13502 = vmatprep.subr.bf16.mxu1 %v15429_v31  ;;  %v6360_v52 = vmax.f32 %v5922_v21, 0.0  ;;  %v16023_v21 = vsub.s32 0, %v16006_v48 }
 0x2cd   :  { %18358 = vst [vmem:[#allocation45_spill] sm:$0xff] %v15993_v3  ;;  %v6197_v33 = vadd.f32 %v6196_v32, %v14963_v59  ;;  %v5927_v47 = vpop.f32.mrb[196].mxu1  ;;  %8099 = vmatprep.mubr.f32.mxu0 %v18319_v0  ;;  %v6361_v32 = vmax.f32 %v5924_v20, 0.0 }
 0x2ce   :  { %v6436_v19 = vmax.f32 %v6195_v24, 0.0  ;;  %v5928_v18 = vadd.f32 %v5927_v47, %v14963_v59  ;;  %v5929_v16 = vpop.f32.mrb[197].mxu1  ;;  %13051 = vmatmul.mubr.msk.f32.gmra.mrb[46].mxu1 %vm6636_vm3, %v15730_v49 }
 0x2cf   :  { %v6437_v23 = vmax.f32 %v6197_v33, 0.0  ;;  %v6200_v31 = vpop.f32.mrb[198].mxu0  ;;  %v5930_v58 = vadd.f32 %v5929_v16, %v14963_v59  ;;  %7986 = vmatprep.mubr.f32.mxu1 %v18319_v0 }
 0x2d0   :  { %v16010_v7 = vpack.c.bf16 %v6436_v19, %v6366_v44  ;;  %v6430_v11 = vmax.f32 %v5928_v18, 0.0  ;;  %v6202_v24 = vpop.f32.mrb[199].mxu0  ;;  %13060 = vmatmul.mubr.msk.f32.gmra.mrb[48].mxu0 %vm6636_vm3, %v15748_v5  ;;  %v6201_v33 = vadd.f32 %v6200_v31, %v14977_v9  ;;  %v16026_v19 = vld [vmem:[#allocation2] sm:$0xff]  ;;  %v16030_v18 = vsub.s32 1, %v16006_v48 }
 0x2d1   :  { %v6431_v47 = vmax.f32 %v5930_v58, 0.0  ;;  %v5933_v15 = vpop.f32.mrb[198].mxu1  ;;  %8105 = vmatprep.mubr.f32.mxu0 %v18319_v0  ;;  %v16015_v4 = vpack.c.bf16 %v6437_v23, %v6367_v34  ;;  %v6203_v44 = vadd.f32 %v6202_v24, %v14977_v9 }
 0x2d2   :  { %18359 = vst [vmem:[#allocation46_spill] sm:$0xff] %v16010_v7  ;;  %v16017_v35 = vpack.c.bf16 %v6430_v11, %v6360_v52  ;;  %v5935_v16 = vpop.f32.mrb[199].mxu1  ;;  %13052 = vmatmul.mubr.msk.f32.gmra.mrb[48].mxu1 %vm6636_vm3, %v15748_v5  ;;  %v5934_v23 = vadd.f32 %v5933_v15, %v14977_v9  ;;  %v6506_v7 = vmax.f32 %v6201_v33, 0.0  ;;  %v16044_v15 = vrot.slane %v16026_v19, %v16023_v21 }
 0x2d3   :  { %18360 = vst [vmem:[#allocation47_spill] sm:$0xff] %v16015_v4  ;;  %v6206_v20 = vpop.f32.mrb[200].mxu0  ;;  %7992 = vmatprep.mubr.f32.mxu1 %v18319_v0  ;;  %v16032_v34 = vpack.c.bf16 %v6431_v47, %v6361_v32  ;;  %v5936_v52 = vadd.f32 %v5935_v16, %v14977_v9  ;;  %v6507_v16 = vmax.f32 %v6203_v44, 0.0  ;;  %v16053_v33 = vrot.slane %v16026_v19, %v16030_v18 }
 0x2d4   :  { %18361 = vst [vmem:[#allocation48_spill] sm:$0xff] %v16017_v35  ;;  %v6207_v31 = vadd.f32 %v6206_v20, %v14987_v38  ;;  %v6208_v58 = vpop.f32.mrb[201].mxu0  ;;  %13061 = vmatmul.mubr.msk.f32.gmra.mrb[50].mxu0 %vm6636_vm3, %v15769_v22  ;;  %v16048_v20 = vpop.permute.xlu0 %6598 }
 0x2d5   :  { %18362 = vst [vmem:[#allocation49_spill] sm:$0xff] %v16032_v34  ;;  %v6209_v11 = vadd.f32 %v6208_v58, %v14987_v38  ;;  %v5939_v24 = vpop.f32.mrb[200].mxu1  ;;  %8111 = vmatprep.mubr.f32.mxu0 %v18319_v0  ;;  %v6501_v44 = vmax.f32 %v5936_v52, 0.0 }
 0x2d6   :  { %v6576_v4 = vmax.f32 %v6207_v31, 0.0  ;;  %v5940_v32 = vadd.f32 %v5939_v24, %v14987_v38  ;;  %v5941_v47 = vpop.f32.mrb[201].mxu1  ;;  %13053 = vmatmul.mubr.msk.f32.gmra.mrb[50].mxu1 %vm6636_vm3, %v15769_v22  ;;  %v6500_v31 = vmax.f32 %v5934_v23, 0.0  ;;  %v16069_v23 = vpop.permute.xlu1 %6603 }
 0x2d7   :  { %v6577_v63 = vmax.f32 %v6209_v11, 0.0  ;;  %v6727_v58 = vpop.f32.mrb[202].mxu0  ;;  %v5942_v54 = vadd.f32 %v5941_v47, %v14987_v38  ;;  %7998 = vmatprep.mubr.f32.mxu1 %v18319_v0 }
 0x2d8   :  { %v16056_v24 = vpack.c.bf16 %v6576_v4, %v6506_v7  ;;  %v6570_v40 = vmax.f32 %v5940_v32, 0.0  ;;  %v6728_v35 = vadd.f32 %v6727_v58, %v16048_v20  ;;  %v6729_v34 = vpop.f32.mrb[203].mxu0  ;;  %13062 = vmatmul.mubr.msk.f32.gmra.mrb[52].mxu0 %vm6636_vm3, %v15786_v6 }
 0x2d9   :  { %v6571_v11 = vmax.f32 %v5942_v54, 0.0  ;;  %v6730_v47 = vadd.f32 %v6729_v34, %v16048_v20  ;;  %v6099_v55 = vpop.f32.mrb[202].mxu1  ;;  %8117 = vmatprep.mubr.f32.mxu0 %v18319_v0  ;;  %v16063_v3 = vpack.c.bf16 %v6577_v63, %v6507_v16 }
 0x2da   :  { %18363 = vst [vmem:[#allocation50_spill] sm:$0xff] %v16056_v24  ;;  %v16065_v46 = vpack.c.bf16 %v6570_v40, %v6500_v31  ;;  %v10616_v7 = vmax.f32 %v6728_v35, 0.0  ;;  %v6101_v4 = vpop.f32.mrb[203].mxu1  ;;  %13054 = vmatmul.mubr.msk.f32.gmra.mrb[52].mxu1 %vm6636_vm3, %v15786_v6  ;;  %v6100_v63 = vadd.f32 %v6099_v55, %v14952_v28 }
 0x2db   :  { %18364 = vst [vmem:[#allocation51_spill] sm:$0xff] %v16063_v3  ;;  %v10617_v32 = vmax.f32 %v6730_v47, 0.0  ;;  %v6733_v58 = vpop.f32.mrb[204].mxu0  ;;  %8004 = vmatprep.mubr.f32.mxu1 %v18319_v0  ;;  %v16072_v54 = vpack.c.bf16 %v6571_v11, %v6501_v44  ;;  %v6102_v16 = vadd.f32 %v6101_v4, %v14952_v28 }
 0x2dc   :  { %18365 = vst [vmem:[#allocation52_spill] sm:$0xff] %v16065_v46  ;;  %v11544_v34 = vmul.f32 %v16044_v15, %v10616_v7  ;;  %v6734_v40 = vadd.f32 %v6733_v58, %v16069_v23  ;;  %v6735_v52 = vpop.f32.mrb[205].mxu0  ;;  %13063 = vmatmul.mubr.msk.f32.gmra.mrb[54].mxu0 %vm6636_vm3, %v15807_v27  ;;  %v16086_v7 = vpop.permute.xlu0 %6608 }
 0x2dd   :  { %18366 = vst [vmem:[#allocation53_spill] sm:$0xff] %v16072_v54  ;;  %v11545_v35 = vmul.f32 %v16053_v33, %v10617_v32  ;;  %v6736_v31 = vadd.f32 %v6735_v52, %v16069_v23  ;;  %v6105_v47 = vpop.f32.mrb[204].mxu1  ;;  %8123 = vmatprep.mubr.f32.mxu0 %v18319_v0  ;;  %v6364_v52 = vmax.f32 %v6100_v63, 0.0  ;;  %v6365_v3 = vmax.f32 %v6102_v16, 0.0 }
 0x2de   :  { %12104 = vst [vmem:[#allocation5] sm:$0xff] %v11544_v34  ;;  %v10686_v44 = vmax.f32 %v6734_v40, 0.0  ;;  %v6106_v11 = vadd.f32 %v6105_v47, %v14963_v59  ;;  %v6107_v55 = vpop.f32.mrb[205].mxu1  ;;  %13055 = vmatmul.mubr.msk.f32.gmra.mrb[54].mxu1 %vm6636_vm3, %v15807_v27 }
 0x2df   :  { %12105 = vst [vmem:[#allocation5 + $0x8] sm:$0xff] %v11545_v35  ;;  %v10687_v58 = vmax.f32 %v6736_v31, 0.0  ;;  %v6739_v32 = vpop.f32.mrb[206].mxu0  ;;  %v6108_v4 = vadd.f32 %v6107_v55, %v14963_v59  ;;  %8010 = vmatprep.mubr.f32.mxu1 %v18319_v0  ;;  %v16101_v55 = vpop.permute.xlu1 %6613 }
 0x2e0   :  { %v11614_v24 = vmul.f32 %v16044_v15, %v10686_v44  ;;  %v6434_v34 = vmax.f32 %v6106_v11, 0.0  ;;  %v6740_v40 = vadd.f32 %v6739_v32, %v16086_v7  ;;  %v6741_v47 = vpop.f32.mrb[207].mxu0  ;;  %13064 = vmatmul.mubr.msk.f32.gmra.mrb[56].mxu0 %vm6636_vm3, %v15824_v25 }
 0x2e1   :  { %v11615_v46 = vmul.f32 %v16053_v33, %v10687_v58  ;;  %v6435_v35 = vmax.f32 %v6108_v4, 0.0  ;;  %v6742_v31 = vadd.f32 %v6741_v47, %v16086_v7  ;;  %v6111_v54 = vpop.f32.mrb[206].mxu1  ;;  %8307 = vmatprep.mubr.f32.mxu0 %v18319_v0 }
 0x2e2   :  { %12174 = vst [vmem:[#allocation5 + $0x230] sm:$0xff] %v11614_v24  ;;  %v16097_v63 = vpack.c.bf16 %v6434_v34, %v6364_v52  ;;  %v10756_v44 = vmax.f32 %v6740_v40, 0.0  ;;  %v6113_v11 = vpop.f32.mrb[207].mxu1  ;;  %13056 = vmatmul.mubr.msk.f32.gmra.mrb[56].mxu1 %vm6636_vm3, %v15824_v25  ;;  %v6112_v24 = vadd.f32 %v6111_v54, %v14977_v9 }
 0x2e3   :  { %12175 = vst [vmem:[#allocation5 + $0x238] sm:$0xff] %v11615_v46  ;;  %v10757_v16 = vmax.f32 %v6742_v31, 0.0  ;;  %v6745_v32 = vpop.f32.mrb[208].mxu0  ;;  %8194 = vmatprep.mubr.f32.mxu1 %v18319_v0  ;;  %v16104_v58 = vpack.c.bf16 %v6435_v35, %v6365_v3  ;;  %v6114_v46 = vadd.f32 %v6113_v11, %v14977_v9  ;;  %v16120_v31 = vpop.permute.xlu0 %6618 }
 0x2e4   :  { %v11684_v4 = vmul.f32 %v16044_v15, %v10756_v44  ;;  %v6746_v52 = vadd.f32 %v6745_v32, %v16101_v55  ;;  %v6747_v34 = vpop.f32.mrb[209].mxu0  ;;  %13073 = vmatmul.mubr.msk.f32.vlgmr.msra.gmra.mrb[58].mxu0 %vm6636_vm3, %v15685_v17  ;;  %v6504_v32 = vmax.f32 %v6112_v24, 0.0 }
 0x2e5   :  { %v11685_v25 = vmul.f32 %v16053_v33, %v10757_v16  ;;  %v6748_v40 = vadd.f32 %v6747_v34, %v16101_v55  ;;  %13512 = vmatpush1.bf16.msra.mxu0 %v15551_v30  ;;  %v6117_v3 = vpop.f32.mrb[208].mxu1  ;;  %8313 = vmatprep.mubr.f32.mxu0 %v18319_v0  ;;  %v18367_v16 = vld [vmem:[#allocation8_spill] sm:$0xff] }
 0x2e6   :  { %12244 = vst [vmem:[#allocation5 + $0x460] sm:$0xff] %v11684_v4  ;;  %v10826_v47 = vmax.f32 %v6746_v52, 0.0  ;;  %13514 = vmatprep.subr.bf16.mxu0 %v15593_v60  ;;  %v6118_v54 = vadd.f32 %v6117_v3, %v14987_v38  ;;  %v6119_v35 = vpop.f32.mrb[209].mxu1  ;;  %13065 = vmatmul.mubr.msk.f32.vlgmr.msra.gmra.mrb[58].mxu1 %vm6636_vm3, %v15685_v17  ;;  %v18368_v17 = vld [vmem:[#allocation10_spill] sm:$0xff] }
 0x2e7   :  { %12245 = vst [vmem:[#allocation5 + $0x468] sm:$0xff] %v11685_v25  ;;  %v10827_v44 = vmax.f32 %v6748_v40, 0.0  ;;  %v6751_v11 = vpop.f32.mrb[210].mxu0  ;;  %v6120_v30 = vadd.f32 %v6119_v35, %v14987_v38  ;;  %13504 = vmatpush1.bf16.msra.mxu1 %v18367_v16  ;;  %8200 = vmatprep.mubr.f32.mxu1 %v18319_v0  ;;  %v6505_v25 = vmax.f32 %v6114_v46, 0.0  ;;  %v16139_v46 = vpop.permute.xlu1 %6623  ;;  %v18370_v16 = vld [vmem:[#allocation9_spill] sm:$0xff] }
 0x2e8   :  { %v11754_v60 = vmul.f32 %v16044_v15, %v10826_v47  ;;  %v6574_v4 = vmax.f32 %v6118_v54, 0.0  ;;  %v6752_v52 = vadd.f32 %v6751_v11, %v16120_v31  ;;  %v6753_v34 = vpop.f32.mrb[211].mxu0  ;;  %13074 = vmatmul.mubr.msk.f32.gmra.mrb[60].mxu0 %vm6636_vm3, %v15705_v50  ;;  %13506 = vmatprep.subr.bf16.mxu1 %v18368_v17 }
 0x2e9   :  { %v11755_v40 = vmul.f32 %v16053_v33, %v10827_v44  ;;  %v6575_v3 = vmax.f32 %v6120_v30, 0.0  ;;  %v6754_v35 = vadd.f32 %v6753_v34, %v16120_v31  ;;  %13516 = vmatpush1.bf16.msra.mxu0 %v15584_v43  ;;  %v6277_v24 = vpop.f32.mrb[210].mxu1  ;;  %8319 = vmatprep.mubr.f32.mxu0 %v18319_v0 }
 0x2ea   :  { %12314 = vst [vmem:[#allocation5 + $0x690] sm:$0xff] %v11754_v60  ;;  %v16134_v47 = vpack.c.bf16 %v6574_v4, %v6504_v32  ;;  %v10896_v54 = vmax.f32 %v6752_v52, 0.0  ;;  %13526 = vmatprep.subr.bf16.mxu0 %v15622_v36  ;;  %v6279_v11 = vpop.f32.mrb[211].mxu1  ;;  %13066 = vmatmul.mubr.msk.f32.gmra.mrb[60].mxu1 %vm6636_vm3, %v15705_v50  ;;  %v6278_v60 = vadd.f32 %v6277_v24, %v14952_v28  ;;  %v18372_v50 = vld [vmem:[#allocation12_spill] sm:$0xff]  ;;  %v16158_v24 = vpop.permute.xlu0 %6628 }
 0x2eb   :  { %12315 = vst [vmem:[#allocation5 + $0x698] sm:$0xff] %v11755_v40  ;;  %v10897_v44 = vmax.f32 %v6754_v35, 0.0  ;;  %v6757_v30 = vpop.f32.mrb[212].mxu0  ;;  %13508 = vmatpush1.bf16.msra.mxu1 %v18370_v16  ;;  %8206 = vmatprep.mubr.f32.mxu1 %v18319_v0  ;;  %v16143_v43 = vpack.c.bf16 %v6575_v3, %v6505_v25  ;;  %v6280_v34 = vadd.f32 %v6279_v11, %v14952_v28 }
 0x2ec   :  { %18369 = vst [vmem:[#allocation8_spill] sm:$0xff] %v16134_v47  ;;  %v11824_v32 = vmul.f32 %v16044_v15, %v10896_v54  ;;  %v6758_v36 = vadd.f32 %v6757_v30, %v16139_v46  ;;  %v6759_v4 = vpop.f32.mrb[213].mxu0  ;;  %13075 = vmatmul.mubr.msk.f32.gmra.mrb[62].mxu0 %vm6636_vm3, %v15730_v49  ;;  %13518 = vmatprep.subr.bf16.mxu1 %v18372_v50  ;;  %v6368_v11 = vmax.f32 %v6278_v60, 0.0 }
 0x2ed   :  { %18371 = vst [vmem:[#allocation10_spill] sm:$0xff] %v16143_v43  ;;  %v11825_v52 = vmul.f32 %v16053_v33, %v10897_v44  ;;  %v6760_v17 = vadd.f32 %v6759_v4, %v16139_v46  ;;  %v6283_v25 = vpop.f32.mrb[212].mxu1  ;;  %8325 = vmatprep.mubr.f32.mxu0 %v18319_v0 }
 0x2ee   :  { %12384 = vst [vmem:[#allocation5 + $0x8c0] sm:$0xff] %v11824_v32  ;;  %v10966_v40 = vmax.f32 %v6758_v36, 0.0  ;;  %v6284_v3 = vadd.f32 %v6283_v25, %v14963_v59  ;;  %v6285_v35 = vpop.f32.mrb[213].mxu1  ;;  %13067 = vmatmul.mubr.msk.f32.gmra.mrb[62].mxu1 %vm6636_vm3, %v15730_v49  ;;  %v6369_v49 = vmax.f32 %v6280_v34, 0.0  ;;  %v16176_v34 = vpop.permute.xlu1 %6633 }
 0x2ef   :  { %12385 = vst [vmem:[#allocation5 + $0x8c8] sm:$0xff] %v11825_v52  ;;  %v10967_v54 = vmax.f32 %v6760_v17, 0.0  ;;  %v6763_v44 = vpop.f32.mrb[214].mxu0  ;;  %v6286_v28 = vadd.f32 %v6285_v35, %v14963_v59  ;;  %8212 = vmatprep.mubr.f32.mxu1 %v18319_v0 }
 0x2f0   :  { %v11894_v30 = vmul.f32 %v16044_v15, %v10966_v40  ;;  %v6438_v16 = vmax.f32 %v6284_v3, 0.0  ;;  %v6764_v32 = vadd.f32 %v6763_v44, %v16158_v24  ;;  %v6765_v36 = vpop.f32.mrb[215].mxu0  ;;  %13076 = vmatmul.mubr.msk.f32.gmra.mrb[64].mxu0 %vm6636_vm3, %v15748_v5  ;;  %v16174_v40 = vsub.s32 4, %v16006_v48 }
 0x2f1   :  { %v11895_v4 = vmul.f32 %v16053_v33, %v10967_v54  ;;  %v6439_v50 = vmax.f32 %v6286_v28, 0.0  ;;  %v6766_v52 = vadd.f32 %v6765_v36, %v16158_v24  ;;  %v6289_v17 = vpop.f32.mrb[214].mxu1  ;;  %8331 = vmatprep.mubr.f32.mxu0 %v18319_v0  ;;  %v16180_v54 = vsub.s32 5, %v16006_v48 }
 0x2f2   :  { %12454 = vst [vmem:[#allocation5 + $0xaf0] sm:$0xff] %v11894_v30  ;;  %v16169_v59 = vpack.c.bf16 %v6438_v16, %v6368_v11  ;;  %v11036_v60 = vmax.f32 %v6764_v32, 0.0  ;;  %v6291_v25 = vpop.f32.mrb[215].mxu1  ;;  %13068 = vmatmul.mubr.msk.f32.gmra.mrb[64].mxu1 %vm6636_vm3, %v15748_v5  ;;  %v6290_v11 = vadd.f32 %v6289_v17, %v14977_v9 }
 0x2f3   :  { %12455 = vst [vmem:[#allocation5 + $0xaf8] sm:$0xff] %v11895_v4  ;;  %v11037_v3 = vmax.f32 %v6766_v52, 0.0  ;;  %v6769_v35 = vpop.f32.mrb[216].mxu0  ;;  %8218 = vmatprep.mubr.f32.mxu1 %v18319_v0  ;;  %v16182_v44 = vpack.c.bf16 %v6439_v50, %v6369_v49  ;;  %v6292_v32 = vadd.f32 %v6291_v25, %v14977_v9  ;;  %v16196_v52 = vrot.slane %v16026_v19, %v16174_v40 }
 0x2f4   :  { %18373 = vst [vmem:[#allocation9_spill] sm:$0xff] %v16169_v59  ;;  %v11964_v28 = vmul.f32 %v16044_v15, %v11036_v60  ;;  %v6770_v5 = vadd.f32 %v6769_v35, %v16176_v34  ;;  %v6771_v30 = vpop.f32.mrb[217].mxu0  ;;  %13077 = vmatmul.mubr.msk.f32.gmra.mrb[66].mxu0 %vm6636_vm3, %v15769_v22  ;;  %v16201_v60 = vsub.s32 2, %v16006_v48  ;;  %v16206_v35 = vrot.slane %v16026_v19, %v16180_v54 }
 0x2f5   :  { %18374 = vst [vmem:[#allocation12_spill] sm:$0xff] %v16182_v44  ;;  %v11965_v16 = vmul.f32 %v16053_v33, %v11037_v3  ;;  %v6772_v36 = vadd.f32 %v6771_v30, %v16176_v34  ;;  %v6295_v4 = vpop.f32.mrb[216].mxu1  ;;  %8337 = vmatprep.mubr.f32.mxu0 %v18319_v0  ;;  %v18375_v44 = vmov 0.0  }
 0x2f6   :  { %12524 = vst [vmem:[#allocation5 + $0xd20] sm:$0xff] %v11964_v28  ;;  %v11106_v49 = vmax.f32 %v6770_v5, 0.0  ;;  %v6296_v50 = vadd.f32 %v6295_v4, %v14987_v38  ;;  %v6297_v17 = vpop.f32.mrb[217].mxu1  ;;  %13069 = vmatmul.mubr.msk.f32.gmra.mrb[66].mxu1 %vm6636_vm3, %v15769_v22  ;;  %v16210_v28 = vsub.s32 3, %v16006_v48  ;;  %v6508_v5 = vmax.f32 %v6290_v11, 0.0 }
 0x2f7   :  { %12525 = vst [vmem:[#allocation5 + $0xd28] sm:$0xff] %v11965_v16  ;;  %v11107_v9 = vmax.f32 %v6772_v36, 0.0  ;;  %v6953_v25 = vpop.f32.mrb[218].mxu0  ;;  %v6298_v3 = vadd.f32 %v6297_v17, %v14987_v38  ;;  %8224 = vmatprep.mubr.f32.mxu1 %v18319_v0  ;;  %v6509_v38 = vmax.f32 %v6292_v32, 0.0 }
 0x2f8   :  { %v12034_v22 = vmul.f32 %v16044_v15, %v11106_v49  ;;  %v6578_v30 = vmax.f32 %v6296_v50, 0.0  ;;  %v6954_v4 = vadd.f32 %v6953_v25, %v16048_v20  ;;  %v6955_v16 = vpop.f32.mrb[219].mxu0  ;;  %13078 = vmatmul.mubr.msk.f32.gmra.mrb[68].mxu0 %vm6636_vm3, %v15786_v6  ;;  %v16224_v50 = vrot.slane %v16026_v19, %v16201_v60 }
 0x2f9   :  { %v12035_v36 = vmul.f32 %v16053_v33, %v11107_v9  ;;  %v6579_v17 = vmax.f32 %v6298_v3, 0.0  ;;  %v6956_v59 = vadd.f32 %v6955_v16, %v16048_v20  ;;  %v6840_v0 = vpop.f32.mrb[218].mxu1  ;;  %8343 = vmatprep.mubr.f32.mxu0 %v18375_v44  ;;  %v16229_v33 = vld [vmem:[%s18316_s6 + $0x28] sm:$0xff] }
 0x2fa   :  { %12594 = vst [vmem:[#allocation5 + $0xf50] sm:$0xff] %v12034_v22  ;;  %v16219_v11 = vpack.c.bf16 %v6578_v30, %v6508_v5  ;;  %v10620_v15 = vmax.f32 %v6954_v4, 0.0  ;;  %v6841_v49 = vadd.f32 %v6840_v0, %v16048_v20  ;;  %v6842_v6 = vpop.f32.mrb[219].mxu1  ;;  %13070 = vmatmul.mubr.msk.f32.gmra.mrb[68].mxu1 %vm6636_vm3, %v16229_v33  ;;  %v16236_v0 = vrot.slane %v16026_v19, %v16210_v28 }
 0x2fb   :  { %12595 = vst [vmem:[#allocation5 + $0xf58] sm:$0xff] %v12035_v36  ;;  %v10621_v32 = vmax.f32 %v6956_v59, 0.0  ;;  %v6959_v9 = vpop.f32.mrb[220].mxu0  ;;  %v6843_v25 = vadd.f32 %v6842_v6, %v16048_v20  ;;  %8230 = vmatprep.mubr.f32.mxu1 %v18375_v44  ;;  %v16239_v3 = vpack.c.bf16 %v6579_v17, %v6509_v38 }
 0x2fc   :  { %18376 = vst [vmem:[#allocation54_spill] sm:$0xff] %v16219_v11  ;;  %v11548_v5 = vmul.f32 %v16196_v52, %v10620_v15  ;;  %v10618_v22 = vmax.f32 %v6841_v49, 0.0  ;;  %v6960_v30 = vadd.f32 %v6959_v9, %v16069_v23  ;;  %v6961_v4 = vpop.f32.mrb[221].mxu0  ;;  %13079 = vmatmul.mubr.msk.f32.gmra.mrb[70].mxu0 %vm6636_vm3, %v15807_v27  ;;  %v16253_v9 = vld [vmem:[%s18316_s6 + $0x30] sm:$0xff]  ;;  %v16265_v11 = vld [vmem:[%s18316_s6 + $0x38] sm:$0xff] }
 0x2fd   :  { %18377 = vst [vmem:[#allocation55_spill] sm:$0xff] %v16239_v3  ;;  %v11549_v59 = vmul.f32 %v16206_v35, %v10621_v32  ;;  %v10619_v16 = vmax.f32 %v6843_v25, 0.0  ;;  %v6962_v36 = vadd.f32 %v6961_v4, %v16069_v23  ;;  %v6846_v6 = vpop.f32.mrb[220].mxu1  ;;  %8349 = vmatprep.mubr.f32.mxu0 %v18375_v44  ;;  %v16284_v3 = vld [vmem:[%s18316_s6] sm:$0xff] }
 0x2fe   :  { %12108 = vst [vmem:[#allocation5 + $0x20] sm:$0xff] %v11548_v5  ;;  %v11546_v38 = vmul.f32 %v16224_v50, %v10618_v22  ;;  %v10690_v17 = vmax.f32 %v6960_v30, 0.0  ;;  %v6847_v15 = vadd.f32 %v6846_v6, %v16069_v23  ;;  %v6848_v49 = vpop.f32.mrb[221].mxu1  ;;  %13071 = vmatmul.mubr.msk.f32.gmra.mrb[70].mxu1 %vm6636_vm3, %v16253_v9 }
 0x2ff   :  { %12109 = vst [vmem:[#allocation5 + $0x28] sm:$0xff] %v11549_v59  ;;  %v11547_v27 = vmul.f32 %v16236_v0, %v10619_v16  ;;  %v10691_v32 = vmax.f32 %v6962_v36, 0.0  ;;  %v6965_v25 = vpop.f32.mrb[222].mxu0  ;;  %v6849_v5 = vadd.f32 %v6848_v49, %v16069_v23  ;;  %8236 = vmatprep.mubr.f32.mxu1 %v18375_v44 }
 0x300   :  { %12106 = vst [vmem:[#allocation5 + $0x10] sm:$0xff] %v11546_v38  ;;  %v11618_v22 = vmul.f32 %v16196_v52, %v10690_v17  ;;  %v10688_v30 = vmax.f32 %v6847_v15, 0.0  ;;  %v6966_v4 = vadd.f32 %v6965_v25, %v16086_v7  ;;  %v6967_v6 = vpop.f32.mrb[223].mxu0  ;;  %13080 = vmatmul.mubr.msk.f32.gmra.mrb[72].mxu0 %vm6636_vm3, %v16265_v11 }
 0x301   :  { %12107 = vst [vmem:[#allocation5 + $0x18] sm:$0xff] %v11547_v27  ;;  %v11619_v59 = vmul.f32 %v16206_v35, %v10691_v32  ;;  %v10689_v16 = vmax.f32 %v6849_v5, 0.0  ;;  %v6968_v36 = vadd.f32 %v6967_v6, %v16086_v7  ;;  %v6852_v38 = vpop.f32.mrb[222].mxu1  ;;  %8533 = vmatprep.mubr.f32.mxu0 %v18375_v44 }
 0x302   :  { %12178 = vst [vmem:[#allocation5 + $0x250] sm:$0xff] %v11618_v22  ;;  %v11616_v17 = vmul.f32 %v16224_v50, %v10688_v30  ;;  %v10760_v15 = vmax.f32 %v6966_v4, 0.0  ;;  %v6853_v49 = vadd.f32 %v6852_v38, %v16086_v7  ;;  %v6854_v25 = vpop.f32.mrb[223].mxu1  ;;  %13072 = vmatmul.mubr.msk.f32.gmra.mrb[72].mxu1 %vm6636_vm3, %v16265_v11 }
 0x303   :  { %12179 = vst [vmem:[#allocation5 + $0x258] sm:$0xff] %v11619_v59  ;;  %v11617_v27 = vmul.f32 %v16236_v0, %v10689_v16  ;;  %v10761_v32 = vmax.f32 %v6968_v36, 0.0  ;;  %v6971_v5 = vpop.f32.mrb[224].mxu0  ;;  %v6855_v6 = vadd.f32 %v6854_v25, %v16086_v7  ;;  %8420 = vmatprep.mubr.f32.mxu1 %v18375_v44 }
 0x304   :  { %12176 = vst [vmem:[#allocation5 + $0x240] sm:$0xff] %v11616_v17  ;;  %v11688_v22 = vmul.f32 %v16196_v52, %v10760_v15  ;;  %v10758_v30 = vmax.f32 %v6853_v49, 0.0  ;;  %v6972_v4 = vadd.f32 %v6971_v5, %v16101_v55  ;;  %v6973_v38 = vpop.f32.mrb[225].mxu0  ;;  %13089 = vmatmul.mubr.msk.f32.vlgmr.msra.gmra.mrb[74].mxu0 %vm6636_vm3, %v16284_v3 }
 0x305   :  { %12177 = vst [vmem:[#allocation5 + $0x248] sm:$0xff] %v11617_v27  ;;  %v11689_v59 = vmul.f32 %v16206_v35, %v10761_v32  ;;  %v10759_v16 = vmax.f32 %v6855_v6, 0.0  ;;  %v6974_v36 = vadd.f32 %v6973_v38, %v16101_v55  ;;  %13528 = vmatpush1.bf16.msra.mxu0 %v15615_v56  ;;  %v6858_v17 = vpop.f32.mrb[224].mxu1  ;;  %8539 = vmatprep.mubr.f32.mxu0 %v18375_v44  ;;  %v18378_v38 = vld [vmem:[#allocation11_spill] sm:$0xff] }
 0x306   :  { %12248 = vst [vmem:[#allocation5 + $0x480] sm:$0xff] %v11688_v22  ;;  %v11686_v15 = vmul.f32 %v16224_v50, %v10758_v30  ;;  %v10830_v49 = vmax.f32 %v6972_v4, 0.0  ;;  %13530 = vmatprep.subr.bf16.mxu0 %v15650_v42  ;;  %v6859_v25 = vadd.f32 %v6858_v17, %v16101_v55  ;;  %v6860_v5 = vpop.f32.mrb[225].mxu1  ;;  %13081 = vmatmul.mubr.msk.f32.vlgmr.msra.gmra.mrb[74].mxu1 %vm6636_vm3, %v16284_v3 }
 0x307   :  { %12249 = vst [vmem:[#allocation5 + $0x488] sm:$0xff] %v11689_v59  ;;  %v11687_v27 = vmul.f32 %v16236_v0, %v10759_v16  ;;  %v10831_v32 = vmax.f32 %v6974_v36, 0.0  ;;  %v6977_v56 = vpop.f32.mrb[226].mxu0  ;;  %v6861_v6 = vadd.f32 %v6860_v5, %v16101_v55  ;;  %13520 = vmatpush1.bf16.msra.mxu1 %v18378_v38  ;;  %8426 = vmatprep.mubr.f32.mxu1 %v18375_v44  ;;  %v16306_v59 = vld [vmem:[%s18316_s6 + $0x8] sm:$0xff]  ;;  %v18379_v16 = vld [vmem:[#allocation14_spill] sm:$0xff] }
 0x308   :  { %12246 = vst [vmem:[#allocation5 + $0x470] sm:$0xff] %v11686_v15  ;;  %v11758_v42 = vmul.f32 %v16196_v52, %v10830_v49  ;;  %v10828_v22 = vmax.f32 %v6859_v25, 0.0  ;;  %v6978_v30 = vadd.f32 %v6977_v56, %v16120_v31  ;;  %v6979_v4 = vpop.f32.mrb[227].mxu0  ;;  %13090 = vmatmul.mubr.msk.f32.gmra.mrb[76].mxu0 %vm6636_vm3, %v16306_v59  ;;  %13522 = vmatprep.subr.bf16.mxu1 %v18379_v16  ;;  %v16329_v16 = vld [vmem:[%s18316_s6 + $0x10] sm:$0xff] }
 0x309   :  { %12247 = vst [vmem:[#allocation5 + $0x478] sm:$0xff] %v11687_v27  ;;  %v11759_v36 = vmul.f32 %v16206_v35, %v10831_v32  ;;  %v10829_v17 = vmax.f32 %v6861_v6, 0.0  ;;  %v6980_v15 = vadd.f32 %v6979_v4, %v16120_v31  ;;  %13532 = vmatpush1.bf16.msra.mxu0 %v15643_v29  ;;  %v6864_v49 = vpop.f32.mrb[226].mxu1  ;;  %8545 = vmatprep.mubr.f32.mxu0 %v18375_v44  ;;  %v18380_v4 = vld [vmem:[#allocation13_spill] sm:$0xff] }
 0x30a   :  { %12318 = vst [vmem:[#allocation5 + $0x6b0] sm:$0xff] %v11758_v42  ;;  %v11756_v25 = vmul.f32 %v16224_v50, %v10828_v22  ;;  %v10900_v5 = vmax.f32 %v6978_v30, 0.0  ;;  %13542 = vmatprep.subr.bf16.mxu0 %v15678_v2  ;;  %v6865_v56 = vadd.f32 %v6864_v49, %v16120_v31  ;;  %v6866_v38 = vpop.f32.mrb[227].mxu1  ;;  %13082 = vmatmul.mubr.msk.f32.gmra.mrb[76].mxu1 %vm6636_vm3, %v16306_v59 }
 0x30b   :  { %12319 = vst [vmem:[#allocation5 + $0x6b8] sm:$0xff] %v11759_v36  ;;  %v11757_v27 = vmul.f32 %v16236_v0, %v10829_v17  ;;  %v10901_v32 = vmax.f32 %v6980_v15, 0.0  ;;  %v6983_v29 = vpop.f32.mrb[228].mxu0  ;;  %v6867_v6 = vadd.f32 %v6866_v38, %v16120_v31  ;;  %13524 = vmatpush1.bf16.msra.mxu1 %v18380_v4  ;;  %8432 = vmatprep.mubr.f32.mxu1 %v18375_v44 }
 0x30c   :  { %12316 = vst [vmem:[#allocation5 + $0x6a0] sm:$0xff] %v11756_v25  ;;  %v11828_v2 = vmul.f32 %v16196_v52, %v10900_v5  ;;  %v10898_v42 = vmax.f32 %v6865_v56, 0.0  ;;  %v6984_v22 = vadd.f32 %v6983_v29, %v16139_v46  ;;  %v6985_v30 = vpop.f32.mrb[229].mxu0  ;;  %13091 = vmatmul.mubr.msk.f32.gmra.mrb[78].mxu0 %vm6636_vm3, %v16329_v16  ;;  %13534 = vmatprep.subr.bf16.mxu1 %v15549_v45 }
 0x30d   :  { %12317 = vst [vmem:[#allocation5 + $0x6a8] sm:$0xff] %v11757_v27  ;;  %v11829_v36 = vmul.f32 %v16206_v35, %v10901_v32  ;;  %v10899_v17 = vmax.f32 %v6867_v6, 0.0  ;;  %v6986_v15 = vadd.f32 %v6985_v30, %v16139_v46  ;;  %v6870_v49 = vpop.f32.mrb[228].mxu1  ;;  %8551 = vmatprep.mubr.f32.mxu0 %v18375_v44 }
 0x30e   :  { %12388 = vst [vmem:[#allocation5 + $0x8e0] sm:$0xff] %v11828_v2  ;;  %v11826_v25 = vmul.f32 %v16224_v50, %v10898_v42  ;;  %v10970_v5 = vmax.f32 %v6984_v22, 0.0  ;;  %v6871_v56 = vadd.f32 %v6870_v49, %v16139_v46  ;;  %v6872_v38 = vpop.f32.mrb[229].mxu1  ;;  %13083 = vmatmul.mubr.msk.f32.gmra.mrb[78].mxu1 %vm6636_vm3, %v16329_v16  ;;  %v16349_v22 = vld [vmem:[%s18316_s6 + $0x18] sm:$0xff] }
 0x30f   :  { %12389 = vst [vmem:[#allocation5 + $0x8e8] sm:$0xff] %v11829_v36  ;;  %v11827_v45 = vmul.f32 %v16236_v0, %v10899_v17  ;;  %v10971_v27 = vmax.f32 %v6986_v15, 0.0  ;;  %v6989_v32 = vpop.f32.mrb[230].mxu0  ;;  %v6873_v29 = vadd.f32 %v6872_v38, %v16139_v46  ;;  %8438 = vmatprep.mubr.f32.mxu1 %v18375_v44 }
 0x310   :  { %12386 = vst [vmem:[#allocation5 + $0x8d0] sm:$0xff] %v11826_v25  ;;  %v11898_v6 = vmul.f32 %v16196_v52, %v10970_v5  ;;  %v10968_v4 = vmax.f32 %v6871_v56, 0.0  ;;  %v6990_v2 = vadd.f32 %v6989_v32, %v16158_v24  ;;  %v6991_v42 = vpop.f32.mrb[231].mxu0  ;;  %13092 = vmatmul.mubr.msk.f32.gmra.mrb[80].mxu0 %vm6636_vm3, %v16349_v22 }
 0x311   :  { %12387 = vst [vmem:[#allocation5 + $0x8d8] sm:$0xff] %v11827_v45  ;;  %v11899_v30 = vmul.f32 %v16206_v35, %v10971_v27  ;;  %v10969_v36 = vmax.f32 %v6873_v29, 0.0  ;;  %v6992_v17 = vadd.f32 %v6991_v42, %v16158_v24  ;;  %v6876_v15 = vpop.f32.mrb[230].mxu1  ;;  %8557 = vmatprep.mubr.f32.mxu0 %v18375_v44  ;;  %v16368_v42 = vld [vmem:[%s18316_s6 + $0x20] sm:$0xff] }
 0x312   :  { %12458 = vst [vmem:[#allocation5 + $0xb10] sm:$0xff] %v11898_v6  ;;  %v11896_v49 = vmul.f32 %v16224_v50, %v10968_v4  ;;  %v11040_v25 = vmax.f32 %v6990_v2, 0.0  ;;  %v6877_v5 = vadd.f32 %v6876_v15, %v16158_v24  ;;  %v6878_v56 = vpop.f32.mrb[231].mxu1  ;;  %13084 = vmatmul.mubr.msk.f32.gmra.mrb[80].mxu1 %vm6636_vm3, %v16349_v22 }
 0x313   :  { %12459 = vst [vmem:[#allocation5 + $0xb18] sm:$0xff] %v11899_v30  ;;  %v11897_v38 = vmul.f32 %v16236_v0, %v10969_v36  ;;  %v11041_v45 = vmax.f32 %v6992_v17, 0.0  ;;  %v6995_v27 = vpop.f32.mrb[232].mxu0  ;;  %v6879_v32 = vadd.f32 %v6878_v56, %v16158_v24  ;;  %8444 = vmatprep.mubr.f32.mxu1 %v18375_v44 }
 0x314   :  { %12456 = vst [vmem:[#allocation5 + $0xb00] sm:$0xff] %v11896_v49  ;;  %v11968_v29 = vmul.f32 %v16196_v52, %v11040_v25  ;;  %v11038_v6 = vmax.f32 %v6877_v5, 0.0  ;;  %v6996_v4 = vadd.f32 %v6995_v27, %v16176_v34  ;;  %v6997_v2 = vpop.f32.mrb[233].mxu0  ;;  %13093 = vmatmul.mubr.msk.f32.gmra.mrb[82].mxu0 %vm6636_vm3, %v16368_v42  ;;  %v16374_v49 = vld [vmem:[#allocation2 + $0x8] sm:$0xff] }
 0x315   :  { %12457 = vst [vmem:[#allocation5 + $0xb08] sm:$0xff] %v11897_v38  ;;  %v11969_v30 = vmul.f32 %v16206_v35, %v11041_v45  ;;  %v11039_v36 = vmax.f32 %v6879_v32, 0.0  ;;  %v6998_v17 = vadd.f32 %v6997_v2, %v16176_v34  ;;  %v6882_v15 = vpop.f32.mrb[232].mxu1  ;;  %8563 = vmatprep.mubr.f32.mxu0 %v18375_v44  ;;  %v16382_v38 = vsub.s32 6, %v16006_v48 }
 0x316   :  { %12528 = vst [vmem:[#allocation5 + $0xd40] sm:$0xff] %v11968_v29  ;;  %v11966_v25 = vmul.f32 %v16224_v50, %v11038_v6  ;;  %v11110_v5 = vmax.f32 %v6996_v4, 0.0  ;;  %v6883_v56 = vadd.f32 %v6882_v15, %v16176_v34  ;;  %v6884_v27 = vpop.f32.mrb[233].mxu1  ;;  %13085 = vmatmul.mubr.msk.f32.gmra.mrb[82].mxu1 %vm6636_vm3, %v16368_v42  ;;  %v16388_v29 = vsub.s32 7, %v16006_v48 }
 0x317   :  { %12529 = vst [vmem:[#allocation5 + $0xd48] sm:$0xff] %v11969_v30  ;;  %v11967_v45 = vmul.f32 %v16236_v0, %v11039_v36  ;;  %v11111_v32 = vmax.f32 %v6998_v17, 0.0  ;;  %v7179_v2 = vpop.f32.mrb[234].mxu0  ;;  %v6885_v47 = vadd.f32 %v6884_v27, %v16176_v34  ;;  %8450 = vmatprep.mubr.f32.mxu1 %v18375_v44  ;;  %v16394_v30 = vrot.slane %v16374_v49, %v16023_v21 }
 0x318   :  { %12526 = vst [vmem:[#allocation5 + $0xd30] sm:$0xff] %v11966_v25  ;;  %v12038_v6 = vmul.f32 %v16196_v52, %v11110_v5  ;;  %v11108_v4 = vmax.f32 %v6883_v56, 0.0  ;;  %v7180_v15 = vadd.f32 %v7179_v2, %v16048_v20  ;;  %v7181_v36 = vpop.f32.mrb[235].mxu0  ;;  %13094 = vmatmul.mubr.msk.f32.gmra.mrb[84].mxu0 %vm6636_vm3, %v16229_v33  ;;  %v16402_v52 = vrot.slane %v16374_v49, %v16030_v18 }
 0x319   :  { %12527 = vst [vmem:[#allocation5 + $0xd38] sm:$0xff] %v11967_v45  ;;  %v12039_v17 = vmul.f32 %v16206_v35, %v11111_v32  ;;  %v11109_v27 = vmax.f32 %v6885_v47, 0.0  ;;  %v7182_v48 = vadd.f32 %v7181_v36, %v16048_v20  ;;  %v7066_v25 = vpop.f32.mrb[234].mxu1  ;;  %8569 = vmatprep.mubr.f32.mxu0 %v18375_v44  ;;  %v16409_v45 = vrot.slane %v16026_v19, %v16382_v38 }
 0x31a   :  { %12598 = vst [vmem:[#allocation5 + $0xf70] sm:$0xff] %v12038_v6  ;;  %v12036_v5 = vmul.f32 %v16224_v50, %v11108_v4  ;;  %v10624_v56 = vmax.f32 %v7180_v15, 0.0  ;;  %v7067_v2 = vadd.f32 %v7066_v25, %v16048_v20  ;;  %v7068_v47 = vpop.f32.mrb[235].mxu1  ;;  %13086 = vmatmul.mubr.msk.f32.gmra.mrb[84].mxu1 %vm6636_vm3, %v16229_v33  ;;  %v16417_v50 = vrot.slane %v16026_v19, %v16388_v29 }
 0x31b   :  { %12599 = vst [vmem:[#allocation5 + $0xf78] sm:$0xff] %v12039_v17  ;;  %v12037_v35 = vmul.f32 %v16236_v0, %v11109_v27  ;;  %v10625_v32 = vmax.f32 %v7182_v48, 0.0  ;;  %v7185_v36 = vpop.f32.mrb[236].mxu0  ;;  %v7069_v6 = vadd.f32 %v7068_v47, %v16048_v20  ;;  %8456 = vmatprep.mubr.f32.mxu1 %v18375_v44 }
 0x31c   :  { %12596 = vst [vmem:[#allocation5 + $0xf60] sm:$0xff] %v12036_v5  ;;  %v11552_v4 = vmul.f32 %v16394_v30, %v10624_v56  ;;  %v10622_v15 = vmax.f32 %v7067_v2, 0.0  ;;  %v7186_v25 = vadd.f32 %v7185_v36, %v16069_v23  ;;  %v7187_v43 = vpop.f32.mrb[237].mxu0  ;;  %13095 = vmatmul.mubr.msk.f32.gmra.mrb[86].mxu0 %vm6636_vm3, %v16253_v9 }
 0x31d   :  { %12597 = vst [vmem:[#allocation5 + $0xf68] sm:$0xff] %v12037_v35  ;;  %v11553_v0 = vmul.f32 %v16402_v52, %v10625_v32  ;;  %v10623_v17 = vmax.f32 %v7069_v6, 0.0  ;;  %v7188_v27 = vadd.f32 %v7187_v43, %v16069_v23  ;;  %v7072_v19 = vpop.f32.mrb[236].mxu1  ;;  %8575 = vmatprep.mubr.f32.mxu0 %v18375_v44 }
 0x31e   :  { %12112 = vst [vmem:[#allocation5 + $0x40] sm:$0xff] %v11552_v4  ;;  %v11550_v48 = vmul.f32 %v16409_v45, %v10622_v15  ;;  %v10694_v5 = vmax.f32 %v7186_v25, 0.0  ;;  %v7073_v56 = vadd.f32 %v7072_v19, %v16069_v23  ;;  %v7074_v2 = vpop.f32.mrb[237].mxu1  ;;  %13087 = vmatmul.mubr.msk.f32.gmra.mrb[86].mxu1 %vm6636_vm3, %v16253_v9 }
 0x31f   :  { %12113 = vst [vmem:[#allocation5 + $0x48] sm:$0xff] %v11553_v0  ;;  %v11551_v47 = vmul.f32 %v16417_v50, %v10623_v17  ;;  %v10695_v35 = vmax.f32 %v7188_v27, 0.0  ;;  %v7191_v32 = vpop.f32.mrb[238].mxu0  ;;  %v7075_v43 = vadd.f32 %v7074_v2, %v16069_v23  ;;  %8462 = vmatprep.mubr.f32.mxu1 %v18375_v44 }
 0x320   :  { %12110 = vst [vmem:[#allocation5 + $0x30] sm:$0xff] %v11550_v48  ;;  %v11622_v36 = vmul.f32 %v16394_v30, %v10694_v5  ;;  %v10692_v6 = vmax.f32 %v7073_v56, 0.0  ;;  %v7192_v4 = vadd.f32 %v7191_v32, %v16086_v7  ;;  %v7193_v15 = vpop.f32.mrb[239].mxu0  ;;  %13096 = vmatmul.mubr.msk.f32.gmra.mrb[88].mxu0 %vm6636_vm3, %v16265_v11 }
 0x321   :  { %12111 = vst [vmem:[#allocation5 + $0x38] sm:$0xff] %v11551_v47  ;;  %v11623_v25 = vmul.f32 %v16402_v52, %v10695_v35  ;;  %v10693_v0 = vmax.f32 %v7075_v43, 0.0  ;;  %v7194_v17 = vadd.f32 %v7193_v15, %v16086_v7  ;;  %v7078_v27 = vpop.f32.mrb[238].mxu1  ;;  %8759 = vmatprep.mubr.f32.mxu0 %v18375_v44 }
 0x322   :  { %12182 = vst [vmem:[#allocation5 + $0x270] sm:$0xff] %v11622_v36  ;;  %v11620_v19 = vmul.f32 %v16409_v45, %v10692_v6  ;;  %v10764_v48 = vmax.f32 %v7192_v4, 0.0  ;;  %v7079_v5 = vadd.f32 %v7078_v27, %v16086_v7  ;;  %v7080_v56 = vpop.f32.mrb[239].mxu1  ;;  %13088 = vmatmul.mubr.msk.f32.gmra.mrb[88].mxu1 %vm6636_vm3, %v16265_v11 }
 0x323   :  { %12183 = vst [vmem:[#allocation5 + $0x278] sm:$0xff] %v11623_v25  ;;  %v11621_v2 = vmul.f32 %v16417_v50, %v10693_v0  ;;  %v10765_v47 = vmax.f32 %v7194_v17, 0.0  ;;  %v7197_v35 = vpop.f32.mrb[240].mxu0  ;;  %v7081_v32 = vadd.f32 %v7080_v56, %v16086_v7  ;;  %8646 = vmatprep.mubr.f32.mxu1 %v18375_v44 }
 0x324   :  { %12180 = vst [vmem:[#allocation5 + $0x260] sm:$0xff] %v11620_v19  ;;  %v11692_v43 = vmul.f32 %v16394_v30, %v10764_v48  ;;  %v10762_v36 = vmax.f32 %v7079_v5, 0.0  ;;  %v7198_v6 = vadd.f32 %v7197_v35, %v16101_v55  ;;  %v7199_v4 = vpop.f32.mrb[241].mxu0  ;;  %13105 = vmatmul.mubr.msk.f32.vlgmr.msra.gmra.mrb[90].mxu0 %vm6636_vm3, %v16284_v3 }
 0x325   :  { %12181 = vst [vmem:[#allocation5 + $0x268] sm:$0xff] %v11621_v2  ;;  %v11693_v15 = vmul.f32 %v16402_v52, %v10765_v47  ;;  %v10763_v25 = vmax.f32 %v7081_v32, 0.0  ;;  %v7200_v0 = vadd.f32 %v7199_v4, %v16101_v55  ;;  %13544 = vmatpush1.bf16.msra.mxu0 %v15671_v57  ;;  %v7084_v17 = vpop.f32.mrb[240].mxu1  ;;  %8765 = vmatprep.mubr.f32.mxu0 %v18375_v44 }
 0x326   :  { %12252 = vst [vmem:[#allocation5 + $0x4a0] sm:$0xff] %v11692_v43  ;;  %v11690_v27 = vmul.f32 %v16409_v45, %v10762_v36  ;;  %v10834_v19 = vmax.f32 %v7198_v6, 0.0  ;;  %13546 = vmatprep.subr.bf16.mxu0 %v15723_v53  ;;  %v7085_v48 = vadd.f32 %v7084_v17, %v16101_v55  ;;  %v7086_v5 = vpop.f32.mrb[241].mxu1  ;;  %13097 = vmatmul.mubr.msk.f32.vlgmr.msra.gmra.mrb[90].mxu1 %vm6636_vm3, %v16284_v3 }
 0x327   :  { %12253 = vst [vmem:[#allocation5 + $0x4a8] sm:$0xff] %v11693_v15  ;;  %v11691_v56 = vmul.f32 %v16417_v50, %v10763_v25  ;;  %v10835_v2 = vmax.f32 %v7200_v0, 0.0  ;;  %v7203_v57 = vpop.f32.mrb[242].mxu0  ;;  %v7087_v47 = vadd.f32 %v7086_v5, %v16101_v55  ;;  %13536 = vmatpush1.bf16.msra.mxu1 %v15544_v8  ;;  %8652 = vmatprep.mubr.f32.mxu1 %v18375_v44 }
 0x328   :  { %12250 = vst [vmem:[#allocation5 + $0x490] sm:$0xff] %v11690_v27  ;;  %v11762_v53 = vmul.f32 %v16394_v30, %v10834_v19  ;;  %v10832_v35 = vmax.f32 %v7085_v48, 0.0  ;;  %v7204_v32 = vadd.f32 %v7203_v57, %v16120_v31  ;;  %v7205_v43 = vpop.f32.mrb[243].mxu0  ;;  %13106 = vmatmul.mubr.msk.f32.gmra.mrb[92].mxu0 %vm6636_vm3, %v16306_v59  ;;  %13538 = vmatprep.subr.bf16.mxu1 %v15582_v14 }
 0x329   :  { %12251 = vst [vmem:[#allocation5 + $0x498] sm:$0xff] %v11691_v56  ;;  %v11763_v36 = vmul.f32 %v16402_v52, %v10835_v2  ;;  %v10833_v6 = vmax.f32 %v7087_v47, 0.0  ;;  %v7206_v8 = vadd.f32 %v7205_v43, %v16120_v31  ;;  %13548 = vmatpush1.bf16.msra.mxu0 %v15714_v10  ;;  %v7090_v4 = vpop.f32.mrb[242].mxu1  ;;  %8771 = vmatprep.mubr.f32.mxu0 %v18375_v44 }
 0x32a   :  { %12322 = vst [vmem:[#allocation5 + $0x6d0] sm:$0xff] %v11762_v53  ;;  %v11760_v15 = vmul.f32 %v16409_v45, %v10832_v35  ;;  %v10904_v25 = vmax.f32 %v7204_v32, 0.0  ;;  %13558 = vmatprep.subr.bf16.mxu0 %v15762_v37  ;;  %v7091_v0 = vadd.f32 %v7090_v4, %v16120_v31  ;;  %v7092_v14 = vpop.f32.mrb[243].mxu1  ;;  %13098 = vmatmul.mubr.msk.f32.gmra.mrb[92].mxu1 %vm6636_vm3, %v16306_v59 }
 0x32b   :  { %12323 = vst [vmem:[#allocation5 + $0x6d8] sm:$0xff] %v11763_v36  ;;  %v11761_v17 = vmul.f32 %v16417_v50, %v10833_v6  ;;  %v10905_v27 = vmax.f32 %v7206_v8, 0.0  ;;  %v7209_v10 = vpop.f32.mrb[244].mxu0  ;;  %v7093_v19 = vadd.f32 %v7092_v14, %v16120_v31  ;;  %13540 = vmatpush1.bf16.msra.mxu1 %v15575_v12  ;;  %8658 = vmatprep.mubr.f32.mxu1 %v18375_v44 }
 0x32c   :  { %12320 = vst [vmem:[#allocation5 + $0x6c0] sm:$0xff] %v11760_v15  ;;  %v11832_v37 = vmul.f32 %v16394_v30, %v10904_v25  ;;  %v10902_v48 = vmax.f32 %v7091_v0, 0.0  ;;  %v7210_v5 = vadd.f32 %v7209_v10, %v16139_v46  ;;  %v7211_v56 = vpop.f32.mrb[245].mxu0  ;;  %13107 = vmatmul.mubr.msk.f32.gmra.mrb[94].mxu0 %vm6636_vm3, %v16329_v16  ;;  %13550 = vmatprep.subr.bf16.mxu1 %v15613_v62 }
 0x32d   :  { %12321 = vst [vmem:[#allocation5 + $0x6c8] sm:$0xff] %v11761_v17  ;;  %v11833_v2 = vmul.f32 %v16402_v52, %v10905_v27  ;;  %v10903_v57 = vmax.f32 %v7093_v19, 0.0  ;;  %v7212_v12 = vadd.f32 %v7211_v56, %v16139_v46  ;;  %v7096_v47 = vpop.f32.mrb[244].mxu1  ;;  %8777 = vmatprep.mubr.f32.mxu0 %v18375_v44 }
 0x32e   :  { %12392 = vst [vmem:[#allocation5 + $0x900] sm:$0xff] %v11832_v37  ;;  %v11830_v53 = vmul.f32 %v16409_v45, %v10902_v48  ;;  %v10974_v35 = vmax.f32 %v7210_v5, 0.0  ;;  %v7097_v32 = vadd.f32 %v7096_v47, %v16139_v46  ;;  %v7098_v43 = vpop.f32.mrb[245].mxu1  ;;  %13099 = vmatmul.mubr.msk.f32.gmra.mrb[94].mxu1 %vm6636_vm3, %v16329_v16 }
 0x32f   :  { %12393 = vst [vmem:[#allocation5 + $0x908] sm:$0xff] %v11833_v2  ;;  %v11831_v62 = vmul.f32 %v16417_v50, %v10903_v57  ;;  %v10975_v36 = vmax.f32 %v7212_v12, 0.0  ;;  %v7215_v6 = vpop.f32.mrb[246].mxu0  ;;  %v7099_v8 = vadd.f32 %v7098_v43, %v16139_v46  ;;  %8664 = vmatprep.mubr.f32.mxu1 %v18375_v44 }
 0x330   :  { %12390 = vst [vmem:[#allocation5 + $0x8f0] sm:$0xff] %v11830_v53  ;;  %v11902_v4 = vmul.f32 %v16394_v30, %v10974_v35  ;;  %v10972_v15 = vmax.f32 %v7097_v32, 0.0  ;;  %v7216_v25 = vadd.f32 %v7215_v6, %v16158_v24  ;;  %v7217_v0 = vpop.f32.mrb[247].mxu0  ;;  %13108 = vmatmul.mubr.msk.f32.gmra.mrb[96].mxu0 %vm6636_vm3, %v16349_v22 }
 0x331   :  { %12391 = vst [vmem:[#allocation5 + $0x8f8] sm:$0xff] %v11831_v62  ;;  %v11903_v14 = vmul.f32 %v16402_v52, %v10975_v36  ;;  %v10973_v17 = vmax.f32 %v7099_v8, 0.0  ;;  %v7218_v27 = vadd.f32 %v7217_v0, %v16158_v24  ;;  %v7102_v10 = vpop.f32.mrb[246].mxu1  ;;  %8783 = vmatprep.mubr.f32.mxu0 %v18375_v44 }
 0x332   :  { %12462 = vst [vmem:[#allocation5 + $0xb30] sm:$0xff] %v11902_v4  ;;  %v11900_v19 = vmul.f32 %v16409_v45, %v10972_v15  ;;  %v11044_v37 = vmax.f32 %v7216_v25, 0.0  ;;  %v7103_v48 = vadd.f32 %v7102_v10, %v16158_v24  ;;  %v7104_v5 = vpop.f32.mrb[247].mxu1  ;;  %13100 = vmatmul.mubr.msk.f32.gmra.mrb[96].mxu1 %vm6636_vm3, %v16349_v22 }
 0x333   :  { %12463 = vst [vmem:[#allocation5 + $0xb38] sm:$0xff] %v11903_v14  ;;  %v11901_v56 = vmul.f32 %v16417_v50, %v10973_v17  ;;  %v11045_v2 = vmax.f32 %v7218_v27, 0.0  ;;  %v7221_v57 = vpop.f32.mrb[248].mxu0  ;;  %v7105_v12 = vadd.f32 %v7104_v5, %v16158_v24  ;;  %8670 = vmatprep.mubr.f32.mxu1 %v18375_v44 }
 0x334   :  { %12460 = vst [vmem:[#allocation5 + $0xb20] sm:$0xff] %v11900_v19  ;;  %v11972_v47 = vmul.f32 %v16394_v30, %v11044_v37  ;;  %v11042_v53 = vmax.f32 %v7103_v48, 0.0  ;;  %v7222_v35 = vadd.f32 %v7221_v57, %v16176_v34  ;;  %v7223_v32 = vpop.f32.mrb[249].mxu0  ;;  %13109 = vmatmul.mubr.msk.f32.gmra.mrb[98].mxu0 %vm6636_vm3, %v16368_v42  ;;  %v16530_v48 = vrot.slane %v16374_v49, %v16174_v40 }
 0x335   :  { %12461 = vst [vmem:[#allocation5 + $0xb28] sm:$0xff] %v11901_v56  ;;  %v11973_v43 = vmul.f32 %v16402_v52, %v11045_v2  ;;  %v11043_v62 = vmax.f32 %v7105_v12, 0.0  ;;  %v7224_v36 = vadd.f32 %v7223_v32, %v16176_v34  ;;  %v7108_v6 = vpop.f32.mrb[248].mxu1  ;;  %8789 = vmatprep.mubr.f32.mxu0 %v18375_v44  ;;  %v16545_v32 = vrot.slane %v16374_v49, %v16201_v60 }
 0x336   :  { %12532 = vst [vmem:[#allocation5 + $0xd60] sm:$0xff] %v11972_v47  ;;  %v11970_v8 = vmul.f32 %v16409_v45, %v11042_v53  ;;  %v11114_v4 = vmax.f32 %v7222_v35, 0.0  ;;  %v7109_v15 = vadd.f32 %v7108_v6, %v16176_v34  ;;  %v7110_v25 = vpop.f32.mrb[249].mxu1  ;;  %13101 = vmatmul.mubr.msk.f32.gmra.mrb[98].mxu1 %vm6636_vm3, %v16368_v42 }
 0x337   :  { %12533 = vst [vmem:[#allocation5 + $0xd68] sm:$0xff] %v11973_v43  ;;  %v11971_v0 = vmul.f32 %v16417_v50, %v11043_v62  ;;  %v11115_v14 = vmax.f32 %v7224_v36, 0.0  ;;  %v7405_v17 = vpop.f32.mrb[250].mxu0  ;;  %v7111_v27 = vadd.f32 %v7110_v25, %v16176_v34  ;;  %8676 = vmatprep.mubr.f32.mxu1 %v18375_v44 }
 0x338   :  { %12530 = vst [vmem:[#allocation5 + $0xd50] sm:$0xff] %v11970_v8  ;;  %v12042_v10 = vmul.f32 %v16394_v30, %v11114_v4  ;;  %v11112_v19 = vmax.f32 %v7109_v15, 0.0  ;;  %v7406_v37 = vadd.f32 %v7405_v17, %v16048_v20  ;;  %v7407_v5 = vpop.f32.mrb[251].mxu0  ;;  %13110 = vmatmul.mubr.msk.f32.gmra.mrb[100].mxu0 %vm6636_vm3, %v16229_v33  ;;  %v16538_v30 = vrot.slane %v16374_v49, %v16180_v54 }
 0x339   :  { %12531 = vst [vmem:[#allocation5 + $0xd58] sm:$0xff] %v11971_v0  ;;  %v12043_v56 = vmul.f32 %v16402_v52, %v11115_v14  ;;  %v11113_v2 = vmax.f32 %v7111_v27, 0.0  ;;  %v7408_v57 = vadd.f32 %v7407_v5, %v16048_v20  ;;  %v7292_v12 = vpop.f32.mrb[250].mxu1  ;;  %8795 = vmatprep.mubr.f32.mxu0 %v18375_v44 }
 0x33a   :  { %12602 = vst [vmem:[#allocation5 + $0xf90] sm:$0xff] %v12042_v10  ;;  %v12040_v47 = vmul.f32 %v16409_v45, %v11112_v19  ;;  %v10628_v53 = vmax.f32 %v7406_v37, 0.0  ;;  %v7293_v35 = vadd.f32 %v7292_v12, %v16048_v20  ;;  %v7294_v52 = vpop.f32.mrb[251].mxu1  ;;  %13102 = vmatmul.mubr.msk.f32.gmra.mrb[100].mxu1 %vm6636_vm3, %v16229_v33  ;;  %v16553_v45 = vrot.slane %v16374_v49, %v16210_v28 }
 0x33b   :  { %12603 = vst [vmem:[#allocation5 + $0xf98] sm:$0xff] %v12043_v56  ;;  %v12041_v43 = vmul.f32 %v16417_v50, %v11113_v2  ;;  %v10629_v62 = vmax.f32 %v7408_v57, 0.0  ;;  %v7411_v36 = vpop.f32.mrb[252].mxu0  ;;  %v7295_v6 = vadd.f32 %v7294_v52, %v16048_v20  ;;  %8682 = vmatprep.mubr.f32.mxu1 %v18375_v44 }
 0x33c   :  { %12600 = vst [vmem:[#allocation5 + $0xf80] sm:$0xff] %v12040_v47  ;;  %v11556_v8 = vmul.f32 %v16530_v48, %v10628_v53  ;;  %v10626_v4 = vmax.f32 %v7293_v35, 0.0  ;;  %v7412_v15 = vadd.f32 %v7411_v36, %v16069_v23  ;;  %v7413_v33 = vpop.f32.mrb[253].mxu0  ;;  %13111 = vmatmul.mubr.msk.f32.gmra.mrb[102].mxu0 %vm6636_vm3, %v16253_v9 }
 0x33d   :  { %12601 = vst [vmem:[#allocation5 + $0xf88] sm:$0xff] %v12041_v43  ;;  %v11557_v50 = vmul.f32 %v16538_v30, %v10629_v62  ;;  %v10627_v25 = vmax.f32 %v7295_v6, 0.0  ;;  %v7414_v0 = vadd.f32 %v7413_v33, %v16069_v23  ;;  %v7298_v14 = vpop.f32.mrb[252].mxu1  ;;  %8801 = vmatprep.mubr.f32.mxu0 %v18375_v44 }
 0x33e   :  { %12116 = vst [vmem:[#allocation5 + $0x60] sm:$0xff] %v11556_v8  ;;  %v11554_v17 = vmul.f32 %v16545_v32, %v10626_v4  ;;  %v10698_v27 = vmax.f32 %v7412_v15, 0.0  ;;  %v7299_v10 = vadd.f32 %v7298_v14, %v16069_v23  ;;  %v7300_v19 = vpop.f32.mrb[253].mxu1  ;;  %13103 = vmatmul.mubr.msk.f32.gmra.mrb[102].mxu1 %vm6636_vm3, %v16253_v9 }
 0x33f   :  { %12117 = vst [vmem:[#allocation5 + $0x68] sm:$0xff] %v11557_v50  ;;  %v11555_v37 = vmul.f32 %v16553_v45, %v10627_v25  ;;  %v10699_v5 = vmax.f32 %v7414_v0, 0.0  ;;  %v7417_v56 = vpop.f32.mrb[254].mxu0  ;;  %v7301_v2 = vadd.f32 %v7300_v19, %v16069_v23  ;;  %8688 = vmatprep.mubr.f32.mxu1 %v18375_v44  ;;  %v18381_v19 = vld [vmem:[#allocation24_spill] sm:$0xff] }
 0x340   :  { %12114 = vst [vmem:[#allocation5 + $0x50] sm:$0xff] %v11554_v17  ;;  %v11626_v57 = vmul.f32 %v16530_v48, %v10698_v27  ;;  %v10696_v12 = vmax.f32 %v7299_v10, 0.0  ;;  %v7418_v47 = vadd.f32 %v7417_v56, %v16086_v7  ;;  %v7419_v53 = vpop.f32.mrb[255].mxu0  ;;  %13112 = vmatmul.mubr.msk.f32.gmra.mrb[104].mxu0 %vm6636_vm3, %v16265_v11 }
 0x341   :  { %12115 = vst [vmem:[#allocation5 + $0x58] sm:$0xff] %v11555_v37  ;;  %v11627_v9 = vmul.f32 %v16538_v30, %v10699_v5  ;;  %v10697_v35 = vmax.f32 %v7301_v2, 0.0  ;;  %v7420_v52 = vadd.f32 %v7419_v53, %v16086_v7  ;;  %v7304_v43 = vpop.f32.mrb[254].mxu1  ;;  %8985 = vmatprep.mubr.f32.mxu0 %v18375_v44  ;;  %v18382_v2 = vld [vmem:[#allocation28_spill] sm:$0xff] }
 0x342   :  { %12186 = vst [vmem:[#allocation5 + $0x290] sm:$0xff] %v11626_v57  ;;  %v11624_v62 = vmul.f32 %v16545_v32, %v10696_v12  ;;  %v10768_v36 = vmax.f32 %v7418_v47, 0.0  ;;  %v7305_v6 = vadd.f32 %v7304_v43, %v16086_v7  ;;  %v7306_v8 = vpop.f32.mrb[255].mxu1  ;;  %13104 = vmatmul.mubr.msk.f32.gmra.mrb[104].mxu1 %vm6636_vm3, %v16265_v11 }
 0x343   :  { %12187 = vst [vmem:[#allocation5 + $0x298] sm:$0xff] %v11627_v9  ;;  %v11625_v4 = vmul.f32 %v16553_v45, %v10697_v35  ;;  %v10769_v15 = vmax.f32 %v7420_v52, 0.0  ;;  %v7423_v33 = vpop.f32.mrb[0].mxu0  ;;  %v7307_v50 = vadd.f32 %v7306_v8, %v16086_v7  ;;  %8872 = vmatprep.mubr.f32.mxu1 %v18375_v44  ;;  %v18383_v52 = vld [vmem:[#allocation15_spill] sm:$0xff] }
 0x344   :  { %12184 = vst [vmem:[#allocation5 + $0x280] sm:$0xff] %v11624_v62  ;;  %v11696_v25 = vmul.f32 %v16530_v48, %v10768_v36  ;;  %v10766_v0 = vmax.f32 %v7305_v6, 0.0  ;;  %v7424_v14 = vadd.f32 %v7423_v33, %v16101_v55  ;;  %v7425_v17 = vpop.f32.mrb[1].mxu0  ;;  %13121 = vmatmul.mubr.msk.f32.vlgmr.msra.gmra.mrb[106].mxu0 %vm6636_vm3, %v16284_v3  ;;  %v18385_v33 = vld [vmem:[#allocation27_spill] sm:$0xff] }
 0x345   :  { %12185 = vst [vmem:[#allocation5 + $0x288] sm:$0xff] %v11625_v4  ;;  %v11697_v11 = vmul.f32 %v16538_v30, %v10769_v15  ;;  %v10767_v27 = vmax.f32 %v7307_v50, 0.0  ;;  %v7426_v10 = vadd.f32 %v7425_v17, %v16101_v55  ;;  %13560 = vmatpush1.bf16.msra.mxu0 %v18381_v19  ;;  %v7310_v37 = vpop.f32.mrb[0].mxu1  ;;  %8991 = vmatprep.mubr.f32.mxu0 %v18375_v44 }
 0x346   :  { %12256 = vst [vmem:[#allocation5 + $0x4c0] sm:$0xff] %v11696_v25  ;;  %v11694_v5 = vmul.f32 %v16545_v32, %v10766_v0  ;;  %v10838_v56 = vmax.f32 %v7424_v14, 0.0  ;;  %13562 = vmatprep.subr.bf16.mxu0 %v18382_v2  ;;  %v7311_v57 = vadd.f32 %v7310_v37, %v16101_v55  ;;  %v7312_v12 = vpop.f32.mrb[1].mxu1  ;;  %13113 = vmatmul.mubr.msk.f32.vlgmr.msra.gmra.mrb[106].mxu1 %vm6636_vm3, %v16284_v3  ;;  %v18384_v3 = vld [vmem:[#allocation17_spill] sm:$0xff]  ;;  %v18386_v37 = vld [vmem:[#allocation16_spill] sm:$0xff] }
 0x347   :  { %12257 = vst [vmem:[#allocation5 + $0x4c8] sm:$0xff] %v11697_v11  ;;  %v11695_v47 = vmul.f32 %v16553_v45, %v10767_v27  ;;  %v10839_v53 = vmax.f32 %v7426_v10, 0.0  ;;  %v7429_v9 = vpop.f32.mrb[2].mxu0  ;;  %v7313_v35 = vadd.f32 %v7312_v12, %v16101_v55  ;;  %13552 = vmatpush1.bf16.msra.mxu1 %v18383_v52  ;;  %8878 = vmatprep.mubr.f32.mxu1 %v18375_v44 }
 0x348   :  { %12254 = vst [vmem:[#allocation5 + $0x4b0] sm:$0xff] %v11694_v5  ;;  %v11766_v43 = vmul.f32 %v16530_v48, %v10838_v56  ;;  %v10836_v62 = vmax.f32 %v7311_v57, 0.0  ;;  %v7430_v36 = vadd.f32 %v7429_v9, %v16120_v31  ;;  %v7431_v6 = vpop.f32.mrb[3].mxu0  ;;  %13122 = vmatmul.mubr.msk.f32.gmra.mrb[108].mxu0 %vm6636_vm3, %v16306_v59  ;;  %13554 = vmatprep.subr.bf16.mxu1 %v18384_v3 }
 0x349   :  { %12255 = vst [vmem:[#allocation5 + $0x4b8] sm:$0xff] %v11695_v47  ;;  %v11767_v8 = vmul.f32 %v16538_v30, %v10839_v53  ;;  %v10837_v4 = vmax.f32 %v7313_v35, 0.0  ;;  %v7432_v15 = vadd.f32 %v7431_v6, %v16120_v31  ;;  %13564 = vmatpush1.bf16.msra.mxu0 %v18385_v33  ;;  %v7316_v50 = vpop.f32.mrb[2].mxu1  ;;  %8997 = vmatprep.mubr.f32.mxu0 %v18375_v44 }
 0x34a   :  { %12326 = vst [vmem:[#allocation5 + $0x6f0] sm:$0xff] %v11766_v43  ;;  %v11764_v25 = vmul.f32 %v16545_v32, %v10836_v62  ;;  %v10908_v0 = vmax.f32 %v7430_v36, 0.0  ;;  %13574 = vmatprep.subr.bf16.mxu0 %v15838_v41  ;;  %v7317_v14 = vadd.f32 %v7316_v50, %v16120_v31  ;;  %v7318_v17 = vpop.f32.mrb[3].mxu1  ;;  %13114 = vmatmul.mubr.msk.f32.gmra.mrb[108].mxu1 %vm6636_vm3, %v16306_v59  ;;  %v18387_v59 = vld [vmem:[#allocation19_spill] sm:$0xff] }
 0x34b   :  { %12327 = vst [vmem:[#allocation5 + $0x6f8] sm:$0xff] %v11767_v8  ;;  %v11765_v11 = vmul.f32 %v16553_v45, %v10837_v4  ;;  %v10909_v27 = vmax.f32 %v7432_v15, 0.0  ;;  %v7435_v10 = vpop.f32.mrb[4].mxu0  ;;  %v7319_v19 = vadd.f32 %v7318_v17, %v16120_v31  ;;  %13556 = vmatpush1.bf16.msra.mxu1 %v18386_v37  ;;  %8884 = vmatprep.mubr.f32.mxu1 %v18375_v44 }
 0x34c   :  { %12324 = vst [vmem:[#allocation5 + $0x6e0] sm:$0xff] %v11764_v25  ;;  %v11836_v41 = vmul.f32 %v16530_v48, %v10908_v0  ;;  %v10906_v5 = vmax.f32 %v7317_v14, 0.0  ;;  %v7436_v56 = vadd.f32 %v7435_v10, %v16139_v46  ;;  %v7437_v2 = vpop.f32.mrb[5].mxu0  ;;  %13123 = vmatmul.mubr.msk.f32.gmra.mrb[110].mxu0 %vm6636_vm3, %v16329_v16  ;;  %13566 = vmatprep.subr.bf16.mxu1 %v18387_v59 }
 0x34d   :  { %12325 = vst [vmem:[#allocation5 + $0x6e8] sm:$0xff] %v11765_v11  ;;  %v11837_v57 = vmul.f32 %v16538_v30, %v10909_v27  ;;  %v10907_v12 = vmax.f32 %v7319_v19, 0.0  ;;  %v7438_v47 = vadd.f32 %v7437_v2, %v16139_v46  ;;  %v7322_v53 = vpop.f32.mrb[4].mxu1  ;;  %9003 = vmatprep.mubr.f32.mxu0 %v18375_v44 }
 0x34e   :  { %12396 = vst [vmem:[#allocation5 + $0x920] sm:$0xff] %v11836_v41  ;;  %v11834_v9 = vmul.f32 %v16545_v32, %v10906_v5  ;;  %v10978_v35 = vmax.f32 %v7436_v56, 0.0  ;;  %v7323_v52 = vadd.f32 %v7322_v53, %v16139_v46  ;;  %v7324_v43 = vpop.f32.mrb[5].mxu1  ;;  %13115 = vmatmul.mubr.msk.f32.gmra.mrb[110].mxu1 %vm6636_vm3, %v16329_v16  ;;  %v16654_v53 = vld [vmem:[#allocation2 + $0x10] sm:$0xff] }
 0x34f   :  { %12397 = vst [vmem:[#allocation5 + $0x928] sm:$0xff] %v11837_v57  ;;  %v11835_v62 = vmul.f32 %v16553_v45, %v10907_v12  ;;  %v10979_v36 = vmax.f32 %v7438_v47, 0.0  ;;  %v7441_v6 = vpop.f32.mrb[6].mxu0  ;;  %v7325_v3 = vadd.f32 %v7324_v43, %v16139_v46  ;;  %8890 = vmatprep.mubr.f32.mxu1 %v18375_v44 }
 0x350   :  { %12394 = vst [vmem:[#allocation5 + $0x910] sm:$0xff] %v11834_v9  ;;  %v11906_v8 = vmul.f32 %v16530_v48, %v10978_v35  ;;  %v10976_v4 = vmax.f32 %v7323_v52, 0.0  ;;  %v7442_v15 = vadd.f32 %v7441_v6, %v16158_v24  ;;  %v7443_v33 = vpop.f32.mrb[7].mxu0  ;;  %13124 = vmatmul.mubr.msk.f32.gmra.mrb[112].mxu0 %vm6636_vm3, %v16349_v22 }
 0x351   :  { %12395 = vst [vmem:[#allocation5 + $0x918] sm:$0xff] %v11835_v62  ;;  %v11907_v16 = vmul.f32 %v16538_v30, %v10979_v36  ;;  %v10977_v50 = vmax.f32 %v7325_v3, 0.0  ;;  %v7444_v25 = vadd.f32 %v7443_v33, %v16158_v24  ;;  %v7328_v0 = vpop.f32.mrb[6].mxu1  ;;  %9009 = vmatprep.mubr.f32.mxu0 %v18375_v44  ;;  %v16668_v33 = vrot.slane %v16654_v53, %v16023_v21 }
 0x352   :  { %12466 = vst [vmem:[#allocation5 + $0xb50] sm:$0xff] %v11906_v8  ;;  %v11904_v14 = vmul.f32 %v16545_v32, %v10976_v4  ;;  %v11048_v17 = vmax.f32 %v7442_v15, 0.0  ;;  %v7329_v11 = vadd.f32 %v7328_v0, %v16158_v24  ;;  %v7330_v27 = vpop.f32.mrb[7].mxu1  ;;  %13116 = vmatmul.mubr.msk.f32.gmra.mrb[112].mxu1 %vm6636_vm3, %v16349_v22  ;;  %v16681_v0 = vrot.slane %v16654_v53, %v16030_v18 }
 0x353   :  { %12467 = vst [vmem:[#allocation5 + $0xb58] sm:$0xff] %v11907_v16  ;;  %v11905_v10 = vmul.f32 %v16553_v45, %v10977_v50  ;;  %v11049_v19 = vmax.f32 %v7444_v25, 0.0  ;;  %v7447_v37 = vpop.f32.mrb[8].mxu0  ;;  %v7331_v41 = vadd.f32 %v7330_v27, %v16158_v24  ;;  %8896 = vmatprep.mubr.f32.mxu1 %v18375_v44  ;;  %v16673_v16 = vld [vmem:[%s18316_s6 + $0x28] sm:$0xff] }
 0x354   :  { %12464 = vst [vmem:[#allocation5 + $0xb40] sm:$0xff] %v11904_v14  ;;  %v11976_v5 = vmul.f32 %v16530_v48, %v11048_v17  ;;  %v11046_v56 = vmax.f32 %v7329_v11, 0.0  ;;  %v7448_v2 = vadd.f32 %v7447_v37, %v16176_v34  ;;  %v7449_v59 = vpop.f32.mrb[9].mxu0  ;;  %13125 = vmatmul.mubr.msk.f32.gmra.mrb[114].mxu0 %vm6636_vm3, %v16368_v42 }
 0x355   :  { %12465 = vst [vmem:[#allocation5 + $0xb48] sm:$0xff] %v11905_v10  ;;  %v11977_v22 = vmul.f32 %v16538_v30, %v11049_v19  ;;  %v11047_v57 = vmax.f32 %v7331_v41, 0.0  ;;  %v7450_v12 = vadd.f32 %v7449_v59, %v16176_v34  ;;  %v7334_v47 = vpop.f32.mrb[8].mxu1  ;;  %9015 = vmatprep.mubr.f32.mxu0 %v18375_v44  ;;  %v16688_v10 = vrot.slane %v16374_v49, %v16382_v38 }
 0x356   :  { %12536 = vst [vmem:[#allocation5 + $0xd80] sm:$0xff] %v11976_v5  ;;  %v11974_v9 = vmul.f32 %v16545_v32, %v11046_v56  ;;  %v11118_v35 = vmax.f32 %v7448_v2, 0.0  ;;  %v7335_v52 = vadd.f32 %v7334_v47, %v16176_v34  ;;  %v7336_v43 = vpop.f32.mrb[9].mxu1  ;;  %13117 = vmatmul.mubr.msk.f32.gmra.mrb[114].mxu1 %vm6636_vm3, %v16368_v42 }
 0x357   :  { %12537 = vst [vmem:[#allocation5 + $0xd88] sm:$0xff] %v11977_v22  ;;  %v11975_v62 = vmul.f32 %v16553_v45, %v11047_v57  ;;  %v11119_v36 = vmax.f32 %v7450_v12, 0.0  ;;  %v7631_v6 = vpop.f32.mrb[10].mxu0  ;;  %v7337_v3 = vadd.f32 %v7336_v43, %v16176_v34  ;;  %8902 = vmatprep.mubr.f32.mxu1 %v18375_v44 }
 0x358   :  { %12534 = vst [vmem:[#allocation5 + $0xd70] sm:$0xff] %v11974_v9  ;;  %v12046_v8 = vmul.f32 %v16530_v48, %v11118_v35  ;;  %v11116_v4 = vmax.f32 %v7335_v52, 0.0  ;;  %v7632_v15 = vadd.f32 %v7631_v6, %v16048_v20  ;;  %v7633_v42 = vpop.f32.mrb[11].mxu0  ;;  %13126 = vmatmul.mubr.msk.f32.gmra.mrb[116].mxu0 %vm6636_vm3, %v16673_v16 }
 0x359   :  { %12535 = vst [vmem:[#allocation5 + $0xd78] sm:$0xff] %v11975_v62  ;;  %v12047_v50 = vmul.f32 %v16538_v30, %v11119_v36  ;;  %v11117_v48 = vmax.f32 %v7337_v3, 0.0  ;;  %v7634_v25 = vadd.f32 %v7633_v42, %v16048_v20  ;;  %v7518_v14 = vpop.f32.mrb[10].mxu1  ;;  %9021 = vmatprep.mubr.f32.mxu0 %v18375_v44 }
 0x35a   :  { %12606 = vst [vmem:[#allocation5 + $0xfb0] sm:$0xff] %v12046_v8  ;;  %v12044_v17 = vmul.f32 %v16545_v32, %v11116_v4  ;;  %v10632_v11 = vmax.f32 %v7632_v15, 0.0  ;;  %v7519_v27 = vadd.f32 %v7518_v14, %v16048_v20  ;;  %v7520_v30 = vpop.f32.mrb[11].mxu1  ;;  %13118 = vmatmul.mubr.msk.f32.gmra.mrb[116].mxu1 %vm6636_vm3, %v16673_v16  ;;  %v16696_v32 = vrot.slane %v16374_v49, %v16388_v29 }
 0x35b   :  { %12607 = vst [vmem:[#allocation5 + $0xfb8] sm:$0xff] %v12047_v50  ;;  %v12045_v19 = vmul.f32 %v16553_v45, %v11117_v48  ;;  %v10633_v37 = vmax.f32 %v7634_v25, 0.0  ;;  %v7637_v41 = vpop.f32.mrb[12].mxu0  ;;  %v7521_v5 = vadd.f32 %v7520_v30, %v16048_v20  ;;  %8908 = vmatprep.mubr.f32.mxu1 %v18375_v44  ;;  %v16704_v45 = vld [vmem:[%s18316_s6 + $0x30] sm:$0xff]  ;;  %v16723_v50 = vld [vmem:[%s18316_s6 + $0x38] sm:$0xff] }
 0x35c   :  { %12604 = vst [vmem:[#allocation5 + $0xfa0] sm:$0xff] %v12044_v17  ;;  %v11560_v56 = vmul.f32 %v16668_v33, %v10632_v11  ;;  %v10630_v2 = vmax.f32 %v7519_v27, 0.0  ;;  %v7638_v59 = vadd.f32 %v7637_v41, %v16069_v23  ;;  %v7639_v22 = vpop.f32.mrb[13].mxu0  ;;  %13127 = vmatmul.mubr.msk.f32.gmra.mrb[118].mxu0 %vm6636_vm3, %v16704_v45 }
 0x35d   :  { %12605 = vst [vmem:[#allocation5 + $0xfa8] sm:$0xff] %v12045_v19  ;;  %v11561_v49 = vmul.f32 %v16681_v0, %v10633_v37  ;;  %v10631_v57 = vmax.f32 %v7521_v5, 0.0  ;;  %v7640_v12 = vadd.f32 %v7639_v22, %v16069_v23  ;;  %v7524_v47 = vpop.f32.mrb[12].mxu1  ;;  %9027 = vmatprep.mubr.f32.mxu0 %v18375_v44 }
 0x35e   :  { %12120 = vst [vmem:[#allocation5 + $0x80] sm:$0xff] %v11560_v56  ;;  %v11558_v9 = vmul.f32 %v16688_v10, %v10630_v2  ;;  %v10702_v35 = vmax.f32 %v7638_v59, 0.0  ;;  %v7525_v52 = vadd.f32 %v7524_v47, %v16069_v23  ;;  %v7526_v43 = vpop.f32.mrb[13].mxu1  ;;  %13119 = vmatmul.mubr.msk.f32.gmra.mrb[118].mxu1 %vm6636_vm3, %v16704_v45 }
 0x35f   :  { %12121 = vst [vmem:[#allocation5 + $0x88] sm:$0xff] %v11561_v49  ;;  %v11559_v62 = vmul.f32 %v16696_v32, %v10631_v57  ;;  %v10703_v36 = vmax.f32 %v7640_v12, 0.0  ;;  %v7643_v6 = vpop.f32.mrb[14].mxu0  ;;  %v7527_v3 = vadd.f32 %v7526_v43, %v16069_v23  ;;  %8914 = vmatprep.mubr.f32.mxu1 %v18375_v44  ;;  %v16742_v57 = vld [vmem:[%s18316_s6] sm:$0xff] }
 0x360   :  { %12118 = vst [vmem:[#allocation5 + $0x70] sm:$0xff] %v11558_v9  ;;  %v11630_v8 = vmul.f32 %v16668_v33, %v10702_v35  ;;  %v10700_v4 = vmax.f32 %v7525_v52, 0.0  ;;  %v7644_v15 = vadd.f32 %v7643_v6, %v16086_v7  ;;  %v7645_v42 = vpop.f32.mrb[15].mxu0  ;;  %13128 = vmatmul.mubr.msk.f32.gmra.mrb[120].mxu0 %vm6636_vm3, %v16723_v50 }
 0x361   :  { %12119 = vst [vmem:[#allocation5 + $0x78] sm:$0xff] %v11559_v62  ;;  %v11631_v48 = vmul.f32 %v16681_v0, %v10703_v36  ;;  %v10701_v25 = vmax.f32 %v7527_v3, 0.0  ;;  %v7646_v14 = vadd.f32 %v7645_v42, %v16086_v7  ;;  %v7530_v17 = vpop.f32.mrb[14].mxu1  ;;  %9211 = vmatprep.mubr.f32.mxu0 %v18375_v44 }
 0x362   :  { %12190 = vst [vmem:[#allocation5 + $0x2b0] sm:$0xff] %v11630_v8  ;;  %v11628_v11 = vmul.f32 %v16688_v10, %v10700_v4  ;;  %v10772_v27 = vmax.f32 %v7644_v15, 0.0  ;;  %v7531_v30 = vadd.f32 %v7530_v17, %v16086_v7  ;;  %v7532_v19 = vpop.f32.mrb[15].mxu1  ;;  %13120 = vmatmul.mubr.msk.f32.gmra.mrb[120].mxu1 %vm6636_vm3, %v16723_v50  ;;  %v18388_v4 = vld [vmem:[#allocation18_spill] sm:$0xff] }
 0x363   :  { %12191 = vst [vmem:[#allocation5 + $0x2b8] sm:$0xff] %v11631_v48  ;;  %v11629_v37 = vmul.f32 %v16696_v32, %v10701_v25  ;;  %v10773_v41 = vmax.f32 %v7646_v14, 0.0  ;;  %v7649_v5 = vpop.f32.mrb[16].mxu0  ;;  %v7533_v56 = vadd.f32 %v7532_v19, %v16086_v7  ;;  %9098 = vmatprep.mubr.f32.mxu1 %v18375_v44  ;;  %v16764_v25 = vld [vmem:[%s18316_s6 + $0x8] sm:$0xff] }
 0x364   :  { %12188 = vst [vmem:[#allocation5 + $0x2a0] sm:$0xff] %v11628_v11  ;;  %v11700_v2 = vmul.f32 %v16668_v33, %v10772_v27  ;;  %v10770_v59 = vmax.f32 %v7531_v30, 0.0  ;;  %v7650_v22 = vadd.f32 %v7649_v5, %v16101_v55  ;;  %v7651_v49 = vpop.f32.mrb[17].mxu0  ;;  %13137 = vmatmul.mubr.msk.f32.vlgmr.msra.gmra.mrb[122].mxu0 %vm6636_vm3, %v16742_v57  ;;  %v18389_v14 = vld [vmem:[#allocation21_spill] sm:$0xff] }
 0x365   :  { %12189 = vst [vmem:[#allocation5 + $0x2a8] sm:$0xff] %v11629_v37  ;;  %v11701_v12 = vmul.f32 %v16681_v0, %v10773_v41  ;;  %v10771_v47 = vmax.f32 %v7533_v56, 0.0  ;;  %v7652_v9 = vadd.f32 %v7651_v49, %v16101_v55  ;;  %13576 = vmatpush1.bf16.msra.mxu0 %v15831_v13  ;;  %v7536_v35 = vpop.f32.mrb[16].mxu1  ;;  %9217 = vmatprep.mubr.f32.mxu0 %v18375_v44 }
 0x366   :  { %12260 = vst [vmem:[#allocation5 + $0x4e0] sm:$0xff] %v11700_v2  ;;  %v11698_v52 = vmul.f32 %v16688_v10, %v10770_v59  ;;  %v10842_v43 = vmax.f32 %v7650_v22, 0.0  ;;  %13578 = vmatprep.subr.bf16.mxu0 %v15873_v39  ;;  %v7537_v62 = vadd.f32 %v7536_v35, %v16101_v55  ;;  %v7538_v36 = vpop.f32.mrb[17].mxu1  ;;  %13129 = vmatmul.mubr.msk.f32.vlgmr.msra.gmra.mrb[122].mxu1 %vm6636_vm3, %v16742_v57  ;;  %v18390_v22 = vld [vmem:[#allocation20_spill] sm:$0xff]  ;;  %v18391_v35 = vld [vmem:[#allocation23_spill] sm:$0xff] }
 0x367   :  { %12261 = vst [vmem:[#allocation5 + $0x4e8] sm:$0xff] %v11701_v12  ;;  %v11699_v6 = vmul.f32 %v16696_v32, %v10771_v47  ;;  %v10843_v3 = vmax.f32 %v7652_v9, 0.0  ;;  %v7655_v13 = vpop.f32.mrb[18].mxu0  ;;  %v7539_v8 = vadd.f32 %v7538_v36, %v16101_v55  ;;  %13568 = vmatpush1.bf16.msra.mxu1 %v18388_v4  ;;  %9104 = vmatprep.mubr.f32.mxu1 %v18375_v44  ;;  %v16787_v9 = vld [vmem:[%s18316_s6 + $0x10] sm:$0xff] }
 0x368   :  { %12258 = vst [vmem:[#allocation5 + $0x4d0] sm:$0xff] %v11698_v52  ;;  %v11770_v39 = vmul.f32 %v16668_v33, %v10842_v43  ;;  %v10840_v15 = vmax.f32 %v7537_v62, 0.0  ;;  %v7656_v42 = vadd.f32 %v7655_v13, %v16120_v31  ;;  %v7657_v48 = vpop.f32.mrb[19].mxu0  ;;  %13138 = vmatmul.mubr.msk.f32.gmra.mrb[124].mxu0 %vm6636_vm3, %v16764_v25  ;;  %13570 = vmatprep.subr.bf16.mxu1 %v18389_v14 }
 0x369   :  { %12259 = vst [vmem:[#allocation5 + $0x4d8] sm:$0xff] %v11699_v6  ;;  %v11771_v17 = vmul.f32 %v16681_v0, %v10843_v3  ;;  %v10841_v11 = vmax.f32 %v7539_v8, 0.0  ;;  %v7658_v27 = vadd.f32 %v7657_v48, %v16120_v31  ;;  %13580 = vmatpush1.bf16.msra.mxu0 %v15864_v61  ;;  %v7542_v30 = vpop.f32.mrb[18].mxu1  ;;  %9223 = vmatprep.mubr.f32.mxu0 %v18375_v44 }
 0x36a   :  { %12330 = vst [vmem:[#allocation5 + $0x710] sm:$0xff] %v11770_v39  ;;  %v11768_v19 = vmul.f32 %v16688_v10, %v10840_v15  ;;  %v10912_v37 = vmax.f32 %v7656_v42, 0.0  ;;  %13590 = vmatprep.subr.bf16.mxu0 %v15902_v26  ;;  %v7543_v41 = vadd.f32 %v7542_v30, %v16120_v31  ;;  %v7544_v5 = vpop.f32.mrb[19].mxu1  ;;  %13130 = vmatmul.mubr.msk.f32.gmra.mrb[124].mxu1 %vm6636_vm3, %v16764_v25 }
 0x36b   :  { %12331 = vst [vmem:[#allocation5 + $0x718] sm:$0xff] %v11771_v17  ;;  %v11769_v56 = vmul.f32 %v16696_v32, %v10841_v11  ;;  %v10913_v2 = vmax.f32 %v7658_v27, 0.0  ;;  %v7661_v61 = vpop.f32.mrb[20].mxu0  ;;  %v7545_v59 = vadd.f32 %v7544_v5, %v16120_v31  ;;  %13572 = vmatpush1.bf16.msra.mxu1 %v18390_v22  ;;  %9110 = vmatprep.mubr.f32.mxu1 %v18375_v44  ;;  %v16807_v27 = vld [vmem:[%s18316_s6 + $0x18] sm:$0xff] }
 0x36c   :  { %12328 = vst [vmem:[#allocation5 + $0x700] sm:$0xff] %v11768_v19  ;;  %v11840_v26 = vmul.f32 %v16668_v33, %v10912_v37  ;;  %v10910_v49 = vmax.f32 %v7543_v41, 0.0  ;;  %v7662_v12 = vadd.f32 %v7661_v61, %v16139_v46  ;;  %v7663_v47 = vpop.f32.mrb[21].mxu0  ;;  %13139 = vmatmul.mubr.msk.f32.gmra.mrb[126].mxu0 %vm6636_vm3, %v16787_v9  ;;  %13582 = vmatprep.subr.bf16.mxu1 %v18391_v35 }
 0x36d   :  { %12329 = vst [vmem:[#allocation5 + $0x708] sm:$0xff] %v11769_v56  ;;  %v11841_v52 = vmul.f32 %v16681_v0, %v10913_v2  ;;  %v10911_v43 = vmax.f32 %v7545_v59, 0.0  ;;  %v7664_v62 = vadd.f32 %v7663_v47, %v16139_v46  ;;  %v7548_v36 = vpop.f32.mrb[20].mxu1  ;;  %9229 = vmatprep.mubr.f32.mxu0 %v18375_v44 }
 0x36e   :  { %12400 = vst [vmem:[#allocation5 + $0x940] sm:$0xff] %v11840_v26  ;;  %v11838_v6 = vmul.f32 %v16688_v10, %v10910_v49  ;;  %v10982_v3 = vmax.f32 %v7662_v12, 0.0  ;;  %v7549_v13 = vadd.f32 %v7548_v36, %v16139_v46  ;;  %v7550_v8 = vpop.f32.mrb[21].mxu1  ;;  %13131 = vmatmul.mubr.msk.f32.gmra.mrb[126].mxu1 %vm6636_vm3, %v16787_v9 }
 0x36f   :  { %12401 = vst [vmem:[#allocation5 + $0x948] sm:$0xff] %v11841_v52  ;;  %v11839_v4 = vmul.f32 %v16696_v32, %v10911_v43  ;;  %v10983_v39 = vmax.f32 %v7664_v62, 0.0  ;;  %v7667_v15 = vpop.f32.mrb[22].mxu0  ;;  %v7551_v42 = vadd.f32 %v7550_v8, %v16139_v46  ;;  %9116 = vmatprep.mubr.f32.mxu1 %v18375_v44  ;;  %v16826_v43 = vld [vmem:[%s18316_s6 + $0x20] sm:$0xff] }
 0x370   :  { %12398 = vst [vmem:[#allocation5 + $0x930] sm:$0xff] %v11838_v6  ;;  %v11910_v48 = vmul.f32 %v16668_v33, %v10982_v3  ;;  %v10980_v14 = vmax.f32 %v7549_v13, 0.0  ;;  %v7668_v17 = vadd.f32 %v7667_v15, %v16158_v24  ;;  %v7669_v11 = vpop.f32.mrb[23].mxu0  ;;  %13140 = vmatmul.mubr.msk.f32.gmra.mrb[128].mxu0 %vm6636_vm3, %v16807_v27 }
 0x371   :  { %12399 = vst [vmem:[#allocation5 + $0x938] sm:$0xff] %v11839_v4  ;;  %v11911_v30 = vmul.f32 %v16681_v0, %v10983_v39  ;;  %v10981_v19 = vmax.f32 %v7551_v42, 0.0  ;;  %v7670_v37 = vadd.f32 %v7669_v11, %v16158_v24  ;;  %v7554_v41 = vpop.f32.mrb[22].mxu1  ;;  %9235 = vmatprep.mubr.f32.mxu0 %v18375_v44 }
 0x372   :  { %12470 = vst [vmem:[#allocation5 + $0xb70] sm:$0xff] %v11910_v48  ;;  %v11908_v5 = vmul.f32 %v16688_v10, %v10980_v14  ;;  %v11052_v56 = vmax.f32 %v7668_v17, 0.0  ;;  %v7555_v2 = vadd.f32 %v7554_v41, %v16158_v24  ;;  %v7556_v61 = vpop.f32.mrb[23].mxu1  ;;  %13132 = vmatmul.mubr.msk.f32.gmra.mrb[128].mxu1 %vm6636_vm3, %v16807_v27 }
 0x373   :  { %12471 = vst [vmem:[#allocation5 + $0xb78] sm:$0xff] %v11911_v30  ;;  %v11909_v59 = vmul.f32 %v16696_v32, %v10981_v19  ;;  %v11053_v22 = vmax.f32 %v7670_v37, 0.0  ;;  %v7673_v26 = vpop.f32.mrb[24].mxu0  ;;  %v7557_v49 = vadd.f32 %v7556_v61, %v16158_v24  ;;  %9122 = vmatprep.mubr.f32.mxu1 %v18375_v44  ;;  %v16844_v19 = vrot.slane %v16654_v53, %v16174_v40 }
 0x374   :  { %12468 = vst [vmem:[#allocation5 + $0xb60] sm:$0xff] %v11908_v5  ;;  %v11980_v12 = vmul.f32 %v16668_v33, %v11052_v56  ;;  %v11050_v47 = vmax.f32 %v7555_v2, 0.0  ;;  %v7674_v35 = vadd.f32 %v7673_v26, %v16176_v34  ;;  %v7675_v52 = vpop.f32.mrb[25].mxu0  ;;  %13141 = vmatmul.mubr.msk.f32.gmra.mrb[130].mxu0 %vm6636_vm3, %v16826_v43  ;;  %v16859_v26 = vrot.slane %v16654_v53, %v16201_v60 }
 0x375   :  { %12469 = vst [vmem:[#allocation5 + $0xb68] sm:$0xff] %v11909_v59  ;;  %v11981_v62 = vmul.f32 %v16681_v0, %v11053_v22  ;;  %v11051_v36 = vmax.f32 %v7557_v49, 0.0  ;;  %v7676_v6 = vadd.f32 %v7675_v52, %v16176_v34  ;;  %v7560_v3 = vpop.f32.mrb[24].mxu1  ;;  %9241 = vmatprep.mubr.f32.mxu0 %v18375_v44 }
 0x376   :  { %12540 = vst [vmem:[#allocation5 + $0xda0] sm:$0xff] %v11980_v12  ;;  %v11978_v13 = vmul.f32 %v16688_v10, %v11050_v47  ;;  %v11122_v8 = vmax.f32 %v7674_v35, 0.0  ;;  %v7561_v4 = vadd.f32 %v7560_v3, %v16176_v34  ;;  %v7562_v39 = vpop.f32.mrb[25].mxu1  ;;  %13133 = vmatmul.mubr.msk.f32.gmra.mrb[130].mxu1 %vm6636_vm3, %v16826_v43 }
 0x377   :  { %12541 = vst [vmem:[#allocation5 + $0xda8] sm:$0xff] %v11981_v62  ;;  %v11979_v15 = vmul.f32 %v16696_v32, %v11051_v36  ;;  %v11123_v42 = vmax.f32 %v7676_v6, 0.0  ;;  %v7857_v48 = vpop.f32.mrb[26].mxu0  ;;  %v7563_v14 = vadd.f32 %v7562_v39, %v16176_v34  ;;  %9128 = vmatprep.mubr.f32.mxu1 %v18375_v44 }
 0x378   :  { %12538 = vst [vmem:[#allocation5 + $0xd90] sm:$0xff] %v11978_v13  ;;  %v12050_v17 = vmul.f32 %v16668_v33, %v11122_v8  ;;  %v11120_v11 = vmax.f32 %v7561_v4, 0.0  ;;  %v7858_v30 = vadd.f32 %v7857_v48, %v16048_v20  ;;  %v7859_v37 = vpop.f32.mrb[27].mxu0  ;;  %13142 = vmatmul.mubr.msk.f32.gmra.mrb[132].mxu0 %vm6636_vm3, %v16673_v16  ;;  %v16852_v33 = vrot.slane %v16654_v53, %v16180_v54 }
 0x379   :  { %12539 = vst [vmem:[#allocation5 + $0xd98] sm:$0xff] %v11979_v15  ;;  %v12051_v41 = vmul.f32 %v16681_v0, %v11123_v42  ;;  %v11121_v5 = vmax.f32 %v7563_v14, 0.0  ;;  %v7860_v56 = vadd.f32 %v7859_v37, %v16048_v20  ;;  %v7744_v2 = vpop.f32.mrb[26].mxu1  ;;  %9247 = vmatprep.mubr.f32.mxu0 %v18375_v44 }
 0x37a   :  { %12610 = vst [vmem:[#allocation5 + $0xfd0] sm:$0xff] %v12050_v17  ;;  %v12048_v61 = vmul.f32 %v16688_v10, %v11120_v11  ;;  %v10636_v59 = vmax.f32 %v7858_v30, 0.0  ;;  %v7745_v22 = vadd.f32 %v7744_v2, %v16048_v20  ;;  %v7746_v0 = vpop.f32.mrb[27].mxu1  ;;  %13134 = vmatmul.mubr.msk.f32.gmra.mrb[132].mxu1 %vm6636_vm3, %v16673_v16  ;;  %v16867_v10 = vrot.slane %v16654_v53, %v16210_v28 }
 0x37b   :  { %12611 = vst [vmem:[#allocation5 + $0xfd8] sm:$0xff] %v12051_v41  ;;  %v12049_v49 = vmul.f32 %v16696_v32, %v11121_v5  ;;  %v10637_v12 = vmax.f32 %v7860_v56, 0.0  ;;  %v7863_v47 = vpop.f32.mrb[28].mxu0  ;;  %v7747_v35 = vadd.f32 %v7746_v0, %v16048_v20  ;;  %9134 = vmatprep.mubr.f32.mxu1 %v18375_v44 }
 0x37c   :  { %12608 = vst [vmem:[#allocation5 + $0xfc0] sm:$0xff] %v12048_v61  ;;  %v11564_v52 = vmul.f32 %v16844_v19, %v10636_v59  ;;  %v10634_v62 = vmax.f32 %v7745_v22, 0.0  ;;  %v7864_v36 = vadd.f32 %v7863_v47, %v16069_v23  ;;  %v7865_v6 = vpop.f32.mrb[29].mxu0  ;;  %13143 = vmatmul.mubr.msk.f32.gmra.mrb[134].mxu0 %vm6636_vm3, %v16704_v45 }
 0x37d   :  { %12609 = vst [vmem:[#allocation5 + $0xfc8] sm:$0xff] %v12049_v49  ;;  %v11565_v32 = vmul.f32 %v16852_v33, %v10637_v12  ;;  %v10635_v3 = vmax.f32 %v7747_v35, 0.0  ;;  %v7866_v13 = vadd.f32 %v7865_v6, %v16069_v23  ;;  %v7750_v8 = vpop.f32.mrb[28].mxu1  ;;  %9253 = vmatprep.mubr.f32.mxu0 %v18375_v44 }
 0x37e   :  { %12124 = vst [vmem:[#allocation5 + $0xa0] sm:$0xff] %v11564_v52  ;;  %v11562_v4 = vmul.f32 %v16859_v26, %v10634_v62  ;;  %v10706_v39 = vmax.f32 %v7864_v36, 0.0  ;;  %v7751_v15 = vadd.f32 %v7750_v8, %v16069_v23  ;;  %v7752_v42 = vpop.f32.mrb[29].mxu1  ;;  %13135 = vmatmul.mubr.msk.f32.gmra.mrb[134].mxu1 %vm6636_vm3, %v16704_v45 }
 0x37f   :  { %12125 = vst [vmem:[#allocation5 + $0xa8] sm:$0xff] %v11565_v32  ;;  %v11563_v48 = vmul.f32 %v16867_v10, %v10635_v3  ;;  %v10707_v14 = vmax.f32 %v7866_v13, 0.0  ;;  %v7869_v17 = vpop.f32.mrb[30].mxu0  ;;  %v7753_v11 = vadd.f32 %v7752_v42, %v16069_v23  ;;  %9140 = vmatprep.mubr.f32.mxu1 %v18375_v44 }
 0x380   :  { %12122 = vst [vmem:[#allocation5 + $0x90] sm:$0xff] %v11562_v4  ;;  %v11634_v30 = vmul.f32 %v16844_v19, %v10706_v39  ;;  %v10704_v37 = vmax.f32 %v7751_v15, 0.0  ;;  %v7870_v41 = vadd.f32 %v7869_v17, %v16086_v7  ;;  %v7871_v5 = vpop.f32.mrb[31].mxu0  ;;  %13144 = vmatmul.mubr.msk.f32.gmra.mrb[136].mxu0 %vm6636_vm3, %v16723_v50 }
 0x381   :  { %12123 = vst [vmem:[#allocation5 + $0x98] sm:$0xff] %v11563_v48  ;;  %v11635_v56 = vmul.f32 %v16852_v33, %v10707_v14  ;;  %v10705_v2 = vmax.f32 %v7753_v11, 0.0  ;;  %v7872_v61 = vadd.f32 %v7871_v5, %v16086_v7  ;;  %v7756_v59 = vpop.f32.mrb[30].mxu1  ;;  %9437 = vmatprep.mubr.f32.mxu0 %v18375_v44  ;;  %v18392_v48 = vld [vmem:[#allocation38_spill] sm:$0xff] }
 0x382   :  { %12194 = vst [vmem:[#allocation5 + $0x2d0] sm:$0xff] %v11634_v30  ;;  %v11632_v22 = vmul.f32 %v16859_v26, %v10704_v37  ;;  %v10776_v0 = vmax.f32 %v7870_v41, 0.0  ;;  %v7757_v49 = vadd.f32 %v7756_v59, %v16086_v7  ;;  %v7758_v12 = vpop.f32.mrb[31].mxu1  ;;  %13136 = vmatmul.mubr.msk.f32.gmra.mrb[136].mxu1 %vm6636_vm3, %v16723_v50  ;;  %v18393_v41 = vld [vmem:[#allocation22_spill] sm:$0xff] }
 0x383   :  { %12195 = vst [vmem:[#allocation5 + $0x2d8] sm:$0xff] %v11635_v56  ;;  %v11633_v47 = vmul.f32 %v16867_v10, %v10705_v2  ;;  %v10777_v35 = vmax.f32 %v7872_v61, 0.0  ;;  %v7875_v52 = vpop.f32.mrb[32].mxu0  ;;  %v7759_v62 = vadd.f32 %v7758_v12, %v16086_v7  ;;  %9324 = vmatprep.mubr.f32.mxu1 %v18375_v44  ;;  %v18394_v59 = vld [vmem:[#allocation26_spill] sm:$0xff]  ;;  %v18395_v12 = vld [vmem:[#allocation37_spill] sm:$0xff] }
 0x384   :  { %12192 = vst [vmem:[#allocation5 + $0x2c0] sm:$0xff] %v11632_v22  ;;  %v11704_v36 = vmul.f32 %v16844_v19, %v10776_v0  ;;  %v10774_v6 = vmax.f32 %v7757_v49, 0.0  ;;  %v7876_v32 = vadd.f32 %v7875_v52, %v16101_v55  ;;  %v7877_v3 = vpop.f32.mrb[33].mxu0  ;;  %13153 = vmatmul.mubr.msk.f32.vlgmr.msra.gmra.mrb[138].mxu0 %vm6636_vm3, %v16742_v57 }
 0x385   :  { %12193 = vst [vmem:[#allocation5 + $0x2c8] sm:$0xff] %v11633_v47  ;;  %v11705_v13 = vmul.f32 %v16852_v33, %v10777_v35  ;;  %v10775_v8 = vmax.f32 %v7759_v62, 0.0  ;;  %v7878_v4 = vadd.f32 %v7877_v3, %v16101_v55  ;;  %13592 = vmatpush1.bf16.msra.mxu0 %v15895_v1  ;;  %v7762_v39 = vpop.f32.mrb[32].mxu1  ;;  %9443 = vmatprep.mubr.f32.mxu0 %v18375_v44 }
 0x386   :  { %12264 = vst [vmem:[#allocation5 + $0x500] sm:$0xff] %v11704_v36  ;;  %v11702_v15 = vmul.f32 %v16859_v26, %v10774_v6  ;;  %v10846_v42 = vmax.f32 %v7876_v32, 0.0  ;;  %13594 = vmatprep.subr.bf16.mxu0 %v18392_v48  ;;  %v7763_v14 = vadd.f32 %v7762_v39, %v16101_v55  ;;  %v7764_v17 = vpop.f32.mrb[33].mxu1  ;;  %13145 = vmatmul.mubr.msk.f32.vlgmr.msra.gmra.mrb[138].mxu1 %vm6636_vm3, %v16742_v57 }
 0x387   :  { %12265 = vst [vmem:[#allocation5 + $0x508] sm:$0xff] %v11705_v13  ;;  %v11703_v11 = vmul.f32 %v16867_v10, %v10775_v8  ;;  %v10847_v30 = vmax.f32 %v7878_v4, 0.0  ;;  %v7881_v1 = vpop.f32.mrb[34].mxu0  ;;  %v7765_v37 = vadd.f32 %v7764_v17, %v16101_v55  ;;  %13584 = vmatpush1.bf16.msra.mxu1 %v18393_v41  ;;  %9330 = vmatprep.mubr.f32.mxu1 %v18375_v44  ;;  %v18396_v8 = vld [vmem:[#allocation25_spill] sm:$0xff] }
 0x388   :  { %12262 = vst [vmem:[#allocation5 + $0x4f0] sm:$0xff] %v11702_v15  ;;  %v11774_v5 = vmul.f32 %v16844_v19, %v10846_v42  ;;  %v10844_v56 = vmax.f32 %v7763_v14, 0.0  ;;  %v7882_v2 = vadd.f32 %v7881_v1, %v16120_v31  ;;  %v7883_v61 = vpop.f32.mrb[35].mxu0  ;;  %13154 = vmatmul.mubr.msk.f32.gmra.mrb[140].mxu0 %vm6636_vm3, %v16764_v25  ;;  %13586 = vmatprep.subr.bf16.mxu1 %v18394_v59  ;;  %v18397_v42 = vld [vmem:[#allocation30_spill] sm:$0xff] }
 0x389   :  { %12263 = vst [vmem:[#allocation5 + $0x4f8] sm:$0xff] %v11703_v11  ;;  %v11775_v22 = vmul.f32 %v16852_v33, %v10847_v30  ;;  %v10845_v0 = vmax.f32 %v7765_v37, 0.0  ;;  %v7884_v49 = vadd.f32 %v7883_v61, %v16120_v31  ;;  %13596 = vmatpush1.bf16.msra.mxu0 %v18395_v12  ;;  %v7768_v47 = vpop.f32.mrb[34].mxu1  ;;  %9449 = vmatprep.mubr.f32.mxu0 %v18375_v44 }
 0x38a   :  { %12334 = vst [vmem:[#allocation5 + $0x730] sm:$0xff] %v11774_v5  ;;  %v11772_v35 = vmul.f32 %v16859_v26, %v10844_v56  ;;  %v10916_v52 = vmax.f32 %v7882_v2, 0.0  ;;  %13606 = vmatprep.subr.bf16.mxu0 %v15958_v51  ;;  %v7769_v62 = vadd.f32 %v7768_v47, %v16120_v31  ;;  %v7770_v36 = vpop.f32.mrb[35].mxu1  ;;  %13146 = vmatmul.mubr.msk.f32.gmra.mrb[140].mxu1 %vm6636_vm3, %v16764_v25 }
 0x38b   :  { %12335 = vst [vmem:[#allocation5 + $0x738] sm:$0xff] %v11775_v22  ;;  %v11773_v6 = vmul.f32 %v16867_v10, %v10845_v0  ;;  %v10917_v32 = vmax.f32 %v7884_v49, 0.0  ;;  %v7887_v3 = vpop.f32.mrb[36].mxu0  ;;  %v7771_v13 = vadd.f32 %v7770_v36, %v16120_v31  ;;  %13588 = vmatpush1.bf16.msra.mxu1 %v18396_v8  ;;  %9336 = vmatprep.mubr.f32.mxu1 %v18375_v44 }
 0x38c   :  { %12332 = vst [vmem:[#allocation5 + $0x720] sm:$0xff] %v11772_v35  ;;  %v11844_v51 = vmul.f32 %v16844_v19, %v10916_v52  ;;  %v10914_v4 = vmax.f32 %v7769_v62, 0.0  ;;  %v7888_v39 = vadd.f32 %v7887_v3, %v16139_v46  ;;  %v7889_v15 = vpop.f32.mrb[37].mxu0  ;;  %13155 = vmatmul.mubr.msk.f32.gmra.mrb[142].mxu0 %vm6636_vm3, %v16787_v9  ;;  %13598 = vmatprep.subr.bf16.mxu1 %v18397_v42 }
 0x38d   :  { %12333 = vst [vmem:[#allocation5 + $0x728] sm:$0xff] %v11773_v6  ;;  %v11845_v48 = vmul.f32 %v16852_v33, %v10917_v32  ;;  %v10915_v14 = vmax.f32 %v7771_v13, 0.0  ;;  %v7890_v17 = vadd.f32 %v7889_v15, %v16139_v46  ;;  %v7774_v11 = vpop.f32.mrb[36].mxu1  ;;  %9455 = vmatprep.mubr.f32.mxu0 %v18375_v44 }
 0x38e   :  { %12404 = vst [vmem:[#allocation5 + $0x960] sm:$0xff] %v11844_v51  ;;  %v11842_v30 = vmul.f32 %v16859_v26, %v10914_v4  ;;  %v10986_v1 = vmax.f32 %v7888_v39, 0.0  ;;  %v7775_v37 = vadd.f32 %v7774_v11, %v16139_v46  ;;  %v7776_v41 = vpop.f32.mrb[37].mxu1  ;;  %13147 = vmatmul.mubr.msk.f32.gmra.mrb[142].mxu1 %vm6636_vm3, %v16787_v9 }
 0x38f   :  { %12405 = vst [vmem:[#allocation5 + $0x968] sm:$0xff] %v11845_v48  ;;  %v11843_v5 = vmul.f32 %v16867_v10, %v10915_v14  ;;  %v10987_v56 = vmax.f32 %v7890_v17, 0.0  ;;  %v7893_v2 = vpop.f32.mrb[38].mxu0  ;;  %v7777_v61 = vadd.f32 %v7776_v41, %v16139_v46  ;;  %9342 = vmatprep.mubr.f32.mxu1 %v18375_v44 }
 0x390   :  { %12402 = vst [vmem:[#allocation5 + $0x950] sm:$0xff] %v11842_v30  ;;  %v11914_v59 = vmul.f32 %v16844_v19, %v10986_v1  ;;  %v10984_v22 = vmax.f32 %v7775_v37, 0.0  ;;  %v7894_v0 = vadd.f32 %v7893_v2, %v16158_v24  ;;  %v7895_v49 = vpop.f32.mrb[39].mxu0  ;;  %13156 = vmatmul.mubr.msk.f32.gmra.mrb[144].mxu0 %vm6636_vm3, %v16807_v27  ;;  %v16968_v30 = vld [vmem:[#allocation2 + $0x18] sm:$0xff] }
 0x391   :  { %12403 = vst [vmem:[#allocation5 + $0x958] sm:$0xff] %v11843_v5  ;;  %v11915_v12 = vmul.f32 %v16852_v33, %v10987_v56  ;;  %v10985_v47 = vmax.f32 %v7777_v61, 0.0  ;;  %v7896_v35 = vadd.f32 %v7895_v49, %v16158_v24  ;;  %v7780_v52 = vpop.f32.mrb[38].mxu1  ;;  %9461 = vmatprep.mubr.f32.mxu0 %v18375_v44 }
 0x392   :  { %12474 = vst [vmem:[#allocation5 + $0xb90] sm:$0xff] %v11914_v59  ;;  %v11912_v62 = vmul.f32 %v16859_v26, %v10984_v22  ;;  %v11056_v36 = vmax.f32 %v7894_v0, 0.0  ;;  %v7781_v6 = vadd.f32 %v7780_v52, %v16158_v24  ;;  %v7782_v32 = vpop.f32.mrb[39].mxu1  ;;  %13148 = vmatmul.mubr.msk.f32.gmra.mrb[144].mxu1 %vm6636_vm3, %v16807_v27 }
 0x393   :  { %12475 = vst [vmem:[#allocation5 + $0xb98] sm:$0xff] %v11915_v12  ;;  %v11913_v3 = vmul.f32 %v16867_v10, %v10985_v47  ;;  %v11057_v13 = vmax.f32 %v7896_v35, 0.0  ;;  %v7899_v8 = vpop.f32.mrb[40].mxu0  ;;  %v7783_v51 = vadd.f32 %v7782_v32, %v16158_v24  ;;  %9348 = vmatprep.mubr.f32.mxu1 %v18375_v44  ;;  %v16982_v12 = vrot.slane %v16968_v30, %v16023_v21 }
 0x394   :  { %12472 = vst [vmem:[#allocation5 + $0xb80] sm:$0xff] %v11912_v62  ;;  %v11984_v4 = vmul.f32 %v16844_v19, %v11056_v36  ;;  %v11054_v39 = vmax.f32 %v7781_v6, 0.0  ;;  %v7900_v15 = vadd.f32 %v7899_v8, %v16176_v34  ;;  %v7901_v42 = vpop.f32.mrb[41].mxu0  ;;  %13157 = vmatmul.mubr.msk.f32.gmra.mrb[146].mxu0 %vm6636_vm3, %v16826_v43 }
 0x395   :  { %12473 = vst [vmem:[#allocation5 + $0xb88] sm:$0xff] %v11913_v3  ;;  %v11985_v48 = vmul.f32 %v16852_v33, %v11057_v13  ;;  %v11055_v14 = vmax.f32 %v7783_v51, 0.0  ;;  %v7902_v17 = vadd.f32 %v7901_v42, %v16176_v34  ;;  %v7786_v11 = vpop.f32.mrb[40].mxu1  ;;  %9467 = vmatprep.mubr.f32.mxu0 %v18375_v44  ;;  %v16997_v13 = vrot.slane %v16654_v53, %v16382_v38 }
 0x396   :  { %12544 = vst [vmem:[#allocation5 + $0xdc0] sm:$0xff] %v11984_v4  ;;  %v11982_v1 = vmul.f32 %v16859_v26, %v11054_v39  ;;  %v11126_v37 = vmax.f32 %v7900_v15, 0.0  ;;  %v7787_v41 = vadd.f32 %v7786_v11, %v16176_v34  ;;  %v7788_v5 = vpop.f32.mrb[41].mxu1  ;;  %13149 = vmatmul.mubr.msk.f32.gmra.mrb[146].mxu1 %vm6636_vm3, %v16826_v43 }
 0x397   :  { %12545 = vst [vmem:[#allocation5 + $0xdc8] sm:$0xff] %v11985_v48  ;;  %v11983_v56 = vmul.f32 %v16867_v10, %v11055_v14  ;;  %v11127_v2 = vmax.f32 %v7902_v17, 0.0  ;;  %v8083_v61 = vpop.f32.mrb[42].mxu0  ;;  %v7789_v59 = vadd.f32 %v7788_v5, %v16176_v34  ;;  %9354 = vmatprep.mubr.f32.mxu1 %v18375_v44 }
 0x398   :  { %12542 = vst [vmem:[#allocation5 + $0xdb0] sm:$0xff] %v11982_v1  ;;  %v12054_v22 = vmul.f32 %v16844_v19, %v11126_v37  ;;  %v11124_v0 = vmax.f32 %v7787_v41, 0.0  ;;  %v8084_v49 = vadd.f32 %v8083_v61, %v16048_v20  ;;  %v8085_v47 = vpop.f32.mrb[43].mxu0  ;;  %13158 = vmatmul.mubr.msk.f32.gmra.mrb[148].mxu0 %vm6636_vm3, %v16673_v16  ;;  %v16990_v19 = vrot.slane %v16968_v30, %v16030_v18 }
 0x399   :  { %12543 = vst [vmem:[#allocation5 + $0xdb8] sm:$0xff] %v11983_v56  ;;  %v12055_v35 = vmul.f32 %v16852_v33, %v11127_v2  ;;  %v11125_v52 = vmax.f32 %v7789_v59, 0.0  ;;  %v8086_v62 = vadd.f32 %v8085_v47, %v16048_v20  ;;  %v7970_v36 = vpop.f32.mrb[42].mxu1  ;;  %9473 = vmatprep.mubr.f32.mxu0 %v18375_v44 }
 0x39a   :  { %12614 = vst [vmem:[#allocation5 + $0xff0] sm:$0xff] %v12054_v22  ;;  %v12052_v6 = vmul.f32 %v16859_v26, %v11124_v0  ;;  %v10640_v32 = vmax.f32 %v8084_v49, 0.0  ;;  %v7971_v3 = vadd.f32 %v7970_v36, %v16048_v20  ;;  %v7972_v33 = vpop.f32.mrb[43].mxu1  ;;  %13150 = vmatmul.mubr.msk.f32.gmra.mrb[148].mxu1 %vm6636_vm3, %v16673_v16  ;;  %v17005_v26 = vrot.slane %v16654_v53, %v16388_v29 }
 0x39b   :  { %12615 = vst [vmem:[#allocation5 + $0xff8] sm:$0xff] %v12055_v35  ;;  %v12053_v8 = vmul.f32 %v16867_v10, %v11125_v52  ;;  %v10641_v51 = vmax.f32 %v8086_v62, 0.0  ;;  %v8089_v4 = vpop.f32.mrb[44].mxu0  ;;  %v7973_v39 = vadd.f32 %v7972_v33, %v16048_v20  ;;  %9360 = vmatprep.mubr.f32.mxu1 %v18375_v44 }
 0x39c   :  { %12612 = vst [vmem:[#allocation5 + $0xfe0] sm:$0xff] %v12052_v6  ;;  %v11568_v15 = vmul.f32 %v16982_v12, %v10640_v32  ;;  %v10638_v42 = vmax.f32 %v7971_v3, 0.0  ;;  %v8090_v48 = vadd.f32 %v8089_v4, %v16069_v23  ;;  %v8091_v16 = vpop.f32.mrb[45].mxu0  ;;  %13159 = vmatmul.mubr.msk.f32.gmra.mrb[150].mxu0 %vm6636_vm3, %v16704_v45 }
 0x39d   :  { %12613 = vst [vmem:[#allocation5 + $0xfe8] sm:$0xff] %v12053_v8  ;;  %v11569_v10 = vmul.f32 %v16990_v19, %v10641_v51  ;;  %v10639_v14 = vmax.f32 %v7973_v39, 0.0  ;;  %v8092_v17 = vadd.f32 %v8091_v16, %v16069_v23  ;;  %v7976_v53 = vpop.f32.mrb[44].mxu1  ;;  %9479 = vmatprep.mubr.f32.mxu0 %v18375_v44 }
 0x39e   :  { %12128 = vst [vmem:[#allocation5 + $0xc0] sm:$0xff] %v11568_v15  ;;  %v11566_v11 = vmul.f32 %v16997_v13, %v10638_v42  ;;  %v10710_v1 = vmax.f32 %v8090_v48, 0.0  ;;  %v7977_v37 = vadd.f32 %v7976_v53, %v16069_v23  ;;  %v7978_v41 = vpop.f32.mrb[45].mxu1  ;;  %13151 = vmatmul.mubr.msk.f32.gmra.mrb[150].mxu1 %vm6636_vm3, %v16704_v45 }
 0x39f   :  { %12129 = vst [vmem:[#allocation5 + $0xc8] sm:$0xff] %v11569_v10  ;;  %v11567_v5 = vmul.f32 %v17005_v26, %v10639_v14  ;;  %v10711_v56 = vmax.f32 %v8092_v17, 0.0  ;;  %v8095_v2 = vpop.f32.mrb[46].mxu0  ;;  %v7979_v61 = vadd.f32 %v7978_v41, %v16069_v23  ;;  %9366 = vmatprep.mubr.f32.mxu1 %v18375_v44  ;;  %v18398_v10 = vld [vmem:[#allocation41_spill] sm:$0xff] }
 0x3a0   :  { %12126 = vst [vmem:[#allocation5 + $0xb0] sm:$0xff] %v11566_v11  ;;  %v11638_v59 = vmul.f32 %v16982_v12, %v10710_v1  ;;  %v10708_v22 = vmax.f32 %v7977_v37, 0.0  ;;  %v8096_v0 = vadd.f32 %v8095_v2, %v16086_v7  ;;  %v8097_v49 = vpop.f32.mrb[47].mxu0  ;;  %13160 = vmatmul.mubr.msk.f32.gmra.mrb[152].mxu0 %vm6636_vm3, %v16723_v50  ;;  %v18399_v11 = vld [vmem:[#allocation45_spill] sm:$0xff] }
 0x3a1   :  { %12127 = vst [vmem:[#allocation5 + $0xb8] sm:$0xff] %v11567_v5  ;;  %v11639_v45 = vmul.f32 %v16990_v19, %v10711_v56  ;;  %v10709_v47 = vmax.f32 %v7979_v61, 0.0  ;;  %v8098_v35 = vadd.f32 %v8097_v49, %v16086_v7  ;;  %v7982_v52 = vpop.f32.mrb[46].mxu1  ;;  %9663 = vmatprep.mubr.f32.mxu0 %v18375_v44  ;;  %v18400_v61 = vld [vmem:[#allocation29_spill] sm:$0xff] }
 0x3a2   :  { %12198 = vst [vmem:[#allocation5 + $0x2f0] sm:$0xff] %v11638_v59  ;;  %v11636_v62 = vmul.f32 %v16997_v13, %v10708_v22  ;;  %v10780_v36 = vmax.f32 %v8096_v0, 0.0  ;;  %v7983_v6 = vadd.f32 %v7982_v52, %v16086_v7  ;;  %v7984_v32 = vpop.f32.mrb[47].mxu1  ;;  %13152 = vmatmul.mubr.msk.f32.gmra.mrb[152].mxu1 %vm6636_vm3, %v16723_v50  ;;  %v18402_v52 = vld [vmem:[#allocation44_spill] sm:$0xff] }
 0x3a3   :  { %12199 = vst [vmem:[#allocation5 + $0x2f8] sm:$0xff] %v11639_v45  ;;  %v11637_v3 = vmul.f32 %v17005_v26, %v10709_v47  ;;  %v10781_v33 = vmax.f32 %v8098_v35, 0.0  ;;  %v8101_v8 = vpop.f32.mrb[48].mxu0  ;;  %v7985_v51 = vadd.f32 %v7984_v32, %v16086_v7  ;;  %9550 = vmatprep.mubr.f32.mxu1 %v18375_v44  ;;  %v18403_v32 = vld [vmem:[#allocation49_spill] sm:$0xff] }
 0x3a4   :  { %12196 = vst [vmem:[#allocation5 + $0x2e0] sm:$0xff] %v11636_v62  ;;  %v11708_v4 = vmul.f32 %v16982_v12, %v10780_v36  ;;  %v10778_v39 = vmax.f32 %v7983_v6, 0.0  ;;  %v8102_v15 = vadd.f32 %v8101_v8, %v16101_v55  ;;  %v8103_v42 = vpop.f32.mrb[49].mxu0  ;;  %13169 = vmatmul.mubr.msk.f32.vlgmr.msra.gmra.mrb[154].mxu0 %vm6636_vm3, %v16742_v57 }
 0x3a5   :  { %12197 = vst [vmem:[#allocation5 + $0x2e8] sm:$0xff] %v11637_v3  ;;  %v11709_v50 = vmul.f32 %v16990_v19, %v10781_v33  ;;  %v10779_v48 = vmax.f32 %v7985_v51, 0.0  ;;  %v8104_v16 = vadd.f32 %v8103_v42, %v16101_v55  ;;  %13608 = vmatpush1.bf16.msra.mxu0 %v18398_v10  ;;  %v7988_v14 = vpop.f32.mrb[48].mxu1  ;;  %9669 = vmatprep.mubr.f32.mxu0 %v18375_v44 }
 0x3a6   :  { %12268 = vst [vmem:[#allocation5 + $0x520] sm:$0xff] %v11708_v4  ;;  %v11706_v17 = vmul.f32 %v16997_v13, %v10778_v39  ;;  %v10850_v53 = vmax.f32 %v8102_v15, 0.0  ;;  %13610 = vmatprep.subr.bf16.mxu0 %v18399_v11  ;;  %v7989_v1 = vadd.f32 %v7988_v14, %v16101_v55  ;;  %v7990_v37 = vpop.f32.mrb[49].mxu1  ;;  %13161 = vmatmul.mubr.msk.f32.vlgmr.msra.gmra.mrb[154].mxu1 %vm6636_vm3, %v16742_v57  ;;  %v18401_v57 = vld [vmem:[#allocation32_spill] sm:$0xff]  ;;  %v18404_v15 = vld [vmem:[#allocation31_spill] sm:$0xff] }
 0x3a7   :  { %12269 = vst [vmem:[#allocation5 + $0x528] sm:$0xff] %v11709_v50  ;;  %v11707_v41 = vmul.f32 %v17005_v26, %v10779_v48  ;;  %v10851_v5 = vmax.f32 %v8104_v16, 0.0  ;;  %v8107_v56 = vpop.f32.mrb[50].mxu0  ;;  %v7991_v2 = vadd.f32 %v7990_v37, %v16101_v55  ;;  %13600 = vmatpush1.bf16.msra.mxu1 %v18400_v61  ;;  %9556 = vmatprep.mubr.f32.mxu1 %v18375_v44 }
 0x3a8   :  { %12266 = vst [vmem:[#allocation5 + $0x510] sm:$0xff] %v11706_v17  ;;  %v11778_v59 = vmul.f32 %v16982_v12, %v10850_v53  ;;  %v10848_v22 = vmax.f32 %v7989_v1, 0.0  ;;  %v8108_v0 = vadd.f32 %v8107_v56, %v16120_v31  ;;  %v8109_v49 = vpop.f32.mrb[51].mxu0  ;;  %13170 = vmatmul.mubr.msk.f32.gmra.mrb[156].mxu0 %vm6636_vm3, %v16764_v25  ;;  %13602 = vmatprep.subr.bf16.mxu1 %v18401_v57 }
 0x3a9   :  { %12267 = vst [vmem:[#allocation5 + $0x518] sm:$0xff] %v11707_v41  ;;  %v11779_v45 = vmul.f32 %v16990_v19, %v10851_v5  ;;  %v10849_v47 = vmax.f32 %v7991_v2, 0.0  ;;  %v8110_v35 = vadd.f32 %v8109_v49, %v16120_v31  ;;  %13612 = vmatpush1.bf16.msra.mxu0 %v18402_v52  ;;  %v7994_v62 = vpop.f32.mrb[50].mxu1  ;;  %9675 = vmatprep.mubr.f32.mxu0 %v18375_v44 }
 0x3aa   :  { %12338 = vst [vmem:[#allocation5 + $0x750] sm:$0xff] %v11778_v59  ;;  %v11776_v36 = vmul.f32 %v16997_v13, %v10848_v22  ;;  %v10920_v6 = vmax.f32 %v8108_v0, 0.0  ;;  %13622 = vmatprep.subr.bf16.mxu0 %v18403_v32  ;;  %v7995_v3 = vadd.f32 %v7994_v62, %v16120_v31  ;;  %v7996_v33 = vpop.f32.mrb[51].mxu1  ;;  %13162 = vmatmul.mubr.msk.f32.gmra.mrb[156].mxu1 %vm6636_vm3, %v16764_v25  ;;  %v18405_v25 = vld [vmem:[#allocation34_spill] sm:$0xff] }
 0x3ab   :  { %12339 = vst [vmem:[#allocation5 + $0x758] sm:$0xff] %v11779_v45  ;;  %v11777_v8 = vmul.f32 %v17005_v26, %v10849_v47  ;;  %v10921_v51 = vmax.f32 %v8110_v35, 0.0  ;;  %v8113_v4 = vpop.f32.mrb[52].mxu0  ;;  %v7997_v39 = vadd.f32 %v7996_v33, %v16120_v31  ;;  %13604 = vmatpush1.bf16.msra.mxu1 %v18404_v15  ;;  %9562 = vmatprep.mubr.f32.mxu1 %v18375_v44 }
 0x3ac   :  { %12336 = vst [vmem:[#allocation5 + $0x740] sm:$0xff] %v11776_v36  ;;  %v11848_v42 = vmul.f32 %v16982_v12, %v10920_v6  ;;  %v10918_v50 = vmax.f32 %v7995_v3, 0.0  ;;  %v8114_v48 = vadd.f32 %v8113_v4, %v16139_v46  ;;  %v8115_v16 = vpop.f32.mrb[53].mxu0  ;;  %13171 = vmatmul.mubr.msk.f32.gmra.mrb[158].mxu0 %vm6636_vm3, %v16787_v9  ;;  %13614 = vmatprep.subr.bf16.mxu1 %v18405_v25 }
 0x3ad   :  { %12337 = vst [vmem:[#allocation5 + $0x748] sm:$0xff] %v11777_v8  ;;  %v11849_v10 = vmul.f32 %v16990_v19, %v10921_v51  ;;  %v10919_v14 = vmax.f32 %v7997_v39, 0.0  ;;  %v8116_v17 = vadd.f32 %v8115_v16, %v16139_v46  ;;  %v8000_v53 = vpop.f32.mrb[52].mxu1  ;;  %9681 = vmatprep.mubr.f32.mxu0 %v18375_v44 }
 0x3ae   :  { %12408 = vst [vmem:[#allocation5 + $0x980] sm:$0xff] %v11848_v42  ;;  %v11846_v11 = vmul.f32 %v16997_v13, %v10918_v50  ;;  %v10990_v1 = vmax.f32 %v8114_v48, 0.0  ;;  %v8001_v37 = vadd.f32 %v8000_v53, %v16139_v46  ;;  %v8002_v41 = vpop.f32.mrb[53].mxu1  ;;  %13163 = vmatmul.mubr.msk.f32.gmra.mrb[158].mxu1 %vm6636_vm3, %v16787_v9 }
 0x3af   :  { %12409 = vst [vmem:[#allocation5 + $0x988] sm:$0xff] %v11849_v10  ;;  %v11847_v5 = vmul.f32 %v17005_v26, %v10919_v14  ;;  %v10991_v56 = vmax.f32 %v8116_v17, 0.0  ;;  %v8119_v2 = vpop.f32.mrb[54].mxu0  ;;  %v8003_v61 = vadd.f32 %v8002_v41, %v16139_v46  ;;  %9568 = vmatprep.mubr.f32.mxu1 %v18375_v44 }
 0x3b0   :  { %12406 = vst [vmem:[#allocation5 + $0x970] sm:$0xff] %v11846_v11  ;;  %v11918_v59 = vmul.f32 %v16982_v12, %v10990_v1  ;;  %v10988_v22 = vmax.f32 %v8001_v37, 0.0  ;;  %v8120_v0 = vadd.f32 %v8119_v2, %v16158_v24  ;;  %v8121_v49 = vpop.f32.mrb[55].mxu0  ;;  %13172 = vmatmul.mubr.msk.f32.gmra.mrb[160].mxu0 %vm6636_vm3, %v16807_v27 }
 0x3b1   :  { %12407 = vst [vmem:[#allocation5 + $0x978] sm:$0xff] %v11847_v5  ;;  %v11919_v9 = vmul.f32 %v16990_v19, %v10991_v56  ;;  %v10989_v57 = vmax.f32 %v8003_v61, 0.0  ;;  %v8122_v45 = vadd.f32 %v8121_v49, %v16158_v24  ;;  %v8006_v47 = vpop.f32.mrb[54].mxu1  ;;  %9687 = vmatprep.mubr.f32.mxu0 %v18375_v44  ;;  %v17118_v5 = vrot.slane %v16968_v30, %v16174_v40  ;;  %v17123_v56 = vld [vmem:[%s18316_s6 + $0x28] sm:$0xff] }
 0x3b2   :  { %12478 = vst [vmem:[#allocation5 + $0xbb0] sm:$0xff] %v11918_v59  ;;  %v11916_v35 = vmul.f32 %v16997_v13, %v10988_v22  ;;  %v11060_v52 = vmax.f32 %v8120_v0, 0.0  ;;  %v8007_v62 = vadd.f32 %v8006_v47, %v16158_v24  ;;  %v8008_v36 = vpop.f32.mrb[55].mxu1  ;;  %13164 = vmatmul.mubr.msk.f32.gmra.mrb[160].mxu1 %vm6636_vm3, %v16807_v27  ;;  %v17131_v59 = vrot.slane %v16968_v30, %v16180_v54 }
 0x3b3   :  { %12479 = vst [vmem:[#allocation5 + $0xbb8] sm:$0xff] %v11919_v9  ;;  %v11917_v6 = vmul.f32 %v17005_v26, %v10989_v57  ;;  %v11061_v32 = vmax.f32 %v8122_v45, 0.0  ;;  %v8125_v3 = vpop.f32.mrb[56].mxu0  ;;  %v8009_v33 = vadd.f32 %v8008_v36, %v16158_v24  ;;  %9574 = vmatprep.mubr.f32.mxu1 %v18375_v44  ;;  %v17138_v57 = vrot.slane %v16968_v30, %v16201_v60 }
 0x3b4   :  { %12476 = vst [vmem:[#allocation5 + $0xba0] sm:$0xff] %v11916_v35  ;;  %v11988_v8 = vmul.f32 %v16982_v12, %v11060_v52  ;;  %v11058_v51 = vmax.f32 %v8007_v62, 0.0  ;;  %v8126_v4 = vadd.f32 %v8125_v3, %v16176_v34  ;;  %v8127_v39 = vpop.f32.mrb[57].mxu0  ;;  %13173 = vmatmul.mubr.msk.f32.gmra.mrb[162].mxu0 %vm6636_vm3, %v16826_v43 }
 0x3b5   :  { %12477 = vst [vmem:[#allocation5 + $0xba8] sm:$0xff] %v11917_v6  ;;  %v11989_v27 = vmul.f32 %v16990_v19, %v11061_v32  ;;  %v11059_v15 = vmax.f32 %v8009_v33, 0.0  ;;  %v8128_v42 = vadd.f32 %v8127_v39, %v16176_v34  ;;  %v8012_v50 = vpop.f32.mrb[56].mxu1  ;;  %9693 = vmatprep.mubr.f32.mxu0 %v18375_v44 }
 0x3b6   :  { %12548 = vst [vmem:[#allocation5 + $0xde0] sm:$0xff] %v11988_v8  ;;  %v11986_v48 = vmul.f32 %v16997_v13, %v11058_v51  ;;  %v11130_v16 = vmax.f32 %v8126_v4, 0.0  ;;  %v8013_v25 = vadd.f32 %v8012_v50, %v16176_v34  ;;  %v8014_v10 = vpop.f32.mrb[57].mxu1  ;;  %13165 = vmatmul.mubr.msk.f32.gmra.mrb[162].mxu1 %vm6636_vm3, %v16826_v43 }
 0x3b7   :  { %12549 = vst [vmem:[#allocation5 + $0xde8] sm:$0xff] %v11989_v27  ;;  %v11987_v14 = vmul.f32 %v17005_v26, %v11059_v15  ;;  %v11131_v17 = vmax.f32 %v8128_v42, 0.0  ;;  %v8309_v53 = vpop.f32.mrb[58].mxu0  ;;  %v8015_v11 = vadd.f32 %v8014_v10, %v16176_v34  ;;  %9580 = vmatprep.mubr.f32.mxu1 %v18375_v44 }
 0x3b8   :  { %12546 = vst [vmem:[#allocation5 + $0xdd0] sm:$0xff] %v11986_v48  ;;  %v12058_v1 = vmul.f32 %v16982_v12, %v11130_v16  ;;  %v11128_v37 = vmax.f32 %v8013_v25, 0.0  ;;  %v8310_v41 = vadd.f32 %v8309_v53, %v16048_v20  ;;  %v8311_v43 = vpop.f32.mrb[59].mxu0  ;;  %13174 = vmatmul.mubr.msk.f32.gmra.mrb[164].mxu0 %vm6636_vm3, %v17123_v56  ;;  %v17173_v53 = vld [vmem:[%s18316_s6 + $0x38] sm:$0xff] }
 0x3b9   :  { %12547 = vst [vmem:[#allocation5 + $0xdd8] sm:$0xff] %v11987_v14  ;;  %v12059_v2 = vmul.f32 %v16990_v19, %v11131_v17  ;;  %v11129_v12 = vmax.f32 %v8015_v11, 0.0  ;;  %v8312_v61 = vadd.f32 %v8311_v43, %v16048_v20  ;;  %v8196_v22 = vpop.f32.mrb[58].mxu1  ;;  %9699 = vmatprep.mubr.f32.mxu0 %v18375_v44 }
 0x3ba   :  { %12618 = vst [vmem:[#allocation5 + $0x1010] sm:$0xff] %v12058_v1  ;;  %v12056_v0 = vmul.f32 %v16997_v13, %v11128_v37  ;;  %v10644_v49 = vmax.f32 %v8310_v41, 0.0  ;;  %v8197_v9 = vadd.f32 %v8196_v22, %v16048_v20  ;;  %v8198_v19 = vpop.f32.mrb[59].mxu1  ;;  %13166 = vmatmul.mubr.msk.f32.gmra.mrb[164].mxu1 %vm6636_vm3, %v17123_v56  ;;  %v17146_v13 = vrot.slane %v16968_v30, %v16210_v28 }
 0x3bb   :  { %12619 = vst [vmem:[#allocation5 + $0x1018] sm:$0xff] %v12059_v2  ;;  %v12057_v45 = vmul.f32 %v17005_v26, %v11129_v12  ;;  %v10645_v47 = vmax.f32 %v8312_v61, 0.0  ;;  %v8315_v35 = vpop.f32.mrb[60].mxu0  ;;  %v8199_v52 = vadd.f32 %v8198_v19, %v16048_v20  ;;  %9586 = vmatprep.mubr.f32.mxu1 %v18375_v44  ;;  %v17154_v26 = vld [vmem:[%s18316_s6 + $0x30] sm:$0xff] }
 0x3bc   :  { %12616 = vst [vmem:[#allocation5 + $0x1000] sm:$0xff] %v12056_v0  ;;  %v11572_v62 = vmul.f32 %v17118_v5, %v10644_v49  ;;  %v10642_v36 = vmax.f32 %v8197_v9, 0.0  ;;  %v8316_v6 = vadd.f32 %v8315_v35, %v16069_v23  ;;  %v8317_v32 = vpop.f32.mrb[61].mxu0  ;;  %13175 = vmatmul.mubr.msk.f32.gmra.mrb[166].mxu0 %vm6636_vm3, %v17154_v26 }
 0x3bd   :  { %12617 = vst [vmem:[#allocation5 + $0x1008] sm:$0xff] %v12057_v45  ;;  %v11573_v3 = vmul.f32 %v17131_v59, %v10645_v47  ;;  %v10643_v33 = vmax.f32 %v8199_v52, 0.0  ;;  %v8318_v8 = vadd.f32 %v8317_v32, %v16069_v23  ;;  %v8202_v51 = vpop.f32.mrb[60].mxu1  ;;  %9705 = vmatprep.mubr.f32.mxu0 %v18375_v44  ;;  %v17192_v52 = vld [vmem:[%s18316_s6] sm:$0xff] }
 0x3be   :  { %12132 = vst [vmem:[#allocation5 + $0xe0] sm:$0xff] %v11572_v62  ;;  %v11570_v4 = vmul.f32 %v17138_v57, %v10642_v36  ;;  %v10714_v39 = vmax.f32 %v8316_v6, 0.0  ;;  %v8203_v27 = vadd.f32 %v8202_v51, %v16069_v23  ;;  %v8204_v15 = vpop.f32.mrb[61].mxu1  ;;  %13167 = vmatmul.mubr.msk.f32.gmra.mrb[166].mxu1 %vm6636_vm3, %v17154_v26  ;;  %v18406_v32 = vld [vmem:[#allocation48_spill] sm:$0xff]  ;;  %v18407_v51 = vld [vmem:[#allocation53_spill] sm:$0xff] }
 0x3bf   :  { %12133 = vst [vmem:[#allocation5 + $0xe8] sm:$0xff] %v11573_v3  ;;  %v11571_v42 = vmul.f32 %v17146_v13, %v10643_v33  ;;  %v10715_v50 = vmax.f32 %v8318_v8, 0.0  ;;  %v8321_v48 = vpop.f32.mrb[62].mxu0  ;;  %v8205_v16 = vadd.f32 %v8204_v15, %v16069_v23  ;;  %9592 = vmatprep.mubr.f32.mxu1 %v18375_v44 }
 0x3c0   :  { %12130 = vst [vmem:[#allocation5 + $0xd0] sm:$0xff] %v11570_v4  ;;  %v11642_v25 = vmul.f32 %v17118_v5, %v10714_v39  ;;  %v10712_v10 = vmax.f32 %v8203_v27, 0.0  ;;  %v8322_v14 = vadd.f32 %v8321_v48, %v16086_v7  ;;  %v8323_v17 = vpop.f32.mrb[63].mxu0  ;;  %13176 = vmatmul.mubr.msk.f32.gmra.mrb[168].mxu0 %vm6636_vm3, %v17173_v53  ;;  %v18408_v48 = vld [vmem:[#allocation33_spill] sm:$0xff] }
 0x3c1   :  { %12131 = vst [vmem:[#allocation5 + $0xd8] sm:$0xff] %v11571_v42  ;;  %v11643_v11 = vmul.f32 %v17131_v59, %v10715_v50  ;;  %v10713_v1 = vmax.f32 %v8205_v16, 0.0  ;;  %v8324_v37 = vadd.f32 %v8323_v17, %v16086_v7  ;;  %v8208_v41 = vpop.f32.mrb[62].mxu1  ;;  %9889 = vmatprep.mubr.f32.mxu0 %v18375_v44  ;;  %v17214_v17 = vld [vmem:[%s18316_s6 + $0x8] sm:$0xff] }
 0x3c2   :  { %12202 = vst [vmem:[#allocation5 + $0x310] sm:$0xff] %v11642_v25  ;;  %v11640_v43 = vmul.f32 %v17138_v57, %v10712_v10  ;;  %v10784_v2 = vmax.f32 %v8322_v14, 0.0  ;;  %v8209_v12 = vadd.f32 %v8208_v41, %v16086_v7  ;;  %v8210_v61 = vpop.f32.mrb[63].mxu1  ;;  %13168 = vmatmul.mubr.msk.f32.gmra.mrb[168].mxu1 %vm6636_vm3, %v17173_v53 }
 0x3c3   :  { %12203 = vst [vmem:[#allocation5 + $0x318] sm:$0xff] %v11643_v11  ;;  %v11641_v22 = vmul.f32 %v17146_v13, %v10713_v1  ;;  %v10785_v0 = vmax.f32 %v8324_v37, 0.0  ;;  %v8327_v49 = vpop.f32.mrb[64].mxu0  ;;  %v8211_v9 = vadd.f32 %v8210_v61, %v16086_v7  ;;  %9776 = vmatprep.mubr.f32.mxu1 %v18375_v44  ;;  %v18409_v11 = vld [vmem:[#allocation36_spill] sm:$0xff] }
 0x3c4   :  { %12200 = vst [vmem:[#allocation5 + $0x300] sm:$0xff] %v11640_v43  ;;  %v11712_v19 = vmul.f32 %v17118_v5, %v10784_v2  ;;  %v10782_v45 = vmax.f32 %v8209_v12, 0.0  ;;  %v8328_v47 = vadd.f32 %v8327_v49, %v16101_v55  ;;  %v8329_v35 = vpop.f32.mrb[65].mxu0  ;;  %13185 = vmatmul.mubr.msk.f32.vlgmr.msra.gmra.mrb[170].mxu0 %vm6636_vm3, %v17192_v52  ;;  %v18410_v43 = vld [vmem:[#allocation52_spill] sm:$0xff] }
 0x3c5   :  { %12201 = vst [vmem:[#allocation5 + $0x308] sm:$0xff] %v11641_v22  ;;  %v11713_v62 = vmul.f32 %v17131_v59, %v10785_v0  ;;  %v10783_v36 = vmax.f32 %v8211_v9, 0.0  ;;  %v8330_v6 = vadd.f32 %v8329_v35, %v16101_v55  ;;  %13624 = vmatpush1.bf16.msra.mxu0 %v18406_v32  ;;  %v8214_v3 = vpop.f32.mrb[64].mxu1  ;;  %9895 = vmatprep.mubr.f32.mxu0 %v18375_v44  ;;  %v18412_v32 = vld [vmem:[#allocation40_spill] sm:$0xff] }
 0x3c6   :  { %12272 = vst [vmem:[#allocation5 + $0x540] sm:$0xff] %v11712_v19  ;;  %v11710_v33 = vmul.f32 %v17138_v57, %v10782_v45  ;;  %v10854_v8 = vmax.f32 %v8328_v47, 0.0  ;;  %13626 = vmatprep.subr.bf16.mxu0 %v18407_v51  ;;  %v8215_v4 = vadd.f32 %v8214_v3, %v16101_v55  ;;  %v8216_v39 = vpop.f32.mrb[65].mxu1  ;;  %13177 = vmatmul.mubr.msk.f32.vlgmr.msra.gmra.mrb[170].mxu1 %vm6636_vm3, %v17192_v52  ;;  %v18411_v47 = vld [vmem:[#allocation35_spill] sm:$0xff] }
 0x3c7   :  { %12273 = vst [vmem:[#allocation5 + $0x548] sm:$0xff] %v11713_v62  ;;  %v11711_v27 = vmul.f32 %v17146_v13, %v10783_v36  ;;  %v10855_v15 = vmax.f32 %v8330_v6, 0.0  ;;  %v8333_v42 = vpop.f32.mrb[66].mxu0  ;;  %v8217_v50 = vadd.f32 %v8216_v39, %v16101_v55  ;;  %13616 = vmatpush1.bf16.msra.mxu1 %v18408_v48  ;;  %9782 = vmatprep.mubr.f32.mxu1 %v18375_v44  ;;  %v17237_v6 = vld [vmem:[%s18316_s6 + $0x10] sm:$0xff] }
 0x3c8   :  { %12270 = vst [vmem:[#allocation5 + $0x530] sm:$0xff] %v11710_v33  ;;  %v11782_v16 = vmul.f32 %v17118_v5, %v10854_v8  ;;  %v10852_v25 = vmax.f32 %v8215_v4, 0.0  ;;  %v8334_v10 = vadd.f32 %v8333_v42, %v16120_v31  ;;  %v8335_v14 = vpop.f32.mrb[67].mxu0  ;;  %13186 = vmatmul.mubr.msk.f32.gmra.mrb[172].mxu0 %vm6636_vm3, %v17214_v17  ;;  %13618 = vmatprep.subr.bf16.mxu1 %v18409_v11 }
 0x3c9   :  { %12271 = vst [vmem:[#allocation5 + $0x538] sm:$0xff] %v11711_v27  ;;  %v11783_v1 = vmul.f32 %v17131_v59, %v10855_v15  ;;  %v10853_v37 = vmax.f32 %v8217_v50, 0.0  ;;  %v8336_v41 = vadd.f32 %v8335_v14, %v16120_v31  ;;  %13628 = vmatpush1.bf16.msra.mxu0 %v18410_v43  ;;  %v8220_v2 = vpop.f32.mrb[66].mxu1  ;;  %9901 = vmatprep.mubr.f32.mxu0 %v18375_v44 }
 0x3ca   :  { %12342 = vst [vmem:[#allocation5 + $0x770] sm:$0xff] %v11782_v16  ;;  %v11780_v12 = vmul.f32 %v17138_v57, %v10852_v25  ;;  %v10924_v61 = vmax.f32 %v8334_v10, 0.0  ;;  %13638 = vmatprep.subr.bf16.mxu0 %v16104_v58  ;;  %v8221_v22 = vadd.f32 %v8220_v2, %v16120_v31  ;;  %v8222_v0 = vpop.f32.mrb[67].mxu1  ;;  %13178 = vmatmul.mubr.msk.f32.gmra.mrb[172].mxu1 %vm6636_vm3, %v17214_v17 }
 0x3cb   :  { %12343 = vst [vmem:[#allocation5 + $0x778] sm:$0xff] %v11783_v1  ;;  %v11781_v49 = vmul.f32 %v17146_v13, %v10853_v37  ;;  %v10925_v9 = vmax.f32 %v8336_v41, 0.0  ;;  %v8339_v19 = vpop.f32.mrb[68].mxu0  ;;  %v8223_v45 = vadd.f32 %v8222_v0, %v16120_v31  ;;  %13620 = vmatpush1.bf16.msra.mxu1 %v18411_v47  ;;  %9788 = vmatprep.mubr.f32.mxu1 %v18375_v44  ;;  %v17257_v1 = vld [vmem:[%s18316_s6 + $0x18] sm:$0xff] }
 0x3cc   :  { %12340 = vst [vmem:[#allocation5 + $0x760] sm:$0xff] %v11780_v12  ;;  %v11852_v58 = vmul.f32 %v17118_v5, %v10924_v61  ;;  %v10922_v35 = vmax.f32 %v8221_v22, 0.0  ;;  %v8340_v62 = vadd.f32 %v8339_v19, %v16139_v46  ;;  %v8341_v36 = vpop.f32.mrb[69].mxu0  ;;  %13187 = vmatmul.mubr.msk.f32.gmra.mrb[174].mxu0 %vm6636_vm3, %v17237_v6  ;;  %13630 = vmatprep.subr.bf16.mxu1 %v18412_v32 }
 0x3cd   :  { %12341 = vst [vmem:[#allocation5 + $0x768] sm:$0xff] %v11781_v49  ;;  %v11853_v3 = vmul.f32 %v17131_v59, %v10925_v9  ;;  %v10923_v33 = vmax.f32 %v8223_v45, 0.0  ;;  %v8342_v8 = vadd.f32 %v8341_v36, %v16139_v46  ;;  %v8226_v51 = vpop.f32.mrb[68].mxu1  ;;  %9907 = vmatprep.mubr.f32.mxu0 %v18375_v44  ;;  %v17276_v36 = vld [vmem:[%s18316_s6 + $0x20] sm:$0xff] }
 0x3ce   :  { %12412 = vst [vmem:[#allocation5 + $0x9a0] sm:$0xff] %v11852_v58  ;;  %v11850_v4 = vmul.f32 %v17138_v57, %v10922_v35  ;;  %v10994_v39 = vmax.f32 %v8340_v62, 0.0  ;;  %v8227_v27 = vadd.f32 %v8226_v51, %v16139_v46  ;;  %v8228_v15 = vpop.f32.mrb[69].mxu1  ;;  %13179 = vmatmul.mubr.msk.f32.gmra.mrb[174].mxu1 %vm6636_vm3, %v17237_v6  ;;  %v17282_v51 = vld [vmem:[#allocation2 + $0x20] sm:$0xff] }
 0x3cf   :  { %12413 = vst [vmem:[#allocation5 + $0x9a8] sm:$0xff] %v11853_v3  ;;  %v11851_v42 = vmul.f32 %v17146_v13, %v10923_v33  ;;  %v10995_v50 = vmax.f32 %v8342_v8, 0.0  ;;  %v8345_v48 = vpop.f32.mrb[70].mxu0  ;;  %v8229_v16 = vadd.f32 %v8228_v15, %v16139_v46  ;;  %9794 = vmatprep.mubr.f32.mxu1 %v18375_v44 }
 0x3d0   :  { %12410 = vst [vmem:[#allocation5 + $0x990] sm:$0xff] %v11850_v4  ;;  %v11922_v25 = vmul.f32 %v17118_v5, %v10994_v39  ;;  %v10992_v10 = vmax.f32 %v8227_v27, 0.0  ;;  %v8346_v14 = vadd.f32 %v8345_v48, %v16158_v24  ;;  %v8347_v11 = vpop.f32.mrb[71].mxu0  ;;  %13188 = vmatmul.mubr.msk.f32.gmra.mrb[176].mxu0 %vm6636_vm3, %v17257_v1 }
 0x3d1   :  { %12411 = vst [vmem:[#allocation5 + $0x998] sm:$0xff] %v11851_v42  ;;  %v11923_v37 = vmul.f32 %v17131_v59, %v10995_v50  ;;  %v10993_v41 = vmax.f32 %v8229_v16, 0.0  ;;  %v8348_v43 = vadd.f32 %v8347_v11, %v16158_v24  ;;  %v8232_v2 = vpop.f32.mrb[70].mxu1  ;;  %9913 = vmatprep.mubr.f32.mxu0 %v18375_v44  ;;  %v17296_v11 = vrot.slane %v17282_v51, %v16023_v21 }
 0x3d2   :  { %12482 = vst [vmem:[#allocation5 + $0xbd0] sm:$0xff] %v11922_v25  ;;  %v11920_v12 = vmul.f32 %v17138_v57, %v10992_v10  ;;  %v11064_v61 = vmax.f32 %v8346_v14, 0.0  ;;  %v8233_v22 = vadd.f32 %v8232_v2, %v16158_v24  ;;  %v8234_v0 = vpop.f32.mrb[71].mxu1  ;;  %13180 = vmatmul.mubr.msk.f32.gmra.mrb[176].mxu1 %vm6636_vm3, %v17257_v1 }
 0x3d3   :  { %12483 = vst [vmem:[#allocation5 + $0xbd8] sm:$0xff] %v11923_v37  ;;  %v11921_v49 = vmul.f32 %v17146_v13, %v10993_v41  ;;  %v11065_v9 = vmax.f32 %v8348_v43, 0.0  ;;  %v8351_v19 = vpop.f32.mrb[72].mxu0  ;;  %v8235_v45 = vadd.f32 %v8234_v0, %v16158_v24  ;;  %9800 = vmatprep.mubr.f32.mxu1 %v18375_v44 }
 0x3d4   :  { %12480 = vst [vmem:[#allocation5 + $0xbc0] sm:$0xff] %v11920_v12  ;;  %v11992_v47 = vmul.f32 %v17118_v5, %v11064_v61  ;;  %v11062_v58 = vmax.f32 %v8233_v22, 0.0  ;;  %v8352_v35 = vadd.f32 %v8351_v19, %v16176_v34  ;;  %v8353_v62 = vpop.f32.mrb[73].mxu0  ;;  %13189 = vmatmul.mubr.msk.f32.gmra.mrb[178].mxu0 %vm6636_vm3, %v17276_v36 }
 0x3d5   :  { %12481 = vst [vmem:[#allocation5 + $0xbc8] sm:$0xff] %v11921_v49  ;;  %v11993_v32 = vmul.f32 %v17131_v59, %v11065_v9  ;;  %v11063_v3 = vmax.f32 %v8235_v45, 0.0  ;;  %v8354_v33 = vadd.f32 %v8353_v62, %v16176_v34  ;;  %v8238_v8 = vpop.f32.mrb[72].mxu1  ;;  %9919 = vmatprep.mubr.f32.mxu0 %v18375_v44  ;;  %v17311_v49 = vrot.slane %v16968_v30, %v16382_v38 }
 0x3d6   :  { %12552 = vst [vmem:[#allocation5 + $0xe00] sm:$0xff] %v11992_v47  ;;  %v11990_v4 = vmul.f32 %v17138_v57, %v11062_v58  ;;  %v11134_v39 = vmax.f32 %v8352_v35, 0.0  ;;  %v8239_v27 = vadd.f32 %v8238_v8, %v16176_v34  ;;  %v8240_v15 = vpop.f32.mrb[73].mxu1  ;;  %13181 = vmatmul.mubr.msk.f32.gmra.mrb[178].mxu1 %vm6636_vm3, %v17276_v36 }
 0x3d7   :  { %12553 = vst [vmem:[#allocation5 + $0xe08] sm:$0xff] %v11993_v32  ;;  %v11991_v42 = vmul.f32 %v17146_v13, %v11063_v3  ;;  %v11135_v50 = vmax.f32 %v8354_v33, 0.0  ;;  %v8535_v48 = vpop.f32.mrb[74].mxu0  ;;  %v8241_v16 = vadd.f32 %v8240_v15, %v16176_v34  ;;  %9806 = vmatprep.mubr.f32.mxu1 %v18375_v44 }
 0x3d8   :  { %12550 = vst [vmem:[#allocation5 + $0xdf0] sm:$0xff] %v11990_v4  ;;  %v12062_v25 = vmul.f32 %v17118_v5, %v11134_v39  ;;  %v11132_v10 = vmax.f32 %v8239_v27, 0.0  ;;  %v8536_v14 = vadd.f32 %v8535_v48, %v16048_v20  ;;  %v8537_v37 = vpop.f32.mrb[75].mxu0  ;;  %13190 = vmatmul.mubr.msk.f32.gmra.mrb[180].mxu0 %vm6636_vm3, %v17123_v56  ;;  %v17304_v5 = vrot.slane %v17282_v51, %v16030_v18 }
 0x3d9   :  { %12551 = vst [vmem:[#allocation5 + $0xdf8] sm:$0xff] %v11991_v42  ;;  %v12063_v41 = vmul.f32 %v17131_v59, %v11135_v50  ;;  %v11133_v43 = vmax.f32 %v8241_v16, 0.0  ;;  %v8538_v2 = vadd.f32 %v8537_v37, %v16048_v20  ;;  %v8422_v12 = vpop.f32.mrb[74].mxu1  ;;  %9925 = vmatprep.mubr.f32.mxu0 %v18375_v44 }
 0x3da   :  { %12622 = vst [vmem:[#allocation5 + $0x1030] sm:$0xff] %v12062_v25  ;;  %v12060_v61 = vmul.f32 %v17138_v57, %v11132_v10  ;;  %v10648_v22 = vmax.f32 %v8536_v14, 0.0  ;;  %v8423_v0 = vadd.f32 %v8422_v12, %v16048_v20  ;;  %v8424_v59 = vpop.f32.mrb[75].mxu1  ;;  %13182 = vmatmul.mubr.msk.f32.gmra.mrb[180].mxu1 %vm6636_vm3, %v17123_v56  ;;  %v17319_v57 = vrot.slane %v16968_v30, %v16388_v29 }
 0x3db   :  { %12623 = vst [vmem:[#allocation5 + $0x1038] sm:$0xff] %v12063_v41  ;;  %v12061_v9 = vmul.f32 %v17146_v13, %v11133_v43  ;;  %v10649_v19 = vmax.f32 %v8538_v2, 0.0  ;;  %v8541_v45 = vpop.f32.mrb[76].mxu0  ;;  %v8425_v47 = vadd.f32 %v8424_v59, %v16048_v20  ;;  %9812 = vmatprep.mubr.f32.mxu1 %v18375_v44 }
 0x3dc   :  { %12620 = vst [vmem:[#allocation5 + $0x1020] sm:$0xff] %v12060_v61  ;;  %v11576_v58 = vmul.f32 %v17296_v11, %v10648_v22  ;;  %v10646_v35 = vmax.f32 %v8423_v0, 0.0  ;;  %v8542_v62 = vadd.f32 %v8541_v45, %v16069_v23  ;;  %v8543_v32 = vpop.f32.mrb[77].mxu0  ;;  %13191 = vmatmul.mubr.msk.f32.gmra.mrb[182].mxu0 %vm6636_vm3, %v17154_v26 }
 0x3dd   :  { %12621 = vst [vmem:[#allocation5 + $0x1028] sm:$0xff] %v12061_v9  ;;  %v11577_v13 = vmul.f32 %v17304_v5, %v10649_v19  ;;  %v10647_v3 = vmax.f32 %v8425_v47, 0.0  ;;  %v8544_v33 = vadd.f32 %v8543_v32, %v16069_v23  ;;  %v8428_v30 = vpop.f32.mrb[76].mxu1  ;;  %9931 = vmatprep.mubr.f32.mxu0 %v18375_v44 }
 0x3de   :  { %12136 = vst [vmem:[#allocation5 + $0x100] sm:$0xff] %v11576_v58  ;;  %v11574_v8 = vmul.f32 %v17311_v49, %v10646_v35  ;;  %v10718_v4 = vmax.f32 %v8542_v62, 0.0  ;;  %v8429_v39 = vadd.f32 %v8428_v30, %v16069_v23  ;;  %v8430_v27 = vpop.f32.mrb[77].mxu1  ;;  %13183 = vmatmul.mubr.msk.f32.gmra.mrb[182].mxu1 %vm6636_vm3, %v17154_v26 }
 0x3df   :  { %12137 = vst [vmem:[#allocation5 + $0x108] sm:$0xff] %v11577_v13  ;;  %v11575_v15 = vmul.f32 %v17319_v57, %v10647_v3  ;;  %v10719_v42 = vmax.f32 %v8544_v33, 0.0  ;;  %v8547_v50 = vpop.f32.mrb[78].mxu0  ;;  %v8431_v48 = vadd.f32 %v8430_v27, %v16069_v23  ;;  %9818 = vmatprep.mubr.f32.mxu1 %v18375_v44 }
 0x3e0   :  { %12134 = vst [vmem:[#allocation5 + $0xf0] sm:$0xff] %v11574_v8  ;;  %v11646_v16 = vmul.f32 %v17296_v11, %v10718_v4  ;;  %v10716_v25 = vmax.f32 %v8429_v39, 0.0  ;;  %v8548_v10 = vadd.f32 %v8547_v50, %v16086_v7  ;;  %v8549_v14 = vpop.f32.mrb[79].mxu0  ;;  %13192 = vmatmul.mubr.msk.f32.gmra.mrb[184].mxu0 %vm6636_vm3, %v17173_v53  ;;  %v18413_v4 = vld [vmem:[#allocation10_spill] sm:$0xff] }
 0x3e1   :  { %12135 = vst [vmem:[#allocation5 + $0xf8] sm:$0xff] %v11575_v15  ;;  %v11647_v37 = vmul.f32 %v17304_v5, %v10719_v42  ;;  %v10717_v41 = vmax.f32 %v8431_v48, 0.0  ;;  %v8550_v43 = vadd.f32 %v8549_v14, %v16086_v7  ;;  %v8434_v2 = vpop.f32.mrb[78].mxu1  ;;  %10115 = vmatprep.mubr.f32.mxu0 %v18375_v44  ;;  %v18414_v48 = vld [vmem:[#allocation39_spill] sm:$0xff] }
 0x3e2   :  { %12206 = vst [vmem:[#allocation5 + $0x330] sm:$0xff] %v11646_v16  ;;  %v11644_v12 = vmul.f32 %v17311_v49, %v10716_v25  ;;  %v10788_v61 = vmax.f32 %v8548_v10, 0.0  ;;  %v8435_v22 = vadd.f32 %v8434_v2, %v16086_v7  ;;  %v8436_v0 = vpop.f32.mrb[79].mxu1  ;;  %13184 = vmatmul.mubr.msk.f32.gmra.mrb[184].mxu1 %vm6636_vm3, %v17173_v53 }
 0x3e3   :  { %12207 = vst [vmem:[#allocation5 + $0x338] sm:$0xff] %v11647_v37  ;;  %v11645_v59 = vmul.f32 %v17319_v57, %v10717_v41  ;;  %v10789_v9 = vmax.f32 %v8550_v43, 0.0  ;;  %v8553_v19 = vpop.f32.mrb[80].mxu0  ;;  %v8437_v45 = vadd.f32 %v8436_v0, %v16086_v7  ;;  %10002 = vmatprep.mubr.f32.mxu1 %v18375_v44  ;;  %v18415_v37 = vld [vmem:[#allocation43_spill] sm:$0xff] }
 0x3e4   :  { %12204 = vst [vmem:[#allocation5 + $0x320] sm:$0xff] %v11644_v12  ;;  %v11716_v47 = vmul.f32 %v17296_v11, %v10788_v61  ;;  %v10786_v58 = vmax.f32 %v8435_v22, 0.0  ;;  %v8554_v35 = vadd.f32 %v8553_v19, %v16101_v55  ;;  %v8555_v62 = vpop.f32.mrb[81].mxu0  ;;  %13201 = vmatmul.mubr.msk.f32.vlgmr.msra.gmra.mrb[186].mxu0 %vm6636_vm3, %v17192_v52  ;;  %v18416_v12 = vld [vmem:[#allocation8_spill] sm:$0xff] }
 0x3e5   :  { %12205 = vst [vmem:[#allocation5 + $0x328] sm:$0xff] %v11645_v59  ;;  %v11717_v32 = vmul.f32 %v17304_v5, %v10789_v9  ;;  %v10787_v13 = vmax.f32 %v8437_v45, 0.0  ;;  %v8556_v3 = vadd.f32 %v8555_v62, %v16101_v55  ;;  %13640 = vmatpush1.bf16.msra.mxu0 %v16097_v63  ;;  %v8440_v33 = vpop.f32.mrb[80].mxu1  ;;  %10121 = vmatprep.mubr.f32.mxu0 %v18375_v44  ;;  %v18417_v59 = vld [vmem:[#allocation12_spill] sm:$0xff]  ;;  %v18418_v62 = vld [vmem:[#allocation42_spill] sm:$0xff] }
 0x3e6   :  { %12276 = vst [vmem:[#allocation5 + $0x560] sm:$0xff] %v11716_v47  ;;  %v11714_v30 = vmul.f32 %v17311_v49, %v10786_v58  ;;  %v10858_v8 = vmax.f32 %v8554_v35, 0.0  ;;  %13642 = vmatprep.subr.bf16.mxu0 %v18413_v4  ;;  %v8441_v39 = vadd.f32 %v8440_v33, %v16101_v55  ;;  %v8442_v27 = vpop.f32.mrb[81].mxu1  ;;  %13193 = vmatmul.mubr.msk.f32.vlgmr.msra.gmra.mrb[186].mxu1 %vm6636_vm3, %v17192_v52 }
 0x3e7   :  { %12277 = vst [vmem:[#allocation5 + $0x568] sm:$0xff] %v11717_v32  ;;  %v11715_v15 = vmul.f32 %v17319_v57, %v10787_v13  ;;  %v10859_v42 = vmax.f32 %v8556_v3, 0.0  ;;  %v8559_v63 = vpop.f32.mrb[82].mxu0  ;;  %v8443_v50 = vadd.f32 %v8442_v27, %v16101_v55  ;;  %13632 = vmatpush1.bf16.msra.mxu1 %v18414_v48  ;;  %10008 = vmatprep.mubr.f32.mxu1 %v18375_v44 }
 0x3e8   :  { %12274 = vst [vmem:[#allocation5 + $0x550] sm:$0xff] %v11714_v30  ;;  %v11786_v16 = vmul.f32 %v17296_v11, %v10858_v8  ;;  %v10856_v25 = vmax.f32 %v8441_v39, 0.0  ;;  %v8560_v10 = vadd.f32 %v8559_v63, %v16120_v31  ;;  %v8561_v14 = vpop.f32.mrb[83].mxu0  ;;  %13202 = vmatmul.mubr.msk.f32.gmra.mrb[188].mxu0 %vm6636_vm3, %v17214_v17  ;;  %13634 = vmatprep.subr.bf16.mxu1 %v18415_v37  ;;  %v18419_v30 = vld [vmem:[#allocation47_spill] sm:$0xff] }
 0x3e9   :  { %12275 = vst [vmem:[#allocation5 + $0x558] sm:$0xff] %v11715_v15  ;;  %v11787_v41 = vmul.f32 %v17304_v5, %v10859_v42  ;;  %v10857_v43 = vmax.f32 %v8443_v50, 0.0  ;;  %v8562_v2 = vadd.f32 %v8561_v14, %v16120_v31  ;;  %13644 = vmatpush1.bf16.msra.mxu0 %v18416_v12  ;;  %v8446_v61 = vpop.f32.mrb[82].mxu1  ;;  %10127 = vmatprep.mubr.f32.mxu0 %v18375_v44 }
 0x3ea   :  { %12346 = vst [vmem:[#allocation5 + $0x790] sm:$0xff] %v11786_v16  ;;  %v11784_v22 = vmul.f32 %v17311_v49, %v10856_v25  ;;  %v10928_v0 = vmax.f32 %v8560_v10, 0.0  ;;  %13654 = vmatprep.subr.bf16.mxu0 %v18417_v59  ;;  %v8447_v9 = vadd.f32 %v8446_v61, %v16120_v31  ;;  %v8448_v19 = vpop.f32.mrb[83].mxu1  ;;  %13194 = vmatmul.mubr.msk.f32.gmra.mrb[188].mxu1 %vm6636_vm3, %v17214_v17 }
 0x3eb   :  { %12347 = vst [vmem:[#allocation5 + $0x798] sm:$0xff] %v11787_v41  ;;  %v11785_v45 = vmul.f32 %v17319_v57, %v10857_v43  ;;  %v10929_v47 = vmax.f32 %v8562_v2, 0.0  ;;  %v8565_v58 = vpop.f32.mrb[84].mxu0  ;;  %v8449_v35 = vadd.f32 %v8448_v19, %v16120_v31  ;;  %13636 = vmatpush1.bf16.msra.mxu1 %v18418_v62  ;;  %10014 = vmatprep.mubr.f32.mxu1 %v18375_v44 }
 0x3ec   :  { %12344 = vst [vmem:[#allocation5 + $0x780] sm:$0xff] %v11784_v22  ;;  %v11856_v32 = vmul.f32 %v17296_v11, %v10928_v0  ;;  %v10926_v13 = vmax.f32 %v8447_v9, 0.0  ;;  %v8566_v3 = vadd.f32 %v8565_v58, %v16139_v46  ;;  %v8567_v33 = vpop.f32.mrb[85].mxu0  ;;  %13203 = vmatmul.mubr.msk.f32.gmra.mrb[190].mxu0 %vm6636_vm3, %v17237_v6  ;;  %13646 = vmatprep.subr.bf16.mxu1 %v18419_v30 }
 0x3ed   :  { %12345 = vst [vmem:[#allocation5 + $0x788] sm:$0xff] %v11785_v45  ;;  %v11857_v8 = vmul.f32 %v17304_v5, %v10929_v47  ;;  %v10927_v4 = vmax.f32 %v8449_v35, 0.0  ;;  %v8568_v39 = vadd.f32 %v8567_v33, %v16139_v46  ;;  %v8452_v27 = vpop.f32.mrb[84].mxu1  ;;  %10133 = vmatprep.mubr.f32.mxu0 %v18375_v44 }
 0x3ee   :  { %12416 = vst [vmem:[#allocation5 + $0x9c0] sm:$0xff] %v11856_v32  ;;  %v11854_v15 = vmul.f32 %v17311_v49, %v10926_v13  ;;  %v10998_v42 = vmax.f32 %v8566_v3, 0.0  ;;  %v8453_v63 = vadd.f32 %v8452_v27, %v16139_v46  ;;  %v8454_v50 = vpop.f32.mrb[85].mxu1  ;;  %13195 = vmatmul.mubr.msk.f32.gmra.mrb[190].mxu1 %vm6636_vm3, %v17237_v6 }
 0x3ef   :  { %12417 = vst [vmem:[#allocation5 + $0x9c8] sm:$0xff] %v11857_v8  ;;  %v11855_v48 = vmul.f32 %v17319_v57, %v10927_v4  ;;  %v10999_v16 = vmax.f32 %v8568_v39, 0.0  ;;  %v8571_v25 = vpop.f32.mrb[86].mxu0  ;;  %v8455_v10 = vadd.f32 %v8454_v50, %v16139_v46  ;;  %10020 = vmatprep.mubr.f32.mxu1 %v18375_v44 }
 0x3f0   :  { %12414 = vst [vmem:[#allocation5 + $0x9b0] sm:$0xff] %v11854_v15  ;;  %v11926_v14 = vmul.f32 %v17296_v11, %v10998_v42  ;;  %v10996_v37 = vmax.f32 %v8453_v63, 0.0  ;;  %v8572_v41 = vadd.f32 %v8571_v25, %v16158_v24  ;;  %v8573_v43 = vpop.f32.mrb[87].mxu0  ;;  %13204 = vmatmul.mubr.msk.f32.gmra.mrb[192].mxu0 %vm6636_vm3, %v17257_v1 }
 0x3f1   :  { %12415 = vst [vmem:[#allocation5 + $0x9b8] sm:$0xff] %v11855_v48  ;;  %v11927_v2 = vmul.f32 %v17304_v5, %v10999_v16  ;;  %v10997_v12 = vmax.f32 %v8455_v10, 0.0  ;;  %v8574_v61 = vadd.f32 %v8573_v43, %v16158_v24  ;;  %v8458_v22 = vpop.f32.mrb[86].mxu1  ;;  %10139 = vmatprep.mubr.f32.mxu0 %v18375_v44 }
 0x3f2   :  { %12486 = vst [vmem:[#allocation5 + $0xbf0] sm:$0xff] %v11926_v14  ;;  %v11924_v0 = vmul.f32 %v17311_v49, %v10996_v37  ;;  %v11068_v59 = vmax.f32 %v8572_v41, 0.0  ;;  %v8459_v9 = vadd.f32 %v8458_v22, %v16158_v24  ;;  %v8460_v19 = vpop.f32.mrb[87].mxu1  ;;  %13196 = vmatmul.mubr.msk.f32.gmra.mrb[192].mxu1 %vm6636_vm3, %v17257_v1  ;;  %v17432_v37 = vrot.slane %v17282_v51, %v16174_v40 }
 0x3f3   :  { %12487 = vst [vmem:[#allocation5 + $0xbf8] sm:$0xff] %v11927_v2  ;;  %v11925_v45 = vmul.f32 %v17319_v57, %v10997_v12  ;;  %v11069_v47 = vmax.f32 %v8574_v61, 0.0  ;;  %v8577_v58 = vpop.f32.mrb[88].mxu0  ;;  %v8461_v35 = vadd.f32 %v8460_v19, %v16158_v24  ;;  %10026 = vmatprep.mubr.f32.mxu1 %v18375_v44 }
 0x3f4   :  { %12484 = vst [vmem:[#allocation5 + $0xbe0] sm:$0xff] %v11924_v0  ;;  %v11996_v62 = vmul.f32 %v17296_v11, %v11068_v59  ;;  %v11066_v32 = vmax.f32 %v8459_v9, 0.0  ;;  %v8578_v13 = vadd.f32 %v8577_v58, %v16176_v34  ;;  %v8579_v3 = vpop.f32.mrb[89].mxu0  ;;  %13205 = vmatmul.mubr.msk.f32.gmra.mrb[194].mxu0 %vm6636_vm3, %v17276_v36  ;;  %v17447_v9 = vrot.slane %v17282_v51, %v16201_v60 }
 0x3f5   :  { %12485 = vst [vmem:[#allocation5 + $0xbe8] sm:$0xff] %v11925_v45  ;;  %v11997_v33 = vmul.f32 %v17304_v5, %v11069_v47  ;;  %v11067_v30 = vmax.f32 %v8461_v35, 0.0  ;;  %v8580_v8 = vadd.f32 %v8579_v3, %v16176_v34  ;;  %v8464_v4 = vpop.f32.mrb[88].mxu1  ;;  %10145 = vmatprep.mubr.f32.mxu0 %v18375_v44 }
 0x3f6   :  { %12556 = vst [vmem:[#allocation5 + $0xe20] sm:$0xff] %v11996_v62  ;;  %v11994_v39 = vmul.f32 %v17311_v49, %v11066_v32  ;;  %v11138_v27 = vmax.f32 %v8578_v13, 0.0  ;;  %v8465_v15 = vadd.f32 %v8464_v4, %v16176_v34  ;;  %v8466_v42 = vpop.f32.mrb[89].mxu1  ;;  %13197 = vmatmul.mubr.msk.f32.gmra.mrb[194].mxu1 %vm6636_vm3, %v17276_v36 }
 0x3f7   :  { %12557 = vst [vmem:[#allocation5 + $0xe28] sm:$0xff] %v11997_v33  ;;  %v11995_v63 = vmul.f32 %v17319_v57, %v11067_v30  ;;  %v11139_v50 = vmax.f32 %v8580_v8, 0.0  ;;  %v8761_v48 = vpop.f32.mrb[90].mxu0  ;;  %v8467_v16 = vadd.f32 %v8466_v42, %v16176_v34  ;;  %10032 = vmatprep.mubr.f32.mxu1 %v18375_v44 }
 0x3f8   :  { %12554 = vst [vmem:[#allocation5 + $0xe10] sm:$0xff] %v11994_v39  ;;  %v12066_v25 = vmul.f32 %v17296_v11, %v11138_v27  ;;  %v11136_v10 = vmax.f32 %v8465_v15, 0.0  ;;  %v8762_v14 = vadd.f32 %v8761_v48, %v16048_v20  ;;  %v8763_v41 = vpop.f32.mrb[91].mxu0  ;;  %13206 = vmatmul.mubr.msk.f32.gmra.mrb[196].mxu0 %vm6636_vm3, %v17123_v56  ;;  %v17440_v11 = vrot.slane %v17282_v51, %v16180_v54 }
 0x3f9   :  { %12555 = vst [vmem:[#allocation5 + $0xe18] sm:$0xff] %v11995_v63  ;;  %v12067_v43 = vmul.f32 %v17304_v5, %v11139_v50  ;;  %v11137_v2 = vmax.f32 %v8467_v16, 0.0  ;;  %v8764_v12 = vadd.f32 %v8763_v41, %v16048_v20  ;;  %v8648_v61 = vpop.f32.mrb[90].mxu1  ;;  %10151 = vmatprep.mubr.f32.mxu0 %v18375_v44 }
 0x3fa   :  { %12626 = vst [vmem:[#allocation5 + $0x1050] sm:$0xff] %v12066_v25  ;;  %v12064_v22 = vmul.f32 %v17311_v49, %v11136_v10  ;;  %v10652_v0 = vmax.f32 %v8762_v14, 0.0  ;;  %v8649_v59 = vadd.f32 %v8648_v61, %v16048_v20  ;;  %v8650_v5 = vpop.f32.mrb[91].mxu1  ;;  %13198 = vmatmul.mubr.msk.f32.gmra.mrb[196].mxu1 %vm6636_vm3, %v17123_v56  ;;  %v17455_v49 = vrot.slane %v17282_v51, %v16210_v28 }
 0x3fb   :  { %12627 = vst [vmem:[#allocation5 + $0x1058] sm:$0xff] %v12067_v43  ;;  %v12065_v19 = vmul.f32 %v17319_v57, %v11137_v2  ;;  %v10653_v45 = vmax.f32 %v8764_v12, 0.0  ;;  %v8767_v47 = vpop.f32.mrb[92].mxu0  ;;  %v8651_v58 = vadd.f32 %v8650_v5, %v16048_v20  ;;  %10038 = vmatprep.mubr.f32.mxu1 %v18375_v44 }
 0x3fc   :  { %12624 = vst [vmem:[#allocation5 + $0x1040] sm:$0xff] %v12064_v22  ;;  %v11580_v35 = vmul.f32 %v17432_v37, %v10652_v0  ;;  %v10650_v62 = vmax.f32 %v8649_v59, 0.0  ;;  %v8768_v32 = vadd.f32 %v8767_v47, %v16069_v23  ;;  %v8769_v56 = vpop.f32.mrb[93].mxu0  ;;  %13207 = vmatmul.mubr.msk.f32.gmra.mrb[198].mxu0 %vm6636_vm3, %v17154_v26 }
 0x3fd   :  { %12625 = vst [vmem:[#allocation5 + $0x1048] sm:$0xff] %v12065_v19  ;;  %v11581_v57 = vmul.f32 %v17440_v11, %v10653_v45  ;;  %v10651_v13 = vmax.f32 %v8651_v58, 0.0  ;;  %v8770_v3 = vadd.f32 %v8769_v56, %v16069_v23  ;;  %v8654_v33 = vpop.f32.mrb[92].mxu1  ;;  %10157 = vmatprep.mubr.f32.mxu0 %v18375_v44 }
 0x3fe   :  { %12140 = vst [vmem:[#allocation5 + $0x120] sm:$0xff] %v11580_v35  ;;  %v11578_v30 = vmul.f32 %v17447_v9, %v10650_v62  ;;  %v10722_v8 = vmax.f32 %v8768_v32, 0.0  ;;  %v8655_v4 = vadd.f32 %v8654_v33, %v16069_v23  ;;  %v8656_v39 = vpop.f32.mrb[93].mxu1  ;;  %13199 = vmatmul.mubr.msk.f32.gmra.mrb[198].mxu1 %vm6636_vm3, %v17154_v26  ;;  %v18420_v32 = vld [vmem:[#allocation9_spill] sm:$0xff] }
 0x3ff   :  { %12141 = vst [vmem:[#allocation5 + $0x128] sm:$0xff] %v11581_v57  ;;  %v11579_v27 = vmul.f32 %v17455_v49, %v10651_v13  ;;  %v10723_v15 = vmax.f32 %v8770_v3, 0.0  ;;  %v8773_v42 = vpop.f32.mrb[94].mxu0  ;;  %v8657_v63 = vadd.f32 %v8656_v39, %v16069_v23  ;;  %10044 = vmatprep.mubr.f32.mxu1 %v18375_v44  ;;  %v18421_v3 = vld [vmem:[#allocation55_spill] sm:$0xff] }
 0x400   :  { %12138 = vst [vmem:[#allocation5 + $0x110] sm:$0xff] %v11578_v30  ;;  %v11650_v50 = vmul.f32 %v17432_v37, %v10722_v8  ;;  %v10720_v48 = vmax.f32 %v8655_v4, 0.0  ;;  %v8774_v16 = vadd.f32 %v8773_v42, %v16086_v7  ;;  %v8775_v25 = vpop.f32.mrb[95].mxu0  ;;  %13208 = vmatmul.mubr.msk.f32.gmra.mrb[200].mxu0 %vm6636_vm3, %v17173_v53 }
 0x401   :  { %12139 = vst [vmem:[#allocation5 + $0x118] sm:$0xff] %v11579_v27  ;;  %v11651_v26 = vmul.f32 %v17440_v11, %v10723_v15  ;;  %v10721_v10 = vmax.f32 %v8657_v63, 0.0  ;;  %v8776_v14 = vadd.f32 %v8775_v25, %v16086_v7  ;;  %v8660_v41 = vpop.f32.mrb[94].mxu1  ;;  %10341 = vmatprep.mubr.f32.mxu0 %v18375_v44  ;;  %v18422_v15 = vld [vmem:[#allocation46_spill] sm:$0xff] }
 0x402   :  { %12210 = vst [vmem:[#allocation5 + $0x350] sm:$0xff] %v11650_v50  ;;  %v11648_v43 = vmul.f32 %v17447_v9, %v10720_v48  ;;  %v10792_v2 = vmax.f32 %v8774_v16, 0.0  ;;  %v8661_v12 = vadd.f32 %v8660_v41, %v16086_v7  ;;  %v8662_v61 = vpop.f32.mrb[95].mxu1  ;;  %13200 = vmatmul.mubr.msk.f32.gmra.mrb[200].mxu1 %vm6636_vm3, %v17173_v53 }
 0x403   :  { %12211 = vst [vmem:[#allocation5 + $0x358] sm:$0xff] %v11651_v26  ;;  %v11649_v22 = vmul.f32 %v17455_v49, %v10721_v10  ;;  %v10793_v0 = vmax.f32 %v8776_v14, 0.0  ;;  %v8779_v59 = vpop.f32.mrb[96].mxu0  ;;  %v8663_v5 = vadd.f32 %v8662_v61, %v16086_v7  ;;  %10228 = vmatprep.mubr.f32.mxu1 %v18375_v44  ;;  %v18424_v10 = vld [vmem:[#allocation54_spill] sm:$0xff] }
 0x404   :  { %12208 = vst [vmem:[#allocation5 + $0x340] sm:$0xff] %v11648_v43  ;;  %v11720_v19 = vmul.f32 %v17432_v37, %v10792_v2  ;;  %v10790_v45 = vmax.f32 %v8661_v12, 0.0  ;;  %v8780_v47 = vadd.f32 %v8779_v59, %v16101_v55  ;;  %v8781_v58 = vpop.f32.mrb[97].mxu0  ;;  %13217 = vmatmul.mubr.msk.f32.vlgmr.msra.gmra.mrb[202].mxu0 %vm6636_vm3, %v17192_v52 }
 0x405   :  { %12209 = vst [vmem:[#allocation5 + $0x348] sm:$0xff] %v11649_v22  ;;  %v11721_v53 = vmul.f32 %v17440_v11, %v10793_v0  ;;  %v10791_v35 = vmax.f32 %v8663_v5, 0.0  ;;  %v8782_v62 = vadd.f32 %v8781_v58, %v16101_v55  ;;  %13656 = vmatpush1.bf16.msra.mxu0 %v18420_v32  ;;  %v8666_v56 = vpop.f32.mrb[96].mxu1  ;;  %10347 = vmatprep.mubr.f32.mxu0 %v18375_v44  ;;  %v18425_v5 = vld [vmem:[#allocation50_spill] sm:$0xff] }
 0x406   :  { %12280 = vst [vmem:[#allocation5 + $0x580] sm:$0xff] %v11720_v19  ;;  %v11718_v57 = vmul.f32 %v17447_v9, %v10790_v45  ;;  %v10862_v13 = vmax.f32 %v8780_v47, 0.0  ;;  %13658 = vmatprep.subr.bf16.mxu0 %v18421_v3  ;;  %v8667_v33 = vadd.f32 %v8666_v56, %v16101_v55  ;;  %v8668_v30 = vpop.f32.mrb[97].mxu1  ;;  %13209 = vmatmul.mubr.msk.f32.vlgmr.msra.gmra.mrb[202].mxu1 %vm6636_vm3, %v17192_v52  ;;  %v18423_v52 = vld [vmem:[#allocation51_spill] sm:$0xff] }
 0x407   :  { %12281 = vst [vmem:[#allocation5 + $0x588] sm:$0xff] %v11721_v53  ;;  %v11719_v8 = vmul.f32 %v17455_v49, %v10791_v35  ;;  %v10863_v4 = vmax.f32 %v8782_v62, 0.0  ;;  %v8785_v39 = vpop.f32.mrb[98].mxu0  ;;  %v8669_v27 = vadd.f32 %v8668_v30, %v16101_v55  ;;  %13648 = vmatpush1.bf16.msra.mxu1 %v18422_v15  ;;  %10234 = vmatprep.mubr.f32.mxu1 %v18375_v44 }
 0x408   :  { %12278 = vst [vmem:[#allocation5 + $0x570] sm:$0xff] %v11718_v57  ;;  %v11790_v42 = vmul.f32 %v17432_v37, %v10862_v13  ;;  %v10860_v63 = vmax.f32 %v8667_v33, 0.0  ;;  %v8786_v50 = vadd.f32 %v8785_v39, %v16120_v31  ;;  %v8787_v48 = vpop.f32.mrb[99].mxu0  ;;  %13218 = vmatmul.mubr.msk.f32.gmra.mrb[204].mxu0 %vm6636_vm3, %v17214_v17  ;;  %13650 = vmatprep.subr.bf16.mxu1 %v18423_v52 }
 0x409   :  { %12279 = vst [vmem:[#allocation5 + $0x578] sm:$0xff] %v11719_v8  ;;  %v11791_v16 = vmul.f32 %v17440_v11, %v10863_v4  ;;  %v10861_v25 = vmax.f32 %v8669_v27, 0.0  ;;  %v8788_v26 = vadd.f32 %v8787_v48, %v16120_v31  ;;  %13660 = vmatpush1.bf16.msra.mxu0 %v18424_v10  ;;  %v8672_v14 = vpop.f32.mrb[98].mxu1  ;;  %10353 = vmatprep.mubr.f32.mxu0 %v18375_v44 }
 0x40a   :  { %12350 = vst [vmem:[#allocation5 + $0x7b0] sm:$0xff] %v11790_v42  ;;  %v11788_v41 = vmul.f32 %v17447_v9, %v10860_v63  ;;  %v10932_v43 = vmax.f32 %v8786_v50, 0.0  ;;  %v8673_v2 = vadd.f32 %v8672_v14, %v16120_v31  ;;  %v8674_v12 = vpop.f32.mrb[99].mxu1  ;;  %13210 = vmatmul.mubr.msk.f32.gmra.mrb[204].mxu1 %vm6636_vm3, %v17214_v17 }
 0x40b   :  { %12351 = vst [vmem:[#allocation5 + $0x7b8] sm:$0xff] %v11791_v16  ;;  %v11789_v61 = vmul.f32 %v17455_v49, %v10861_v25  ;;  %v10933_v22 = vmax.f32 %v8788_v26, 0.0  ;;  %v8791_v0 = vpop.f32.mrb[100].mxu0  ;;  %v8675_v59 = vadd.f32 %v8674_v12, %v16120_v31  ;;  %13652 = vmatpush1.bf16.msra.mxu1 %v18425_v5  ;;  %10240 = vmatprep.mubr.f32.mxu1 %v18375_v44  ;;  %v17554_v5 = vld [vmem:[#allocation2 + $0x28] sm:$0xff] }
 0x40c   :  { %12348 = vst [vmem:[#allocation5 + $0x7a0] sm:$0xff] %v11788_v41  ;;  %v11860_v19 = vmul.f32 %v17432_v37, %v10932_v43  ;;  %v10930_v45 = vmax.f32 %v8673_v2, 0.0  ;;  %v8792_v47 = vadd.f32 %v8791_v0, %v16139_v46  ;;  %v8793_v58 = vpop.f32.mrb[101].mxu0  ;;  %13219 = vmatmul.mubr.msk.f32.gmra.mrb[206].mxu0 %vm6636_vm3, %v17237_v6 }
 0x40d   :  { %12349 = vst [vmem:[#allocation5 + $0x7a8] sm:$0xff] %v11789_v61  ;;  %v11861_v17 = vmul.f32 %v17440_v11, %v10933_v22  ;;  %v10931_v53 = vmax.f32 %v8675_v59, 0.0  ;;  %v8794_v35 = vadd.f32 %v8793_v58, %v16139_v46  ;;  %v8678_v62 = vpop.f32.mrb[100].mxu1  ;;  %10359 = vmatprep.mubr.f32.mxu0 %v18375_v44 }
 0x40e   :  { %12420 = vst [vmem:[#allocation5 + $0x9e0] sm:$0xff] %v11860_v19  ;;  %v11858_v32 = vmul.f32 %v17447_v9, %v10930_v45  ;;  %v11002_v56 = vmax.f32 %v8792_v47, 0.0  ;;  %v8679_v57 = vadd.f32 %v8678_v62, %v16139_v46  ;;  %v8680_v13 = vpop.f32.mrb[101].mxu1  ;;  %13211 = vmatmul.mubr.msk.f32.gmra.mrb[206].mxu1 %vm6636_vm3, %v17237_v6 }
 0x40f   :  { %12421 = vst [vmem:[#allocation5 + $0x9e8] sm:$0xff] %v11861_v17  ;;  %v11859_v3 = vmul.f32 %v17455_v49, %v10931_v53  ;;  %v11003_v33 = vmax.f32 %v8794_v35, 0.0  ;;  %v8797_v30 = vpop.f32.mrb[102].mxu0  ;;  %v8681_v8 = vadd.f32 %v8680_v13, %v16139_v46  ;;  %10246 = vmatprep.mubr.f32.mxu1 %v18375_v44  ;;  %v17568_v13 = vrot.slane %v17554_v5, %v16023_v21 }
 0x410   :  { %12418 = vst [vmem:[#allocation5 + $0x9d0] sm:$0xff] %v11858_v32  ;;  %v11930_v4 = vmul.f32 %v17432_v37, %v11002_v56  ;;  %v11000_v39 = vmax.f32 %v8679_v57, 0.0  ;;  %v8798_v27 = vadd.f32 %v8797_v30, %v16158_v24  ;;  %v8799_v15 = vpop.f32.mrb[103].mxu0  ;;  %13220 = vmatmul.mubr.msk.f32.gmra.mrb[208].mxu0 %vm6636_vm3, %v17257_v1 }
 0x411   :  { %12419 = vst [vmem:[#allocation5 + $0x9d8] sm:$0xff] %v11859_v3  ;;  %v11931_v6 = vmul.f32 %v17440_v11, %v11003_v33  ;;  %v11001_v42 = vmax.f32 %v8681_v8, 0.0  ;;  %v8800_v63 = vadd.f32 %v8799_v15, %v16158_v24  ;;  %v8684_v50 = vpop.f32.mrb[102].mxu1  ;;  %10365 = vmatprep.mubr.f32.mxu0 %v18375_v44  ;;  %v17573_v3 = vld [vmem:[%s18316_s6 + $0x28] sm:$0xff]  ;;  %v17581_v8 = vrot.slane %v17554_v5, %v16030_v18 }
 0x412   :  { %12490 = vst [vmem:[#allocation5 + $0xc10] sm:$0xff] %v11930_v4  ;;  %v11928_v48 = vmul.f32 %v17447_v9, %v11000_v39  ;;  %v11072_v52 = vmax.f32 %v8798_v27, 0.0  ;;  %v8685_v16 = vadd.f32 %v8684_v50, %v16158_v24  ;;  %v8686_v25 = vpop.f32.mrb[103].mxu1  ;;  %13212 = vmatmul.mubr.msk.f32.gmra.mrb[208].mxu1 %vm6636_vm3, %v17257_v1 }
 0x413   :  { %12491 = vst [vmem:[#allocation5 + $0xc18] sm:$0xff] %v11931_v6  ;;  %v11929_v26 = vmul.f32 %v17455_v49, %v11001_v42  ;;  %v11073_v10 = vmax.f32 %v8800_v63, 0.0  ;;  %v8803_v14 = vpop.f32.mrb[104].mxu0  ;;  %v8687_v41 = vadd.f32 %v8686_v25, %v16158_v24  ;;  %10252 = vmatprep.mubr.f32.mxu1 %v18375_v44  ;;  %v17588_v6 = vrot.slane %v17282_v51, %v16382_v38 }
 0x414   :  { %12488 = vst [vmem:[#allocation5 + $0xc00] sm:$0xff] %v11928_v48  ;;  %v12000_v43 = vmul.f32 %v17432_v37, %v11072_v52  ;;  %v11070_v2 = vmax.f32 %v8685_v16, 0.0  ;;  %v8804_v12 = vadd.f32 %v8803_v14, %v16176_v34  ;;  %v8805_v61 = vpop.f32.mrb[105].mxu0  ;;  %13221 = vmatmul.mubr.msk.f32.gmra.mrb[210].mxu0 %vm6636_vm3, %v17276_v36 }
 0x415   :  { %12489 = vst [vmem:[#allocation5 + $0xc08] sm:$0xff] %v11929_v26  ;;  %v12001_v1 = vmul.f32 %v17440_v11, %v11073_v10  ;;  %v11071_v22 = vmax.f32 %v8687_v41, 0.0  ;;  %v8806_v0 = vadd.f32 %v8805_v61, %v16176_v34  ;;  %v8690_v59 = vpop.f32.mrb[104].mxu1  ;;  %10371 = vmatprep.mubr.f32.mxu0 %v18375_v44 }
 0x416   :  { %12560 = vst [vmem:[#allocation5 + $0xe40] sm:$0xff] %v12000_v43  ;;  %v11998_v19 = vmul.f32 %v17447_v9, %v11070_v2  ;;  %v11142_v45 = vmax.f32 %v8804_v12, 0.0  ;;  %v8691_v47 = vadd.f32 %v8690_v59, %v16176_v34  ;;  %v8692_v58 = vpop.f32.mrb[105].mxu1  ;;  %13213 = vmatmul.mubr.msk.f32.gmra.mrb[210].mxu1 %vm6636_vm3, %v17276_v36 }
 0x417   :  { %12561 = vst [vmem:[#allocation5 + $0xe48] sm:$0xff] %v12001_v1  ;;  %v11999_v17 = vmul.f32 %v17455_v49, %v11071_v22  ;;  %v11143_v53 = vmax.f32 %v8806_v0, 0.0  ;;  %v8987_v35 = vpop.f32.mrb[106].mxu0  ;;  %v8693_v62 = vadd.f32 %v8692_v58, %v16176_v34  ;;  %10258 = vmatprep.mubr.f32.mxu1 %v18375_v44 }
 0x418   :  { %12558 = vst [vmem:[#allocation5 + $0xe30] sm:$0xff] %v11998_v19  ;;  %v12070_v32 = vmul.f32 %v17432_v37, %v11142_v45  ;;  %v11140_v56 = vmax.f32 %v8691_v47, 0.0  ;;  %v8988_v57 = vadd.f32 %v8987_v35, %v16048_v20  ;;  %v8989_v36 = vpop.f32.mrb[107].mxu0  ;;  %13222 = vmatmul.mubr.msk.f32.gmra.mrb[212].mxu0 %vm6636_vm3, %v17573_v3 }
 0x419   :  { %12559 = vst [vmem:[#allocation5 + $0xe38] sm:$0xff] %v11999_v17  ;;  %v12071_v33 = vmul.f32 %v17440_v11, %v11143_v53  ;;  %v11141_v37 = vmax.f32 %v8693_v62, 0.0  ;;  %v8990_v30 = vadd.f32 %v8989_v36, %v16048_v20  ;;  %v8874_v4 = vpop.f32.mrb[106].mxu1  ;;  %10377 = vmatprep.mubr.f32.mxu0 %v18375_v44  ;;  %v17623_v17 = vld [vmem:[%s18316_s6 + $0x38] sm:$0xff] }
 0x41a   :  { %12630 = vst [vmem:[#allocation5 + $0x1070] sm:$0xff] %v12070_v32  ;;  %v12068_v39 = vmul.f32 %v17447_v9, %v11140_v56  ;;  %v10656_v27 = vmax.f32 %v8988_v57, 0.0  ;;  %v8875_v15 = vadd.f32 %v8874_v4, %v16048_v20  ;;  %v8876_v11 = vpop.f32.mrb[107].mxu1  ;;  %13214 = vmatmul.mubr.msk.f32.gmra.mrb[212].mxu1 %vm6636_vm3, %v17573_v3  ;;  %v17596_v9 = vrot.slane %v17282_v51, %v16388_v29 }
 0x41b   :  { %12631 = vst [vmem:[#allocation5 + $0x1078] sm:$0xff] %v12071_v33  ;;  %v12069_v42 = vmul.f32 %v17455_v49, %v11141_v37  ;;  %v10657_v63 = vmax.f32 %v8990_v30, 0.0  ;;  %v8993_v50 = vpop.f32.mrb[108].mxu0  ;;  %v8877_v48 = vadd.f32 %v8876_v11, %v16048_v20  ;;  %10264 = vmatprep.mubr.f32.mxu1 %v18375_v44  ;;  %v17604_v49 = vld [vmem:[%s18316_s6 + $0x30] sm:$0xff] }
 0x41c   :  { %12628 = vst [vmem:[#allocation5 + $0x1060] sm:$0xff] %v12068_v39  ;;  %v11584_v52 = vmul.f32 %v17568_v13, %v10656_v27  ;;  %v10654_v16 = vmax.f32 %v8875_v15, 0.0  ;;  %v8994_v25 = vadd.f32 %v8993_v50, %v16069_v23  ;;  %v8995_v26 = vpop.f32.mrb[109].mxu0  ;;  %13223 = vmatmul.mubr.msk.f32.gmra.mrb[214].mxu0 %vm6636_vm3, %v17604_v49 }
 0x41d   :  { %12629 = vst [vmem:[#allocation5 + $0x1068] sm:$0xff] %v12069_v42  ;;  %v11585_v51 = vmul.f32 %v17581_v8, %v10657_v63  ;;  %v10655_v10 = vmax.f32 %v8877_v48, 0.0  ;;  %v8996_v14 = vadd.f32 %v8995_v26, %v16069_v23  ;;  %v8880_v41 = vpop.f32.mrb[108].mxu1  ;;  %10383 = vmatprep.mubr.f32.mxu0 %v18375_v44  ;;  %v13749_v63 = vld [vmem:[%s18316_s6] sm:$0xff] }
 0x41e   :  { %12144 = vst [vmem:[#allocation5 + $0x140] sm:$0xff] %v11584_v52  ;;  %v11582_v43 = vmul.f32 %v17588_v6, %v10654_v16  ;;  %v10726_v2 = vmax.f32 %v8994_v25, 0.0  ;;  %v8881_v12 = vadd.f32 %v8880_v41, %v16069_v23  ;;  %v8882_v61 = vpop.f32.mrb[109].mxu1  ;;  %13215 = vmatmul.mubr.msk.f32.gmra.mrb[214].mxu1 %vm6636_vm3, %v17604_v49 }
 0x41f   :  { %12145 = vst [vmem:[#allocation5 + $0x148] sm:$0xff] %v11585_v51  ;;  %v11583_v1 = vmul.f32 %v17596_v9, %v10655_v10  ;;  %v10727_v22 = vmax.f32 %v8996_v14, 0.0  ;;  %v8999_v0 = vpop.f32.mrb[110].mxu0  ;;  %v8883_v59 = vadd.f32 %v8882_v61, %v16069_v23  ;;  %10270 = vmatprep.mubr.f32.mxu1 %v18375_v44 }
 0x420   :  { %12142 = vst [vmem:[#allocation5 + $0x130] sm:$0xff] %v11582_v43  ;;  %v11654_v19 = vmul.f32 %v17568_v13, %v10726_v2  ;;  %v10724_v45 = vmax.f32 %v8881_v12, 0.0  ;;  %v9000_v47 = vadd.f32 %v8999_v0, %v16086_v7  ;;  %v9001_v58 = vpop.f32.mrb[111].mxu0  ;;  %13224 = vmatmul.mubr.msk.f32.gmra.mrb[216].mxu0 %vm6636_vm3, %v17623_v17  ;;  %v13750_v0 = vld [vmem:[%s18316_s6 + $0x8] sm:$0xff] }
 0x421   :  { %12143 = vst [vmem:[#allocation5 + $0x138] sm:$0xff] %v11583_v1  ;;  %v11655_v53 = vmul.f32 %v17581_v8, %v10727_v22  ;;  %v10725_v35 = vmax.f32 %v8883_v59, 0.0  ;;  %v9002_v62 = vadd.f32 %v9001_v58, %v16086_v7  ;;  %v8886_v32 = vpop.f32.mrb[110].mxu1  ;;  %10567 = vmatprep.mubr.f32.mxu0 %v18375_v44 }
 0x422   :  { %12214 = vst [vmem:[#allocation5 + $0x370] sm:$0xff] %v11654_v19  ;;  %v11652_v56 = vmul.f32 %v17588_v6, %v10724_v45  ;;  %v10796_v57 = vmax.f32 %v9000_v47, 0.0  ;;  %v8887_v36 = vadd.f32 %v8886_v32, %v16086_v7  ;;  %v8888_v33 = vpop.f32.mrb[111].mxu1  ;;  %13216 = vmatmul.mubr.msk.f32.gmra.mrb[216].mxu1 %vm6636_vm3, %v17623_v17 }
 0x423   :  { %12215 = vst [vmem:[#allocation5 + $0x378] sm:$0xff] %v11655_v53  ;;  %v11653_v37 = vmul.f32 %v17596_v9, %v10725_v35  ;;  %v10797_v30 = vmax.f32 %v9002_v62, 0.0  ;;  %v9005_v4 = vpop.f32.mrb[112].mxu0  ;;  %v8889_v39 = vadd.f32 %v8888_v33, %v16086_v7  ;;  %10454 = vmatprep.mubr.f32.mxu1 %v18375_v44 }
 0x424   :  { %12212 = vst [vmem:[#allocation5 + $0x360] sm:$0xff] %v11652_v56  ;;  %v11724_v27 = vmul.f32 %v17568_v13, %v10796_v57  ;;  %v10794_v15 = vmax.f32 %v8887_v36, 0.0  ;;  %v9006_v11 = vadd.f32 %v9005_v4, %v16101_v55  ;;  %v9007_v42 = vpop.f32.mrb[113].mxu0  ;;  %13233 = vmatmul.mubr.msk.f32.vlgmr.msra.gmra.mrb[218].mxu0 %vm6636_vm3, %v13749_v63 }
 0x425   :  { %12213 = vst [vmem:[#allocation5 + $0x368] sm:$0xff] %v11653_v37  ;;  %v11725_v50 = vmul.f32 %v17581_v8, %v10797_v30  ;;  %v10795_v48 = vmax.f32 %v8889_v39, 0.0  ;;  %v9008_v52 = vadd.f32 %v9007_v42, %v16101_v55  ;;  %v8892_v16 = vpop.f32.mrb[112].mxu1  ;;  %10573 = vmatprep.mubr.f32.mxu0 %v18375_v44  ;;  %v13751_v39 = vld [vmem:[%s18316_s6 + $0x10] sm:$0xff] }
 0x426   :  { %12284 = vst [vmem:[#allocation5 + $0x5a0] sm:$0xff] %v11724_v27  ;;  %v11722_v25 = vmul.f32 %v17588_v6, %v10794_v15  ;;  %v10866_v26 = vmax.f32 %v9006_v11, 0.0  ;;  %v8893_v51 = vadd.f32 %v8892_v16, %v16101_v55  ;;  %v8894_v10 = vpop.f32.mrb[113].mxu1  ;;  %13225 = vmatmul.mubr.msk.f32.vlgmr.msra.gmra.mrb[218].mxu1 %vm6636_vm3, %v13749_v63 }
 0x427   :  { %12285 = vst [vmem:[#allocation5 + $0x5a8] sm:$0xff] %v11725_v50  ;;  %v11723_v14 = vmul.f32 %v17596_v9, %v10795_v48  ;;  %v10867_v41 = vmax.f32 %v9008_v52, 0.0  ;;  %v9011_v43 = vpop.f32.mrb[114].mxu0  ;;  %v8895_v2 = vadd.f32 %v8894_v10, %v16101_v55  ;;  %10460 = vmatprep.mubr.f32.mxu1 %v18375_v44 }
 0x428   :  { %12282 = vst [vmem:[#allocation5 + $0x590] sm:$0xff] %v11722_v25  ;;  %v11794_v12 = vmul.f32 %v17568_v13, %v10866_v26  ;;  %v10864_v61 = vmax.f32 %v8893_v51, 0.0  ;;  %v9012_v1 = vadd.f32 %v9011_v43, %v16120_v31  ;;  %v9013_v22 = vpop.f32.mrb[115].mxu0  ;;  %13234 = vmatmul.mubr.msk.f32.gmra.mrb[220].mxu0 %vm6636_vm3, %v13750_v0 }
 0x429   :  { %12283 = vst [vmem:[#allocation5 + $0x598] sm:$0xff] %v11723_v14  ;;  %v11795_v59 = vmul.f32 %v17581_v8, %v10867_v41  ;;  %v10865_v19 = vmax.f32 %v8895_v2, 0.0  ;;  %v9014_v45 = vadd.f32 %v9013_v22, %v16120_v31  ;;  %v8898_v47 = vpop.f32.mrb[114].mxu1  ;;  %10579 = vmatprep.mubr.f32.mxu0 %v18375_v44  ;;  %v13752_v2 = vld [vmem:[%s18316_s6 + $0x18] sm:$0xff] }
 0x42a   :  { %12354 = vst [vmem:[#allocation5 + $0x7d0] sm:$0xff] %v11794_v12  ;;  %v11792_v58 = vmul.f32 %v17588_v6, %v10864_v61  ;;  %v10936_v53 = vmax.f32 %v9012_v1, 0.0  ;;  %v8899_v35 = vadd.f32 %v8898_v47, %v16120_v31  ;;  %v8900_v62 = vpop.f32.mrb[115].mxu1  ;;  %13226 = vmatmul.mubr.msk.f32.gmra.mrb[220].mxu1 %vm6636_vm3, %v13750_v0 }
 0x42b   :  { %12355 = vst [vmem:[#allocation5 + $0x7d8] sm:$0xff] %v11795_v59  ;;  %v11793_v32 = vmul.f32 %v17596_v9, %v10865_v19  ;;  %v10937_v56 = vmax.f32 %v9014_v45, 0.0  ;;  %v9017_v57 = vpop.f32.mrb[116].mxu0  ;;  %v8901_v36 = vadd.f32 %v8900_v62, %v16120_v31  ;;  %10466 = vmatprep.mubr.f32.mxu1 %v18375_v44 }
 0x42c   :  { %12352 = vst [vmem:[#allocation5 + $0x7c0] sm:$0xff] %v11792_v58  ;;  %v11864_v33 = vmul.f32 %v17568_v13, %v10936_v53  ;;  %v10934_v37 = vmax.f32 %v8899_v35, 0.0  ;;  %v9018_v30 = vadd.f32 %v9017_v57, %v16139_v46  ;;  %v9019_v4 = vpop.f32.mrb[117].mxu0  ;;  %13235 = vmatmul.mubr.msk.f32.gmra.mrb[222].mxu0 %vm6636_vm3, %v13751_v39 }
 0x42d   :  { %12353 = vst [vmem:[#allocation5 + $0x7c8] sm:$0xff] %v11793_v32  ;;  %v11865_v27 = vmul.f32 %v17581_v8, %v10937_v56  ;;  %v10935_v15 = vmax.f32 %v8901_v36, 0.0  ;;  %v9020_v11 = vadd.f32 %v9019_v4, %v16139_v46  ;;  %v8904_v42 = vpop.f32.mrb[116].mxu1  ;;  %10585 = vmatprep.mubr.f32.mxu0 %v18375_v44  ;;  %v13753_v36 = vld [vmem:[%s18316_s6 + $0x20] sm:$0xff]  ;;  %s13805_s6 = smov [#allocation5]  }
 0x42e   :  { %12424 = vst [vmem:[#allocation5 + $0xa00] sm:$0xff] %v11864_v33  ;;  %v11862_v63 = vmul.f32 %v17588_v6, %v10934_v37  ;;  %v11006_v50 = vmax.f32 %v9018_v30, 0.0  ;;  %v8905_v48 = vadd.f32 %v8904_v42, %v16139_v46  ;;  %v8906_v52 = vpop.f32.mrb[117].mxu1  ;;  %13227 = vmatmul.mubr.msk.f32.gmra.mrb[222].mxu1 %vm6636_vm3, %v13751_v39  ;;  %s12669_s1 = sshll.u32 %s13805_s6, 4  ;;  %s12670_s1 = int_to_ptr.vmem [resolvable:$true] %s12669_s1 }
 0x42f   :  { %12425 = vst [vmem:[#allocation5 + $0xa08] sm:$0xff] %v11865_v27  ;;  %v11863_v16 = vmul.f32 %v17596_v9, %v10935_v15  ;;  %v11007_v25 = vmax.f32 %v9020_v11, 0.0  ;;  %v9023_v26 = vpop.f32.mrb[118].mxu0  ;;  %v8907_v51 = vadd.f32 %v8906_v52, %v16139_v46  ;;  %10472 = vmatprep.mubr.f32.mxu1 %v18375_v44  ;;  %s13776_s21 = scalar_lea.vmem %s12670_s1, 71680  ;;  %p13781_p9 = scmp.lt.s32.totalorder %s12670_s1, %s12670_s1 }
 0x430   :  { %12422 = vst [vmem:[#allocation5 + $0x9f0] sm:$0xff] %v11862_v63  ;;  %v11934_v10 = vmul.f32 %v17568_v13, %v11006_v50  ;;  %v11004_v14 = vmax.f32 %v8905_v48, 0.0  ;;  %v9024_v41 = vadd.f32 %v9023_v26, %v16158_v24  ;;  %v9025_v43 = vpop.f32.mrb[119].mxu0  ;;  %13236 = vmatmul.mubr.msk.f32.gmra.mrb[224].mxu0 %vm6636_vm3, %v13752_v2  ;;  %v17716_v26 = vrot.slane %v17554_v5, %v16174_v40  ;;  %p13777_p8 = scmp.ne.s32.totalorder %s12670_s1, %s13776_s21  ;;  %p13782_p10 = scmp.lt.s32.totalorder %s13776_s21, %s13776_s21 }
 0x431   :  { %12423 = vst [vmem:[#allocation5 + $0x9f8] sm:$0xff] %v11863_v16  ;;  %v11935_v12 = vmul.f32 %v17581_v8, %v11007_v25  ;;  %v11005_v61 = vmax.f32 %v8907_v51, 0.0  ;;  %v9026_v1 = vadd.f32 %v9025_v43, %v16158_v24  ;;  %v8910_v22 = vpop.f32.mrb[118].mxu1  ;;  %10591 = vmatprep.mubr.f32.mxu0 %v18375_v44 }
 0x432   :  { %12494 = vst [vmem:[#allocation5 + $0xc30] sm:$0xff] %v11934_v10  ;;  %v11932_v0 = vmul.f32 %v17588_v6, %v11004_v14  ;;  %v11076_v59 = vmax.f32 %v9024_v41, 0.0  ;;  %v8911_v19 = vadd.f32 %v8910_v22, %v16158_v24  ;;  %v8912_v45 = vpop.f32.mrb[119].mxu1  ;;  %13228 = vmatmul.mubr.msk.f32.gmra.mrb[224].mxu1 %vm6636_vm3, %v13752_v2  ;;  %p13783_p11 = por %p13782_p10, %p13781_p9 }
 0x433   :  { %12495 = vst [vmem:[#allocation5 + $0xc38] sm:$0xff] %v11935_v12  ;;  %v11933_v47 = vmul.f32 %v17596_v9, %v11005_v61  ;;  %v11077_v58 = vmax.f32 %v9026_v1, 0.0  ;;  %v9029_v53 = vpop.f32.mrb[120].mxu0  ;;  %v8913_v35 = vadd.f32 %v8912_v45, %v16158_v24  ;;  %10478 = vmatprep.mubr.f32.mxu1 %v18375_v44  ;;  %v17731_v1 = vrot.slane %v17554_v5, %v16201_v60 }
 0x434   :  { %12492 = vst [vmem:[#allocation5 + $0xc20] sm:$0xff] %v11932_v0  ;;  %v12004_v62 = vmul.f32 %v17568_v13, %v11076_v59  ;;  %v11074_v32 = vmax.f32 %v8911_v19, 0.0  ;;  %v9030_v56 = vadd.f32 %v9029_v53, %v16176_v34  ;;  %v9031_v57 = vpop.f32.mrb[121].mxu0  ;;  %13237 = vmatmul.mubr.msk.f32.gmra.mrb[226].mxu0 %vm6636_vm3, %v13753_v36  ;;  %p13784_p12 = pnand %p13783_p11, %p13777_p8 }
 0x435   :  { %12493 = vst [vmem:[#allocation5 + $0xc28] sm:$0xff] %v11933_v47  ;;  %v12005_v33 = vmul.f32 %v17581_v8, %v11077_v58  ;;  %v11075_v37 = vmax.f32 %v8913_v35, 0.0  ;;  %v9032_v30 = vadd.f32 %v9031_v57, %v16176_v34  ;;  %v8916_v4 = vpop.f32.mrb[120].mxu1  ;;  %10597 = vmatprep.mubr.f32.mxu0 %v18375_v44 }
 0x436   :  { %12564 = vst [vmem:[#allocation5 + $0xe60] sm:$0xff] %v12004_v62  ;;  %v12002_v39 = vmul.f32 %v17588_v6, %v11074_v32  ;;  %v11146_v27 = vmax.f32 %v9030_v56, 0.0  ;;  %v8917_v15 = vadd.f32 %v8916_v4, %v16176_v34  ;;  %v8918_v11 = vpop.f32.mrb[121].mxu1  ;;  %13229 = vmatmul.mubr.msk.f32.gmra.mrb[226].mxu1 %vm6636_vm3, %v13753_v36 }
 0x437   :  { %12565 = vst [vmem:[#allocation5 + $0xe68] sm:$0xff] %v12005_v33  ;;  %v12003_v42 = vmul.f32 %v17596_v9, %v11075_v37  ;;  %v11147_v63 = vmax.f32 %v9032_v30, 0.0  ;;  %v9213_v50 = vpop.f32.mrb[122].mxu0  ;;  %v8919_v48 = vadd.f32 %v8918_v11, %v16176_v34  ;;  %10484 = vmatprep.mubr.f32.mxu1 %v18375_v44 }
 0x438   :  { %12562 = vst [vmem:[#allocation5 + $0xe50] sm:$0xff] %v12002_v39  ;;  %v12074_v52 = vmul.f32 %v17568_v13, %v11146_v27  ;;  %v11144_v16 = vmax.f32 %v8917_v15, 0.0  ;;  %v9214_v25 = vadd.f32 %v9213_v50, %v16048_v20  ;;  %v9215_v51 = vpop.f32.mrb[123].mxu0  ;;  %13238 = vmatmul.mubr.msk.f32.gmra.mrb[228].mxu0 %vm6636_vm3, %v17573_v3  ;;  %v17724_v13 = vrot.slane %v17554_v5, %v16180_v54 }
 0x439   :  { %12563 = vst [vmem:[#allocation5 + $0xe58] sm:$0xff] %v12003_v42  ;;  %v12075_v10 = vmul.f32 %v17581_v8, %v11147_v63  ;;  %v11145_v14 = vmax.f32 %v8919_v48, 0.0  ;;  %v9216_v41 = vadd.f32 %v9215_v51, %v16048_v20  ;;  %v9100_v43 = vpop.f32.mrb[122].mxu1  ;;  %10603 = vmatprep.mubr.f32.mxu0 %v18375_v44 }
 0x43a   :  { %12634 = vst [vmem:[#allocation5 + $0x1090] sm:$0xff] %v12074_v52  ;;  %v12072_v2 = vmul.f32 %v17588_v6, %v11144_v16  ;;  %v10660_v12 = vmax.f32 %v9214_v25, 0.0  ;;  %v9101_v61 = vadd.f32 %v9100_v43, %v16048_v20  ;;  %v9102_v8 = vpop.f32.mrb[123].mxu1  ;;  %13230 = vmatmul.mubr.msk.f32.gmra.mrb[228].mxu1 %vm6636_vm3, %v17573_v3  ;;  %v17739_v6 = vrot.slane %v17554_v5, %v16210_v28 }
 0x43b   :  { %12635 = vst [vmem:[#allocation5 + $0x1098] sm:$0xff] %v12075_v10  ;;  %v12073_v22 = vmul.f32 %v17596_v9, %v11145_v14  ;;  %v10661_v0 = vmax.f32 %v9216_v41, 0.0  ;;  %v9219_v59 = vpop.f32.mrb[124].mxu0  ;;  %v9103_v19 = vadd.f32 %v9102_v8, %v16048_v20  ;;  %10490 = vmatprep.mubr.f32.mxu1 %v18375_v44 }
 0x43c   :  { %12632 = vst [vmem:[#allocation5 + $0x1080] sm:$0xff] %v12072_v2  ;;  %v11588_v45 = vmul.f32 %v17716_v26, %v10660_v12  ;;  %v10658_v47 = vmax.f32 %v9101_v61, 0.0  ;;  %v9220_v58 = vadd.f32 %v9219_v59, %v16069_v23  ;;  %v9221_v3 = vpop.f32.mrb[125].mxu0  ;;  %13239 = vmatmul.mubr.msk.f32.gmra.mrb[230].mxu0 %vm6636_vm3, %v17604_v49 }
 0x43d   :  { %12633 = vst [vmem:[#allocation5 + $0x1088] sm:$0xff] %v12073_v22  ;;  %v11589_v9 = vmul.f32 %v17724_v13, %v10661_v0  ;;  %v10659_v53 = vmax.f32 %v9103_v19, 0.0  ;;  %v9222_v35 = vadd.f32 %v9221_v3, %v16069_v23  ;;  %v9106_v62 = vpop.f32.mrb[124].mxu1  ;;  %10609 = vmatprep.mubr.f32.mxu0 %v18375_v44 }
 0x43e   :  { %12148 = vst [vmem:[#allocation5 + $0x160] sm:$0xff] %v11588_v45  ;;  %v11586_v32 = vmul.f32 %v17731_v1, %v10658_v47  ;;  %v10730_v56 = vmax.f32 %v9220_v58, 0.0  ;;  %v9107_v57 = vadd.f32 %v9106_v62, %v16069_v23  ;;  %v9108_v36 = vpop.f32.mrb[125].mxu1  ;;  %13231 = vmatmul.mubr.msk.f32.gmra.mrb[230].mxu1 %vm6636_vm3, %v17604_v49 }
 0x43f   :  { %12149 = vst [vmem:[#allocation5 + $0x168] sm:$0xff] %v11589_v9  ;;  %v11587_v33 = vmul.f32 %v17739_v6, %v10659_v53  ;;  %v10731_v37 = vmax.f32 %v9222_v35, 0.0  ;;  %v9225_v30 = vpop.f32.mrb[126].mxu0  ;;  %v9109_v4 = vadd.f32 %v9108_v36, %v16069_v23  ;;  %10496 = vmatprep.mubr.f32.mxu1 %v18375_v44 }
 0x440   :  { %12146 = vst [vmem:[#allocation5 + $0x150] sm:$0xff] %v11586_v32  ;;  %v11658_v39 = vmul.f32 %v17716_v26, %v10730_v56  ;;  %v10728_v27 = vmax.f32 %v9107_v57, 0.0  ;;  %v9226_v15 = vadd.f32 %v9225_v30, %v16086_v7  ;;  %v9227_v11 = vpop.f32.mrb[127].mxu0  ;;  %13240 = vmatmul.mubr.msk.f32.gmra.mrb[232].mxu0 %vm6636_vm3, %v17623_v17 }
 0x441   :  { %12147 = vst [vmem:[#allocation5 + $0x158] sm:$0xff] %v11587_v33  ;;  %v11659_v49 = vmul.f32 %v17724_v13, %v10731_v37  ;;  %v10729_v42 = vmax.f32 %v9109_v4, 0.0  ;;  %v9228_v63 = vadd.f32 %v9227_v11, %v16086_v7  ;;  %v9112_v50 = vpop.f32.mrb[126].mxu1 }
 0x442   :  { %12218 = vst [vmem:[#allocation5 + $0x390] sm:$0xff] %v11658_v39  ;;  %v11656_v44 = vmul.f32 %v17731_v1, %v10728_v27  ;;  %v10800_v48 = vmax.f32 %v9226_v15, 0.0  ;;  %v9113_v52 = vadd.f32 %v9112_v50, %v16086_v7  ;;  %v9114_v16 = vpop.f32.mrb[127].mxu1  ;;  %13232 = vmatmul.mubr.msk.f32.gmra.mrb[232].mxu1 %vm6636_vm3, %v17623_v17 }
 0x443   :  { %12219 = vst [vmem:[#allocation5 + $0x398] sm:$0xff] %v11659_v49  ;;  %v11657_v25 = vmul.f32 %v17739_v6, %v10729_v42  ;;  %v10801_v51 = vmax.f32 %v9228_v63, 0.0  ;;  %v9231_v10 = vpop.f32.mrb[128].mxu0  ;;  %v9115_v14 = vadd.f32 %v9114_v16, %v16086_v7 }
 0x444   :  { %12216 = vst [vmem:[#allocation5 + $0x380] sm:$0xff] %v11656_v44  ;;  %v11728_v41 = vmul.f32 %v17716_v26, %v10800_v48  ;;  %v10798_v43 = vmax.f32 %v9113_v52, 0.0  ;;  %v9232_v2 = vadd.f32 %v9231_v10, %v16101_v55  ;;  %v9233_v12 = vpop.f32.mrb[129].mxu0 }
 0x445   :  { %12217 = vst [vmem:[#allocation5 + $0x388] sm:$0xff] %v11657_v25  ;;  %v11729_v61 = vmul.f32 %v17724_v13, %v10801_v51  ;;  %v10799_v8 = vmax.f32 %v9115_v14, 0.0  ;;  %v9234_v17 = vadd.f32 %v9233_v12, %v16101_v55  ;;  %v9118_v22 = vpop.f32.mrb[128].mxu1 }
 0x446   :  { %12288 = vst [vmem:[#allocation5 + $0x5c0] sm:$0xff] %v11728_v41  ;;  %v11726_v0 = vmul.f32 %v17731_v1, %v10798_v43  ;;  %v10870_v59 = vmax.f32 %v9232_v2, 0.0  ;;  %v9119_v19 = vadd.f32 %v9118_v22, %v16101_v55  ;;  %v9120_v45 = vpop.f32.mrb[129].mxu1 }
 0x447   :  { %12289 = vst [vmem:[#allocation5 + $0x5c8] sm:$0xff] %v11729_v61  ;;  %v11727_v47 = vmul.f32 %v17739_v6, %v10799_v8  ;;  %v10871_v58 = vmax.f32 %v9234_v17, 0.0  ;;  %v9237_v3 = vpop.f32.mrb[130].mxu0  ;;  %v9121_v9 = vadd.f32 %v9120_v45, %v16101_v55 }
 0x448   :  { %12286 = vst [vmem:[#allocation5 + $0x5b0] sm:$0xff] %v11726_v0  ;;  %v11798_v53 = vmul.f32 %v17716_v26, %v10870_v59  ;;  %v10868_v35 = vmax.f32 %v9119_v19, 0.0  ;;  %v9238_v62 = vadd.f32 %v9237_v3, %v16120_v31  ;;  %v9239_v32 = vpop.f32.mrb[131].mxu0 }
 0x449   :  { %12287 = vst [vmem:[#allocation5 + $0x5b8] sm:$0xff] %v11727_v47  ;;  %v11799_v56 = vmul.f32 %v17724_v13, %v10871_v58  ;;  %v10869_v57 = vmax.f32 %v9121_v9, 0.0  ;;  %v9240_v36 = vadd.f32 %v9239_v32, %v16120_v31  ;;  %v9124_v33 = vpop.f32.mrb[130].mxu1 }
 0x44a   :  { %12358 = vst [vmem:[#allocation5 + $0x7f0] sm:$0xff] %v11798_v53  ;;  %v11796_v37 = vmul.f32 %v17731_v1, %v10868_v35  ;;  %v10940_v30 = vmax.f32 %v9238_v62, 0.0  ;;  %v9125_v4 = vadd.f32 %v9124_v33, %v16120_v31  ;;  %v9126_v39 = vpop.f32.mrb[131].mxu1 }
 0x44b   :  { %12359 = vst [vmem:[#allocation5 + $0x7f8] sm:$0xff] %v11799_v56  ;;  %v11797_v27 = vmul.f32 %v17739_v6, %v10869_v57  ;;  %v10941_v15 = vmax.f32 %v9240_v36, 0.0  ;;  %v9243_v11 = vpop.f32.mrb[132].mxu0  ;;  %v9127_v49 = vadd.f32 %v9126_v39, %v16120_v31 }
 0x44c   :  { %12356 = vst [vmem:[#allocation5 + $0x7e0] sm:$0xff] %v11796_v37  ;;  %v11868_v42 = vmul.f32 %v17716_v26, %v10940_v30  ;;  %v10938_v63 = vmax.f32 %v9125_v4, 0.0  ;;  %v9244_v50 = vadd.f32 %v9243_v11, %v16139_v46  ;;  %v9245_v44 = vpop.f32.mrb[133].mxu0 }
 0x44d   :  { %12357 = vst [vmem:[#allocation5 + $0x7e8] sm:$0xff] %v11797_v27  ;;  %v11869_v48 = vmul.f32 %v17724_v13, %v10941_v15  ;;  %v10939_v52 = vmax.f32 %v9127_v49, 0.0  ;;  %v9246_v16 = vadd.f32 %v9245_v44, %v16139_v46  ;;  %v9130_v25 = vpop.f32.mrb[132].mxu1  ;;  %v17804_v15 = vld [vmem:[#allocation2 + $0x30] sm:$0xff] }
 0x44e   :  { %12428 = vst [vmem:[#allocation5 + $0xa20] sm:$0xff] %v11868_v42  ;;  %v11866_v51 = vmul.f32 %v17731_v1, %v10938_v63  ;;  %v11010_v10 = vmax.f32 %v9244_v50, 0.0  ;;  %v9131_v14 = vadd.f32 %v9130_v25, %v16139_v46  ;;  %v9132_v41 = vpop.f32.mrb[133].mxu1 }
 0x44f   :  { %12429 = vst [vmem:[#allocation5 + $0xa28] sm:$0xff] %v11869_v48  ;;  %v11867_v43 = vmul.f32 %v17739_v6, %v10939_v52  ;;  %v11011_v2 = vmax.f32 %v9246_v16, 0.0  ;;  %v9249_v12 = vpop.f32.mrb[134].mxu0  ;;  %v9133_v61 = vadd.f32 %v9132_v41, %v16139_v46 }
 0x450   :  { %12426 = vst [vmem:[#allocation5 + $0xa10] sm:$0xff] %v11866_v51  ;;  %v11938_v8 = vmul.f32 %v17716_v26, %v11010_v10  ;;  %v11008_v17 = vmax.f32 %v9131_v14, 0.0  ;;  %v9250_v22 = vadd.f32 %v9249_v12, %v16158_v24  ;;  %v9251_v0 = vpop.f32.mrb[135].mxu0  ;;  %v17814_v10 = vrot.slane %v17804_v15, %v16023_v21 }
 0x451   :  { %12427 = vst [vmem:[#allocation5 + $0xa18] sm:$0xff] %v11867_v43  ;;  %v11939_v59 = vmul.f32 %v17724_v13, %v11011_v2  ;;  %v11009_v19 = vmax.f32 %v9133_v61, 0.0  ;;  %v9252_v45 = vadd.f32 %v9251_v0, %v16158_v24  ;;  %v9136_v47 = vpop.f32.mrb[134].mxu1  ;;  %v17820_v12 = vrot.slane %v17804_v15, %v16030_v18 }
 0x452   :  { %12498 = vst [vmem:[#allocation5 + $0xc50] sm:$0xff] %v11938_v8  ;;  %v11936_v58 = vmul.f32 %v17731_v1, %v11008_v17  ;;  %v11080_v3 = vmax.f32 %v9250_v22, 0.0  ;;  %v9137_v9 = vadd.f32 %v9136_v47, %v16158_v24  ;;  %v9138_v53 = vpop.f32.mrb[135].mxu1  ;;  %v17826_v22 = vrot.slane %v17554_v5, %v16382_v38 }
 0x453   :  { %12499 = vst [vmem:[#allocation5 + $0xc58] sm:$0xff] %v11939_v59  ;;  %v11937_v35 = vmul.f32 %v17739_v6, %v11009_v19  ;;  %v11081_v62 = vmax.f32 %v9252_v45, 0.0  ;;  %v9255_v32 = vpop.f32.mrb[136].mxu0  ;;  %v9139_v56 = vadd.f32 %v9138_v53, %v16158_v24  ;;  %v17832_v47 = vrot.slane %v17554_v5, %v16388_v29 }
 0x454   :  { %12496 = vst [vmem:[#allocation5 + $0xc40] sm:$0xff] %v11936_v58  ;;  %v12008_v57 = vmul.f32 %v17716_v26, %v11080_v3  ;;  %v11078_v36 = vmax.f32 %v9137_v9, 0.0  ;;  %v9256_v33 = vadd.f32 %v9255_v32, %v16176_v34  ;;  %v9257_v37 = vpop.f32.mrb[137].mxu0 }
 0x455   :  { %12497 = vst [vmem:[#allocation5 + $0xc48] sm:$0xff] %v11937_v35  ;;  %v12009_v30 = vmul.f32 %v17724_v13, %v11081_v62  ;;  %v11079_v4 = vmax.f32 %v9139_v56, 0.0  ;;  %v9258_v39 = vadd.f32 %v9257_v37, %v16176_v34  ;;  %v9142_v27 = vpop.f32.mrb[136].mxu1 }
 0x456   :  { %12568 = vst [vmem:[#allocation5 + $0xe80] sm:$0xff] %v12008_v57  ;;  %v12006_v11 = vmul.f32 %v17731_v1, %v11078_v36  ;;  %v11150_v49 = vmax.f32 %v9256_v33, 0.0  ;;  %v9143_v42 = vadd.f32 %v9142_v27, %v16176_v34  ;;  %v9144_v63 = vpop.f32.mrb[137].mxu1 }
 0x457   :  { %12569 = vst [vmem:[#allocation5 + $0xe88] sm:$0xff] %v12009_v30  ;;  %v12007_v50 = vmul.f32 %v17739_v6, %v11079_v4  ;;  %v11151_v44 = vmax.f32 %v9258_v39, 0.0  ;;  %v9439_v48 = vpop.f32.mrb[138].mxu0  ;;  %v9145_v52 = vadd.f32 %v9144_v63, %v16176_v34 }
 0x458   :  { %12566 = vst [vmem:[#allocation5 + $0xe70] sm:$0xff] %v12006_v11  ;;  %v12078_v16 = vmul.f32 %v17716_v26, %v11150_v49  ;;  %v11148_v25 = vmax.f32 %v9143_v42, 0.0  ;;  %v9440_v51 = vadd.f32 %v9439_v48, %v16048_v20  ;;  %v9441_v14 = vpop.f32.mrb[139].mxu0 }
 0x459   :  { %12567 = vst [vmem:[#allocation5 + $0xe78] sm:$0xff] %v12007_v50  ;;  %v12079_v41 = vmul.f32 %v17724_v13, %v11151_v44  ;;  %v11149_v43 = vmax.f32 %v9145_v52, 0.0  ;;  %v9442_v2 = vadd.f32 %v9441_v14, %v16048_v20  ;;  %v9326_v61 = vpop.f32.mrb[138].mxu1 }
 0x45a   :  { %12638 = vst [vmem:[#allocation5 + $0x10b0] sm:$0xff] %v12078_v16  ;;  %v12076_v26 = vmul.f32 %v17731_v1, %v11148_v25  ;;  %v10664_v8 = vmax.f32 %v9440_v51, 0.0  ;;  %v9327_v17 = vadd.f32 %v9326_v61, %v16048_v20  ;;  %v9328_v0 = vpop.f32.mrb[139].mxu1 }
 0x45b   :  { %12639 = vst [vmem:[#allocation5 + $0x10b8] sm:$0xff] %v12079_v41  ;;  %v12077_v13 = vmul.f32 %v17739_v6, %v11149_v43  ;;  %v10665_v59 = vmax.f32 %v9442_v2, 0.0  ;;  %v9445_v19 = vpop.f32.mrb[140].mxu0  ;;  %v9329_v45 = vadd.f32 %v9328_v0, %v16048_v20 }
 0x45c   :  { %12636 = vst [vmem:[#allocation5 + $0x10a0] sm:$0xff] %v12076_v26  ;;  %v11592_v1 = vmul.f32 %v17814_v10, %v10664_v8  ;;  %v10662_v58 = vmax.f32 %v9327_v17, 0.0  ;;  %v9446_v3 = vadd.f32 %v9445_v19, %v16069_v23  ;;  %v9447_v9 = vpop.f32.mrb[141].mxu0 }
 0x45d   :  { %12637 = vst [vmem:[#allocation5 + $0x10a8] sm:$0xff] %v12077_v13  ;;  %v11593_v53 = vmul.f32 %v17820_v12, %v10665_v59  ;;  %v10663_v35 = vmax.f32 %v9329_v45, 0.0  ;;  %v9448_v6 = vadd.f32 %v9447_v9, %v16069_v23  ;;  %v9332_v62 = vpop.f32.mrb[140].mxu1 }
 0x45e   :  { %12152 = vst [vmem:[#allocation5 + $0x180] sm:$0xff] %v11592_v1  ;;  %v11590_v32 = vmul.f32 %v17826_v22, %v10662_v58  ;;  %v10734_v56 = vmax.f32 %v9446_v3, 0.0  ;;  %v9333_v5 = vadd.f32 %v9332_v62, %v16069_v23  ;;  %v9334_v57 = vpop.f32.mrb[141].mxu1 }
 0x45f   :  { %12153 = vst [vmem:[#allocation5 + $0x188] sm:$0xff] %v11593_v53  ;;  %v11591_v36 = vmul.f32 %v17832_v47, %v10663_v35  ;;  %v10735_v33 = vmax.f32 %v9448_v6, 0.0  ;;  %v9451_v37 = vpop.f32.mrb[142].mxu0  ;;  %v9335_v30 = vadd.f32 %v9334_v57, %v16069_v23 }
 0x460   :  { %12150 = vst [vmem:[#allocation5 + $0x170] sm:$0xff] %v11590_v32  ;;  %v11662_v4 = vmul.f32 %v17814_v10, %v10734_v56  ;;  %v10732_v39 = vmax.f32 %v9333_v5, 0.0  ;;  %v9452_v27 = vadd.f32 %v9451_v37, %v16086_v7  ;;  %v9453_v11 = vpop.f32.mrb[143].mxu0 }
 0x461   :  { %12151 = vst [vmem:[#allocation5 + $0x178] sm:$0xff] %v11591_v36  ;;  %v11663_v49 = vmul.f32 %v17820_v12, %v10735_v33  ;;  %v10733_v42 = vmax.f32 %v9335_v30, 0.0  ;;  %v9454_v63 = vadd.f32 %v9453_v11, %v16086_v7  ;;  %v9338_v50 = vpop.f32.mrb[142].mxu1 }
 0x462   :  { %12222 = vst [vmem:[#allocation5 + $0x3b0] sm:$0xff] %v11662_v4  ;;  %v11660_v44 = vmul.f32 %v17826_v22, %v10732_v39  ;;  %v10804_v48 = vmax.f32 %v9452_v27, 0.0  ;;  %v9339_v52 = vadd.f32 %v9338_v50, %v16086_v7  ;;  %v9340_v16 = vpop.f32.mrb[143].mxu1 }
 0x463   :  { %12223 = vst [vmem:[#allocation5 + $0x3b8] sm:$0xff] %v11663_v49  ;;  %v11661_v25 = vmul.f32 %v17832_v47, %v10733_v42  ;;  %v10805_v51 = vmax.f32 %v9454_v63, 0.0  ;;  %v9457_v14 = vpop.f32.mrb[144].mxu0  ;;  %v9341_v41 = vadd.f32 %v9340_v16, %v16086_v7 }
 0x464   :  { %12220 = vst [vmem:[#allocation5 + $0x3a0] sm:$0xff] %v11660_v44  ;;  %v11732_v43 = vmul.f32 %v17814_v10, %v10804_v48  ;;  %v10802_v2 = vmax.f32 %v9339_v52, 0.0  ;;  %v9458_v61 = vadd.f32 %v9457_v14, %v16101_v55  ;;  %v9459_v26 = vpop.f32.mrb[145].mxu0 }
 0x465   :  { %12221 = vst [vmem:[#allocation5 + $0x3a8] sm:$0xff] %v11661_v25  ;;  %v11733_v8 = vmul.f32 %v17820_v12, %v10805_v51  ;;  %v10803_v17 = vmax.f32 %v9341_v41, 0.0  ;;  %v9460_v0 = vadd.f32 %v9459_v26, %v16101_v55  ;;  %v9344_v13 = vpop.f32.mrb[144].mxu1 }
 0x466   :  { %12292 = vst [vmem:[#allocation5 + $0x5e0] sm:$0xff] %v11732_v43  ;;  %v11730_v59 = vmul.f32 %v17826_v22, %v10802_v2  ;;  %v10874_v19 = vmax.f32 %v9458_v61, 0.0  ;;  %v9345_v45 = vadd.f32 %v9344_v13, %v16101_v55  ;;  %v9346_v1 = vpop.f32.mrb[145].mxu1 }
 0x467   :  { %12293 = vst [vmem:[#allocation5 + $0x5e8] sm:$0xff] %v11733_v8  ;;  %v11731_v58 = vmul.f32 %v17832_v47, %v10803_v17  ;;  %v10875_v3 = vmax.f32 %v9460_v0, 0.0  ;;  %v9463_v9 = vpop.f32.mrb[146].mxu0  ;;  %v9347_v53 = vadd.f32 %v9346_v1, %v16101_v55 }
 0x468   :  { %12290 = vst [vmem:[#allocation5 + $0x5d0] sm:$0xff] %v11730_v59  ;;  %v11802_v35 = vmul.f32 %v17814_v10, %v10874_v19  ;;  %v10872_v6 = vmax.f32 %v9345_v45, 0.0  ;;  %v9464_v62 = vadd.f32 %v9463_v9, %v16120_v31  ;;  %v9465_v32 = vpop.f32.mrb[147].mxu0 }
 0x469   :  { %12291 = vst [vmem:[#allocation5 + $0x5d8] sm:$0xff] %v11731_v58  ;;  %v11803_v56 = vmul.f32 %v17820_v12, %v10875_v3  ;;  %v10873_v5 = vmax.f32 %v9347_v53, 0.0  ;;  %v9466_v57 = vadd.f32 %v9465_v32, %v16120_v31  ;;  %v9350_v36 = vpop.f32.mrb[146].mxu1 }
 0x46a   :  { %12362 = vst [vmem:[#allocation5 + $0x810] sm:$0xff] %v11802_v35  ;;  %v11800_v33 = vmul.f32 %v17826_v22, %v10872_v6  ;;  %v10944_v37 = vmax.f32 %v9464_v62, 0.0  ;;  %v9351_v30 = vadd.f32 %v9350_v36, %v16120_v31  ;;  %v9352_v4 = vpop.f32.mrb[147].mxu1 }
 0x46b   :  { %12363 = vst [vmem:[#allocation5 + $0x818] sm:$0xff] %v11803_v56  ;;  %v11801_v39 = vmul.f32 %v17832_v47, %v10873_v5  ;;  %v10945_v27 = vmax.f32 %v9466_v57, 0.0  ;;  %v9469_v11 = vpop.f32.mrb[148].mxu0  ;;  %v9353_v49 = vadd.f32 %v9352_v4, %v16120_v31 }
 0x46c   :  { %12360 = vst [vmem:[#allocation5 + $0x800] sm:$0xff] %v11800_v33  ;;  %v11872_v42 = vmul.f32 %v17814_v10, %v10944_v37  ;;  %v10942_v63 = vmax.f32 %v9351_v30, 0.0  ;;  %v9470_v50 = vadd.f32 %v9469_v11, %v16139_v46  ;;  %v9471_v44 = vpop.f32.mrb[149].mxu0 }
 0x46d   :  { %12361 = vst [vmem:[#allocation5 + $0x808] sm:$0xff] %v11801_v39  ;;  %v11873_v48 = vmul.f32 %v17820_v12, %v10945_v27  ;;  %v10943_v52 = vmax.f32 %v9353_v49, 0.0  ;;  %v9472_v16 = vadd.f32 %v9471_v44, %v16139_v46  ;;  %v9356_v25 = vpop.f32.mrb[148].mxu1 }
 0x46e   :  { %12432 = vst [vmem:[#allocation5 + $0xa40] sm:$0xff] %v11872_v42  ;;  %v11870_v51 = vmul.f32 %v17826_v22, %v10942_v63  ;;  %v11014_v14 = vmax.f32 %v9470_v50, 0.0  ;;  %v9357_v41 = vadd.f32 %v9356_v25, %v16139_v46  ;;  %v9358_v43 = vpop.f32.mrb[149].mxu1 }
 0x46f   :  { %12433 = vst [vmem:[#allocation5 + $0xa48] sm:$0xff] %v11873_v48  ;;  %v11871_v2 = vmul.f32 %v17832_v47, %v10943_v52  ;;  %v11015_v61 = vmax.f32 %v9472_v16, 0.0  ;;  %v9475_v26 = vpop.f32.mrb[150].mxu0  ;;  %v9359_v8 = vadd.f32 %v9358_v43, %v16139_v46 }
 0x470   :  { %12430 = vst [vmem:[#allocation5 + $0xa30] sm:$0xff] %v11870_v51  ;;  %v11942_v17 = vmul.f32 %v17814_v10, %v11014_v14  ;;  %v11012_v0 = vmax.f32 %v9357_v41, 0.0  ;;  %v9476_v13 = vadd.f32 %v9475_v26, %v16158_v24  ;;  %v9477_v59 = vpop.f32.mrb[151].mxu0  ;;  %v17894_v51 = vrot.slane %v17804_v15, %v16174_v40 }
 0x471   :  { %12431 = vst [vmem:[#allocation5 + $0xa38] sm:$0xff] %v11871_v2  ;;  %v11943_v19 = vmul.f32 %v17820_v12, %v11015_v61  ;;  %v11013_v45 = vmax.f32 %v9359_v8, 0.0  ;;  %v9478_v1 = vadd.f32 %v9477_v59, %v16158_v24  ;;  %v9362_v58 = vpop.f32.mrb[150].mxu1  ;;  %v17900_v61 = vrot.slane %v17804_v15, %v16180_v54 }
 0x472   :  { %12502 = vst [vmem:[#allocation5 + $0xc70] sm:$0xff] %v11942_v17  ;;  %v11940_v3 = vmul.f32 %v17826_v22, %v11012_v0  ;;  %v11084_v9 = vmax.f32 %v9476_v13, 0.0  ;;  %v9363_v53 = vadd.f32 %v9362_v58, %v16158_v24  ;;  %v9364_v35 = vpop.f32.mrb[151].mxu1  ;;  %v17906_v0 = vrot.slane %v17804_v15, %v16201_v60 }
 0x473   :  { %12503 = vst [vmem:[#allocation5 + $0xc78] sm:$0xff] %v11943_v19  ;;  %v11941_v6 = vmul.f32 %v17832_v47, %v11013_v45  ;;  %v11085_v62 = vmax.f32 %v9478_v1, 0.0  ;;  %v9481_v32 = vpop.f32.mrb[152].mxu0  ;;  %v9365_v56 = vadd.f32 %v9364_v35, %v16158_v24  ;;  %v17912_v1 = vrot.slane %v17804_v15, %v16210_v28 }
 0x474   :  { %12500 = vst [vmem:[#allocation5 + $0xc60] sm:$0xff] %v11940_v3  ;;  %v12012_v5 = vmul.f32 %v17814_v10, %v11084_v9  ;;  %v11082_v57 = vmax.f32 %v9363_v53, 0.0  ;;  %v9482_v36 = vadd.f32 %v9481_v32, %v16176_v34  ;;  %v9483_v33 = vpop.f32.mrb[153].mxu0 }
 0x475   :  { %12501 = vst [vmem:[#allocation5 + $0xc68] sm:$0xff] %v11941_v6  ;;  %v12013_v37 = vmul.f32 %v17820_v12, %v11085_v62  ;;  %v11083_v30 = vmax.f32 %v9365_v56, 0.0  ;;  %v9484_v4 = vadd.f32 %v9483_v33, %v16176_v34  ;;  %v9368_v39 = vpop.f32.mrb[152].mxu1 }
 0x476   :  { %12572 = vst [vmem:[#allocation5 + $0xea0] sm:$0xff] %v12012_v5  ;;  %v12010_v27 = vmul.f32 %v17826_v22, %v11082_v57  ;;  %v11154_v11 = vmax.f32 %v9482_v36, 0.0  ;;  %v9369_v49 = vadd.f32 %v9368_v39, %v16176_v34  ;;  %v9370_v42 = vpop.f32.mrb[153].mxu1 }
 0x477   :  { %12573 = vst [vmem:[#allocation5 + $0xea8] sm:$0xff] %v12013_v37  ;;  %v12011_v63 = vmul.f32 %v17832_v47, %v11083_v30  ;;  %v11155_v50 = vmax.f32 %v9484_v4, 0.0  ;;  %v9665_v44 = vpop.f32.mrb[154].mxu0  ;;  %v9371_v48 = vadd.f32 %v9370_v42, %v16176_v34 }
 0x478   :  { %12570 = vst [vmem:[#allocation5 + $0xe90] sm:$0xff] %v12010_v27  ;;  %v12082_v52 = vmul.f32 %v17814_v10, %v11154_v11  ;;  %v11152_v16 = vmax.f32 %v9369_v49, 0.0  ;;  %v9666_v25 = vadd.f32 %v9665_v44, %v16048_v20  ;;  %v9667_v14 = vpop.f32.mrb[155].mxu0 }
 0x479   :  { %12571 = vst [vmem:[#allocation5 + $0xe98] sm:$0xff] %v12011_v63  ;;  %v12083_v41 = vmul.f32 %v17820_v12, %v11155_v50  ;;  %v11153_v43 = vmax.f32 %v9371_v48, 0.0  ;;  %v9668_v2 = vadd.f32 %v9667_v14, %v16048_v20  ;;  %v9552_v26 = vpop.f32.mrb[154].mxu1 }
 0x47a   :  { %12642 = vst [vmem:[#allocation5 + $0x10d0] sm:$0xff] %v12082_v52  ;;  %v12080_v10 = vmul.f32 %v17826_v22, %v11152_v16  ;;  %v10668_v8 = vmax.f32 %v9666_v25, 0.0  ;;  %v9553_v17 = vadd.f32 %v9552_v26, %v16048_v20  ;;  %v9554_v13 = vpop.f32.mrb[155].mxu1 }
 0x47b   :  { %12643 = vst [vmem:[#allocation5 + $0x10d8] sm:$0xff] %v12083_v41  ;;  %v12081_v12 = vmul.f32 %v17832_v47, %v11153_v43  ;;  %v10669_v59 = vmax.f32 %v9668_v2, 0.0  ;;  %v9671_v19 = vpop.f32.mrb[156].mxu0  ;;  %v9555_v45 = vadd.f32 %v9554_v13, %v16048_v20 }
 0x47c   :  { %12640 = vst [vmem:[#allocation5 + $0x10c0] sm:$0xff] %v12080_v10  ;;  %v11596_v22 = vmul.f32 %v17894_v51, %v10668_v8  ;;  %v10666_v58 = vmax.f32 %v9553_v17, 0.0  ;;  %v9672_v3 = vadd.f32 %v9671_v19, %v16069_v23  ;;  %v9673_v9 = vpop.f32.mrb[157].mxu0 }
 0x47d   :  { %12641 = vst [vmem:[#allocation5 + $0x10c8] sm:$0xff] %v12081_v12  ;;  %v11597_v53 = vmul.f32 %v17900_v61, %v10669_v59  ;;  %v10667_v35 = vmax.f32 %v9555_v45, 0.0  ;;  %v9674_v47 = vadd.f32 %v9673_v9, %v16069_v23  ;;  %v9558_v6 = vpop.f32.mrb[156].mxu1 }
 0x47e   :  { %12156 = vst [vmem:[#allocation5 + $0x1a0] sm:$0xff] %v11596_v22  ;;  %v11594_v62 = vmul.f32 %v17906_v0, %v10666_v58  ;;  %v10738_v32 = vmax.f32 %v9672_v3, 0.0  ;;  %v9559_v56 = vadd.f32 %v9558_v6, %v16069_v23  ;;  %v9560_v5 = vpop.f32.mrb[157].mxu1 }
 0x47f   :  { %12157 = vst [vmem:[#allocation5 + $0x1a8] sm:$0xff] %v11597_v53  ;;  %v11595_v57 = vmul.f32 %v17912_v1, %v10667_v35  ;;  %v10739_v36 = vmax.f32 %v9674_v47, 0.0  ;;  %v9677_v33 = vpop.f32.mrb[158].mxu0  ;;  %v9561_v37 = vadd.f32 %v9560_v5, %v16069_v23 }
 0x480   :  { %12154 = vst [vmem:[#allocation5 + $0x190] sm:$0xff] %v11594_v62  ;;  %v11666_v30 = vmul.f32 %v17894_v51, %v10738_v32  ;;  %v10736_v4 = vmax.f32 %v9559_v56, 0.0  ;;  %v9678_v39 = vadd.f32 %v9677_v33, %v16086_v7  ;;  %v9679_v27 = vpop.f32.mrb[159].mxu0 }
 0x481   :  { %12155 = vst [vmem:[#allocation5 + $0x198] sm:$0xff] %v11595_v57  ;;  %v11667_v11 = vmul.f32 %v17900_v61, %v10739_v36  ;;  %v10737_v49 = vmax.f32 %v9561_v37, 0.0  ;;  %v9680_v42 = vadd.f32 %v9679_v27, %v16086_v7  ;;  %v9564_v63 = vpop.f32.mrb[158].mxu1 }
 0x482   :  { %12226 = vst [vmem:[#allocation5 + $0x3d0] sm:$0xff] %v11666_v30  ;;  %v11664_v50 = vmul.f32 %v17906_v0, %v10736_v4  ;;  %v10808_v44 = vmax.f32 %v9678_v39, 0.0  ;;  %v9565_v48 = vadd.f32 %v9564_v63, %v16086_v7  ;;  %v9566_v52 = vpop.f32.mrb[159].mxu1 }
 0x483   :  { %12227 = vst [vmem:[#allocation5 + $0x3d8] sm:$0xff] %v11667_v11  ;;  %v11665_v16 = vmul.f32 %v17912_v1, %v10737_v49  ;;  %v10809_v25 = vmax.f32 %v9680_v42, 0.0  ;;  %v9683_v14 = vpop.f32.mrb[160].mxu0  ;;  %v9567_v41 = vadd.f32 %v9566_v52, %v16086_v7 }
 0x484   :  { %12224 = vst [vmem:[#allocation5 + $0x3c0] sm:$0xff] %v11664_v50  ;;  %v11736_v43 = vmul.f32 %v17894_v51, %v10808_v44  ;;  %v10806_v2 = vmax.f32 %v9565_v48, 0.0  ;;  %v9684_v26 = vadd.f32 %v9683_v14, %v16101_v55  ;;  %v9685_v10 = vpop.f32.mrb[161].mxu0 }
 0x485   :  { %12225 = vst [vmem:[#allocation5 + $0x3c8] sm:$0xff] %v11665_v16  ;;  %v11737_v8 = vmul.f32 %v17900_v61, %v10809_v25  ;;  %v10807_v17 = vmax.f32 %v9567_v41, 0.0  ;;  %v9686_v13 = vadd.f32 %v9685_v10, %v16101_v55  ;;  %v9570_v12 = vpop.f32.mrb[160].mxu1 }
 0x486   :  { %12296 = vst [vmem:[#allocation5 + $0x600] sm:$0xff] %v11736_v43  ;;  %v11734_v59 = vmul.f32 %v17906_v0, %v10806_v2  ;;  %v10878_v19 = vmax.f32 %v9684_v26, 0.0  ;;  %v9571_v45 = vadd.f32 %v9570_v12, %v16101_v55  ;;  %v9572_v22 = vpop.f32.mrb[161].mxu1 }
 0x487   :  { %12297 = vst [vmem:[#allocation5 + $0x608] sm:$0xff] %v11737_v8  ;;  %v11735_v58 = vmul.f32 %v17912_v1, %v10807_v17  ;;  %v10879_v3 = vmax.f32 %v9686_v13, 0.0  ;;  %v9689_v9 = vpop.f32.mrb[162].mxu0  ;;  %v9573_v53 = vadd.f32 %v9572_v22, %v16101_v55 }
 0x488   :  { %12294 = vst [vmem:[#allocation5 + $0x5f0] sm:$0xff] %v11734_v59  ;;  %v11806_v35 = vmul.f32 %v17894_v51, %v10878_v19  ;;  %v10876_v47 = vmax.f32 %v9571_v45, 0.0  ;;  %v9690_v6 = vadd.f32 %v9689_v9, %v16120_v31  ;;  %v9691_v62 = vpop.f32.mrb[163].mxu0 }
 0x489   :  { %12295 = vst [vmem:[#allocation5 + $0x5f8] sm:$0xff] %v11735_v58  ;;  %v11807_v32 = vmul.f32 %v17900_v61, %v10879_v3  ;;  %v10877_v56 = vmax.f32 %v9573_v53, 0.0  ;;  %v9692_v5 = vadd.f32 %v9691_v62, %v16120_v31  ;;  %v9576_v57 = vpop.f32.mrb[162].mxu1 }
 0x48a   :  { %12366 = vst [vmem:[#allocation5 + $0x830] sm:$0xff] %v11806_v35  ;;  %v11804_v36 = vmul.f32 %v17906_v0, %v10876_v47  ;;  %v10948_v33 = vmax.f32 %v9690_v6, 0.0  ;;  %v9577_v37 = vadd.f32 %v9576_v57, %v16120_v31  ;;  %v9578_v30 = vpop.f32.mrb[163].mxu1 }
 0x48b   :  { %12367 = vst [vmem:[#allocation5 + $0x838] sm:$0xff] %v11807_v32  ;;  %v11805_v4 = vmul.f32 %v17912_v1, %v10877_v56  ;;  %v10949_v39 = vmax.f32 %v9692_v5, 0.0  ;;  %v9695_v27 = vpop.f32.mrb[164].mxu0  ;;  %v9579_v11 = vadd.f32 %v9578_v30, %v16120_v31 }
 0x48c   :  { %12364 = vst [vmem:[#allocation5 + $0x820] sm:$0xff] %v11804_v36  ;;  %v11876_v49 = vmul.f32 %v17894_v51, %v10948_v33  ;;  %v10946_v42 = vmax.f32 %v9577_v37, 0.0  ;;  %v9696_v63 = vadd.f32 %v9695_v27, %v16139_v46  ;;  %v9697_v50 = vpop.f32.mrb[165].mxu0 }
 0x48d   :  { %12365 = vst [vmem:[#allocation5 + $0x828] sm:$0xff] %v11805_v4  ;;  %v11877_v44 = vmul.f32 %v17900_v61, %v10949_v39  ;;  %v10947_v48 = vmax.f32 %v9579_v11, 0.0  ;;  %v9698_v52 = vadd.f32 %v9697_v50, %v16139_v46  ;;  %v9582_v16 = vpop.f32.mrb[164].mxu1  ;;  %v17966_v39 = vld [vmem:[#allocation2 + $0x38] sm:$0xff] }
 0x48e   :  { %12436 = vst [vmem:[#allocation5 + $0xa60] sm:$0xff] %v11876_v49  ;;  %v11874_v25 = vmul.f32 %v17906_v0, %v10946_v42  ;;  %v11018_v14 = vmax.f32 %v9696_v63, 0.0  ;;  %v9583_v41 = vadd.f32 %v9582_v16, %v16139_v46  ;;  %v9584_v43 = vpop.f32.mrb[165].mxu1 }
 0x48f   :  { %12437 = vst [vmem:[#allocation5 + $0xa68] sm:$0xff] %v11877_v44  ;;  %v11875_v2 = vmul.f32 %v17912_v1, %v10947_v48  ;;  %v11019_v26 = vmax.f32 %v9698_v52, 0.0  ;;  %v9701_v10 = vpop.f32.mrb[166].mxu0  ;;  %v9585_v8 = vadd.f32 %v9584_v43, %v16139_v46 }
 0x490   :  { %12434 = vst [vmem:[#allocation5 + $0xa50] sm:$0xff] %v11874_v25  ;;  %v11946_v17 = vmul.f32 %v17894_v51, %v11018_v14  ;;  %v11016_v13 = vmax.f32 %v9583_v41, 0.0  ;;  %v9702_v12 = vadd.f32 %v9701_v10, %v16158_v24  ;;  %v9703_v59 = vpop.f32.mrb[167].mxu0  ;;  %v17976_v14 = vrot.slane %v17966_v39, %v16023_v21 }
 0x491   :  { %12435 = vst [vmem:[#allocation5 + $0xa58] sm:$0xff] %v11875_v2  ;;  %v11947_v19 = vmul.f32 %v17900_v61, %v11019_v26  ;;  %v11017_v45 = vmax.f32 %v9585_v8, 0.0  ;;  %v9704_v22 = vadd.f32 %v9703_v59, %v16158_v24  ;;  %v9588_v58 = vpop.f32.mrb[166].mxu1  ;;  %v17982_v10 = vrot.slane %v17966_v39, %v16030_v18 }
 0x492   :  { %12506 = vst [vmem:[#allocation5 + $0xc90] sm:$0xff] %v11946_v17  ;;  %v11944_v3 = vmul.f32 %v17906_v0, %v11016_v13  ;;  %v11088_v9 = vmax.f32 %v9702_v12, 0.0  ;;  %v9589_v53 = vadd.f32 %v9588_v58, %v16158_v24  ;;  %v9590_v35 = vpop.f32.mrb[167].mxu1  ;;  %v17988_v12 = vrot.slane %v17804_v15, %v16382_v38 }
 0x493   :  { %12507 = vst [vmem:[#allocation5 + $0xc98] sm:$0xff] %v11947_v19  ;;  %v11945_v47 = vmul.f32 %v17912_v1, %v11017_v45  ;;  %v11089_v6 = vmax.f32 %v9704_v22, 0.0  ;;  %v9707_v62 = vpop.f32.mrb[168].mxu0  ;;  %v9591_v32 = vadd.f32 %v9590_v35, %v16158_v24  ;;  %v17994_v58 = vrot.slane %v17804_v15, %v16388_v29 }
 0x494   :  { %12504 = vst [vmem:[#allocation5 + $0xc80] sm:$0xff] %v11944_v3  ;;  %v12016_v56 = vmul.f32 %v17894_v51, %v11088_v9  ;;  %v11086_v5 = vmax.f32 %v9589_v53, 0.0  ;;  %v9708_v57 = vadd.f32 %v9707_v62, %v16176_v34  ;;  %v9709_v36 = vpop.f32.mrb[169].mxu0 }
 0x495   :  { %12505 = vst [vmem:[#allocation5 + $0xc88] sm:$0xff] %v11945_v47  ;;  %v12017_v33 = vmul.f32 %v17900_v61, %v11089_v6  ;;  %v11087_v37 = vmax.f32 %v9591_v32, 0.0  ;;  %v9710_v30 = vadd.f32 %v9709_v36, %v16176_v34  ;;  %v9594_v4 = vpop.f32.mrb[168].mxu1 }
 0x496   :  { %12576 = vst [vmem:[#allocation5 + $0xec0] sm:$0xff] %v12016_v56  ;;  %v12014_v27 = vmul.f32 %v17906_v0, %v11086_v5  ;;  %v11158_v11 = vmax.f32 %v9708_v57, 0.0  ;;  %v9595_v49 = vadd.f32 %v9594_v4, %v16176_v34  ;;  %v9596_v42 = vpop.f32.mrb[169].mxu1 }
 0x497   :  { %12577 = vst [vmem:[#allocation5 + $0xec8] sm:$0xff] %v12017_v33  ;;  %v12015_v63 = vmul.f32 %v17912_v1, %v11087_v37  ;;  %v11159_v50 = vmax.f32 %v9710_v30, 0.0  ;;  %v9891_v44 = vpop.f32.mrb[170].mxu0  ;;  %v9597_v48 = vadd.f32 %v9596_v42, %v16176_v34 }
 0x498   :  { %12574 = vst [vmem:[#allocation5 + $0xeb0] sm:$0xff] %v12014_v27  ;;  %v12086_v52 = vmul.f32 %v17894_v51, %v11158_v11  ;;  %v11156_v16 = vmax.f32 %v9595_v49, 0.0  ;;  %v9892_v25 = vadd.f32 %v9891_v44, %v16048_v20  ;;  %v9893_v41 = vpop.f32.mrb[171].mxu0 }
 0x499   :  { %12575 = vst [vmem:[#allocation5 + $0xeb8] sm:$0xff] %v12015_v63  ;;  %v12087_v43 = vmul.f32 %v17900_v61, %v11159_v50  ;;  %v11157_v2 = vmax.f32 %v9597_v48, 0.0  ;;  %v9894_v26 = vadd.f32 %v9893_v41, %v16048_v20  ;;  %v9778_v8 = vpop.f32.mrb[170].mxu1 }
 0x49a   :  { %12646 = vst [vmem:[#allocation5 + $0x10f0] sm:$0xff] %v12086_v52  ;;  %v12084_v51 = vmul.f32 %v17906_v0, %v11156_v16  ;;  %v10672_v17 = vmax.f32 %v9892_v25, 0.0  ;;  %v9779_v13 = vadd.f32 %v9778_v8, %v16048_v20  ;;  %v9780_v59 = vpop.f32.mrb[171].mxu1 }
 0x49b   :  { %12647 = vst [vmem:[#allocation5 + $0x10f8] sm:$0xff] %v12087_v43  ;;  %v12085_v61 = vmul.f32 %v17912_v1, %v11157_v2  ;;  %v10673_v19 = vmax.f32 %v9894_v26, 0.0  ;;  %v9897_v45 = vpop.f32.mrb[172].mxu0  ;;  %v9781_v22 = vadd.f32 %v9780_v59, %v16048_v20 }
 0x49c   :  { %12644 = vst [vmem:[#allocation5 + $0x10e0] sm:$0xff] %v12084_v51  ;;  %v11600_v0 = vmul.f32 %v17976_v14, %v10672_v17  ;;  %v10670_v3 = vmax.f32 %v9779_v13, 0.0  ;;  %v9898_v9 = vadd.f32 %v9897_v45, %v16069_v23  ;;  %v9899_v53 = vpop.f32.mrb[173].mxu0 }
 0x49d   :  { %12645 = vst [vmem:[#allocation5 + $0x10e8] sm:$0xff] %v12085_v61  ;;  %v11601_v35 = vmul.f32 %v17982_v10, %v10673_v19  ;;  %v10671_v47 = vmax.f32 %v9781_v22, 0.0  ;;  %v9900_v1 = vadd.f32 %v9899_v53, %v16069_v23  ;;  %v9784_v6 = vpop.f32.mrb[172].mxu1 }
 0x49e   :  { %12160 = vst [vmem:[#allocation5 + $0x1c0] sm:$0xff] %v11600_v0  ;;  %v11598_v62 = vmul.f32 %v17988_v12, %v10670_v3  ;;  %v10742_v32 = vmax.f32 %v9898_v9, 0.0  ;;  %v9785_v15 = vadd.f32 %v9784_v6, %v16069_v23  ;;  %v9786_v56 = vpop.f32.mrb[173].mxu1 }
 0x49f   :  { %12161 = vst [vmem:[#allocation5 + $0x1c8] sm:$0xff] %v11601_v35  ;;  %v11599_v5 = vmul.f32 %v17994_v58, %v10671_v47  ;;  %v10743_v57 = vmax.f32 %v9900_v1, 0.0  ;;  %v9903_v36 = vpop.f32.mrb[174].mxu0  ;;  %v9787_v33 = vadd.f32 %v9786_v56, %v16069_v23 }
 0x4a0   :  { %12158 = vst [vmem:[#allocation5 + $0x1b0] sm:$0xff] %v11598_v62  ;;  %v11670_v37 = vmul.f32 %v17976_v14, %v10742_v32  ;;  %v10740_v30 = vmax.f32 %v9785_v15, 0.0  ;;  %v9904_v4 = vadd.f32 %v9903_v36, %v16086_v7  ;;  %v9905_v27 = vpop.f32.mrb[175].mxu0 }
 0x4a1   :  { %12159 = vst [vmem:[#allocation5 + $0x1b8] sm:$0xff] %v11599_v5  ;;  %v11671_v11 = vmul.f32 %v17982_v10, %v10743_v57  ;;  %v10741_v49 = vmax.f32 %v9787_v33, 0.0  ;;  %v9906_v42 = vadd.f32 %v9905_v27, %v16086_v7  ;;  %v9790_v63 = vpop.f32.mrb[174].mxu1 }
 0x4a2   :  { %12230 = vst [vmem:[#allocation5 + $0x3f0] sm:$0xff] %v11670_v37  ;;  %v11668_v50 = vmul.f32 %v17988_v12, %v10740_v30  ;;  %v10812_v44 = vmax.f32 %v9904_v4, 0.0  ;;  %v9791_v48 = vadd.f32 %v9790_v63, %v16086_v7  ;;  %v9792_v52 = vpop.f32.mrb[175].mxu1 }
 0x4a3   :  { %12231 = vst [vmem:[#allocation5 + $0x3f8] sm:$0xff] %v11671_v11  ;;  %v11669_v16 = vmul.f32 %v17994_v58, %v10741_v49  ;;  %v10813_v25 = vmax.f32 %v9906_v42, 0.0  ;;  %v9909_v41 = vpop.f32.mrb[176].mxu0  ;;  %v9793_v43 = vadd.f32 %v9792_v52, %v16086_v7 }
 0x4a4   :  { %12228 = vst [vmem:[#allocation5 + $0x3e0] sm:$0xff] %v11668_v50  ;;  %v11740_v2 = vmul.f32 %v17976_v14, %v10812_v44  ;;  %v10810_v26 = vmax.f32 %v9791_v48, 0.0  ;;  %v9910_v8 = vadd.f32 %v9909_v41, %v16101_v55  ;;  %v9911_v51 = vpop.f32.mrb[177].mxu0 }
 0x4a5   :  { %12229 = vst [vmem:[#allocation5 + $0x3e8] sm:$0xff] %v11669_v16  ;;  %v11741_v17 = vmul.f32 %v17982_v10, %v10813_v25  ;;  %v10811_v13 = vmax.f32 %v9793_v43, 0.0  ;;  %v9912_v59 = vadd.f32 %v9911_v51, %v16101_v55  ;;  %v9796_v61 = vpop.f32.mrb[176].mxu1 }
 0x4a6   :  { %12300 = vst [vmem:[#allocation5 + $0x620] sm:$0xff] %v11740_v2  ;;  %v11738_v19 = vmul.f32 %v17988_v12, %v10810_v26  ;;  %v10882_v45 = vmax.f32 %v9910_v8, 0.0  ;;  %v9797_v22 = vadd.f32 %v9796_v61, %v16101_v55  ;;  %v9798_v0 = vpop.f32.mrb[177].mxu1 }
 0x4a7   :  { %12301 = vst [vmem:[#allocation5 + $0x628] sm:$0xff] %v11741_v17  ;;  %v11739_v3 = vmul.f32 %v17994_v58, %v10811_v13  ;;  %v10883_v9 = vmax.f32 %v9912_v59, 0.0  ;;  %v9915_v53 = vpop.f32.mrb[178].mxu0  ;;  %v9799_v35 = vadd.f32 %v9798_v0, %v16101_v55 }
 0x4a8   :  { %12298 = vst [vmem:[#allocation5 + $0x610] sm:$0xff] %v11738_v19  ;;  %v11810_v47 = vmul.f32 %v17976_v14, %v10882_v45  ;;  %v10880_v1 = vmax.f32 %v9797_v22, 0.0  ;;  %v9916_v6 = vadd.f32 %v9915_v53, %v16120_v31  ;;  %v9917_v62 = vpop.f32.mrb[179].mxu0 }
 0x4a9   :  { %12299 = vst [vmem:[#allocation5 + $0x618] sm:$0xff] %v11739_v3  ;;  %v11811_v32 = vmul.f32 %v17982_v10, %v10883_v9  ;;  %v10881_v15 = vmax.f32 %v9799_v35, 0.0  ;;  %v9918_v56 = vadd.f32 %v9917_v62, %v16120_v31  ;;  %v9802_v5 = vpop.f32.mrb[178].mxu1 }
 0x4aa   :  { %12370 = vst [vmem:[#allocation5 + $0x850] sm:$0xff] %v11810_v47  ;;  %v11808_v57 = vmul.f32 %v17988_v12, %v10880_v1  ;;  %v10952_v36 = vmax.f32 %v9916_v6, 0.0  ;;  %v9803_v33 = vadd.f32 %v9802_v5, %v16120_v31  ;;  %v9804_v37 = vpop.f32.mrb[179].mxu1 }
 0x4ab   :  { %12371 = vst [vmem:[#allocation5 + $0x858] sm:$0xff] %v11811_v32  ;;  %v11809_v30 = vmul.f32 %v17994_v58, %v10881_v15  ;;  %v10953_v4 = vmax.f32 %v9918_v56, 0.0  ;;  %v9921_v27 = vpop.f32.mrb[180].mxu0  ;;  %v9805_v11 = vadd.f32 %v9804_v37, %v16120_v31 }
 0x4ac   :  { %12368 = vst [vmem:[#allocation5 + $0x840] sm:$0xff] %v11808_v57  ;;  %v11880_v49 = vmul.f32 %v17976_v14, %v10952_v36  ;;  %v10950_v42 = vmax.f32 %v9803_v33, 0.0  ;;  %v9922_v63 = vadd.f32 %v9921_v27, %v16139_v46  ;;  %v9923_v50 = vpop.f32.mrb[181].mxu0 }
 0x4ad   :  { %12369 = vst [vmem:[#allocation5 + $0x848] sm:$0xff] %v11809_v30  ;;  %v11881_v44 = vmul.f32 %v17982_v10, %v10953_v4  ;;  %v10951_v48 = vmax.f32 %v9805_v11, 0.0  ;;  %v9924_v52 = vadd.f32 %v9923_v50, %v16139_v46  ;;  %v9808_v16 = vpop.f32.mrb[180].mxu1 }
 0x4ae   :  { %12440 = vst [vmem:[#allocation5 + $0xa80] sm:$0xff] %v11880_v49  ;;  %v11878_v25 = vmul.f32 %v17988_v12, %v10950_v42  ;;  %v11022_v41 = vmax.f32 %v9922_v63, 0.0  ;;  %v9809_v43 = vadd.f32 %v9808_v16, %v16139_v46  ;;  %v9810_v2 = vpop.f32.mrb[181].mxu1 }
 0x4af   :  { %12441 = vst [vmem:[#allocation5 + $0xa88] sm:$0xff] %v11881_v44  ;;  %v11879_v26 = vmul.f32 %v17994_v58, %v10951_v48  ;;  %v11023_v8 = vmax.f32 %v9924_v52, 0.0  ;;  %v9927_v51 = vpop.f32.mrb[182].mxu0  ;;  %v9811_v17 = vadd.f32 %v9810_v2, %v16139_v46 }
 0x4b0   :  { %12438 = vst [vmem:[#allocation5 + $0xa70] sm:$0xff] %v11878_v25  ;;  %v11950_v13 = vmul.f32 %v17976_v14, %v11022_v41  ;;  %v11020_v59 = vmax.f32 %v9809_v43, 0.0  ;;  %v9928_v61 = vadd.f32 %v9927_v51, %v16158_v24  ;;  %v9929_v19 = vpop.f32.mrb[183].mxu0  ;;  %v18056_v25 = vrot.slane %v17966_v39, %v16174_v40 }
 0x4b1   :  { %12439 = vst [vmem:[#allocation5 + $0xa78] sm:$0xff] %v11879_v26  ;;  %v11951_v45 = vmul.f32 %v17982_v10, %v11023_v8  ;;  %v11021_v22 = vmax.f32 %v9811_v17, 0.0  ;;  %v9930_v0 = vadd.f32 %v9929_v19, %v16158_v24  ;;  %v9814_v3 = vpop.f32.mrb[182].mxu1  ;;  %v18062_v8 = vrot.slane %v17966_v39, %v16180_v54 }
 0x4b2   :  { %12510 = vst [vmem:[#allocation5 + $0xcb0] sm:$0xff] %v11950_v13  ;;  %v11948_v9 = vmul.f32 %v17988_v12, %v11020_v59  ;;  %v11092_v53 = vmax.f32 %v9928_v61, 0.0  ;;  %v9815_v35 = vadd.f32 %v9814_v3, %v16158_v24  ;;  %v9816_v47 = vpop.f32.mrb[183].mxu1  ;;  %v18068_v59 = vrot.slane %v17966_v39, %v16201_v60 }
 0x4b3   :  { %12511 = vst [vmem:[#allocation5 + $0xcb8] sm:$0xff] %v11951_v45  ;;  %v11949_v1 = vmul.f32 %v17994_v58, %v11021_v22  ;;  %v11093_v6 = vmax.f32 %v9930_v0, 0.0  ;;  %v9933_v62 = vpop.f32.mrb[184].mxu0  ;;  %v9817_v32 = vadd.f32 %v9816_v47, %v16158_v24  ;;  %v18074_v0 = vrot.slane %v17966_v39, %v16210_v28 }
 0x4b4   :  { %12508 = vst [vmem:[#allocation5 + $0xca0] sm:$0xff] %v11948_v9  ;;  %v12020_v15 = vmul.f32 %v17976_v14, %v11092_v53  ;;  %v11090_v56 = vmax.f32 %v9815_v35, 0.0  ;;  %v9934_v5 = vadd.f32 %v9933_v62, %v16176_v34  ;;  %v9935_v57 = vpop.f32.mrb[185].mxu0 }
 0x4b5   :  { %12509 = vst [vmem:[#allocation5 + $0xca8] sm:$0xff] %v11949_v1  ;;  %v12021_v36 = vmul.f32 %v17982_v10, %v11093_v6  ;;  %v11091_v33 = vmax.f32 %v9817_v32, 0.0  ;;  %v9936_v37 = vadd.f32 %v9935_v57, %v16176_v34  ;;  %v9820_v30 = vpop.f32.mrb[184].mxu1 }
 0x4b6   :  { %12580 = vst [vmem:[#allocation5 + $0xee0] sm:$0xff] %v12020_v15  ;;  %v12018_v4 = vmul.f32 %v17988_v12, %v11090_v56  ;;  %v11162_v27 = vmax.f32 %v9934_v5, 0.0  ;;  %v9821_v11 = vadd.f32 %v9820_v30, %v16176_v34  ;;  %v9822_v49 = vpop.f32.mrb[185].mxu1 }
 0x4b7   :  { %12581 = vst [vmem:[#allocation5 + $0xee8] sm:$0xff] %v12021_v36  ;;  %v12019_v42 = vmul.f32 %v17994_v58, %v11091_v33  ;;  %v11163_v63 = vmax.f32 %v9936_v37, 0.0  ;;  %v10117_v50 = vpop.f32.mrb[186].mxu0  ;;  %v9823_v44 = vadd.f32 %v9822_v49, %v16176_v34 }
 0x4b8   :  { %12578 = vst [vmem:[#allocation5 + $0xed0] sm:$0xff] %v12018_v4  ;;  %v12090_v48 = vmul.f32 %v17976_v14, %v11162_v27  ;;  %v11160_v52 = vmax.f32 %v9821_v11, 0.0  ;;  %v10118_v16 = vadd.f32 %v10117_v50, %v16048_v20  ;;  %v10119_v41 = vpop.f32.mrb[187].mxu0 }
 0x4b9   :  { %12579 = vst [vmem:[#allocation5 + $0xed8] sm:$0xff] %v12019_v42  ;;  %v12091_v43 = vmul.f32 %v17982_v10, %v11163_v63  ;;  %v11161_v2 = vmax.f32 %v9823_v44, 0.0  ;;  %v10120_v26 = vadd.f32 %v10119_v41, %v16048_v20  ;;  %v10004_v51 = vpop.f32.mrb[186].mxu1 }
 0x4ba   :  { %12650 = vst [vmem:[#allocation5 + $0x1110] sm:$0xff] %v12090_v48  ;;  %v12088_v14 = vmul.f32 %v17988_v12, %v11160_v52  ;;  %v10676_v17 = vmax.f32 %v10118_v16, 0.0  ;;  %v10005_v13 = vadd.f32 %v10004_v51, %v16048_v20  ;;  %v10006_v61 = vpop.f32.mrb[187].mxu1 }
 0x4bb   :  { %12651 = vst [vmem:[#allocation5 + $0x1118] sm:$0xff] %v12091_v43  ;;  %v12089_v10 = vmul.f32 %v17994_v58, %v11161_v2  ;;  %v10677_v19 = vmax.f32 %v10120_v26, 0.0  ;;  %v10123_v45 = vpop.f32.mrb[188].mxu0  ;;  %v10007_v22 = vadd.f32 %v10006_v61, %v16048_v20 }
 0x4bc   :  { %12648 = vst [vmem:[#allocation5 + $0x1100] sm:$0xff] %v12088_v14  ;;  %v11604_v12 = vmul.f32 %v18056_v25, %v10676_v17  ;;  %v10674_v3 = vmax.f32 %v10005_v13, 0.0  ;;  %v10124_v9 = vadd.f32 %v10123_v45, %v16069_v23  ;;  %v10125_v53 = vpop.f32.mrb[189].mxu0 }
 0x4bd   :  { %12649 = vst [vmem:[#allocation5 + $0x1108] sm:$0xff] %v12089_v10  ;;  %v11605_v35 = vmul.f32 %v18062_v8, %v10677_v19  ;;  %v10675_v47 = vmax.f32 %v10007_v22, 0.0  ;;  %v10126_v58 = vadd.f32 %v10125_v53, %v16069_v23  ;;  %v10010_v1 = vpop.f32.mrb[188].mxu1 }
 0x4be   :  { %12164 = vst [vmem:[#allocation5 + $0x1e0] sm:$0xff] %v11604_v12  ;;  %v11602_v6 = vmul.f32 %v18068_v59, %v10674_v3  ;;  %v10746_v62 = vmax.f32 %v10124_v9, 0.0  ;;  %v10011_v32 = vadd.f32 %v10010_v1, %v16069_v23  ;;  %v10012_v15 = vpop.f32.mrb[189].mxu1 }
 0x4bf   :  { %12165 = vst [vmem:[#allocation5 + $0x1e8] sm:$0xff] %v11605_v35  ;;  %v11603_v56 = vmul.f32 %v18074_v0, %v10675_v47  ;;  %v10747_v5 = vmax.f32 %v10126_v58, 0.0  ;;  %v10129_v57 = vpop.f32.mrb[190].mxu0  ;;  %v10013_v36 = vadd.f32 %v10012_v15, %v16069_v23 }
 0x4c0   :  { %12162 = vst [vmem:[#allocation5 + $0x1d0] sm:$0xff] %v11602_v6  ;;  %v11674_v33 = vmul.f32 %v18056_v25, %v10746_v62  ;;  %v10744_v37 = vmax.f32 %v10011_v32, 0.0  ;;  %v10130_v30 = vadd.f32 %v10129_v57, %v16086_v7  ;;  %v10131_v4 = vpop.f32.mrb[191].mxu0 }
 0x4c1   :  { %12163 = vst [vmem:[#allocation5 + $0x1d8] sm:$0xff] %v11603_v56  ;;  %v11675_v27 = vmul.f32 %v18062_v8, %v10747_v5  ;;  %v10745_v11 = vmax.f32 %v10013_v36, 0.0  ;;  %v10132_v49 = vadd.f32 %v10131_v4, %v16086_v7  ;;  %v10016_v42 = vpop.f32.mrb[190].mxu1 }
 0x4c2   :  { %12234 = vst [vmem:[#allocation5 + $0x410] sm:$0xff] %v11674_v33  ;;  %v11672_v63 = vmul.f32 %v18068_v59, %v10744_v37  ;;  %v10816_v50 = vmax.f32 %v10130_v30, 0.0  ;;  %v10017_v44 = vadd.f32 %v10016_v42, %v16086_v7  ;;  %v10018_v48 = vpop.f32.mrb[191].mxu1 }
 0x4c3   :  { %12235 = vst [vmem:[#allocation5 + $0x418] sm:$0xff] %v11675_v27  ;;  %v11673_v52 = vmul.f32 %v18074_v0, %v10745_v11  ;;  %v10817_v16 = vmax.f32 %v10132_v49, 0.0  ;;  %v10135_v41 = vpop.f32.mrb[192].mxu0  ;;  %v10019_v43 = vadd.f32 %v10018_v48, %v16086_v7 }
 0x4c4   :  { %12232 = vst [vmem:[#allocation5 + $0x400] sm:$0xff] %v11672_v63  ;;  %v11744_v2 = vmul.f32 %v18056_v25, %v10816_v50  ;;  %v10814_v26 = vmax.f32 %v10017_v44, 0.0  ;;  %v10136_v51 = vadd.f32 %v10135_v41, %v16101_v55  ;;  %v10137_v14 = vpop.f32.mrb[193].mxu0 }
 0x4c5   :  { %12233 = vst [vmem:[#allocation5 + $0x408] sm:$0xff] %v11673_v52  ;;  %v11745_v17 = vmul.f32 %v18062_v8, %v10817_v16  ;;  %v10815_v13 = vmax.f32 %v10019_v43, 0.0  ;;  %v10138_v61 = vadd.f32 %v10137_v14, %v16101_v55  ;;  %v10022_v10 = vpop.f32.mrb[192].mxu1 }
 0x4c6   :  { %12304 = vst [vmem:[#allocation5 + $0x640] sm:$0xff] %v11744_v2  ;;  %v11742_v19 = vmul.f32 %v18068_v59, %v10814_v26  ;;  %v10886_v45 = vmax.f32 %v10136_v51, 0.0  ;;  %v10023_v22 = vadd.f32 %v10022_v10, %v16101_v55  ;;  %v10024_v12 = vpop.f32.mrb[193].mxu1 }
 0x4c7   :  { %12305 = vst [vmem:[#allocation5 + $0x648] sm:$0xff] %v11745_v17  ;;  %v11743_v3 = vmul.f32 %v18074_v0, %v10815_v13  ;;  %v10887_v9 = vmax.f32 %v10138_v61, 0.0  ;;  %v10141_v53 = vpop.f32.mrb[194].mxu0  ;;  %v10025_v35 = vadd.f32 %v10024_v12, %v16101_v55 }
 0x4c8   :  { %12302 = vst [vmem:[#allocation5 + $0x630] sm:$0xff] %v11742_v19  ;;  %v11814_v47 = vmul.f32 %v18056_v25, %v10886_v45  ;;  %v10884_v58 = vmax.f32 %v10023_v22, 0.0  ;;  %v10142_v1 = vadd.f32 %v10141_v53, %v16120_v31  ;;  %v10143_v6 = vpop.f32.mrb[195].mxu0 }
 0x4c9   :  { %12303 = vst [vmem:[#allocation5 + $0x638] sm:$0xff] %v11743_v3  ;;  %v11815_v62 = vmul.f32 %v18062_v8, %v10887_v9  ;;  %v10885_v32 = vmax.f32 %v10025_v35, 0.0  ;;  %v10144_v15 = vadd.f32 %v10143_v6, %v16120_v31  ;;  %v10028_v56 = vpop.f32.mrb[194].mxu1 }
 0x4ca   :  { %12374 = vst [vmem:[#allocation5 + $0x870] sm:$0xff] %v11814_v47  ;;  %v11812_v5 = vmul.f32 %v18068_v59, %v10884_v58  ;;  %v10956_v57 = vmax.f32 %v10142_v1, 0.0  ;;  %v10029_v36 = vadd.f32 %v10028_v56, %v16120_v31  ;;  %v10030_v33 = vpop.f32.mrb[195].mxu1 }
 0x4cb   :  { %12375 = vst [vmem:[#allocation5 + $0x878] sm:$0xff] %v11815_v62  ;;  %v11813_v37 = vmul.f32 %v18074_v0, %v10885_v32  ;;  %v10957_v30 = vmax.f32 %v10144_v15, 0.0  ;;  %v10147_v4 = vpop.f32.mrb[196].mxu0  ;;  %v10031_v27 = vadd.f32 %v10030_v33, %v16120_v31 }
 0x4cc   :  { %12372 = vst [vmem:[#allocation5 + $0x860] sm:$0xff] %v11812_v5  ;;  %v11884_v11 = vmul.f32 %v18056_v25, %v10956_v57  ;;  %v10954_v49 = vmax.f32 %v10029_v36, 0.0  ;;  %v10148_v42 = vadd.f32 %v10147_v4, %v16139_v46  ;;  %v10149_v63 = vpop.f32.mrb[197].mxu0 }
 0x4cd   :  { %12373 = vst [vmem:[#allocation5 + $0x868] sm:$0xff] %v11813_v37  ;;  %v11885_v50 = vmul.f32 %v18062_v8, %v10957_v30  ;;  %v10955_v44 = vmax.f32 %v10031_v27, 0.0  ;;  %v10150_v48 = vadd.f32 %v10149_v63, %v16139_v46  ;;  %v10034_v52 = vpop.f32.mrb[196].mxu1  ;;  %v18128_v30 = vld [vmem:[#allocation2 + $0x40] sm:$0x3f] }
 0x4ce   :  { %12444 = vst [vmem:[#allocation5 + $0xaa0] sm:$0xff] %v11884_v11  ;;  %v11882_v16 = vmul.f32 %v18068_v59, %v10954_v49  ;;  %v11026_v41 = vmax.f32 %v10148_v42, 0.0  ;;  %v10035_v43 = vadd.f32 %v10034_v52, %v16139_v46  ;;  %v10036_v2 = vpop.f32.mrb[197].mxu1 }
 0x4cf   :  { %12445 = vst [vmem:[#allocation5 + $0xaa8] sm:$0xff] %v11885_v50  ;;  %v11883_v26 = vmul.f32 %v18074_v0, %v10955_v44  ;;  %v11027_v51 = vmax.f32 %v10150_v48, 0.0  ;;  %v10153_v14 = vpop.f32.mrb[198].mxu0  ;;  %v10037_v17 = vadd.f32 %v10036_v2, %v16139_v46 }
 0x4d0   :  { %12442 = vst [vmem:[#allocation5 + $0xa90] sm:$0xff] %v11882_v16  ;;  %v11954_v13 = vmul.f32 %v18056_v25, %v11026_v41  ;;  %v11024_v61 = vmax.f32 %v10035_v43, 0.0  ;;  %v10154_v10 = vadd.f32 %v10153_v14, %v16158_v24  ;;  %v10155_v19 = vpop.f32.mrb[199].mxu0  ;;  %v18138_v41 = vrot.slane %v18128_v30, %v16023_v21 }
 0x4d1   :  { %12443 = vst [vmem:[#allocation5 + $0xa98] sm:$0xff] %v11883_v26  ;;  %v11955_v45 = vmul.f32 %v18062_v8, %v11027_v51  ;;  %v11025_v22 = vmax.f32 %v10037_v17, 0.0  ;;  %v10156_v12 = vadd.f32 %v10155_v19, %v16158_v24  ;;  %v10040_v3 = vpop.f32.mrb[198].mxu1  ;;  %v18144_v14 = vrot.slane %v18128_v30, %v16030_v18 }
 0x4d2   :  { %12514 = vst [vmem:[#allocation5 + $0xcd0] sm:$0xff] %v11954_v13  ;;  %v11952_v9 = vmul.f32 %v18068_v59, %v11024_v61  ;;  %v11096_v53 = vmax.f32 %v10154_v10, 0.0  ;;  %v10041_v35 = vadd.f32 %v10040_v3, %v16158_v24  ;;  %v10042_v47 = vpop.f32.mrb[199].mxu1  ;;  %v18150_v21 = vrot.slane %v17966_v39, %v16382_v38 }
 0x4d3   :  { %12515 = vst [vmem:[#allocation5 + $0xcd8] sm:$0xff] %v11955_v45  ;;  %v11953_v58 = vmul.f32 %v18074_v0, %v11025_v22  ;;  %v11097_v1 = vmax.f32 %v10156_v12, 0.0  ;;  %v10159_v6 = vpop.f32.mrb[200].mxu0  ;;  %v10043_v62 = vadd.f32 %v10042_v47, %v16158_v24  ;;  %v18156_v22 = vrot.slane %v17966_v39, %v16388_v29 }
 0x4d4   :  { %12512 = vst [vmem:[#allocation5 + $0xcc0] sm:$0xff] %v11952_v9  ;;  %v12024_v32 = vmul.f32 %v18056_v25, %v11096_v53  ;;  %v11094_v15 = vmax.f32 %v10041_v35, 0.0  ;;  %v10160_v56 = vadd.f32 %v10159_v6, %v16176_v34  ;;  %v10161_v5 = vpop.f32.mrb[201].mxu0 }
 0x4d5   :  { %12513 = vst [vmem:[#allocation5 + $0xcc8] sm:$0xff] %v11953_v58  ;;  %v12025_v57 = vmul.f32 %v18062_v8, %v11097_v1  ;;  %v11095_v36 = vmax.f32 %v10043_v62, 0.0  ;;  %v10162_v33 = vadd.f32 %v10161_v5, %v16176_v34  ;;  %v10046_v37 = vpop.f32.mrb[200].mxu1 }
 0x4d6   :  { %12584 = vst [vmem:[#allocation5 + $0xf00] sm:$0xff] %v12024_v32  ;;  %v12022_v4 = vmul.f32 %v18068_v59, %v11094_v15  ;;  %v11166_v27 = vmax.f32 %v10160_v56, 0.0  ;;  %v10047_v11 = vadd.f32 %v10046_v37, %v16176_v34  ;;  %v10048_v49 = vpop.f32.mrb[201].mxu1 }
 0x4d7   :  { %12585 = vst [vmem:[#allocation5 + $0xf08] sm:$0xff] %v12025_v57  ;;  %v12023_v42 = vmul.f32 %v18074_v0, %v11095_v36  ;;  %v11167_v63 = vmax.f32 %v10162_v33, 0.0  ;;  %v10343_v50 = vpop.f32.mrb[202].mxu0  ;;  %v10049_v44 = vadd.f32 %v10048_v49, %v16176_v34 }
 0x4d8   :  { %12582 = vst [vmem:[#allocation5 + $0xef0] sm:$0xff] %v12022_v4  ;;  %v12094_v48 = vmul.f32 %v18056_v25, %v11166_v27  ;;  %v11164_v52 = vmax.f32 %v10047_v11, 0.0  ;;  %v10344_v16 = vadd.f32 %v10343_v50, %v16048_v20  ;;  %v10345_v43 = vpop.f32.mrb[203].mxu0 }
 0x4d9   :  { %12583 = vst [vmem:[#allocation5 + $0xef8] sm:$0xff] %v12023_v42  ;;  %v12095_v2 = vmul.f32 %v18062_v8, %v11167_v63  ;;  %v11165_v26 = vmax.f32 %v10049_v44, 0.0  ;;  %v10346_v51 = vadd.f32 %v10345_v43, %v16048_v20  ;;  %v10230_v17 = vpop.f32.mrb[202].mxu1 }
 0x4da   :  { %12654 = vst [vmem:[#allocation5 + $0x1130] sm:$0xff] %v12094_v48  ;;  %v12092_v25 = vmul.f32 %v18068_v59, %v11164_v52  ;;  %v10680_v13 = vmax.f32 %v10344_v16, 0.0  ;;  %v10231_v61 = vadd.f32 %v10230_v17, %v16048_v20  ;;  %v10232_v10 = vpop.f32.mrb[203].mxu1 }
 0x4db   :  { %12655 = vst [vmem:[#allocation5 + $0x1138] sm:$0xff] %v12095_v2  ;;  %v12093_v8 = vmul.f32 %v18074_v0, %v11165_v26  ;;  %v10681_v19 = vmax.f32 %v10346_v51, 0.0  ;;  %v10349_v45 = vpop.f32.mrb[204].mxu0  ;;  %v10233_v18 = vadd.f32 %v10232_v10, %v16048_v20 }
 0x4dc   :  { %12652 = vst [vmem:[#allocation5 + $0x1120] sm:$0xff] %v12092_v25  ;;  %v11608_v59 = vmul.f32 %v18138_v41, %v10680_v13  ;;  %v10678_v12 = vmax.f32 %v10231_v61, 0.0  ;;  %v10350_v3 = vadd.f32 %v10349_v45, %v16069_v23  ;;  %v10351_v38 = vpop.f32.mrb[205].mxu0 }
 0x4dd   :  { %12653 = vst [vmem:[#allocation5 + $0x1128] sm:$0xff] %v12093_v8  ;;  %v11609_v9 = vmul.f32 %v18144_v14, %v10681_v19  ;;  %v10679_v53 = vmax.f32 %v10233_v18, 0.0  ;;  %v10352_v0 = vadd.f32 %v10351_v38, %v16069_v23  ;;  %v10236_v35 = vpop.f32.mrb[204].mxu1 }
 0x4de   :  { %12168 = vst [vmem:[#allocation5 + $0x200] sm:$0xff] %v11608_v59  ;;  %v11606_v47 = vmul.f32 %v18150_v21, %v10678_v12  ;;  %v10750_v58 = vmax.f32 %v10350_v3, 0.0  ;;  %v10237_v29 = vadd.f32 %v10236_v35, %v16069_v23  ;;  %v10238_v39 = vpop.f32.mrb[205].mxu1 }
 0x4df   :  { %12169 = vst [vmem:[#allocation5 + $0x208] sm:$0xff] %v11609_v9  ;;  %v11607_v1 = vmul.f32 %v18156_v22, %v10679_v53  ;;  %v10751_v6 = vmax.f32 %v10352_v0, 0.0  ;;  %v10355_v62 = vpop.f32.mrb[206].mxu0  ;;  %v10239_v32 = vadd.f32 %v10238_v39, %v16069_v23 }
 0x4e0   :  { %12166 = vst [vmem:[#allocation5 + $0x1f0] sm:$0xff] %v11606_v47  ;;  %v11678_v15 = vmul.f32 %v18138_v41, %v10750_v58  ;;  %v10748_v56 = vmax.f32 %v10237_v29, 0.0  ;;  %v10356_v5 = vadd.f32 %v10355_v62, %v16086_v7  ;;  %v10357_v57 = vpop.f32.mrb[207].mxu0 }
 0x4e1   :  { %12167 = vst [vmem:[#allocation5 + $0x1f8] sm:$0xff] %v11607_v1  ;;  %v11679_v36 = vmul.f32 %v18144_v14, %v10751_v6  ;;  %v10749_v33 = vmax.f32 %v10239_v32, 0.0  ;;  %v10358_v37 = vadd.f32 %v10357_v57, %v16086_v7  ;;  %v10242_v4 = vpop.f32.mrb[206].mxu1 }
 0x4e2   :  { %12238 = vst [vmem:[#allocation5 + $0x430] sm:$0xff] %v11678_v15  ;;  %v11676_v27 = vmul.f32 %v18150_v21, %v10748_v56  ;;  %v10820_v11 = vmax.f32 %v10356_v5, 0.0  ;;  %v10243_v49 = vadd.f32 %v10242_v4, %v16086_v7  ;;  %v10244_v42 = vpop.f32.mrb[207].mxu1 }
 0x4e3   :  { %12239 = vst [vmem:[#allocation5 + $0x438] sm:$0xff] %v11679_v36  ;;  %v11677_v63 = vmul.f32 %v18156_v22, %v10749_v33  ;;  %v10821_v50 = vmax.f32 %v10358_v37, 0.0  ;;  %v10361_v44 = vpop.f32.mrb[208].mxu0  ;;  %v10245_v48 = vadd.f32 %v10244_v42, %v16086_v7 }
 0x4e4   :  { %12236 = vst [vmem:[#allocation5 + $0x420] sm:$0xff] %v11676_v27  ;;  %v11748_v52 = vmul.f32 %v18138_v41, %v10820_v11  ;;  %v10818_v16 = vmax.f32 %v10243_v49, 0.0  ;;  %v10362_v43 = vadd.f32 %v10361_v44, %v16101_v55  ;;  %v10363_v2 = vpop.f32.mrb[209].mxu0 }
 0x4e5   :  { %12237 = vst [vmem:[#allocation5 + $0x428] sm:$0xff] %v11677_v63  ;;  %v11749_v26 = vmul.f32 %v18144_v14, %v10821_v50  ;;  %v10819_v51 = vmax.f32 %v10245_v48, 0.0  ;;  %v10364_v17 = vadd.f32 %v10363_v2, %v16101_v55  ;;  %v10248_v25 = vpop.f32.mrb[208].mxu1 }
 0x4e6   :  { %12308 = vst [vmem:[#allocation5 + $0x660] sm:$0xff] %v11748_v52  ;;  %v11746_v13 = vmul.f32 %v18150_v21, %v10818_v16  ;;  %v10890_v61 = vmax.f32 %v10362_v43, 0.0  ;;  %v10249_v10 = vadd.f32 %v10248_v25, %v16101_v55  ;;  %v10250_v8 = vpop.f32.mrb[209].mxu1 }
 0x4e7   :  { %12309 = vst [vmem:[#allocation5 + $0x668] sm:$0xff] %v11749_v26  ;;  %v11747_v19 = vmul.f32 %v18156_v22, %v10819_v51  ;;  %v10891_v45 = vmax.f32 %v10364_v17, 0.0  ;;  %v10367_v18 = vpop.f32.mrb[210].mxu0  ;;  %v10251_v59 = vadd.f32 %v10250_v8, %v16101_v55 }
 0x4e8   :  { %12306 = vst [vmem:[#allocation5 + $0x650] sm:$0xff] %v11746_v13  ;;  %v11818_v12 = vmul.f32 %v18138_v41, %v10890_v61  ;;  %v10888_v3 = vmax.f32 %v10249_v10, 0.0  ;;  %v10368_v38 = vadd.f32 %v10367_v18, %v16120_v31  ;;  %v10369_v9 = vpop.f32.mrb[211].mxu0 }
 0x4e9   :  { %12307 = vst [vmem:[#allocation5 + $0x658] sm:$0xff] %v11747_v19  ;;  %v11819_v53 = vmul.f32 %v18144_v14, %v10891_v45  ;;  %v10889_v0 = vmax.f32 %v10251_v59, 0.0  ;;  %v10370_v35 = vadd.f32 %v10369_v9, %v16120_v31  ;;  %v10254_v47 = vpop.f32.mrb[210].mxu1 }
 0x4ea   :  { %12378 = vst [vmem:[#allocation5 + $0x890] sm:$0xff] %v11818_v12  ;;  %v11816_v58 = vmul.f32 %v18150_v21, %v10888_v3  ;;  %v10960_v29 = vmax.f32 %v10368_v38, 0.0  ;;  %v10255_v39 = vadd.f32 %v10254_v47, %v16120_v31  ;;  %v10256_v1 = vpop.f32.mrb[211].mxu1 }
 0x4eb   :  { %12379 = vst [vmem:[#allocation5 + $0x898] sm:$0xff] %v11819_v53  ;;  %v11817_v6 = vmul.f32 %v18156_v22, %v10889_v0  ;;  %v10961_v62 = vmax.f32 %v10370_v35, 0.0  ;;  %v10373_v32 = vpop.f32.mrb[212].mxu0  ;;  %v10257_v15 = vadd.f32 %v10256_v1, %v16120_v31 }
 0x4ec   :  { %12376 = vst [vmem:[#allocation5 + $0x880] sm:$0xff] %v11816_v58  ;;  %v11888_v56 = vmul.f32 %v18138_v41, %v10960_v29  ;;  %v10958_v5 = vmax.f32 %v10255_v39, 0.0  ;;  %v10374_v57 = vadd.f32 %v10373_v32, %v16139_v46  ;;  %v10375_v36 = vpop.f32.mrb[213].mxu0 }
 0x4ed   :  { %12377 = vst [vmem:[#allocation5 + $0x888] sm:$0xff] %v11817_v6  ;;  %v11889_v33 = vmul.f32 %v18144_v14, %v10961_v62  ;;  %v10959_v37 = vmax.f32 %v10257_v15, 0.0  ;;  %v10376_v4 = vadd.f32 %v10375_v36, %v16139_v46  ;;  %v10260_v27 = vpop.f32.mrb[212].mxu1 }
 0x4ee   :  { %12448 = vst [vmem:[#allocation5 + $0xac0] sm:$0xff] %v11888_v56  ;;  %v11886_v11 = vmul.f32 %v18150_v21, %v10958_v5  ;;  %v11030_v49 = vmax.f32 %v10374_v57, 0.0  ;;  %v10261_v42 = vadd.f32 %v10260_v27, %v16139_v46  ;;  %v10262_v63 = vpop.f32.mrb[213].mxu1 }
 0x4ef   :  { %12449 = vst [vmem:[#allocation5 + $0xac8] sm:$0xff] %v11889_v33  ;;  %v11887_v50 = vmul.f32 %v18156_v22, %v10959_v37  ;;  %v11031_v44 = vmax.f32 %v10376_v4, 0.0  ;;  %v10379_v48 = vpop.f32.mrb[214].mxu0  ;;  %v10263_v52 = vadd.f32 %v10262_v63, %v16139_v46  ;;  %v18218_v33 = vrot.slane %v18128_v30, %v16174_v40 }
 0x4f0   :  { %12446 = vst [vmem:[#allocation5 + $0xab0] sm:$0xff] %v11886_v11  ;;  %v11958_v16 = vmul.f32 %v18138_v41, %v11030_v49  ;;  %v11028_v43 = vmax.f32 %v10261_v42, 0.0  ;;  %v10380_v2 = vadd.f32 %v10379_v48, %v16158_v24  ;;  %v10381_v26 = vpop.f32.mrb[215].mxu0  ;;  %v18224_v49 = vrot.slane %v18128_v30, %v16180_v54 }
 0x4f1   :  { %12447 = vst [vmem:[#allocation5 + $0xab8] sm:$0xff] %v11887_v50  ;;  %v11959_v51 = vmul.f32 %v18144_v14, %v11031_v44  ;;  %v11029_v17 = vmax.f32 %v10263_v52, 0.0  ;;  %v10382_v25 = vadd.f32 %v10381_v26, %v16158_v24  ;;  %v10266_v13 = vpop.f32.mrb[214].mxu1  ;;  %v18230_v40 = vrot.slane %v18128_v30, %v16201_v60 }
 0x4f2   :  { %12518 = vst [vmem:[#allocation5 + $0xcf0] sm:$0xff] %v11958_v16  ;;  %v11956_v61 = vmul.f32 %v18150_v21, %v11028_v43  ;;  %v11100_v10 = vmax.f32 %v10380_v2, 0.0  ;;  %v10267_v8 = vadd.f32 %v10266_v13, %v16158_v24  ;;  %v10268_v19 = vpop.f32.mrb[215].mxu1  ;;  %v18236_v16 = vrot.slane %v18128_v30, %v16210_v28 }
 0x4f3   :  { %12519 = vst [vmem:[#allocation5 + $0xcf8] sm:$0xff] %v11959_v51  ;;  %v11957_v45 = vmul.f32 %v18156_v22, %v11029_v17  ;;  %v11101_v18 = vmax.f32 %v10382_v25, 0.0  ;;  %v10385_v59 = vpop.f32.mrb[216].mxu0  ;;  %v10269_v12 = vadd.f32 %v10268_v19, %v16158_v24 }
 0x4f4   :  { %12516 = vst [vmem:[#allocation5 + $0xce0] sm:$0xff] %v11956_v61  ;;  %v12028_v3 = vmul.f32 %v18138_v41, %v11100_v10  ;;  %v11098_v38 = vmax.f32 %v10267_v8, 0.0  ;;  %v10386_v9 = vadd.f32 %v10385_v59, %v16176_v34  ;;  %v10387_v53 = vpop.f32.mrb[217].mxu0 }
 0x4f5   :  { %12517 = vst [vmem:[#allocation5 + $0xce8] sm:$0xff] %v11957_v45  ;;  %v12029_v0 = vmul.f32 %v18144_v14, %v11101_v18  ;;  %v11099_v35 = vmax.f32 %v10269_v12, 0.0  ;;  %v10388_v47 = vadd.f32 %v10387_v53, %v16176_v34  ;;  %v10272_v58 = vpop.f32.mrb[216].mxu1 }
 0x4f6   :  { %12588 = vst [vmem:[#allocation5 + $0xf20] sm:$0xff] %v12028_v3  ;;  %v12026_v29 = vmul.f32 %v18150_v21, %v11098_v38  ;;  %v11170_v39 = vmax.f32 %v10386_v9, 0.0  ;;  %v10273_v1 = vadd.f32 %v10272_v58, %v16176_v34  ;;  %v10274_v6 = vpop.f32.mrb[217].mxu1 }
 0x4f7   :  { %12589 = vst [vmem:[#allocation5 + $0xf28] sm:$0xff] %v12029_v0  ;;  %v12027_v62 = vmul.f32 %v18156_v22, %v11099_v35  ;;  %v11171_v32 = vmax.f32 %v10388_v47, 0.0  ;;  %v10569_v15 = vpop.f32.mrb[218].mxu0  ;;  %v10275_v56 = vadd.f32 %v10274_v6, %v16176_v34 }
 0x4f8   :  { %12586 = vst [vmem:[#allocation5 + $0xf10] sm:$0xff] %v12026_v29  ;;  %v12098_v5 = vmul.f32 %v18138_v41, %v11170_v39  ;;  %v11168_v57 = vmax.f32 %v10273_v1, 0.0  ;;  %v10570_v36 = vadd.f32 %v10569_v15, %v16048_v20  ;;  %v10571_v37 = vpop.f32.mrb[219].mxu0 }
 0x4f9   :  { %12587 = vst [vmem:[#allocation5 + $0xf18] sm:$0xff] %v12027_v62  ;;  %v12099_v4 = vmul.f32 %v18144_v14, %v11171_v32  ;;  %v11169_v27 = vmax.f32 %v10275_v56, 0.0  ;;  %v10572_v11 = vadd.f32 %v10571_v37, %v16048_v20  ;;  %v10456_v42 = vpop.f32.mrb[218].mxu1 }
 0x4fa   :  { %12658 = vst [vmem:[#allocation5 + $0x1150] sm:$0xff] %v12098_v5  ;;  %v12096_v41 = vmul.f32 %v18150_v21, %v11168_v57  ;;  %v10684_v63 = vmax.f32 %v10570_v36, 0.0  ;;  %v10457_v50 = vadd.f32 %v10456_v42, %v16048_v20  ;;  %v10458_v44 = vpop.f32.mrb[219].mxu1 }
 0x4fb   :  { %12659 = vst [vmem:[#allocation5 + $0x1158] sm:$0xff] %v12099_v4  ;;  %v12097_v14 = vmul.f32 %v18156_v22, %v11169_v27  ;;  %v10685_v48 = vmax.f32 %v10572_v11, 0.0  ;;  %v10575_v52 = vpop.f32.mrb[220].mxu0  ;;  %v10459_v54 = vadd.f32 %v10458_v44, %v16048_v20 }
 0x4fc   :  { %12656 = vst [vmem:[#allocation5 + $0x1140] sm:$0xff] %v12096_v41  ;;  %v11612_v21 = vmul.f32 %v18218_v33, %v10684_v63  ;;  %v10682_v43 = vmax.f32 %v10457_v50, 0.0  ;;  %v10576_v2 = vadd.f32 %v10575_v52, %v16069_v23  ;;  %v10577_v60 = vpop.f32.mrb[221].mxu0 }
 0x4fd   :  { %12657 = vst [vmem:[#allocation5 + $0x1148] sm:$0xff] %v12097_v14  ;;  %v11613_v26 = vmul.f32 %v18224_v49, %v10685_v48  ;;  %v10683_v51 = vmax.f32 %v10459_v54, 0.0  ;;  %v10578_v22 = vadd.f32 %v10577_v60, %v16069_v23  ;;  %v10462_v17 = vpop.f32.mrb[220].mxu1 }
 0x4fe   :  { %12172 = vst [vmem:[#allocation5 + $0x220] sm:$0xff] %v11612_v21  ;;  %v11610_v20 = vmul.f32 %v18230_v40, %v10682_v43  ;;  %v10754_v25 = vmax.f32 %v10576_v2, 0.0  ;;  %v10463_v28 = vadd.f32 %v10462_v17, %v16069_v23  ;;  %v10464_v30 = vpop.f32.mrb[221].mxu1 }
 0x4ff   :  { %12173 = vst [vmem:[#allocation5 + $0x228] sm:$0xff] %v11613_v26  ;;  %v11611_v13 = vmul.f32 %v18236_v16, %v10683_v51  ;;  %v10755_v61 = vmax.f32 %v10578_v22, 0.0  ;;  %v10581_v10 = vpop.f32.mrb[222].mxu0  ;;  %v10465_v8 = vadd.f32 %v10464_v30, %v16069_v23 }
 0x500   :  { %12170 = vst [vmem:[#allocation5 + $0x210] sm:$0xff] %v11610_v20  ;;  %v11682_v19 = vmul.f32 %v18218_v33, %v10754_v25  ;;  %v10752_v45 = vmax.f32 %v10463_v28, 0.0  ;;  %v10582_v18 = vadd.f32 %v10581_v10, %v16086_v7  ;;  %v10583_v59 = vpop.f32.mrb[223].mxu0 }
 0x501   :  { %12171 = vst [vmem:[#allocation5 + $0x218] sm:$0xff] %v11611_v13  ;;  %v11683_v12 = vmul.f32 %v18224_v49, %v10755_v61  ;;  %v10753_v3 = vmax.f32 %v10465_v8, 0.0  ;;  %v10584_v38 = vadd.f32 %v10583_v59, %v16086_v7  ;;  %v10468_v9 = vpop.f32.mrb[222].mxu1 }
 0x502   :  { %12242 = vst [vmem:[#allocation5 + $0x450] sm:$0xff] %v11682_v19  ;;  %v11680_v53 = vmul.f32 %v18230_v40, %v10752_v45  ;;  %v10824_v0 = vmax.f32 %v10582_v18, 0.0  ;;  %v10469_v23 = vadd.f32 %v10468_v9, %v16086_v7  ;;  %v10470_v35 = vpop.f32.mrb[223].mxu1 }
 0x503   :  { %12243 = vst [vmem:[#allocation5 + $0x458] sm:$0xff] %v11683_v12  ;;  %v11681_v47 = vmul.f32 %v18236_v16, %v10753_v3  ;;  %v10825_v58 = vmax.f32 %v10584_v38, 0.0  ;;  %v10587_v29 = vpop.f32.mrb[224].mxu0  ;;  %v10471_v39 = vadd.f32 %v10470_v35, %v16086_v7 }
 0x504   :  { %12240 = vst [vmem:[#allocation5 + $0x440] sm:$0xff] %v11680_v53  ;;  %v11752_v1 = vmul.f32 %v18218_v33, %v10824_v0  ;;  %v10822_v6 = vmax.f32 %v10469_v23, 0.0  ;;  %v10588_v62 = vadd.f32 %v10587_v29, %v16101_v55  ;;  %v10589_v32 = vpop.f32.mrb[225].mxu0 }
 0x505   :  { %12241 = vst [vmem:[#allocation5 + $0x448] sm:$0xff] %v11681_v47  ;;  %v11753_v15 = vmul.f32 %v18224_v49, %v10825_v58  ;;  %v10823_v56 = vmax.f32 %v10471_v39, 0.0  ;;  %v10590_v5 = vadd.f32 %v10589_v32, %v16101_v55  ;;  %v10474_v57 = vpop.f32.mrb[224].mxu1 }
 0x506   :  { %12312 = vst [vmem:[#allocation5 + $0x680] sm:$0xff] %v11752_v1  ;;  %v11750_v36 = vmul.f32 %v18230_v40, %v10822_v6  ;;  %v10894_v37 = vmax.f32 %v10588_v62, 0.0  ;;  %v10475_v7 = vadd.f32 %v10474_v57, %v16101_v55  ;;  %v10476_v4 = vpop.f32.mrb[225].mxu1 }
 0x507   :  { %12313 = vst [vmem:[#allocation5 + $0x688] sm:$0xff] %v11753_v15  ;;  %v11751_v27 = vmul.f32 %v18236_v16, %v10823_v56  ;;  %v10895_v11 = vmax.f32 %v10590_v5, 0.0  ;;  %v10593_v42 = vpop.f32.mrb[226].mxu0  ;;  %v10477_v41 = vadd.f32 %v10476_v4, %v16101_v55 }
 0x508   :  { %12310 = vst [vmem:[#allocation5 + $0x670] sm:$0xff] %v11750_v36  ;;  %v11822_v63 = vmul.f32 %v18218_v33, %v10894_v37  ;;  %v10892_v50 = vmax.f32 %v10475_v7, 0.0  ;;  %v10594_v44 = vadd.f32 %v10593_v42, %v16120_v31  ;;  %v10595_v14 = vpop.f32.mrb[227].mxu0 }
 0x509   :  { %12311 = vst [vmem:[#allocation5 + $0x678] sm:$0xff] %v11751_v27  ;;  %v11823_v48 = vmul.f32 %v18224_v49, %v10895_v11  ;;  %v10893_v52 = vmax.f32 %v10477_v41, 0.0  ;;  %v10596_v54 = vadd.f32 %v10595_v14, %v16120_v31  ;;  %v10480_v21 = vpop.f32.mrb[226].mxu1 }
 0x50a   :  { %12382 = vst [vmem:[#allocation5 + $0x8b0] sm:$0xff] %v11822_v63  ;;  %v11820_v43 = vmul.f32 %v18230_v40, %v10892_v50  ;;  %v10964_v2 = vmax.f32 %v10594_v44, 0.0  ;;  %v10481_v55 = vadd.f32 %v10480_v21, %v16120_v31  ;;  %v10482_v60 = vpop.f32.mrb[227].mxu1 }
 0x50b   :  { %12383 = vst [vmem:[#allocation5 + $0x8b8] sm:$0xff] %v11823_v48  ;;  %v11821_v26 = vmul.f32 %v18236_v16, %v10893_v52  ;;  %v10965_v51 = vmax.f32 %v10596_v54, 0.0  ;;  %v10599_v22 = vpop.f32.mrb[228].mxu0  ;;  %v10483_v17 = vadd.f32 %v10482_v60, %v16120_v31 }
 0x50c   :  { %12380 = vst [vmem:[#allocation5 + $0x8a0] sm:$0xff] %v11820_v43  ;;  %v11892_v20 = vmul.f32 %v18218_v33, %v10964_v2  ;;  %v10962_v25 = vmax.f32 %v10481_v55, 0.0  ;;  %v10600_v28 = vadd.f32 %v10599_v22, %v16139_v46  ;;  %v10601_v30 = vpop.f32.mrb[229].mxu0 }
 0x50d   :  { %12381 = vst [vmem:[#allocation5 + $0x8a8] sm:$0xff] %v11821_v26  ;;  %v11893_v13 = vmul.f32 %v18224_v49, %v10965_v51  ;;  %v10963_v61 = vmax.f32 %v10483_v17, 0.0  ;;  %v10602_v10 = vadd.f32 %v10601_v30, %v16139_v46  ;;  %v10486_v8 = vpop.f32.mrb[228].mxu1 }
 0x50e   :  { %12452 = vst [vmem:[#allocation5 + $0xae0] sm:$0xff] %v11892_v20  ;;  %v11890_v19 = vmul.f32 %v18230_v40, %v10962_v25  ;;  %v11034_v45 = vmax.f32 %v10600_v28, 0.0  ;;  %v10487_v31 = vadd.f32 %v10486_v8, %v16139_v46  ;;  %v10488_v18 = vpop.f32.mrb[229].mxu1 }
 0x50f   :  { %12453 = vst [vmem:[#allocation5 + $0xae8] sm:$0xff] %v11893_v13  ;;  %v11891_v59 = vmul.f32 %v18236_v16, %v10963_v61  ;;  %v11035_v12 = vmax.f32 %v10602_v10, 0.0  ;;  %v10605_v3 = vpop.f32.mrb[230].mxu0  ;;  %v10489_v38 = vadd.f32 %v10488_v18, %v16139_v46 }
 0x510   :  { %12450 = vst [vmem:[#allocation5 + $0xad0] sm:$0xff] %v11890_v19  ;;  %v11962_v9 = vmul.f32 %v18218_v33, %v11034_v45  ;;  %v11032_v53 = vmax.f32 %v10487_v31, 0.0  ;;  %v10606_v0 = vadd.f32 %v10605_v3, %v16158_v24  ;;  %v10607_v23 = vpop.f32.mrb[231].mxu0 }
 0x511   :  { %12451 = vst [vmem:[#allocation5 + $0xad8] sm:$0xff] %v11891_v59  ;;  %v11963_v35 = vmul.f32 %v18224_v49, %v11035_v12  ;;  %v11033_v47 = vmax.f32 %v10489_v38, 0.0  ;;  %v10608_v58 = vadd.f32 %v10607_v23, %v16158_v24  ;;  %v10492_v29 = vpop.f32.mrb[230].mxu1 }
 0x512   :  { %12522 = vst [vmem:[#allocation5 + $0xd10] sm:$0xff] %v11962_v9  ;;  %v11960_v39 = vmul.f32 %v18230_v40, %v11032_v53  ;;  %v11104_v1 = vmax.f32 %v10606_v0, 0.0  ;;  %v10493_v46 = vadd.f32 %v10492_v29, %v16158_v24  ;;  %v10494_v6 = vpop.f32.mrb[231].mxu1 }
 0x513   :  { %12523 = vst [vmem:[#allocation5 + $0xd18] sm:$0xff] %v11963_v35  ;;  %v11961_v62 = vmul.f32 %v18236_v16, %v11033_v47  ;;  %v11105_v32 = vmax.f32 %v10608_v58, 0.0  ;;  %v10611_v15 = vpop.f32.mrb[232].mxu0  ;;  %v10495_v56 = vadd.f32 %v10494_v6, %v16158_v24 }
 0x514   :  { %12520 = vst [vmem:[#allocation5 + $0xd00] sm:$0xff] %v11960_v39  ;;  %v12032_v5 = vmul.f32 %v18218_v33, %v11104_v1  ;;  %v11102_v57 = vmax.f32 %v10493_v46, 0.0  ;;  %v10612_v36 = vadd.f32 %v10611_v15, %v16176_v34  ;;  %v10613_v37 = vpop.f32.mrb[233].mxu0 }
 0x515   :  { %12521 = vst [vmem:[#allocation5 + $0xd08] sm:$0xff] %v11961_v62  ;;  %v12033_v7 = vmul.f32 %v18224_v49, %v11105_v32  ;;  %v11103_v4 = vmax.f32 %v10495_v56, 0.0  ;;  %v10614_v27 = vadd.f32 %v10613_v37, %v16176_v34  ;;  %v10498_v11 = vpop.f32.mrb[232].mxu1 }
 0x516   :  { %12592 = vst [vmem:[#allocation5 + $0xf40] sm:$0xff] %v12032_v5  ;;  %v12030_v42 = vmul.f32 %v18230_v40, %v11102_v57  ;;  %v11174_v41 = vmax.f32 %v10612_v36, 0.0  ;;  %v10499_v24 = vadd.f32 %v10498_v11, %v16176_v34  ;;  %v10500_v63 = vpop.f32.mrb[233].mxu1 }
 0x517   :  { %12593 = vst [vmem:[#allocation5 + $0xf48] sm:$0xff] %v12033_v7  ;;  %v12031_v50 = vmul.f32 %v18236_v16, %v11103_v4  ;;  %v11175_v44 = vmax.f32 %v10614_v27, 0.0  ;;  %v10501_v14 = vadd.f32 %v10500_v63, %v16176_v34 }
 0x518   :  { %12590 = vst [vmem:[#allocation5 + $0xf30] sm:$0xff] %v12030_v42  ;;  %v12102_v48 = vmul.f32 %v18218_v33, %v11174_v41  ;;  %v11172_v52 = vmax.f32 %v10499_v24, 0.0 }
 0x519   :  { %12591 = vst [vmem:[#allocation5 + $0xf38] sm:$0xff] %v12031_v50  ;;  %v12103_v54 = vmul.f32 %v18224_v49, %v11175_v44  ;;  %v11173_v21 = vmax.f32 %v10501_v14, 0.0 }
 0x51a   :  { %12662 = vst [vmem:[#allocation5 + $0x1170] sm:$0xff] %v12102_v48  ;;  %v12100_v43 = vmul.f32 %v18230_v40, %v11172_v52 }
 0x51b   :  { %12663 = vst [vmem:[#allocation5 + $0x1178] sm:$0xff] %v12103_v54  ;;  %v12101_v2 = vmul.f32 %v18236_v16, %v11173_v21 }
 0x51c   :  { %12660 = vst [vmem:[#allocation5 + $0x1160] sm:$0xff] %v12100_v43 }
 0x51d   :  { %12661 = vst [vmem:[#allocation5 + $0x1168] sm:$0xff] %v12101_v2 }
 0x51e   :  { %13787 = shalt.err (!%p13784_p12)
}
 0x51f   :  { %s13788_s24 = scalar_lea.hbm %s18318_s8, 71680 }
 0x520   :  { %p13789_p13 = scmp.ne.s32.totalorder %s18318_s8, %s13788_s24  ;;  %p13792_p0 = scmp.lt.u32.totalorder %s13788_s24, %s18318_s8 }
 0x522   :  { %p13794_p1 = pnand %p13792_p0, %p13789_p13 }
 0x524   :  { %13797 = shalt.err (!%p13794_p1)
}
 0x525   :  { %s13806_s28 = smov 8960   ;;  %s13807_s0 = smov 560  }
 0x526   :  { %12675 = dma.vmem_to_hbm [thread:$0]  %s12670_s1, 71680, %s18318_s8, [#allocation4], %s13806_s28, %s13806_s28, %s13807_s0  }
 0x527   :  { %13800 = dma.done.wait [#allocation4], 71680  }
 0x528   :  { %13801 = vsyncadd [#allocation4], 4294895616 }
 0x529   :  { %12679 = vsyncpa [#allocation3], 1 }
 0x52a   :  { %12680 = vsyncpa [#allocation4], 1 }

</bundles_post_ra>
